<compile_context>
chip_gen: v6e
topology: v6e:2x2x1
jax: 0.10.0
libtpu: 0.0.40
codegen_flags: <defaults>
</compile_context>

<pallas_src>
import functools

import jax
import jax.numpy as jnp
from jax.experimental import pallas as pl
from jax.experimental.pallas import tpu as pltpu

# ----------------------------- configuration -------------------------------
B = 2              # batch
FR = 8             # frames (temporal sequence before cls token)
C = 3              # image channels
H = W = 16         # frame spatial size
P = 4              # ViT patch size
NH = NW = H // P   # patch grid
NPATCH = NH * NW   # patches per frame
E = 64             # embed dim (stands in for 768)
HEADS = 4          # attention heads (stands in for 12)
DH = E // HEADS    # head dim
VIT_DEPTH = 2      # ViT blocks (stands in for 12)
VIT_MLP = 4 * E
LF_LAYERS = 3      # Longformer layers
LF_FFN = 4 * E     # intermediate_size
WINDOW = 4         # one-sided attention window (stands in for 18)
MAX_POS = 288      # max_position_embeddings
PAD_TOKEN_ID = -1
INTERMEDIATE_VEC = 8   # mlp_head[-1] = Linear(768, 2 * intermediate_vec)
LN_EPS = 1e-5

_VMEM_LIMIT = 32 * 1024 * 1024
_SQRT2_INV = 0.7071067811865476


# --------------------------- in-kernel helpers ------------------------------
def _ln(x, g, b, eps):
    mean = jnp.mean(x, axis=-1, keepdims=True)
    var = jnp.mean(jnp.square(x - mean), axis=-1, keepdims=True)
    return (x - mean) * jax.lax.rsqrt(var + eps) * g + b


def _gelu(x):
    # exact GELU (matches torch.nn.GELU default)
    return 0.5 * x * (1.0 + jax.lax.erf(x * _SQRT2_INV))


def _mha_proj(h_in, wqkv_ref, bqkv_ref, projw_ref, bias, *, heads, dh, scale):
    """Multi-head attention + output projection, all heads unrolled in-kernel.

    h_in:      (S, E) value
    wqkv_ref:  (3*heads, E, dh) Ref  -- [q heads | k heads | v heads]
    bqkv_ref:  (3*heads, 1, dh) Ref
    projw_ref: (heads, dh, E)   Ref
    bias:      (S, S) additive mask value or None
    Returns    sum_h softmax(q_h k_h^T * scale + bias) v_h @ projw[h] -> (S, E)
    (identical to concatenating heads then multiplying by the full proj matrix).
    """
    acc = None
    for h in range(heads):
        q = jnp.dot(h_in, wqkv_ref[h],
                    preferred_element_type=jnp.float32) + bqkv_ref[h]
        k = jnp.dot(h_in, wqkv_ref[heads + h],
                    preferred_element_type=jnp.float32) + bqkv_ref[heads + h]
        v = jnp.dot(h_in, wqkv_ref[2 * heads + h],
                    preferred_element_type=jnp.float32) + bqkv_ref[2 * heads + h]
        s = jnp.dot(q, k.T, preferred_element_type=jnp.float32) * scale
        if bias is not None:
            s = s + bias
        s = s - jnp.max(s, axis=-1, keepdims=True)
        p = jnp.exp(s)
        p = p * pl.reciprocal(jnp.sum(p, axis=-1, keepdims=True), approx=True)
        o = jnp.dot(p, v, preferred_element_type=jnp.float32)
        contrib = jnp.dot(o, projw_ref[h], preferred_element_type=jnp.float32)
        acc = contrib if acc is None else acc + contrib
    return acc


def _full_spec(shape):
    nd = len(shape)
    return pl.BlockSpec(shape, lambda i, nd=nd: (0,) * nd)


# ------------------------------ Pallas kernels ------------------------------
def _linear_kernel(x_ref, w_ref, b_ref, o_ref):
    o_ref[...] = (jnp.dot(x_ref[...], w_ref[...],
                          preferred_element_type=jnp.float32) + b_ref[...])


def patch_embed(x2, w, b, *, row_blocks=2):
    """Patch-embedding matmul, tiled over rows (parallel grid for v7x 2xTC)."""
    M, K = x2.shape
    N = w.shape[1]
    bm = M // row_blocks
    return pl.pallas_call(
        _linear_kernel,
        out_shape=jax.ShapeDtypeStruct((M, N), jnp.float32),
        grid=(row_blocks,),
        in_specs=[pl.BlockSpec((bm, K), lambda i: (i, 0)),
                  pl.BlockSpec((K, N), lambda i: (0, 0)),
                  pl.BlockSpec((1, N), lambda i: (0, 0))],
        out_specs=pl.BlockSpec((bm, N), lambda i: (i, 0)),
        compiler_params=pltpu.CompilerParams(
            dimension_semantics=("parallel",), vmem_limit_bytes=_VMEM_LIMIT),
    )(x2, w, b)


def _layernorm_kernel(x_ref, g_ref, b_ref, o_ref, *, eps):
    o_ref[...] = _ln(x_ref[...], g_ref[...], b_ref[...], eps)


def layernorm(x2, gamma, beta, eps=LN_EPS):
    """Standalone LayerNorm (used only for the ViT cls norm and LF embeddings)."""
    M, D = x2.shape
    return pl.pallas_call(
        functools.partial(_layernorm_kernel, eps=eps),
        out_shape=jax.ShapeDtypeStruct((M, D), jnp.float32),
        grid=(1,),
        in_specs=[pl.BlockSpec((M, D), lambda i: (0, 0)),
                  pl.BlockSpec((1, D), lambda i: (0, 0)),
                  pl.BlockSpec((1, D), lambda i: (0, 0))],
        out_specs=pl.BlockSpec((M, D), lambda i: (0, 0)),
        compiler_params=pltpu.CompilerParams(
            dimension_semantics=("arbitrary",), vmem_limit_bytes=_VMEM_LIMIT),
    )(x2, gamma, beta)


def _vit_block_kernel(x_ref, ln1g, ln1b, wqkv, bqkv, projw, projb,
                      ln2g, ln2b, fc1w, fc1b, fc2w, fc2b, o_ref,
                      *, heads, dh, eps):
    """Fused pre-LN ViT block: LN1 -> MHA -> +res -> LN2 -> MLP(GELU) -> +res."""
    x = x_ref[0]                                          # (S, E)
    h1 = _ln(x, ln1g[...], ln1b[...], eps)
    attn = _mha_proj(h1, wqkv, bqkv, projw, None,
                     heads=heads, dh=dh, scale=dh ** -0.5)
    x = x + attn + projb[...]
    h2 = _ln(x, ln2g[...], ln2b[...], eps)
    h2 = _gelu(jnp.dot(h2, fc1w[...],
                       preferred_element_type=jnp.float32) + fc1b[...])
    x = x + jnp.dot(h2, fc2w[...],
                    preferred_element_type=jnp.float32) + fc2b[...]
    o_ref[0] = x


def vit_block(x, p):
    n, s, _ = x.shape
    kernel = functools.partial(_vit_block_kernel, heads=HEADS, dh=DH, eps=LN_EPS)
    return pl.pallas_call(
        kernel,
        out_shape=jax.ShapeDtypeStruct((n, s, E), jnp.float32),
        grid=(n,),
        in_specs=[pl.BlockSpec((1, s, E), lambda i: (i, 0, 0)),
                  _full_spec((1, E)), _full_spec((1, E)),
                  _full_spec((3 * HEADS, E, DH)), _full_spec((3 * HEADS, 1, DH)),
                  _full_spec((HEADS, DH, E)), _full_spec((1, E)),
                  _full_spec((1, E)), _full_spec((1, E)),
                  _full_spec((E, VIT_MLP)), _full_spec((1, VIT_MLP)),
                  _full_spec((VIT_MLP, E)), _full_spec((1, E))],
        out_specs=pl.BlockSpec((1, s, E), lambda i: (i, 0, 0)),
        compiler_params=pltpu.CompilerParams(
            dimension_semantics=("parallel",), vmem_limit_bytes=_VMEM_LIMIT),
    )(x, p["ln1_g"], p["ln1_b"], p["wqkv"], p["bqkv"], p["proj_w"], p["proj_b"],
      p["ln2_g"], p["ln2_b"], p["fc1_w"], p["fc1_b"], p["fc2_w"], p["fc2_b"])


def _lf_layer_kernel(x_ref, bias_ref, wqkv, bqkv, aow, aob, alng, alnb,
                     iw, ib, ow, ob, olng, olnb, o_ref, *, heads, dh, eps):
    """Fused post-LN Longformer layer: MHA(+bias) -> +res -> LN -> FFN -> +res -> LN."""
    x = x_ref[0]                                          # (S, E)
    attn = _mha_proj(x, wqkv, bqkv, aow, bias_ref[0],
                     heads=heads, dh=dh, scale=dh ** -0.5)
    x = _ln(x + attn + aob[...], alng[...], alnb[...], eps)
    h = _gelu(jnp.dot(x, iw[...],
                      preferred_element_type=jnp.float32) + ib[...])
    y = x + jnp.dot(h, ow[...], preferred_element_type=jnp.float32) + ob[...]
    o_ref[0] = _ln(y, olng[...], olnb[...], eps)


def longformer_layer(x, bias, p):
    b, s, _ = x.shape
    kernel = functools.partial(_lf_layer_kernel, heads=HEADS, dh=DH, eps=LN_EPS)
    return pl.pallas_call(
        kernel,
        out_shape=jax.ShapeDtypeStruct((b, s, E), jnp.float32),
        grid=(b,),
        in_specs=[pl.BlockSpec((1, s, E), lambda i: (i, 0, 0)),
                  pl.BlockSpec((1, s, s), lambda i: (i, 0, 0)),   # bias shared by all heads
                  _full_spec((3 * HEADS, E, DH)), _full_spec((3 * HEADS, 1, DH)),
                  _full_spec((HEADS, DH, E)), _full_spec((1, E)),
                  _full_spec((1, E)), _full_spec((1, E)),
                  _full_spec((E, LF_FFN)), _full_spec((1, LF_FFN)),
                  _full_spec((LF_FFN, E)), _full_spec((1, E)),
                  _full_spec((1, E)), _full_spec((1, E))],
        out_specs=pl.BlockSpec((1, s, E), lambda i: (i, 0, 0)),
        compiler_params=pltpu.CompilerParams(
            dimension_semantics=("parallel",), vmem_limit_bytes=_VMEM_LIMIT),
    )(x, bias, p["wqkv"], p["bqkv"], p["ao_w"], p["ao_b"],
      p["a_ln_g"], p["a_ln_b"], p["i_w"], p["i_b"], p["o_w"], p["o_b"],
      p["o_ln_g"], p["o_ln_b"])


def _head_kernel(x_ref, lng, lnb, w1, b1, w2, b2, o_ref, *, eps):
    h = _ln(x_ref[...], lng[...], lnb[...], eps)
    h = _gelu(jnp.dot(h, w1[...], preferred_element_type=jnp.float32) + b1[...])
    o_ref[...] = jnp.dot(h, w2[...], preferred_element_type=jnp.float32) + b2[...]


def mlp_head(x2, p):
    """Fused LayerNorm + Linear + GELU + Linear (dropout is identity in eval)."""
    M, D = x2.shape
    N = p["fc2_w"].shape[1]
    return pl.pallas_call(
        functools.partial(_head_kernel, eps=LN_EPS),
        out_shape=jax.ShapeDtypeStruct((M, N), jnp.float32),
        grid=(1,),
        in_specs=[pl.BlockSpec((M, D), lambda i: (0, 0)),
                  _full_spec((1, E)), _full_spec((1, E)),
                  _full_spec((E, E)), _full_spec((1, E)),
                  _full_spec((E, N)), _full_spec((1, N))],
        out_specs=pl.BlockSpec((M, N), lambda i: (0, 0)),
        compiler_params=pltpu.CompilerParams(
            dimension_semantics=("arbitrary",), vmem_limit_bytes=_VMEM_LIMIT),
    )(x2, p["ln_g"], p["ln_b"], p["fc1_w"], p["fc1_b"], p["fc2_w"], p["fc2_b"])


# ------------------------------ model pieces --------------------------------
def vit_backbone(frames, p):
    """frames: (BF, C, H, W)  ->  (BF, E) cls features (num_classes=0 head)."""
    bf = frames.shape[0]
    # Patch-embed conv (kernel==stride==P) expressed as a matmul over patches.
    patches = frames.reshape(bf, C, NH, P, NW, P)
    patches = patches.transpose(0, 2, 4, 1, 3, 5).reshape(bf * NH * NW, C * P * P)
    tok = patch_embed(patches, p["patch_w"], p["patch_b"]).reshape(bf, NPATCH, E)
    cls = jnp.broadcast_to(p["cls_token"], (bf, 1, E))
    x = jnp.concatenate([cls, tok], axis=1) + p["pos_embed"]
    for blk in p["blocks"]:
        x = vit_block(x, blk)
    # Final ViT LayerNorm applied only to the cls tokens (LN is per-token, so
    # this is identical to norming the whole sequence and then taking [:, 0]).
    return layernorm(x[:, 0], p["norm_g"], p["norm_b"])          # (bf, E)


def vtn_forward(params, x, position_ids):
    """x: (B, F, C, H, W) float32, position_ids: (B, F) int32."""
    b, fr = x.shape[0], x.shape[1]
    feats = vit_backbone(x.reshape(b * fr, C, H, W), params["vit"])
    feats = feats.reshape(b, fr, E)

    attention_mask = jnp.ones((b, fr), jnp.int32)
    cls = jnp.broadcast_to(params["cls_token"], (b, 1, E))
    seq = jnp.concatenate([cls, feats], axis=1)                  # (b, fr+1, E)
    attention_mask = jnp.concatenate(
        [attention_mask, jnp.ones((b, 1), jnp.int32)], axis=1)
    attention_mask = attention_mask.at[:, 0].set(2)              # cls = global attention

    # ---- pad_to_window_size_local ----
    w2 = 2 * WINDOW
    seqlen = seq.shape[1]
    pad_len = (w2 - seqlen % w2) % w2
    seq = jnp.pad(seq, ((0, 0), (0, pad_len), (0, 0)),
                  constant_values=float(PAD_TOKEN_ID))
    attention_mask = jnp.pad(attention_mask, ((0, 0), (0, pad_len)))
    position_ids = jnp.pad(position_ids, ((0, 0), (1, pad_len)))
    s = seq.shape[1]

    token_type_ids = jnp.zeros((b, s), jnp.int32).at[:, 0].set(1)
    mask = (attention_mask != 0).astype(jnp.int32)
    position_ids = position_ids.astype(jnp.int32) % (MAX_POS - 2)
    position_ids = position_ids.at[:, 0].set(MAX_POS - 2)
    position_ids = jnp.where(mask == 0, MAX_POS - 1, position_ids)

    # ---- Longformer embeddings (word_embeddings is None; inputs_embeds used) ----
    lf = params["lf"]
    emb = (seq
           + jnp.take(lf["pos_table"], position_ids, axis=0)
           + jnp.take(lf["type_table"], token_type_ids, axis=0))
    hstate = layernorm(emb.reshape(-1, E),
                       lf["emb_ln_g"], lf["emb_ln_b"]).reshape(b, s, E)

    # ---- sliding-window + global attention as an additive mask (b, s, s) ----
    # Kept per-batch (NOT broadcast to heads); all heads share it inside the
    # fused layer kernel.
    # TODO(synk): HF Longformer's chunked sliding_chunks kernel and its separate
    # global q/k/v projections are folded into one masked dense attention here.
    is_global = attention_mask > 1
    idx = jnp.arange(s)
    local = jnp.abs(idx[:, None] - idx[None, :]) <= WINDOW
    allowed = (attention_mask[:, None, :] != 0) & (
        local[None, :, :] | is_global[:, :, None] | is_global[:, None, :])
    bias = jnp.where(allowed, 0.0, -1e9).astype(jnp.float32)     # (b, s, s)

    for layer in lf["layers"]:
        hstate = longformer_layer(hstate, bias, layer)

    # ---- mlp head (dropout is identity in eval) ----
    y = mlp_head(hstate.reshape(-1, E), params["head"])
    return y.reshape(b, s, 2 * INTERMEDIATE_VEC)


# ------------------------------ parameter init ------------------------------
def init_params(key):
    keys = iter(jax.random.split(key, 256))

    def rnd(shape, scale=0.02):
        return jax.random.normal(next(keys), shape, dtype=jnp.float32) * scale

    ones = lambda shape: jnp.ones(shape, jnp.float32)
    zeros = lambda shape: jnp.zeros(shape, jnp.float32)

    vit_blocks = []
    for _ in range(VIT_DEPTH):
        vit_blocks.append(dict(
            ln1_g=ones((1, E)), ln1_b=zeros((1, E)),
            # stacked per-head projections: [q heads | k heads | v heads]
            wqkv=rnd((3 * HEADS, E, DH)), bqkv=zeros((3 * HEADS, 1, DH)),
            proj_w=rnd((HEADS, DH, E)), proj_b=zeros((1, E)),
            ln2_g=ones((1, E)), ln2_b=zeros((1, E)),
            fc1_w=rnd((E, VIT_MLP)), fc1_b=zeros((1, VIT_MLP)),
            fc2_w=rnd((VIT_MLP, E)), fc2_b=zeros((1, E)),
        ))
    vit = dict(
        patch_w=rnd((C * P * P, E)), patch_b=zeros((1, E)),
        cls_token=rnd((1, 1, E)), pos_embed=rnd((1, NPATCH + 1, E)),
        blocks=vit_blocks,
        norm_g=ones((1, E)), norm_b=zeros((1, E)),
    )

    lf_layers = []
    for _ in range(LF_LAYERS):
        lf_layers.append(dict(
            wqkv=rnd((3 * HEADS, E, DH)), bqkv=zeros((3 * HEADS, 1, DH)),
            ao_w=rnd((HEADS, DH, E)), ao_b=zeros((1, E)),
            a_ln_g=ones((1, E)), a_ln_b=zeros((1, E)),
            i_w=rnd((E, LF_FFN)), i_b=zeros((1, LF_FFN)),
            o_w=rnd((LF_FFN, E)), o_b=zeros((1, E)),
            o_ln_g=ones((1, E)), o_ln_b=zeros((1, E)),
        ))
    lf = dict(
        pos_table=rnd((MAX_POS, E)), type_table=rnd((2, E)),
        emb_ln_g=ones((1, E)), emb_ln_b=zeros((1, E)),
        layers=lf_layers,
    )

    head = dict(
        ln_g=ones((1, E)), ln_b=zeros((1, E)),
        fc1_w=rnd((E, E)), fc1_b=zeros((1, E)),
        fc2_w=rnd((E, 2 * INTERMEDIATE_VEC)), fc2_b=zeros((1, 2 * INTERMEDIATE_VEC)),
    )

    return dict(vit=vit, cls_token=rnd((1, 1, E)), lf=lf, head=head)


# --------------------------------- main --------------------------------------
if __name__ == "__main__":
    key = jax.random.PRNGKey(0)
    pkey, xkey = jax.random.split(key)
    params = init_params(pkey)

    x = jax.random.normal(xkey, (B, FR, C, H, W), dtype=jnp.float32)
    position_ids = jnp.tile(jnp.arange(FR, dtype=jnp.int32), (B, 1))

    out = jax.jit(vtn_forward)(params, x, position_ids)
    out = jax.block_until_ready(out)

    w2 = 2 * WINDOW
    padded_seq = FR + 1 + (w2 - (FR + 1) % w2) % w2
    assert out.shape == (B, padded_seq, 2 * INTERMEDIATE_VEC), out.shape
    assert jnp.all(jnp.isfinite(out))
    print("KERNEL_OK")
</pallas_src>

<mosaic_0001>
module attributes {stable_mosaic.version = 11 : i64} {
  func.func @_linear_kernel(%arg0: i32, %arg1: memref<128x48xf32, #tpu.memory_space<vmem>>, %arg2: memref<48x64xf32, #tpu.memory_space<vmem>>, %arg3: memref<1x64xf32, #tpu.memory_space<vmem>>, %arg4: memref<128x64xf32, #tpu.memory_space<vmem>>) attributes {dimension_semantics = [#tpu.dimension_semantics<parallel>], iteration_bounds = array<i64: 2>, scalar_prefetch = 0 : i64, scratch_operands = 0 : i64, tpu.core_type = #tpu.core_type<tc>, window_params = [{transform_indices = @transform_0, window_bounds = array<i64: 128, 48>}, {pipeline_mode = #tpu.pipeline_mode<synchronous>, transform_indices = @transform_1, window_bounds = array<i64: 48, 64>}, {pipeline_mode = #tpu.pipeline_mode<synchronous>, transform_indices = @transform_2, window_bounds = array<i64: 1, 64>}, {transform_indices = @transform_3, window_bounds = array<i64: 128, 64>}]} {
    %c0 = arith.constant 0 : index
    %c0_0 = arith.constant 0 : index
    %0 = vector.load %arg1[%c0, %c0_0] : memref<128x48xf32, #tpu.memory_space<vmem>>, vector<128x48xf32>
    %c0_1 = arith.constant 0 : index
    %c0_2 = arith.constant 0 : index
    %1 = vector.load %arg2[%c0_1, %c0_2] : memref<48x64xf32, #tpu.memory_space<vmem>>, vector<48x64xf32>
    %cst = arith.constant dense<0.000000e+00> : vector<128x64xf32>
    %2 = tpu.matmul %0, %1, %cst {dimension_numbers = #tpu.dot_dimension_numbers<[1], [0], [0], [1], [0, 0, 1, 1], [], []>} : vector<128x48xf32>, vector<48x64xf32>, vector<128x64xf32> -> vector<128x64xf32>
    %c0_3 = arith.constant 0 : index
    %c0_4 = arith.constant 0 : index
    %3 = vector.load %arg3[%c0_3, %c0_4] : memref<1x64xf32, #tpu.memory_space<vmem>>, vector<1x64xf32>
    %4 = vector.broadcast %3 : vector<1x64xf32> to vector<128x64xf32>
    %5 = arith.addf %2, %4 : vector<128x64xf32>
    %c0_5 = arith.constant 0 : index
    %c0_6 = arith.constant 0 : index
    %6 = vector.load %arg4[%c0_5, %c0_6] : memref<128x64xf32, #tpu.memory_space<vmem>>, vector<128x64xf32>
    tpu.vector_store %arg4[%c0_5, %c0_6], %5 {strides = array<i32>} : memref<128x64xf32, #tpu.memory_space<vmem>>, vector<128x64xf32>,
    return
  }
  func.func @transform_0(%arg0: i32) -> (i32, i32) {
    %c0_i32 = arith.constant 0 : i32
    %c0_i32_0 = arith.constant 0 : i32
    return %arg0, %c0_i32 : i32, i32
  }
  func.func @transform_1(%arg0: i32) -> (i32, i32) {
    %c0_i32 = arith.constant 0 : i32
    %c0_i32_0 = arith.constant 0 : i32
    %c0_i32_1 = arith.constant 0 : i32
    return %c0_i32, %c0_i32_0 : i32, i32
  }
  func.func @transform_2(%arg0: i32) -> (i32, i32) {
    %c0_i32 = arith.constant 0 : i32
    %c0_i32_0 = arith.constant 0 : i32
    %c0_i32_1 = arith.constant 0 : i32
    return %c0_i32, %c0_i32_0 : i32, i32
  }
  func.func @transform_3(%arg0: i32) -> (i32, i32) {
    %c0_i32 = arith.constant 0 : i32
    %c0_i32_0 = arith.constant 0 : i32
    return %arg0, %c0_i32 : i32, i32
  }
}

module attributes {stable_mosaic.version = 11 : i64} {
  func.func @_vit_block_kernel(%arg0: i32, %arg1: memref<1x17x64xf32, #tpu.memory_space<vmem>>, %arg2: memref<1x64xf32, #tpu.memory_space<vmem>>, %arg3: memref<1x64xf32, #tpu.memory_space<vmem>>, %arg4: memref<12x64x16xf32, #tpu.memory_space<vmem>>, %arg5: memref<12x1x16xf32, #tpu.memory_space<vmem>>, %arg6: memref<4x16x64xf32, #tpu.memory_space<vmem>>, %arg7: memref<1x64xf32, #tpu.memory_space<vmem>>, %arg8: memref<1x64xf32, #tpu.memory_space<vmem>>, %arg9: memref<1x64xf32, #tpu.memory_space<vmem>>, %arg10: memref<64x256xf32, #tpu.memory_space<vmem>>, %arg11: memref<1x256xf32, #tpu.memory_space<vmem>>, %arg12: memref<256x64xf32, #tpu.memory_space<vmem>>, %arg13: memref<1x64xf32, #tpu.memory_space<vmem>>, %arg14: memref<1x17x64xf32, #tpu.memory_space<vmem>>) attributes {dimension_semantics = [#tpu.dimension_semantics<parallel>], iteration_bounds = array<i64: 16>, scalar_prefetch = 0 : i64, scratch_operands = 0 : i64, tpu.core_type = #tpu.core_type<tc>, window_params = [{transform_indices = @transform_0, window_bounds = array<i64: 1, 17, 64>}, {pipeline_mode = #tpu.pipeline_mode<synchronous>, transform_indices = @transform_1, window_bounds = array<i64: 1, 64>}, {pipeline_mode = #tpu.pipeline_mode<synchronous>, transform_indices = @transform_2, window_bounds = array<i64: 1, 64>}, {pipeline_mode = #tpu.pipeline_mode<synchronous>, transform_indices = @transform_3, window_bounds = array<i64: 12, 64, 16>}, {pipeline_mode = #tpu.pipeline_mode<synchronous>, transform_indices = @transform_4, window_bounds = array<i64: 12, 1, 16>}, {pipeline_mode = #tpu.pipeline_mode<synchronous>, transform_indices = @transform_5, window_bounds = array<i64: 4, 16, 64>}, {pipeline_mode = #tpu.pipeline_mode<synchronous>, transform_indices = @transform_6, window_bounds = array<i64: 1, 64>}, {pipeline_mode = #tpu.pipeline_mode<synchronous>, transform_indices = @transform_7, window_bounds = array<i64: 1, 64>}, {pipeline_mode = #tpu.pipeline_mode<synchronous>, transform_indices = @transform_8, window_bounds = array<i64: 1, 64>}, {pipeline_mode = #tpu.pipeline_mode<synchronous>, transform_indices = @transform_9, window_bounds = array<i64: 64, 256>}, {pipeline_mode = #tpu.pipeline_mode<synchronous>, transform_indices = @transform_10, window_bounds = array<i64: 1, 256>}, {pipeline_mode = #tpu.pipeline_mode<synchronous>, transform_indices = @transform_11, window_bounds = array<i64: 256, 64>}, {pipeline_mode = #tpu.pipeline_mode<synchronous>, transform_indices = @transform_12, window_bounds = array<i64: 1, 64>}, {transform_indices = @transform_13, window_bounds = array<i64: 1, 17, 64>}]} {
    %c0 = arith.constant 0 : index
    %c0_0 = arith.constant 0 : index
    %c0_1 = arith.constant 0 : index
    %0 = vector.load %arg1[%c0, %c0_0, %c0_1] : memref<1x17x64xf32, #tpu.memory_space<vmem>>, vector<1x17x64xf32>
    %1 = vector.shape_cast %0 : vector<1x17x64xf32> to vector<17x64xf32>
    %c0_2 = arith.constant 0 : index
    %c0_3 = arith.constant 0 : index
    %2 = vector.load %arg2[%c0_2, %c0_3] : memref<1x64xf32, #tpu.memory_space<vmem>>, vector<1x64xf32>
    %c0_4 = arith.constant 0 : index
    %c0_5 = arith.constant 0 : index
    %3 = vector.load %arg3[%c0_4, %c0_5] : memref<1x64xf32, #tpu.memory_space<vmem>>, vector<1x64xf32>
    %cst = arith.constant dense<0.000000e+00> : vector<17xf32>
    %4 = vector.multi_reduction <add>, %1, %cst [1] : vector<17x64xf32> to vector<17xf32>
    %5 = vector.shape_cast %4 : vector<17xf32> to vector<17x1xf32>
    %cst_6 = arith.constant 6.400000e+01 : f32
    %6 = vector.broadcast %cst_6 : f32 to vector<17x1xf32>
    %7 = arith.divf %5, %6 : vector<17x1xf32>
    %8 = vector.broadcast %7 : vector<17x1xf32> to vector<17x64xf32>
    %9 = arith.subf %1, %8 : vector<17x64xf32>
    %10 = arith.mulf %9, %9 : vector<17x64xf32>
    %cst_7 = arith.constant dense<0.000000e+00> : vector<17xf32>
    %11 = vector.multi_reduction <add>, %10, %cst_7 [1] : vector<17x64xf32> to vector<17xf32>
    %12 = vector.shape_cast %11 : vector<17xf32> to vector<17x1xf32>
    %cst_8 = arith.constant 6.400000e+01 : f32
    %13 = vector.broadcast %cst_8 : f32 to vector<17x1xf32>
    %14 = arith.divf %12, %13 : vector<17x1xf32>
    %15 = vector.broadcast %7 : vector<17x1xf32> to vector<17x64xf32>
    %16 = arith.subf %1, %15 : vector<17x64xf32>
    %cst_9 = arith.constant 9.99999974E-6 : f32
    %17 = vector.broadcast %cst_9 : f32 to vector<17x1xf32>
    %18 = arith.addf %14, %17 : vector<17x1xf32>
    %19 = math.rsqrt %18 : vector<17x1xf32>
    %20 = vector.broadcast %19 : vector<17x1xf32> to vector<17x64xf32>
    %21 = arith.mulf %16, %20 : vector<17x64xf32>
    %22 = vector.broadcast %2 : vector<1x64xf32> to vector<17x64xf32>
    %23 = arith.mulf %21, %22 : vector<17x64xf32>
    %24 = vector.broadcast %3 : vector<1x64xf32> to vector<17x64xf32>
    %25 = arith.addf %23, %24 : vector<17x64xf32>
    %c0_10 = arith.constant 0 : index
    %c0_11 = arith.constant 0 : index
    %c0_12 = arith.constant 0 : index
    %26 = vector.load %arg4[%c0_10, %c0_11, %c0_12] : memref<12x64x16xf32, #tpu.memory_space<vmem>>, vector<1x64x16xf32>
    %27 = vector.shape_cast %26 : vector<1x64x16xf32> to vector<64x16xf32>
    %cst_13 = arith.constant dense<0.000000e+00> : vector<17x16xf32>
    %28 = tpu.matmul %25, %27, %cst_13 {dimension_numbers = #tpu.dot_dimension_numbers<[1], [0], [0], [1], [0, 0, 1, 1], [], []>} : vector<17x64xf32>, vector<64x16xf32>, vector<17x16xf32> -> vector<17x16xf32>
    %c0_14 = arith.constant 0 : index
    %c0_15 = arith.constant 0 : index
    %c0_16 = arith.constant 0 : index
    %29 = vector.load %arg5[%c0_14, %c0_15, %c0_16] : memref<12x1x16xf32, #tpu.memory_space<vmem>>, vector<1x1x16xf32>
    %30 = vector.shape_cast %29 : vector<1x1x16xf32> to vector<1x16xf32>
    %31 = vector.broadcast %30 : vector<1x16xf32> to vector<17x16xf32>
    %32 = arith.addf %28, %31 : vector<17x16xf32>
    %c4 = arith.constant 4 : index
    %c0_17 = arith.constant 0 : index
    %c0_18 = arith.constant 0 : index
    %33 = vector.load %arg4[%c4, %c0_17, %c0_18] : memref<12x64x16xf32, #tpu.memory_space<vmem>>, vector<1x64x16xf32>
    %34 = vector.shape_cast %33 : vector<1x64x16xf32> to vector<64x16xf32>
    %cst_19 = arith.constant dense<0.000000e+00> : vector<17x16xf32>
    %35 = tpu.matmul %25, %34, %cst_19 {dimension_numbers = #tpu.dot_dimension_numbers<[1], [0], [0], [1], [0, 0, 1, 1], [], []>} : vector<17x64xf32>, vector<64x16xf32>, vector<17x16xf32> -> vector<17x16xf32>
    %c4_20 = arith.constant 4 : index
    %c0_21 = arith.constant 0 : index
    %c0_22 = arith.constant 0 : index
    %36 = vector.load %arg5[%c4_20, %c0_21, %c0_22] : memref<12x1x16xf32, #tpu.memory_space<vmem>>, vector<1x1x16xf32>
    %37 = vector.shape_cast %36 : vector<1x1x16xf32> to vector<1x16xf32>
    %38 = vector.broadcast %37 : vector<1x16xf32> to vector<17x16xf32>
    %39 = arith.addf %35, %38 : vector<17x16xf32>
    %c8 = arith.constant 8 : index
    %c0_23 = arith.constant 0 : index
    %c0_24 = arith.constant 0 : index
    %40 = vector.load %arg4[%c8, %c0_23, %c0_24] : memref<12x64x16xf32, #tpu.memory_space<vmem>>, vector<1x64x16xf32>
    %41 = vector.shape_cast %40 : vector<1x64x16xf32> to vector<64x16xf32>
    %cst_25 = arith.constant dense<0.000000e+00> : vector<17x16xf32>
    %42 = tpu.matmul %25, %41, %cst_25 {dimension_numbers = #tpu.dot_dimension_numbers<[1], [0], [0], [1], [0, 0, 1, 1], [], []>} : vector<17x64xf32>, vector<64x16xf32>, vector<17x16xf32> -> vector<17x16xf32>
    %c8_26 = arith.constant 8 : index
    %c0_27 = arith.constant 0 : index
    %c0_28 = arith.constant 0 : index
    %43 = vector.load %arg5[%c8_26, %c0_27, %c0_28] : memref<12x1x16xf32, #tpu.memory_space<vmem>>, vector<1x1x16xf32>
    %44 = vector.shape_cast %43 : vector<1x1x16xf32> to vector<1x16xf32>
    %45 = vector.broadcast %44 : vector<1x16xf32> to vector<17x16xf32>
    %46 = arith.addf %42, %45 : vector<17x16xf32>
    %47 = tpu.transpose %39, [1, 0] : vector<17x16xf32> -> vector<16x17xf32>
    %cst_29 = arith.constant dense<0.000000e+00> : vector<17x17xf32>
    %48 = tpu.matmul %32, %47, %cst_29 {dimension_numbers = #tpu.dot_dimension_numbers<[1], [0], [0], [1], [0, 0, 1, 1], [], []>} : vector<17x16xf32>, vector<16x17xf32>, vector<17x17xf32> -> vector<17x17xf32>
    %cst_30 = arith.constant 2.500000e-01 : f32
    %49 = vector.broadcast %cst_30 : f32 to vector<17x17xf32>
    %50 = arith.mulf %48, %49 : vector<17x17xf32>
    %cst_31 = arith.constant dense<0xFF800000> : vector<17xf32>
    %51 = vector.multi_reduction <maximumf>, %50, %cst_31 [1] : vector<17x17xf32> to vector<17xf32>
    %52 = vector.shape_cast %51 : vector<17xf32> to vector<17x1xf32>
    %53 = vector.broadcast %52 : vector<17x1xf32> to vector<17x17xf32>
    %54 = arith.subf %50, %53 : vector<17x17xf32>
    %55 = math.exp %54 : vector<17x17xf32>
    %cst_32 = arith.constant dense<0.000000e+00> : vector<17xf32>
    %56 = vector.multi_reduction <add>, %55, %cst_32 [1] : vector<17x17xf32> to vector<17xf32>
    %57 = vector.shape_cast %56 : vector<17xf32> to vector<17x1xf32>
    %58 = tpu.reciprocal %57 {approx = true} : vector<17x1xf32> -> vector<17x1xf32>
    %59 = vector.broadcast %58 : vector<17x1xf32> to vector<17x17xf32>
    %60 = arith.mulf %55, %59 : vector<17x17xf32>
    %cst_33 = arith.constant dense<0.000000e+00> : vector<17x16xf32>
    %61 = tpu.matmul %60, %46, %cst_33 {dimension_numbers = #tpu.dot_dimension_numbers<[1], [0], [0], [1], [0, 0, 1, 1], [], []>} : vector<17x17xf32>, vector<17x16xf32>, vector<17x16xf32> -> vector<17x16xf32>
    %c0_34 = arith.constant 0 : index
    %c0_35 = arith.constant 0 : index
    %c0_36 = arith.constant 0 : index
    %62 = vector.load %arg6[%c0_34, %c0_35, %c0_36] : memref<4x16x64xf32, #tpu.memory_space<vmem>>, vector<1x16x64xf32>
    %63 = vector.shape_cast %62 : vector<1x16x64xf32> to vector<16x64xf32>
    %cst_37 = arith.constant dense<0.000000e+00> : vector<17x64xf32>
    %64 = tpu.matmul %61, %63, %cst_37 {dimension_numbers = #tpu.dot_dimension_numbers<[1], [0], [0], [1], [0, 0, 1, 1], [], []>} : vector<17x16xf32>, vector<16x64xf32>, vector<17x64xf32> -> vector<17x64xf32>
    %c1 = arith.constant 1 : index
    %c0_38 = arith.constant 0 : index
    %c0_39 = arith.constant 0 : index
    %65 = vector.load %arg4[%c1, %c0_38, %c0_39] : memref<12x64x16xf32, #tpu.memory_space<vmem>>, vector<1x64x16xf32>
    %66 = vector.shape_cast %65 : vector<1x64x16xf32> to vector<64x16xf32>
    %cst_40 = arith.constant dense<0.000000e+00> : vector<17x16xf32>
    %67 = tpu.matmul %25, %66, %cst_40 {dimension_numbers = #tpu.dot_dimension_numbers<[1], [0], [0], [1], [0, 0, 1, 1], [], []>} : vector<17x64xf32>, vector<64x16xf32>, vector<17x16xf32> -> vector<17x16xf32>
    %c1_41 = arith.constant 1 : index
    %c0_42 = arith.constant 0 : index
    %c0_43 = arith.constant 0 : index
    %68 = vector.load %arg5[%c1_41, %c0_42, %c0_43] : memref<12x1x16xf32, #tpu.memory_space<vmem>>, vector<1x1x16xf32>
    %69 = vector.shape_cast %68 : vector<1x1x16xf32> to vector<1x16xf32>
    %70 = vector.broadcast %69 : vector<1x16xf32> to vector<17x16xf32>
    %71 = arith.addf %67, %70 : vector<17x16xf32>
    %c5 = arith.constant 5 : index
    %c0_44 = arith.constant 0 : index
    %c0_45 = arith.constant 0 : index
    %72 = vector.load %arg4[%c5, %c0_44, %c0_45] : memref<12x64x16xf32, #tpu.memory_space<vmem>>, vector<1x64x16xf32>
    %73 = vector.shape_cast %72 : vector<1x64x16xf32> to vector<64x16xf32>
    %cst_46 = arith.constant dense<0.000000e+00> : vector<17x16xf32>
    %74 = tpu.matmul %25, %73, %cst_46 {dimension_numbers = #tpu.dot_dimension_numbers<[1], [0], [0], [1], [0, 0, 1, 1], [], []>} : vector<17x64xf32>, vector<64x16xf32>, vector<17x16xf32> -> vector<17x16xf32>
    %c5_47 = arith.constant 5 : index
    %c0_48 = arith.constant 0 : index
    %c0_49 = arith.constant 0 : index
    %75 = vector.load %arg5[%c5_47, %c0_48, %c0_49] : memref<12x1x16xf32, #tpu.memory_space<vmem>>, vector<1x1x16xf32>
    %76 = vector.shape_cast %75 : vector<1x1x16xf32> to vector<1x16xf32>
    %77 = vector.broadcast %76 : vector<1x16xf32> to vector<17x16xf32>
    %78 = arith.addf %74, %77 : vector<17x16xf32>
    %c9 = arith.constant 9 : index
    %c0_50 = arith.constant 0 : index
    %c0_51 = arith.constant 0 : index
    %79 = vector.load %arg4[%c9, %c0_50, %c0_51] : memref<12x64x16xf32, #tpu.memory_space<vmem>>, vector<1x64x16xf32>
    %80 = vector.shape_cast %79 : vector<1x64x16xf32> to vector<64x16xf32>
    %cst_52 = arith.constant dense<0.000000e+00> : vector<17x16xf32>
    %81 = tpu.matmul %25, %80, %cst_52 {dimension_numbers = #tpu.dot_dimension_numbers<[1], [0], [0], [1], [0, 0, 1, 1], [], []>} : vector<17x64xf32>, vector<64x16xf32>, vector<17x16xf32> -> vector<17x16xf32>
    %c9_53 = arith.constant 9 : index
    %c0_54 = arith.constant 0 : index
    %c0_55 = arith.constant 0 : index
    %82 = vector.load %arg5[%c9_53, %c0_54, %c0_55] : memref<12x1x16xf32, #tpu.memory_space<vmem>>, vector<1x1x16xf32>
    %83 = vector.shape_cast %82 : vector<1x1x16xf32> to vector<1x16xf32>
    %84 = vector.broadcast %83 : vector<1x16xf32> to vector<17x16xf32>
    %85 = arith.addf %81, %84 : vector<17x16xf32>
    %86 = tpu.transpose %78, [1, 0] : vector<17x16xf32> -> vector<16x17xf32>
    %cst_56 = arith.constant dense<0.000000e+00> : vector<17x17xf32>
    %87 = tpu.matmul %71, %86, %cst_56 {dimension_numbers = #tpu.dot_dimension_numbers<[1], [0], [0], [1], [0, 0, 1, 1], [], []>} : vector<17x16xf32>, vector<16x17xf32>, vector<17x17xf32> -> vector<17x17xf32>
    %cst_57 = arith.constant 2.500000e-01 : f32
    %88 = vector.broadcast %cst_57 : f32 to vector<17x17xf32>
    %89 = arith.mulf %87, %88 : vector<17x17xf32>
    %cst_58 = arith.constant dense<0xFF800000> : vector<17xf32>
    %90 = vector.multi_reduction <maximumf>, %89, %cst_58 [1] : vector<17x17xf32> to vector<17xf32>
    %91 = vector.shape_cast %90 : vector<17xf32> to vector<17x1xf32>
    %92 = vector.broadcast %91 : vector<17x1xf32> to vector<17x17xf32>
    %93 = arith.subf %89, %92 : vector<17x17xf32>
    %94 = math.exp %93 : vector<17x17xf32>
    %cst_59 = arith.constant dense<0.000000e+00> : vector<17xf32>
    %95 = vector.multi_reduction <add>, %94, %cst_59 [1] : vector<17x17xf32> to vector<17xf32>
    %96 = vector.shape_cast %95 : vector<17xf32> to vector<17x1xf32>
    %97 = tpu.reciprocal %96 {approx = true} : vector<17x1xf32> -> vector<17x1xf32>
    %98 = vector.broadcast %97 : vector<17x1xf32> to vector<17x17xf32>
    %99 = arith.mulf %94, %98 : vector<17x17xf32>
    %cst_60 = arith.constant dense<0.000000e+00> : vector<17x16xf32>
    %100 = tpu.matmul %99, %85, %cst_60 {dimension_numbers = #tpu.dot_dimension_numbers<[1], [0], [0], [1], [0, 0, 1, 1], [], []>} : vector<17x17xf32>, vector<17x16xf32>, vector<17x16xf32> -> vector<17x16xf32>
    %c1_61 = arith.constant 1 : index
    %c0_62 = arith.constant 0 : index
    %c0_63 = arith.constant 0 : index
    %101 = vector.load %arg6[%c1_61, %c0_62, %c0_63] : memref<4x16x64xf32, #tpu.memory_space<vmem>>, vector<1x16x64xf32>
    %102 = vector.shape_cast %101 : vector<1x16x64xf32> to vector<16x64xf32>
    %cst_64 = arith.constant dense<0.000000e+00> : vector<17x64xf32>
    %103 = tpu.matmul %100, %102, %cst_64 {dimension_numbers = #tpu.dot_dimension_numbers<[1], [0], [0], [1], [0, 0, 1, 1], [], []>} : vector<17x16xf32>, vector<16x64xf32>, vector<17x64xf32> -> vector<17x64xf32>
    %104 = arith.addf %64, %103 : vector<17x64xf32>
    %c2 = arith.constant 2 : index
    %c0_65 = arith.constant 0 : index
    %c0_66 = arith.constant 0 : index
    %105 = vector.load %arg4[%c2, %c0_65, %c0_66] : memref<12x64x16xf32, #tpu.memory_space<vmem>>, vector<1x64x16xf32>
    %106 = vector.shape_cast %105 : vector<1x64x16xf32> to vector<64x16xf32>
    %cst_67 = arith.constant dense<0.000000e+00> : vector<17x16xf32>
    %107 = tpu.matmul %25, %106, %cst_67 {dimension_numbers = #tpu.dot_dimension_numbers<[1], [0], [0], [1], [0, 0, 1, 1], [], []>} : vector<17x64xf32>, vector<64x16xf32>, vector<17x16xf32> -> vector<17x16xf32>
    %c2_68 = arith.constant 2 : index
    %c0_69 = arith.constant 0 : index
    %c0_70 = arith.constant 0 : index
    %108 = vector.load %arg5[%c2_68, %c0_69, %c0_70] : memref<12x1x16xf32, #tpu.memory_space<vmem>>, vector<1x1x16xf32>
    %109 = vector.shape_cast %108 : vector<1x1x16xf32> to vector<1x16xf32>
    %110 = vector.broadcast %109 : vector<1x16xf32> to vector<17x16xf32>
    %111 = arith.addf %107, %110 : vector<17x16xf32>
    %c6 = arith.constant 6 : index
    %c0_71 = arith.constant 0 : index
    %c0_72 = arith.constant 0 : index
    %112 = vector.load %arg4[%c6, %c0_71, %c0_72] : memref<12x64x16xf32, #tpu.memory_space<vmem>>, vector<1x64x16xf32>
    %113 = vector.shape_cast %112 : vector<1x64x16xf32> to vector<64x16xf32>
    %cst_73 = arith.constant dense<0.000000e+00> : vector<17x16xf32>
    %114 = tpu.matmul %25, %113, %cst_73 {dimension_numbers = #tpu.dot_dimension_numbers<[1], [0], [0], [1], [0, 0, 1, 1], [], []>} : vector<17x64xf32>, vector<64x16xf32>, vector<17x16xf32> -> vector<17x16xf32>
    %c6_74 = arith.constant 6 : index
    %c0_75 = arith.constant 0 : index
    %c0_76 = arith.constant 0 : index
    %115 = vector.load %arg5[%c6_74, %c0_75, %c0_76] : memref<12x1x16xf32, #tpu.memory_space<vmem>>, vector<1x1x16xf32>
    %116 = vector.shape_cast %115 : vector<1x1x16xf32> to vector<1x16xf32>
    %117 = vector.broadcast %116 : vector<1x16xf32> to vector<17x16xf32>
    %118 = arith.addf %114, %117 : vector<17x16xf32>
    %c10 = arith.constant 10 : index
    %c0_77 = arith.constant 0 : index
    %c0_78 = arith.constant 0 : index
    %119 = vector.load %arg4[%c10, %c0_77, %c0_78] : memref<12x64x16xf32, #tpu.memory_space<vmem>>, vector<1x64x16xf32>
    %120 = vector.shape_cast %119 : vector<1x64x16xf32> to vector<64x16xf32>
    %cst_79 = arith.constant dense<0.000000e+00> : vector<17x16xf32>
    %121 = tpu.matmul %25, %120, %cst_79 {dimension_numbers = #tpu.dot_dimension_numbers<[1], [0], [0], [1], [0, 0, 1, 1], [], []>} : vector<17x64xf32>, vector<64x16xf32>, vector<17x16xf32> -> vector<17x16xf32>
    %c10_80 = arith.constant 10 : index
    %c0_81 = arith.constant 0 : index
    %c0_82 = arith.constant 0 : index
    %122 = vector.load %arg5[%c10_80, %c0_81, %c0_82] : memref<12x1x16xf32, #tpu.memory_space<vmem>>, vector<1x1x16xf32>
    %123 = vector.shape_cast %122 : vector<1x1x16xf32> to vector<1x16xf32>
    %124 = vector.broadcast %123 : vector<1x16xf32> to vector<17x16xf32>
    %125 = arith.addf %121, %124 : vector<17x16xf32>
    %126 = tpu.transpose %118, [1, 0] : vector<17x16xf32> -> vector<16x17xf32>
    %cst_83 = arith.constant dense<0.000000e+00> : vector<17x17xf32>
    %127 = tpu.matmul %111, %126, %cst_83 {dimension_numbers = #tpu.dot_dimension_numbers<[1], [0], [0], [1], [0, 0, 1, 1], [], []>} : vector<17x16xf32>, vector<16x17xf32>, vector<17x17xf32> -> vector<17x17xf32>
    %cst_84 = arith.constant 2.500000e-01 : f32
    %128 = vector.broadcast %cst_84 : f32 to vector<17x17xf32>
    %129 = arith.mulf %127, %128 : vector<17x17xf32>
    %cst_85 = arith.constant dense<0xFF800000> : vector<17xf32>
    %130 = vector.multi_reduction <maximumf>, %129, %cst_85 [1] : vector<17x17xf32> to vector<17xf32>
    %131 = vector.shape_cast %130 : vector<17xf32> to vector<17x1xf32>
    %132 = vector.broadcast %131 : vector<17x1xf32> to vector<17x17xf32>
    %133 = arith.subf %129, %132 : vector<17x17xf32>
    %134 = math.exp %133 : vector<17x17xf32>
    %cst_86 = arith.constant dense<0.000000e+00> : vector<17xf32>
    %135 = vector.multi_reduction <add>, %134, %cst_86 [1] : vector<17x17xf32> to vector<17xf32>
    %136 = vector.shape_cast %135 : vector<17xf32> to vector<17x1xf32>
    %137 = tpu.reciprocal %136 {approx = true} : vector<17x1xf32> -> vector<17x1xf32>
    %138 = vector.broadcast %137 : vector<17x1xf32> to vector<17x17xf32>
    %139 = arith.mulf %134, %138 : vector<17x17xf32>
    %cst_87 = arith.constant dense<0.000000e+00> : vector<17x16xf32>
    %140 = tpu.matmul %139, %125, %cst_87 {dimension_numbers = #tpu.dot_dimension_numbers<[1], [0], [0], [1], [0, 0, 1, 1], [], []>} : vector<17x17xf32>, vector<17x16xf32>, vector<17x16xf32> -> vector<17x16xf32>
    %c2_88 = arith.constant 2 : index
    %c0_89 = arith.constant 0 : index
    %c0_90 = arith.constant 0 : index
    %141 = vector.load %arg6[%c2_88, %c0_89, %c0_90] : memref<4x16x64xf32, #tpu.memory_space<vmem>>, vector<1x16x64xf32>
    %142 = vector.shape_cast %141 : vector<1x16x64xf32> to vector<16x64xf32>
    %cst_91 = arith.constant dense<0.000000e+00> : vector<17x64xf32>
    %143 = tpu.matmul %140, %142, %cst_91 {dimension_numbers = #tpu.dot_dimension_numbers<[1], [0], [0], [1], [0, 0, 1, 1], [], []>} : vector<17x16xf32>, vector<16x64xf32>, vector<17x64xf32> -> vector<17x64xf32>
    %144 = arith.addf %104, %143 : vector<17x64xf32>
    %c3 = arith.constant 3 : index
    %c0_92 = arith.constant 0 : index
    %c0_93 = arith.constant 0 : index
    %145 = vector.load %arg4[%c3, %c0_92, %c0_93] : memref<12x64x16xf32, #tpu.memory_space<vmem>>, vector<1x64x16xf32>
    %146 = vector.shape_cast %145 : vector<1x64x16xf32> to vector<64x16xf32>
    %cst_94 = arith.constant dense<0.000000e+00> : vector<17x16xf32>
    %147 = tpu.matmul %25, %146, %cst_94 {dimension_numbers = #tpu.dot_dimension_numbers<[1], [0], [0], [1], [0, 0, 1, 1], [], []>} : vector<17x64xf32>, vector<64x16xf32>, vector<17x16xf32> -> vector<17x16xf32>
    %c3_95 = arith.constant 3 : index
    %c0_96 = arith.constant 0 : index
    %c0_97 = arith.constant 0 : index
    %148 = vector.load %arg5[%c3_95, %c0_96, %c0_97] : memref<12x1x16xf32, #tpu.memory_space<vmem>>, vector<1x1x16xf32>
    %149 = vector.shape_cast %148 : vector<1x1x16xf32> to vector<1x16xf32>
    %150 = vector.broadcast %149 : vector<1x16xf32> to vector<17x16xf32>
    %151 = arith.addf %147, %150 : vector<17x16xf32>
    %c7 = arith.constant 7 : index
    %c0_98 = arith.constant 0 : index
    %c0_99 = arith.constant 0 : index
    %152 = vector.load %arg4[%c7, %c0_98, %c0_99] : memref<12x64x16xf32, #tpu.memory_space<vmem>>, vector<1x64x16xf32>
    %153 = vector.shape_cast %152 : vector<1x64x16xf32> to vector<64x16xf32>
    %cst_100 = arith.constant dense<0.000000e+00> : vector<17x16xf32>
    %154 = tpu.matmul %25, %153, %cst_100 {dimension_numbers = #tpu.dot_dimension_numbers<[1], [0], [0], [1], [0, 0, 1, 1], [], []>} : vector<17x64xf32>, vector<64x16xf32>, vector<17x16xf32> -> vector<17x16xf32>
    %c7_101 = arith.constant 7 : index
    %c0_102 = arith.constant 0 : index
    %c0_103 = arith.constant 0 : index
    %155 = vector.load %arg5[%c7_101, %c0_102, %c0_103] : memref<12x1x16xf32, #tpu.memory_space<vmem>>, vector<1x1x16xf32>
    %156 = vector.shape_cast %155 : vector<1x1x16xf32> to vector<1x16xf32>
    %157 = vector.broadcast %156 : vector<1x16xf32> to vector<17x16xf32>
    %158 = arith.addf %154, %157 : vector<17x16xf32>
    %c11 = arith.constant 11 : index
    %c0_104 = arith.constant 0 : index
    %c0_105 = arith.constant 0 : index
    %159 = vector.load %arg4[%c11, %c0_104, %c0_105] : memref<12x64x16xf32, #tpu.memory_space<vmem>>, vector<1x64x16xf32>
    %160 = vector.shape_cast %159 : vector<1x64x16xf32> to vector<64x16xf32>
    %cst_106 = arith.constant dense<0.000000e+00> : vector<17x16xf32>
    %161 = tpu.matmul %25, %160, %cst_106 {dimension_numbers = #tpu.dot_dimension_numbers<[1], [0], [0], [1], [0, 0, 1, 1], [], []>} : vector<17x64xf32>, vector<64x16xf32>, vector<17x16xf32> -> vector<17x16xf32>
    %c11_107 = arith.constant 11 : index
    %c0_108 = arith.constant 0 : index
    %c0_109 = arith.constant 0 : index
    %162 = vector.load %arg5[%c11_107, %c0_108, %c0_109] : memref<12x1x16xf32, #tpu.memory_space<vmem>>, vector<1x1x16xf32>
    %163 = vector.shape_cast %162 : vector<1x1x16xf32> to vector<1x16xf32>
    %164 = vector.broadcast %163 : vector<1x16xf32> to vector<17x16xf32>
    %165 = arith.addf %161, %164 : vector<17x16xf32>
    %166 = tpu.transpose %158, [1, 0] : vector<17x16xf32> -> vector<16x17xf32>
    %cst_110 = arith.constant dense<0.000000e+00> : vector<17x17xf32>
    %167 = tpu.matmul %151, %166, %cst_110 {dimension_numbers = #tpu.dot_dimension_numbers<[1], [0], [0], [1], [0, 0, 1, 1], [], []>} : vector<17x16xf32>, vector<16x17xf32>, vector<17x17xf32> -> vector<17x17xf32>
    %cst_111 = arith.constant 2.500000e-01 : f32
    %168 = vector.broadcast %cst_111 : f32 to vector<17x17xf32>
    %169 = arith.mulf %167, %168 : vector<17x17xf32>
    %cst_112 = arith.constant dense<0xFF800000> : vector<17xf32>
    %170 = vector.multi_reduction <maximumf>, %169, %cst_112 [1] : vector<17x17xf32> to vector<17xf32>
    %171 = vector.shape_cast %170 : vector<17xf32> to vector<17x1xf32>
    %172 = vector.broadcast %171 : vector<17x1xf32> to vector<17x17xf32>
    %173 = arith.subf %169, %172 : vector<17x17xf32>
    %174 = math.exp %173 : vector<17x17xf32>
    %cst_113 = arith.constant dense<0.000000e+00> : vector<17xf32>
    %175 = vector.multi_reduction <add>, %174, %cst_113 [1] : vector<17x17xf32> to vector<17xf32>
    %176 = vector.shape_cast %175 : vector<17xf32> to vector<17x1xf32>
    %177 = tpu.reciprocal %176 {approx = true} : vector<17x1xf32> -> vector<17x1xf32>
    %178 = vector.broadcast %177 : vector<17x1xf32> to vector<17x17xf32>
    %179 = arith.mulf %174, %178 : vector<17x17xf32>
    %cst_114 = arith.constant dense<0.000000e+00> : vector<17x16xf32>
    %180 = tpu.matmul %179, %165, %cst_114 {dimension_numbers = #tpu.dot_dimension_numbers<[1], [0], [0], [1], [0, 0, 1, 1], [], []>} : vector<17x17xf32>, vector<17x16xf32>, vector<17x16xf32> -> vector<17x16xf32>
    %c3_115 = arith.constant 3 : index
    %c0_116 = arith.constant 0 : index
    %c0_117 = arith.constant 0 : index
    %181 = vector.load %arg6[%c3_115, %c0_116, %c0_117] : memref<4x16x64xf32, #tpu.memory_space<vmem>>, vector<1x16x64xf32>
    %182 = vector.shape_cast %181 : vector<1x16x64xf32> to vector<16x64xf32>
    %cst_118 = arith.constant dense<0.000000e+00> : vector<17x64xf32>
    %183 = tpu.matmul %180, %182, %cst_118 {dimension_numbers = #tpu.dot_dimension_numbers<[1], [0], [0], [1], [0, 0, 1, 1], [], []>} : vector<17x16xf32>, vector<16x64xf32>, vector<17x64xf32> -> vector<17x64xf32>
    %184 = arith.addf %144, %183 : vector<17x64xf32>
    %185 = arith.addf %1, %184 : vector<17x64xf32>
    %c0_119 = arith.constant 0 : index
    %c0_120 = arith.constant 0 : index
    %186 = vector.load %arg7[%c0_119, %c0_120] : memref<1x64xf32, #tpu.memory_space<vmem>>, vector<1x64xf32>
    %187 = vector.broadcast %186 : vector<1x64xf32> to vector<17x64xf32>
    %188 = arith.addf %185, %187 : vector<17x64xf32>
    %c0_121 = arith.constant 0 : index
    %c0_122 = arith.constant 0 : index
    %189 = vector.load %arg8[%c0_121, %c0_122] : memref<1x64xf32, #tpu.memory_space<vmem>>, vector<1x64xf32>
    %c0_123 = arith.constant 0 : index
    %c0_124 = arith.constant 0 : index
    %190 = vector.load %arg9[%c0_123, %c0_124] : memref<1x64xf32, #tpu.memory_space<vmem>>, vector<1x64xf32>
    %cst_125 = arith.constant dense<0.000000e+00> : vector<17xf32>
    %191 = vector.multi_reduction <add>, %188, %cst_125 [1] : vector<17x64xf32> to vector<17xf32>
    %192 = vector.shape_cast %191 : vector<17xf32> to vector<17x1xf32>
    %cst_126 = arith.constant 6.400000e+01 : f32
    %193 = vector.broadcast %cst_126 : f32 to vector<17x1xf32>
    %194 = arith.divf %192, %193 : vector<17x1xf32>
    %195 = vector.broadcast %194 : vector<17x1xf32> to vector<17x64xf32>
    %196 = arith.subf %188, %195 : vector<17x64xf32>
    %197 = arith.mulf %196, %196 : vector<17x64xf32>
    %cst_127 = arith.constant dense<0.000000e+00> : vector<17xf32>
    %198 = vector.multi_reduction <add>, %197, %cst_127 [1] : vector<17x64xf32> to vector<17xf32>
    %199 = vector.shape_cast %198 : vector<17xf32> to vector<17x1xf32>
    %cst_128 = arith.constant 6.400000e+01 : f32
    %200 = vector.broadcast %cst_128 : f32 to vector<17x1xf32>
    %201 = arith.divf %199, %200 : vector<17x1xf32>
    %202 = vector.broadcast %194 : vector<17x1xf32> to vector<17x64xf32>
    %203 = arith.subf %188, %202 : vector<17x64xf32>
    %cst_129 = arith.constant 9.99999974E-6 : f32
    %204 = vector.broadcast %cst_129 : f32 to vector<17x1xf32>
    %205 = arith.addf %201, %204 : vector<17x1xf32>
    %206 = math.rsqrt %205 : vector<17x1xf32>
    %207 = vector.broadcast %206 : vector<17x1xf32> to vector<17x64xf32>
    %208 = arith.mulf %203, %207 : vector<17x64xf32>
    %209 = vector.broadcast %189 : vector<1x64xf32> to vector<17x64xf32>
    %210 = arith.mulf %208, %209 : vector<17x64xf32>
    %211 = vector.broadcast %190 : vector<1x64xf32> to vector<17x64xf32>
    %212 = arith.addf %210, %211 : vector<17x64xf32>
    %c0_130 = arith.constant 0 : index
    %c0_131 = arith.constant 0 : index
    %213 = vector.load %arg10[%c0_130, %c0_131] : memref<64x256xf32, #tpu.memory_space<vmem>>, vector<64x256xf32>
    %cst_132 = arith.constant dense<0.000000e+00> : vector<17x256xf32>
    %214 = tpu.matmul %212, %213, %cst_132 {dimension_numbers = #tpu.dot_dimension_numbers<[1], [0], [0], [1], [0, 0, 1, 1], [], []>} : vector<17x64xf32>, vector<64x256xf32>, vector<17x256xf32> -> vector<17x256xf32>
    %c0_133 = arith.constant 0 : index
    %c0_134 = arith.constant 0 : index
    %215 = vector.load %arg11[%c0_133, %c0_134] : memref<1x256xf32, #tpu.memory_space<vmem>>, vector<1x256xf32>
    %216 = vector.broadcast %215 : vector<1x256xf32> to vector<17x256xf32>
    %217 = arith.addf %214, %216 : vector<17x256xf32>
    %cst_135 = arith.constant 5.000000e-01 : f32
    %218 = vector.broadcast %cst_135 : f32 to vector<17x256xf32>
    %219 = arith.mulf %218, %217 : vector<17x256xf32>
    %cst_136 = arith.constant 0.707106769 : f32
    %220 = vector.broadcast %cst_136 : f32 to vector<17x256xf32>
    %221 = arith.mulf %217, %220 : vector<17x256xf32>
    %222 = math.erf %221 : vector<17x256xf32>
    %cst_137 = arith.constant 1.000000e+00 : f32
    %223 = vector.broadcast %cst_137 : f32 to vector<17x256xf32>
    %224 = arith.addf %223, %222 : vector<17x256xf32>
    %225 = arith.mulf %219, %224 : vector<17x256xf32>
    %c0_138 = arith.constant 0 : index
    %c0_139 = arith.constant 0 : index
    %226 = vector.load %arg12[%c0_138, %c0_139] : memref<256x64xf32, #tpu.memory_space<vmem>>, vector<256x64xf32>
    %cst_140 = arith.constant dense<0.000000e+00> : vector<17x64xf32>
    %227 = tpu.matmul %225, %226, %cst_140 {dimension_numbers = #tpu.dot_dimension_numbers<[1], [0], [0], [1], [0, 0, 1, 1], [], []>} : vector<17x256xf32>, vector<256x64xf32>, vector<17x64xf32> -> vector<17x64xf32>
    %228 = arith.addf %188, %227 : vector<17x64xf32>
    %c0_141 = arith.constant 0 : index
    %c0_142 = arith.constant 0 : index
    %229 = vector.load %arg13[%c0_141, %c0_142] : memref<1x64xf32, #tpu.memory_space<vmem>>, vector<1x64xf32>
    %230 = vector.broadcast %229 : vector<1x64xf32> to vector<17x64xf32>
    %231 = arith.addf %228, %230 : vector<17x64xf32>
    %c0_143 = arith.constant 0 : index
    %c0_144 = arith.constant 0 : index
    %c0_145 = arith.constant 0 : index
    %232 = vector.load %arg14[%c0_143, %c0_144, %c0_145] : memref<1x17x64xf32, #tpu.memory_space<vmem>>, vector<1x17x64xf32>
    %233 = vector.shape_cast %232 : vector<1x17x64xf32> to vector<17x64xf32>
    %234 = vector.shape_cast %231 : vector<17x64xf32> to vector<1x17x64xf32>
    tpu.vector_store %arg14[%c0_143, %c0_144, %c0_145], %234 {strides = array<i32>} : memref<1x17x64xf32, #tpu.memory_space<vmem>>, vector<1x17x64xf32>,
    return
  }
  func.func @transform_0(%arg0: i32) -> (i32, i32, i32) {
    %c0_i32 = arith.constant 0 : i32
    %c0_i32_0 = arith.constant 0 : i32
    %c0_i32_1 = arith.constant 0 : i32
    return %arg0, %c0_i32, %c0_i32_0 : i32, i32, i32
  }
  func.func @transform_1(%arg0: i32) -> (i32, i32) {
    %c0_i32 = arith.constant 0 : i32
    %c0_i32_0 = arith.constant 0 : i32
    %c0_i32_1 = arith.constant 0 : i32
    return %c0_i32, %c0_i32_0 : i32, i32
  }
  func.func @transform_2(%arg0: i32) -> (i32, i32) {
    %c0_i32 = arith.constant 0 : i32
    %c0_i32_0 = arith.constant 0 : i32
    %c0_i32_1 = arith.constant 0 : i32
    return %c0_i32, %c0_i32_0 : i32, i32
  }
  func.func @transform_3(%arg0: i32) -> (i32, i32, i32) {
    %c0_i32 = arith.constant 0 : i32
    %c0_i32_0 = arith.constant 0 : i32
    %c0_i32_1 = arith.constant 0 : i32
    %c0_i32_2 = arith.constant 0 : i32
    return %c0_i32, %c0_i32_0, %c0_i32_1 : i32, i32, i32
  }
  func.func @transform_4(%arg0: i32) -> (i32, i32, i32) {
    %c0_i32 = arith.constant 0 : i32
    %c0_i32_0 = arith.constant 0 : i32
    %c0_i32_1 = arith.constant 0 : i32
    %c0_i32_2 = arith.constant 0 : i32
    return %c0_i32, %c0_i32_0, %c0_i32_1 : i32, i32, i32
  }
  func.func @transform_5(%arg0: i32) -> (i32, i32, i32) {
    %c0_i32 = arith.constant 0 : i32
    %c0_i32_0 = arith.constant 0 : i32
    %c0_i32_1 = arith.constant 0 : i32
    %c0_i32_2 = arith.constant 0 : i32
    return %c0_i32, %c0_i32_0, %c0_i32_1 : i32, i32, i32
  }
  func.func @transform_6(%arg0: i32) -> (i32, i32) {
    %c0_i32 = arith.constant 0 : i32
    %c0_i32_0 = arith.constant 0 : i32
    %c0_i32_1 = arith.constant 0 : i32
    return %c0_i32, %c0_i32_0 : i32, i32
  }
  func.func @transform_7(%arg0: i32) -> (i32, i32) {
    %c0_i32 = arith.constant 0 : i32
    %c0_i32_0 = arith.constant 0 : i32
    %c0_i32_1 = arith.constant 0 : i32
    return %c0_i32, %c0_i32_0 : i32, i32
  }
  func.func @transform_8(%arg0: i32) -> (i32, i32) {
    %c0_i32 = arith.constant 0 : i32
    %c0_i32_0 = arith.constant 0 : i32
    %c0_i32_1 = arith.constant 0 : i32
    return %c0_i32, %c0_i32_0 : i32, i32
  }
  func.func @transform_9(%arg0: i32) -> (i32, i32) {
    %c0_i32 = arith.constant 0 : i32
    %c0_i32_0 = arith.constant 0 : i32
    %c0_i32_1 = arith.constant 0 : i32
    return %c0_i32, %c0_i32_0 : i32, i32
  }
  func.func @transform_10(%arg0: i32) -> (i32, i32) {
    %c0_i32 = arith.constant 0 : i32
    %c0_i32_0 = arith.constant 0 : i32
    %c0_i32_1 = arith.constant 0 : i32
    return %c0_i32, %c0_i32_0 : i32, i32
  }
  func.func @transform_11(%arg0: i32) -> (i32, i32) {
    %c0_i32 = arith.constant 0 : i32
    %c0_i32_0 = arith.constant 0 : i32
    %c0_i32_1 = arith.constant 0 : i32
    return %c0_i32, %c0_i32_0 : i32, i32
  }
  func.func @transform_12(%arg0: i32) -> (i32, i32) {
    %c0_i32 = arith.constant 0 : i32
    %c0_i32_0 = arith.constant 0 : i32
    %c0_i32_1 = arith.constant 0 : i32
    return %c0_i32, %c0_i32_0 : i32, i32
  }
  func.func @transform_13(%arg0: i32) -> (i32, i32, i32) {
    %c0_i32 = arith.constant 0 : i32
    %c0_i32_0 = arith.constant 0 : i32
    %c0_i32_1 = arith.constant 0 : i32
    return %arg0, %c0_i32, %c0_i32_0 : i32, i32, i32
  }
}

module attributes {stable_mosaic.version = 11 : i64} {
  func.func @_layernorm_kernel(%arg0: i32, %arg1: memref<16x64xf32, #tpu.memory_space<vmem>>, %arg2: memref<1x64xf32, #tpu.memory_space<vmem>>, %arg3: memref<1x64xf32, #tpu.memory_space<vmem>>, %arg4: memref<16x64xf32, #tpu.memory_space<vmem>>) attributes {dimension_semantics = [#tpu.dimension_semantics<arbitrary>], iteration_bounds = array<i64: 1>, scalar_prefetch = 0 : i64, scratch_operands = 0 : i64, tpu.core_type = #tpu.core_type<tc>, window_params = [{pipeline_mode = #tpu.pipeline_mode<synchronous>, transform_indices = @transform_0, window_bounds = array<i64: 16, 64>}, {pipeline_mode = #tpu.pipeline_mode<synchronous>, transform_indices = @transform_1, window_bounds = array<i64: 1, 64>}, {pipeline_mode = #tpu.pipeline_mode<synchronous>, transform_indices = @transform_2, window_bounds = array<i64: 1, 64>}, {pipeline_mode = #tpu.pipeline_mode<synchronous>, transform_indices = @transform_3, window_bounds = array<i64: 16, 64>}]} {
    %c0 = arith.constant 0 : index
    %c0_0 = arith.constant 0 : index
    %0 = vector.load %arg1[%c0, %c0_0] : memref<16x64xf32, #tpu.memory_space<vmem>>, vector<16x64xf32>
    %c0_1 = arith.constant 0 : index
    %c0_2 = arith.constant 0 : index
    %1 = vector.load %arg2[%c0_1, %c0_2] : memref<1x64xf32, #tpu.memory_space<vmem>>, vector<1x64xf32>
    %c0_3 = arith.constant 0 : index
    %c0_4 = arith.constant 0 : index
    %2 = vector.load %arg3[%c0_3, %c0_4] : memref<1x64xf32, #tpu.memory_space<vmem>>, vector<1x64xf32>
    %cst = arith.constant dense<0.000000e+00> : vector<16xf32>
    %3 = vector.multi_reduction <add>, %0, %cst [1] : vector<16x64xf32> to vector<16xf32>
    %4 = vector.shape_cast %3 : vector<16xf32> to vector<16x1xf32>
    %cst_5 = arith.constant 6.400000e+01 : f32
    %5 = vector.broadcast %cst_5 : f32 to vector<16x1xf32>
    %6 = arith.divf %4, %5 : vector<16x1xf32>
    %7 = vector.broadcast %6 : vector<16x1xf32> to vector<16x64xf32>
    %8 = arith.subf %0, %7 : vector<16x64xf32>
    %9 = arith.mulf %8, %8 : vector<16x64xf32>
    %cst_6 = arith.constant dense<0.000000e+00> : vector<16xf32>
    %10 = vector.multi_reduction <add>, %9, %cst_6 [1] : vector<16x64xf32> to vector<16xf32>
    %11 = vector.shape_cast %10 : vector<16xf32> to vector<16x1xf32>
    %cst_7 = arith.constant 6.400000e+01 : f32
    %12 = vector.broadcast %cst_7 : f32 to vector<16x1xf32>
    %13 = arith.divf %11, %12 : vector<16x1xf32>
    %14 = vector.broadcast %6 : vector<16x1xf32> to vector<16x64xf32>
    %15 = arith.subf %0, %14 : vector<16x64xf32>
    %cst_8 = arith.constant 9.99999974E-6 : f32
    %16 = vector.broadcast %cst_8 : f32 to vector<16x1xf32>
    %17 = arith.addf %13, %16 : vector<16x1xf32>
    %18 = math.rsqrt %17 : vector<16x1xf32>
    %19 = vector.broadcast %18 : vector<16x1xf32> to vector<16x64xf32>
    %20 = arith.mulf %15, %19 : vector<16x64xf32>
    %21 = vector.broadcast %1 : vector<1x64xf32> to vector<16x64xf32>
    %22 = arith.mulf %20, %21 : vector<16x64xf32>
    %23 = vector.broadcast %2 : vector<1x64xf32> to vector<16x64xf32>
    %24 = arith.addf %22, %23 : vector<16x64xf32>
    %c0_9 = arith.constant 0 : index
    %c0_10 = arith.constant 0 : index
    %25 = vector.load %arg4[%c0_9, %c0_10] : memref<16x64xf32, #tpu.memory_space<vmem>>, vector<16x64xf32>
    tpu.vector_store %arg4[%c0_9, %c0_10], %24 {strides = array<i32>} : memref<16x64xf32, #tpu.memory_space<vmem>>, vector<16x64xf32>,
    return
  }
  func.func @transform_0(%arg0: i32) -> (i32, i32) {
    %c0_i32 = arith.constant 0 : i32
    %c0_i32_0 = arith.constant 0 : i32
    %c0_i32_1 = arith.constant 0 : i32
    return %c0_i32, %c0_i32_0 : i32, i32
  }
  func.func @transform_1(%arg0: i32) -> (i32, i32) {
    %c0_i32 = arith.constant 0 : i32
    %c0_i32_0 = arith.constant 0 : i32
    %c0_i32_1 = arith.constant 0 : i32
    return %c0_i32, %c0_i32_0 : i32, i32
  }
  func.func @transform_2(%arg0: i32) -> (i32, i32) {
    %c0_i32 = arith.constant 0 : i32
    %c0_i32_0 = arith.constant 0 : i32
    %c0_i32_1 = arith.constant 0 : i32
    return %c0_i32, %c0_i32_0 : i32, i32
  }
  func.func @transform_3(%arg0: i32) -> (i32, i32) {
    %c0_i32 = arith.constant 0 : i32
    %c0_i32_0 = arith.constant 0 : i32
    %c0_i32_1 = arith.constant 0 : i32
    return %c0_i32, %c0_i32_0 : i32, i32
  }
}

module attributes {stable_mosaic.version = 11 : i64} {
  func.func @_lf_layer_kernel(%arg0: i32, %arg1: memref<1x16x64xf32, #tpu.memory_space<vmem>>, %arg2: memref<1x16x16xf32, #tpu.memory_space<vmem>>, %arg3: memref<12x64x16xf32, #tpu.memory_space<vmem>>, %arg4: memref<12x1x16xf32, #tpu.memory_space<vmem>>, %arg5: memref<4x16x64xf32, #tpu.memory_space<vmem>>, %arg6: memref<1x64xf32, #tpu.memory_space<vmem>>, %arg7: memref<1x64xf32, #tpu.memory_space<vmem>>, %arg8: memref<1x64xf32, #tpu.memory_space<vmem>>, %arg9: memref<64x256xf32, #tpu.memory_space<vmem>>, %arg10: memref<1x256xf32, #tpu.memory_space<vmem>>, %arg11: memref<256x64xf32, #tpu.memory_space<vmem>>, %arg12: memref<1x64xf32, #tpu.memory_space<vmem>>, %arg13: memref<1x64xf32, #tpu.memory_space<vmem>>, %arg14: memref<1x64xf32, #tpu.memory_space<vmem>>, %arg15: memref<1x16x64xf32, #tpu.memory_space<vmem>>) attributes {dimension_semantics = [#tpu.dimension_semantics<parallel>], iteration_bounds = array<i64: 2>, scalar_prefetch = 0 : i64, scratch_operands = 0 : i64, tpu.core_type = #tpu.core_type<tc>, window_params = [{transform_indices = @transform_0, window_bounds = array<i64: 1, 16, 64>}, {transform_indices = @transform_1, window_bounds = array<i64: 1, 16, 16>}, {pipeline_mode = #tpu.pipeline_mode<synchronous>, transform_indices = @transform_2, window_bounds = array<i64: 12, 64, 16>}, {pipeline_mode = #tpu.pipeline_mode<synchronous>, transform_indices = @transform_3, window_bounds = array<i64: 12, 1, 16>}, {pipeline_mode = #tpu.pipeline_mode<synchronous>, transform_indices = @transform_4, window_bounds = array<i64: 4, 16, 64>}, {pipeline_mode = #tpu.pipeline_mode<synchronous>, transform_indices = @transform_5, window_bounds = array<i64: 1, 64>}, {pipeline_mode = #tpu.pipeline_mode<synchronous>, transform_indices = @transform_6, window_bounds = array<i64: 1, 64>}, {pipeline_mode = #tpu.pipeline_mode<synchronous>, transform_indices = @transform_7, window_bounds = array<i64: 1, 64>}, {pipeline_mode = #tpu.pipeline_mode<synchronous>, transform_indices = @transform_8, window_bounds = array<i64: 64, 256>}, {pipeline_mode = #tpu.pipeline_mode<synchronous>, transform_indices = @transform_9, window_bounds = array<i64: 1, 256>}, {pipeline_mode = #tpu.pipeline_mode<synchronous>, transform_indices = @transform_10, window_bounds = array<i64: 256, 64>}, {pipeline_mode = #tpu.pipeline_mode<synchronous>, transform_indices = @transform_11, window_bounds = array<i64: 1, 64>}, {pipeline_mode = #tpu.pipeline_mode<synchronous>, transform_indices = @transform_12, window_bounds = array<i64: 1, 64>}, {pipeline_mode = #tpu.pipeline_mode<synchronous>, transform_indices = @transform_13, window_bounds = array<i64: 1, 64>}, {transform_indices = @transform_14, window_bounds = array<i64: 1, 16, 64>}]} {
    %c0 = arith.constant 0 : index
    %c0_0 = arith.constant 0 : index
    %c0_1 = arith.constant 0 : index
    %0 = vector.load %arg1[%c0, %c0_0, %c0_1] : memref<1x16x64xf32, #tpu.memory_space<vmem>>, vector<1x16x64xf32>
    %1 = vector.shape_cast %0 : vector<1x16x64xf32> to vector<16x64xf32>
    %c0_2 = arith.constant 0 : index
    %c0_3 = arith.constant 0 : index
    %c0_4 = arith.constant 0 : index
    %2 = vector.load %arg2[%c0_2, %c0_3, %c0_4] : memref<1x16x16xf32, #tpu.memory_space<vmem>>, vector<1x16x16xf32>
    %3 = vector.shape_cast %2 : vector<1x16x16xf32> to vector<16x16xf32>
    %c0_5 = arith.constant 0 : index
    %c0_6 = arith.constant 0 : index
    %c0_7 = arith.constant 0 : index
    %4 = vector.load %arg3[%c0_5, %c0_6, %c0_7] : memref<12x64x16xf32, #tpu.memory_space<vmem>>, vector<1x64x16xf32>
    %5 = vector.shape_cast %4 : vector<1x64x16xf32> to vector<64x16xf32>
    %cst = arith.constant dense<0.000000e+00> : vector<16x16xf32>
    %6 = tpu.matmul %1, %5, %cst {dimension_numbers = #tpu.dot_dimension_numbers<[1], [0], [0], [1], [0, 0, 1, 1], [], []>} : vector<16x64xf32>, vector<64x16xf32>, vector<16x16xf32> -> vector<16x16xf32>
    %c0_8 = arith.constant 0 : index
    %c0_9 = arith.constant 0 : index
    %c0_10 = arith.constant 0 : index
    %7 = vector.load %arg4[%c0_8, %c0_9, %c0_10] : memref<12x1x16xf32, #tpu.memory_space<vmem>>, vector<1x1x16xf32>
    %8 = vector.shape_cast %7 : vector<1x1x16xf32> to vector<1x16xf32>
    %9 = vector.broadcast %8 : vector<1x16xf32> to vector<16x16xf32>
    %10 = arith.addf %6, %9 : vector<16x16xf32>
    %c4 = arith.constant 4 : index
    %c0_11 = arith.constant 0 : index
    %c0_12 = arith.constant 0 : index
    %11 = vector.load %arg3[%c4, %c0_11, %c0_12] : memref<12x64x16xf32, #tpu.memory_space<vmem>>, vector<1x64x16xf32>
    %12 = vector.shape_cast %11 : vector<1x64x16xf32> to vector<64x16xf32>
    %cst_13 = arith.constant dense<0.000000e+00> : vector<16x16xf32>
    %13 = tpu.matmul %1, %12, %cst_13 {dimension_numbers = #tpu.dot_dimension_numbers<[1], [0], [0], [1], [0, 0, 1, 1], [], []>} : vector<16x64xf32>, vector<64x16xf32>, vector<16x16xf32> -> vector<16x16xf32>
    %c4_14 = arith.constant 4 : index
    %c0_15 = arith.constant 0 : index
    %c0_16 = arith.constant 0 : index
    %14 = vector.load %arg4[%c4_14, %c0_15, %c0_16] : memref<12x1x16xf32, #tpu.memory_space<vmem>>, vector<1x1x16xf32>
    %15 = vector.shape_cast %14 : vector<1x1x16xf32> to vector<1x16xf32>
    %16 = vector.broadcast %15 : vector<1x16xf32> to vector<16x16xf32>
    %17 = arith.addf %13, %16 : vector<16x16xf32>
    %c8 = arith.constant 8 : index
    %c0_17 = arith.constant 0 : index
    %c0_18 = arith.constant 0 : index
    %18 = vector.load %arg3[%c8, %c0_17, %c0_18] : memref<12x64x16xf32, #tpu.memory_space<vmem>>, vector<1x64x16xf32>
    %19 = vector.shape_cast %18 : vector<1x64x16xf32> to vector<64x16xf32>
    %cst_19 = arith.constant dense<0.000000e+00> : vector<16x16xf32>
    %20 = tpu.matmul %1, %19, %cst_19 {dimension_numbers = #tpu.dot_dimension_numbers<[1], [0], [0], [1], [0, 0, 1, 1], [], []>} : vector<16x64xf32>, vector<64x16xf32>, vector<16x16xf32> -> vector<16x16xf32>
    %c8_20 = arith.constant 8 : index
    %c0_21 = arith.constant 0 : index
    %c0_22 = arith.constant 0 : index
    %21 = vector.load %arg4[%c8_20, %c0_21, %c0_22] : memref<12x1x16xf32, #tpu.memory_space<vmem>>, vector<1x1x16xf32>
    %22 = vector.shape_cast %21 : vector<1x1x16xf32> to vector<1x16xf32>
    %23 = vector.broadcast %22 : vector<1x16xf32> to vector<16x16xf32>
    %24 = arith.addf %20, %23 : vector<16x16xf32>
    %25 = tpu.transpose %17, [1, 0] : vector<16x16xf32> -> vector<16x16xf32>
    %cst_23 = arith.constant dense<0.000000e+00> : vector<16x16xf32>
    %26 = tpu.matmul %10, %25, %cst_23 {dimension_numbers = #tpu.dot_dimension_numbers<[1], [0], [0], [1], [0, 0, 1, 1], [], []>} : vector<16x16xf32>, vector<16x16xf32>, vector<16x16xf32> -> vector<16x16xf32>
    %cst_24 = arith.constant 2.500000e-01 : f32
    %27 = vector.broadcast %cst_24 : f32 to vector<16x16xf32>
    %28 = arith.mulf %26, %27 : vector<16x16xf32>
    %29 = arith.addf %28, %3 : vector<16x16xf32>
    %cst_25 = arith.constant dense<0xFF800000> : vector<16xf32>
    %30 = vector.multi_reduction <maximumf>, %29, %cst_25 [1] : vector<16x16xf32> to vector<16xf32>
    %31 = vector.shape_cast %30 : vector<16xf32> to vector<16x1xf32>
    %32 = vector.broadcast %31 : vector<16x1xf32> to vector<16x16xf32>
    %33 = arith.subf %29, %32 : vector<16x16xf32>
    %34 = math.exp %33 : vector<16x16xf32>
    %cst_26 = arith.constant dense<0.000000e+00> : vector<16xf32>
    %35 = vector.multi_reduction <add>, %34, %cst_26 [1] : vector<16x16xf32> to vector<16xf32>
    %36 = vector.shape_cast %35 : vector<16xf32> to vector<16x1xf32>
    %37 = tpu.reciprocal %36 {approx = true} : vector<16x1xf32> -> vector<16x1xf32>
    %38 = vector.broadcast %37 : vector<16x1xf32> to vector<16x16xf32>
    %39 = arith.mulf %34, %38 : vector<16x16xf32>
    %cst_27 = arith.constant dense<0.000000e+00> : vector<16x16xf32>
    %40 = tpu.matmul %39, %24, %cst_27 {dimension_numbers = #tpu.dot_dimension_numbers<[1], [0], [0], [1], [0, 0, 1, 1], [], []>} : vector<16x16xf32>, vector<16x16xf32>, vector<16x16xf32> -> vector<16x16xf32>
    %c0_28 = arith.constant 0 : index
    %c0_29 = arith.constant 0 : index
    %c0_30 = arith.constant 0 : index
    %41 = vector.load %arg5[%c0_28, %c0_29, %c0_30] : memref<4x16x64xf32, #tpu.memory_space<vmem>>, vector<1x16x64xf32>
    %42 = vector.shape_cast %41 : vector<1x16x64xf32> to vector<16x64xf32>
    %cst_31 = arith.constant dense<0.000000e+00> : vector<16x64xf32>
    %43 = tpu.matmul %40, %42, %cst_31 {dimension_numbers = #tpu.dot_dimension_numbers<[1], [0], [0], [1], [0, 0, 1, 1], [], []>} : vector<16x16xf32>, vector<16x64xf32>, vector<16x64xf32> -> vector<16x64xf32>
    %c1 = arith.constant 1 : index
    %c0_32 = arith.constant 0 : index
    %c0_33 = arith.constant 0 : index
    %44 = vector.load %arg3[%c1, %c0_32, %c0_33] : memref<12x64x16xf32, #tpu.memory_space<vmem>>, vector<1x64x16xf32>
    %45 = vector.shape_cast %44 : vector<1x64x16xf32> to vector<64x16xf32>
    %cst_34 = arith.constant dense<0.000000e+00> : vector<16x16xf32>
    %46 = tpu.matmul %1, %45, %cst_34 {dimension_numbers = #tpu.dot_dimension_numbers<[1], [0], [0], [1], [0, 0, 1, 1], [], []>} : vector<16x64xf32>, vector<64x16xf32>, vector<16x16xf32> -> vector<16x16xf32>
    %c1_35 = arith.constant 1 : index
    %c0_36 = arith.constant 0 : index
    %c0_37 = arith.constant 0 : index
    %47 = vector.load %arg4[%c1_35, %c0_36, %c0_37] : memref<12x1x16xf32, #tpu.memory_space<vmem>>, vector<1x1x16xf32>
    %48 = vector.shape_cast %47 : vector<1x1x16xf32> to vector<1x16xf32>
    %49 = vector.broadcast %48 : vector<1x16xf32> to vector<16x16xf32>
    %50 = arith.addf %46, %49 : vector<16x16xf32>
    %c5 = arith.constant 5 : index
    %c0_38 = arith.constant 0 : index
    %c0_39 = arith.constant 0 : index
    %51 = vector.load %arg3[%c5, %c0_38, %c0_39] : memref<12x64x16xf32, #tpu.memory_space<vmem>>, vector<1x64x16xf32>
    %52 = vector.shape_cast %51 : vector<1x64x16xf32> to vector<64x16xf32>
    %cst_40 = arith.constant dense<0.000000e+00> : vector<16x16xf32>
    %53 = tpu.matmul %1, %52, %cst_40 {dimension_numbers = #tpu.dot_dimension_numbers<[1], [0], [0], [1], [0, 0, 1, 1], [], []>} : vector<16x64xf32>, vector<64x16xf32>, vector<16x16xf32> -> vector<16x16xf32>
    %c5_41 = arith.constant 5 : index
    %c0_42 = arith.constant 0 : index
    %c0_43 = arith.constant 0 : index
    %54 = vector.load %arg4[%c5_41, %c0_42, %c0_43] : memref<12x1x16xf32, #tpu.memory_space<vmem>>, vector<1x1x16xf32>
    %55 = vector.shape_cast %54 : vector<1x1x16xf32> to vector<1x16xf32>
    %56 = vector.broadcast %55 : vector<1x16xf32> to vector<16x16xf32>
    %57 = arith.addf %53, %56 : vector<16x16xf32>
    %c9 = arith.constant 9 : index
    %c0_44 = arith.constant 0 : index
    %c0_45 = arith.constant 0 : index
    %58 = vector.load %arg3[%c9, %c0_44, %c0_45] : memref<12x64x16xf32, #tpu.memory_space<vmem>>, vector<1x64x16xf32>
    %59 = vector.shape_cast %58 : vector<1x64x16xf32> to vector<64x16xf32>
    %cst_46 = arith.constant dense<0.000000e+00> : vector<16x16xf32>
    %60 = tpu.matmul %1, %59, %cst_46 {dimension_numbers = #tpu.dot_dimension_numbers<[1], [0], [0], [1], [0, 0, 1, 1], [], []>} : vector<16x64xf32>, vector<64x16xf32>, vector<16x16xf32> -> vector<16x16xf32>
    %c9_47 = arith.constant 9 : index
    %c0_48 = arith.constant 0 : index
    %c0_49 = arith.constant 0 : index
    %61 = vector.load %arg4[%c9_47, %c0_48, %c0_49] : memref<12x1x16xf32, #tpu.memory_space<vmem>>, vector<1x1x16xf32>
    %62 = vector.shape_cast %61 : vector<1x1x16xf32> to vector<1x16xf32>
    %63 = vector.broadcast %62 : vector<1x16xf32> to vector<16x16xf32>
    %64 = arith.addf %60, %63 : vector<16x16xf32>
    %65 = tpu.transpose %57, [1, 0] : vector<16x16xf32> -> vector<16x16xf32>
    %cst_50 = arith.constant dense<0.000000e+00> : vector<16x16xf32>
    %66 = tpu.matmul %50, %65, %cst_50 {dimension_numbers = #tpu.dot_dimension_numbers<[1], [0], [0], [1], [0, 0, 1, 1], [], []>} : vector<16x16xf32>, vector<16x16xf32>, vector<16x16xf32> -> vector<16x16xf32>
    %cst_51 = arith.constant 2.500000e-01 : f32
    %67 = vector.broadcast %cst_51 : f32 to vector<16x16xf32>
    %68 = arith.mulf %66, %67 : vector<16x16xf32>
    %69 = arith.addf %68, %3 : vector<16x16xf32>
    %cst_52 = arith.constant dense<0xFF800000> : vector<16xf32>
    %70 = vector.multi_reduction <maximumf>, %69, %cst_52 [1] : vector<16x16xf32> to vector<16xf32>
    %71 = vector.shape_cast %70 : vector<16xf32> to vector<16x1xf32>
    %72 = vector.broadcast %71 : vector<16x1xf32> to vector<16x16xf32>
    %73 = arith.subf %69, %72 : vector<16x16xf32>
    %74 = math.exp %73 : vector<16x16xf32>
    %cst_53 = arith.constant dense<0.000000e+00> : vector<16xf32>
    %75 = vector.multi_reduction <add>, %74, %cst_53 [1] : vector<16x16xf32> to vector<16xf32>
    %76 = vector.shape_cast %75 : vector<16xf32> to vector<16x1xf32>
    %77 = tpu.reciprocal %76 {approx = true} : vector<16x1xf32> -> vector<16x1xf32>
    %78 = vector.broadcast %77 : vector<16x1xf32> to vector<16x16xf32>
    %79 = arith.mulf %74, %78 : vector<16x16xf32>
    %cst_54 = arith.constant dense<0.000000e+00> : vector<16x16xf32>
    %80 = tpu.matmul %79, %64, %cst_54 {dimension_numbers = #tpu.dot_dimension_numbers<[1], [0], [0], [1], [0, 0, 1, 1], [], []>} : vector<16x16xf32>, vector<16x16xf32>, vector<16x16xf32> -> vector<16x16xf32>
    %c1_55 = arith.constant 1 : index
    %c0_56 = arith.constant 0 : index
    %c0_57 = arith.constant 0 : index
    %81 = vector.load %arg5[%c1_55, %c0_56, %c0_57] : memref<4x16x64xf32, #tpu.memory_space<vmem>>, vector<1x16x64xf32>
    %82 = vector.shape_cast %81 : vector<1x16x64xf32> to vector<16x64xf32>
    %cst_58 = arith.constant dense<0.000000e+00> : vector<16x64xf32>
    %83 = tpu.matmul %80, %82, %cst_58 {dimension_numbers = #tpu.dot_dimension_numbers<[1], [0], [0], [1], [0, 0, 1, 1], [], []>} : vector<16x16xf32>, vector<16x64xf32>, vector<16x64xf32> -> vector<16x64xf32>
    %84 = arith.addf %43, %83 : vector<16x64xf32>
    %c2 = arith.constant 2 : index
    %c0_59 = arith.constant 0 : index
    %c0_60 = arith.constant 0 : index
    %85 = vector.load %arg3[%c2, %c0_59, %c0_60] : memref<12x64x16xf32, #tpu.memory_space<vmem>>, vector<1x64x16xf32>
    %86 = vector.shape_cast %85 : vector<1x64x16xf32> to vector<64x16xf32>
    %cst_61 = arith.constant dense<0.000000e+00> : vector<16x16xf32>
    %87 = tpu.matmul %1, %86, %cst_61 {dimension_numbers = #tpu.dot_dimension_numbers<[1], [0], [0], [1], [0, 0, 1, 1], [], []>} : vector<16x64xf32>, vector<64x16xf32>, vector<16x16xf32> -> vector<16x16xf32>
    %c2_62 = arith.constant 2 : index
    %c0_63 = arith.constant 0 : index
    %c0_64 = arith.constant 0 : index
    %88 = vector.load %arg4[%c2_62, %c0_63, %c0_64] : memref<12x1x16xf32, #tpu.memory_space<vmem>>, vector<1x1x16xf32>
    %89 = vector.shape_cast %88 : vector<1x1x16xf32> to vector<1x16xf32>
    %90 = vector.broadcast %89 : vector<1x16xf32> to vector<16x16xf32>
    %91 = arith.addf %87, %90 : vector<16x16xf32>
    %c6 = arith.constant 6 : index
    %c0_65 = arith.constant 0 : index
    %c0_66 = arith.constant 0 : index
    %92 = vector.load %arg3[%c6, %c0_65, %c0_66] : memref<12x64x16xf32, #tpu.memory_space<vmem>>, vector<1x64x16xf32>
    %93 = vector.shape_cast %92 : vector<1x64x16xf32> to vector<64x16xf32>
    %cst_67 = arith.constant dense<0.000000e+00> : vector<16x16xf32>
    %94 = tpu.matmul %1, %93, %cst_67 {dimension_numbers = #tpu.dot_dimension_numbers<[1], [0], [0], [1], [0, 0, 1, 1], [], []>} : vector<16x64xf32>, vector<64x16xf32>, vector<16x16xf32> -> vector<16x16xf32>
    %c6_68 = arith.constant 6 : index
    %c0_69 = arith.constant 0 : index
    %c0_70 = arith.constant 0 : index
    %95 = vector.load %arg4[%c6_68, %c0_69, %c0_70] : memref<12x1x16xf32, #tpu.memory_space<vmem>>, vector<1x1x16xf32>
    %96 = vector.shape_cast %95 : vector<1x1x16xf32> to vector<1x16xf32>
    %97 = vector.broadcast %96 : vector<1x16xf32> to vector<16x16xf32>
    %98 = arith.addf %94, %97 : vector<16x16xf32>
    %c10 = arith.constant 10 : index
    %c0_71 = arith.constant 0 : index
    %c0_72 = arith.constant 0 : index
    %99 = vector.load %arg3[%c10, %c0_71, %c0_72] : memref<12x64x16xf32, #tpu.memory_space<vmem>>, vector<1x64x16xf32>
    %100 = vector.shape_cast %99 : vector<1x64x16xf32> to vector<64x16xf32>
    %cst_73 = arith.constant dense<0.000000e+00> : vector<16x16xf32>
    %101 = tpu.matmul %1, %100, %cst_73 {dimension_numbers = #tpu.dot_dimension_numbers<[1], [0], [0], [1], [0, 0, 1, 1], [], []>} : vector<16x64xf32>, vector<64x16xf32>, vector<16x16xf32> -> vector<16x16xf32>
    %c10_74 = arith.constant 10 : index
    %c0_75 = arith.constant 0 : index
    %c0_76 = arith.constant 0 : index
    %102 = vector.load %arg4[%c10_74, %c0_75, %c0_76] : memref<12x1x16xf32, #tpu.memory_space<vmem>>, vector<1x1x16xf32>
    %103 = vector.shape_cast %102 : vector<1x1x16xf32> to vector<1x16xf32>
    %104 = vector.broadcast %103 : vector<1x16xf32> to vector<16x16xf32>
    %105 = arith.addf %101, %104 : vector<16x16xf32>
    %106 = tpu.transpose %98, [1, 0] : vector<16x16xf32> -> vector<16x16xf32>
    %cst_77 = arith.constant dense<0.000000e+00> : vector<16x16xf32>
    %107 = tpu.matmul %91, %106, %cst_77 {dimension_numbers = #tpu.dot_dimension_numbers<[1], [0], [0], [1], [0, 0, 1, 1], [], []>} : vector<16x16xf32>, vector<16x16xf32>, vector<16x16xf32> -> vector<16x16xf32>
    %cst_78 = arith.constant 2.500000e-01 : f32
    %108 = vector.broadcast %cst_78 : f32 to vector<16x16xf32>
    %109 = arith.mulf %107, %108 : vector<16x16xf32>
    %110 = arith.addf %109, %3 : vector<16x16xf32>
    %cst_79 = arith.constant dense<0xFF800000> : vector<16xf32>
    %111 = vector.multi_reduction <maximumf>, %110, %cst_79 [1] : vector<16x16xf32> to vector<16xf32>
    %112 = vector.shape_cast %111 : vector<16xf32> to vector<16x1xf32>
    %113 = vector.broadcast %112 : vector<16x1xf32> to vector<16x16xf32>
    %114 = arith.subf %110, %113 : vector<16x16xf32>
    %115 = math.exp %114 : vector<16x16xf32>
    %cst_80 = arith.constant dense<0.000000e+00> : vector<16xf32>
    %116 = vector.multi_reduction <add>, %115, %cst_80 [1] : vector<16x16xf32> to vector<16xf32>
    %117 = vector.shape_cast %116 : vector<16xf32> to vector<16x1xf32>
    %118 = tpu.reciprocal %117 {approx = true} : vector<16x1xf32> -> vector<16x1xf32>
    %119 = vector.broadcast %118 : vector<16x1xf32> to vector<16x16xf32>
    %120 = arith.mulf %115, %119 : vector<16x16xf32>
    %cst_81 = arith.constant dense<0.000000e+00> : vector<16x16xf32>
    %121 = tpu.matmul %120, %105, %cst_81 {dimension_numbers = #tpu.dot_dimension_numbers<[1], [0], [0], [1], [0, 0, 1, 1], [], []>} : vector<16x16xf32>, vector<16x16xf32>, vector<16x16xf32> -> vector<16x16xf32>
    %c2_82 = arith.constant 2 : index
    %c0_83 = arith.constant 0 : index
    %c0_84 = arith.constant 0 : index
    %122 = vector.load %arg5[%c2_82, %c0_83, %c0_84] : memref<4x16x64xf32, #tpu.memory_space<vmem>>, vector<1x16x64xf32>
    %123 = vector.shape_cast %122 : vector<1x16x64xf32> to vector<16x64xf32>
    %cst_85 = arith.constant dense<0.000000e+00> : vector<16x64xf32>
    %124 = tpu.matmul %121, %123, %cst_85 {dimension_numbers = #tpu.dot_dimension_numbers<[1], [0], [0], [1], [0, 0, 1, 1], [], []>} : vector<16x16xf32>, vector<16x64xf32>, vector<16x64xf32> -> vector<16x64xf32>
    %125 = arith.addf %84, %124 : vector<16x64xf32>
    %c3 = arith.constant 3 : index
    %c0_86 = arith.constant 0 : index
    %c0_87 = arith.constant 0 : index
    %126 = vector.load %arg3[%c3, %c0_86, %c0_87] : memref<12x64x16xf32, #tpu.memory_space<vmem>>, vector<1x64x16xf32>
    %127 = vector.shape_cast %126 : vector<1x64x16xf32> to vector<64x16xf32>
    %cst_88 = arith.constant dense<0.000000e+00> : vector<16x16xf32>
    %128 = tpu.matmul %1, %127, %cst_88 {dimension_numbers = #tpu.dot_dimension_numbers<[1], [0], [0], [1], [0, 0, 1, 1], [], []>} : vector<16x64xf32>, vector<64x16xf32>, vector<16x16xf32> -> vector<16x16xf32>
    %c3_89 = arith.constant 3 : index
    %c0_90 = arith.constant 0 : index
    %c0_91 = arith.constant 0 : index
    %129 = vector.load %arg4[%c3_89, %c0_90, %c0_91] : memref<12x1x16xf32, #tpu.memory_space<vmem>>, vector<1x1x16xf32>
    %130 = vector.shape_cast %129 : vector<1x1x16xf32> to vector<1x16xf32>
    %131 = vector.broadcast %130 : vector<1x16xf32> to vector<16x16xf32>
    %132 = arith.addf %128, %131 : vector<16x16xf32>
    %c7 = arith.constant 7 : index
    %c0_92 = arith.constant 0 : index
    %c0_93 = arith.constant 0 : index
    %133 = vector.load %arg3[%c7, %c0_92, %c0_93] : memref<12x64x16xf32, #tpu.memory_space<vmem>>, vector<1x64x16xf32>
    %134 = vector.shape_cast %133 : vector<1x64x16xf32> to vector<64x16xf32>
    %cst_94 = arith.constant dense<0.000000e+00> : vector<16x16xf32>
    %135 = tpu.matmul %1, %134, %cst_94 {dimension_numbers = #tpu.dot_dimension_numbers<[1], [0], [0], [1], [0, 0, 1, 1], [], []>} : vector<16x64xf32>, vector<64x16xf32>, vector<16x16xf32> -> vector<16x16xf32>
    %c7_95 = arith.constant 7 : index
    %c0_96 = arith.constant 0 : index
    %c0_97 = arith.constant 0 : index
    %136 = vector.load %arg4[%c7_95, %c0_96, %c0_97] : memref<12x1x16xf32, #tpu.memory_space<vmem>>, vector<1x1x16xf32>
    %137 = vector.shape_cast %136 : vector<1x1x16xf32> to vector<1x16xf32>
    %138 = vector.broadcast %137 : vector<1x16xf32> to vector<16x16xf32>
    %139 = arith.addf %135, %138 : vector<16x16xf32>
    %c11 = arith.constant 11 : index
    %c0_98 = arith.constant 0 : index
    %c0_99 = arith.constant 0 : index
    %140 = vector.load %arg3[%c11, %c0_98, %c0_99] : memref<12x64x16xf32, #tpu.memory_space<vmem>>, vector<1x64x16xf32>
    %141 = vector.shape_cast %140 : vector<1x64x16xf32> to vector<64x16xf32>
    %cst_100 = arith.constant dense<0.000000e+00> : vector<16x16xf32>
    %142 = tpu.matmul %1, %141, %cst_100 {dimension_numbers = #tpu.dot_dimension_numbers<[1], [0], [0], [1], [0, 0, 1, 1], [], []>} : vector<16x64xf32>, vector<64x16xf32>, vector<16x16xf32> -> vector<16x16xf32>
    %c11_101 = arith.constant 11 : index
    %c0_102 = arith.constant 0 : index
    %c0_103 = arith.constant 0 : index
    %143 = vector.load %arg4[%c11_101, %c0_102, %c0_103] : memref<12x1x16xf32, #tpu.memory_space<vmem>>, vector<1x1x16xf32>
    %144 = vector.shape_cast %143 : vector<1x1x16xf32> to vector<1x16xf32>
    %145 = vector.broadcast %144 : vector<1x16xf32> to vector<16x16xf32>
    %146 = arith.addf %142, %145 : vector<16x16xf32>
    %147 = tpu.transpose %139, [1, 0] : vector<16x16xf32> -> vector<16x16xf32>
    %cst_104 = arith.constant dense<0.000000e+00> : vector<16x16xf32>
    %148 = tpu.matmul %132, %147, %cst_104 {dimension_numbers = #tpu.dot_dimension_numbers<[1], [0], [0], [1], [0, 0, 1, 1], [], []>} : vector<16x16xf32>, vector<16x16xf32>, vector<16x16xf32> -> vector<16x16xf32>
    %cst_105 = arith.constant 2.500000e-01 : f32
    %149 = vector.broadcast %cst_105 : f32 to vector<16x16xf32>
    %150 = arith.mulf %148, %149 : vector<16x16xf32>
    %151 = arith.addf %150, %3 : vector<16x16xf32>
    %cst_106 = arith.constant dense<0xFF800000> : vector<16xf32>
    %152 = vector.multi_reduction <maximumf>, %151, %cst_106 [1] : vector<16x16xf32> to vector<16xf32>
    %153 = vector.shape_cast %152 : vector<16xf32> to vector<16x1xf32>
    %154 = vector.broadcast %153 : vector<16x1xf32> to vector<16x16xf32>
    %155 = arith.subf %151, %154 : vector<16x16xf32>
    %156 = math.exp %155 : vector<16x16xf32>
    %cst_107 = arith.constant dense<0.000000e+00> : vector<16xf32>
    %157 = vector.multi_reduction <add>, %156, %cst_107 [1] : vector<16x16xf32> to vector<16xf32>
    %158 = vector.shape_cast %157 : vector<16xf32> to vector<16x1xf32>
    %159 = tpu.reciprocal %158 {approx = true} : vector<16x1xf32> -> vector<16x1xf32>
    %160 = vector.broadcast %159 : vector<16x1xf32> to vector<16x16xf32>
    %161 = arith.mulf %156, %160 : vector<16x16xf32>
    %cst_108 = arith.constant dense<0.000000e+00> : vector<16x16xf32>
    %162 = tpu.matmul %161, %146, %cst_108 {dimension_numbers = #tpu.dot_dimension_numbers<[1], [0], [0], [1], [0, 0, 1, 1], [], []>} : vector<16x16xf32>, vector<16x16xf32>, vector<16x16xf32> -> vector<16x16xf32>
    %c3_109 = arith.constant 3 : index
    %c0_110 = arith.constant 0 : index
    %c0_111 = arith.constant 0 : index
    %163 = vector.load %arg5[%c3_109, %c0_110, %c0_111] : memref<4x16x64xf32, #tpu.memory_space<vmem>>, vector<1x16x64xf32>
    %164 = vector.shape_cast %163 : vector<1x16x64xf32> to vector<16x64xf32>
    %cst_112 = arith.constant dense<0.000000e+00> : vector<16x64xf32>
    %165 = tpu.matmul %162, %164, %cst_112 {dimension_numbers = #tpu.dot_dimension_numbers<[1], [0], [0], [1], [0, 0, 1, 1], [], []>} : vector<16x16xf32>, vector<16x64xf32>, vector<16x64xf32> -> vector<16x64xf32>
    %166 = arith.addf %125, %165 : vector<16x64xf32>
    %167 = arith.addf %1, %166 : vector<16x64xf32>
    %c0_113 = arith.constant 0 : index
    %c0_114 = arith.constant 0 : index
    %168 = vector.load %arg6[%c0_113, %c0_114] : memref<1x64xf32, #tpu.memory_space<vmem>>, vector<1x64xf32>
    %169 = vector.broadcast %168 : vector<1x64xf32> to vector<16x64xf32>
    %170 = arith.addf %167, %169 : vector<16x64xf32>
    %c0_115 = arith.constant 0 : index
    %c0_116 = arith.constant 0 : index
    %171 = vector.load %arg7[%c0_115, %c0_116] : memref<1x64xf32, #tpu.memory_space<vmem>>, vector<1x64xf32>
    %c0_117 = arith.constant 0 : index
    %c0_118 = arith.constant 0 : index
    %172 = vector.load %arg8[%c0_117, %c0_118] : memref<1x64xf32, #tpu.memory_space<vmem>>, vector<1x64xf32>
    %cst_119 = arith.constant dense<0.000000e+00> : vector<16xf32>
    %173 = vector.multi_reduction <add>, %170, %cst_119 [1] : vector<16x64xf32> to vector<16xf32>
    %174 = vector.shape_cast %173 : vector<16xf32> to vector<16x1xf32>
    %cst_120 = arith.constant 6.400000e+01 : f32
    %175 = vector.broadcast %cst_120 : f32 to vector<16x1xf32>
    %176 = arith.divf %174, %175 : vector<16x1xf32>
    %177 = vector.broadcast %176 : vector<16x1xf32> to vector<16x64xf32>
    %178 = arith.subf %170, %177 : vector<16x64xf32>
    %179 = arith.mulf %178, %178 : vector<16x64xf32>
    %cst_121 = arith.constant dense<0.000000e+00> : vector<16xf32>
    %180 = vector.multi_reduction <add>, %179, %cst_121 [1] : vector<16x64xf32> to vector<16xf32>
    %181 = vector.shape_cast %180 : vector<16xf32> to vector<16x1xf32>
    %cst_122 = arith.constant 6.400000e+01 : f32
    %182 = vector.broadcast %cst_122 : f32 to vector<16x1xf32>
    %183 = arith.divf %181, %182 : vector<16x1xf32>
    %184 = vector.broadcast %176 : vector<16x1xf32> to vector<16x64xf32>
    %185 = arith.subf %170, %184 : vector<16x64xf32>
    %cst_123 = arith.constant 9.99999974E-6 : f32
    %186 = vector.broadcast %cst_123 : f32 to vector<16x1xf32>
    %187 = arith.addf %183, %186 : vector<16x1xf32>
    %188 = math.rsqrt %187 : vector<16x1xf32>
    %189 = vector.broadcast %188 : vector<16x1xf32> to vector<16x64xf32>
    %190 = arith.mulf %185, %189 : vector<16x64xf32>
    %191 = vector.broadcast %171 : vector<1x64xf32> to vector<16x64xf32>
    %192 = arith.mulf %190, %191 : vector<16x64xf32>
    %193 = vector.broadcast %172 : vector<1x64xf32> to vector<16x64xf32>
    %194 = arith.addf %192, %193 : vector<16x64xf32>
    %c0_124 = arith.constant 0 : index
    %c0_125 = arith.constant 0 : index
    %195 = vector.load %arg9[%c0_124, %c0_125] : memref<64x256xf32, #tpu.memory_space<vmem>>, vector<64x256xf32>
    %cst_126 = arith.constant dense<0.000000e+00> : vector<16x256xf32>
    %196 = tpu.matmul %194, %195, %cst_126 {dimension_numbers = #tpu.dot_dimension_numbers<[1], [0], [0], [1], [0, 0, 1, 1], [], []>} : vector<16x64xf32>, vector<64x256xf32>, vector<16x256xf32> -> vector<16x256xf32>
    %c0_127 = arith.constant 0 : index
    %c0_128 = arith.constant 0 : index
    %197 = vector.load %arg10[%c0_127, %c0_128] : memref<1x256xf32, #tpu.memory_space<vmem>>, vector<1x256xf32>
    %198 = vector.broadcast %197 : vector<1x256xf32> to vector<16x256xf32>
    %199 = arith.addf %196, %198 : vector<16x256xf32>
    %cst_129 = arith.constant 5.000000e-01 : f32
    %200 = vector.broadcast %cst_129 : f32 to vector<16x256xf32>
    %201 = arith.mulf %200, %199 : vector<16x256xf32>
    %cst_130 = arith.constant 0.707106769 : f32
    %202 = vector.broadcast %cst_130 : f32 to vector<16x256xf32>
    %203 = arith.mulf %199, %202 : vector<16x256xf32>
    %204 = math.erf %203 : vector<16x256xf32>
    %cst_131 = arith.constant 1.000000e+00 : f32
    %205 = vector.broadcast %cst_131 : f32 to vector<16x256xf32>
    %206 = arith.addf %205, %204 : vector<16x256xf32>
    %207 = arith.mulf %201, %206 : vector<16x256xf32>
    %c0_132 = arith.constant 0 : index
    %c0_133 = arith.constant 0 : index
    %208 = vector.load %arg11[%c0_132, %c0_133] : memref<256x64xf32, #tpu.memory_space<vmem>>, vector<256x64xf32>
    %cst_134 = arith.constant dense<0.000000e+00> : vector<16x64xf32>
    %209 = tpu.matmul %207, %208, %cst_134 {dimension_numbers = #tpu.dot_dimension_numbers<[1], [0], [0], [1], [0, 0, 1, 1], [], []>} : vector<16x256xf32>, vector<256x64xf32>, vector<16x64xf32> -> vector<16x64xf32>
    %210 = arith.addf %194, %209 : vector<16x64xf32>
    %c0_135 = arith.constant 0 : index
    %c0_136 = arith.constant 0 : index
    %211 = vector.load %arg12[%c0_135, %c0_136] : memref<1x64xf32, #tpu.memory_space<vmem>>, vector<1x64xf32>
    %212 = vector.broadcast %211 : vector<1x64xf32> to vector<16x64xf32>
    %213 = arith.addf %210, %212 : vector<16x64xf32>
    %c0_137 = arith.constant 0 : index
    %c0_138 = arith.constant 0 : index
    %214 = vector.load %arg13[%c0_137, %c0_138] : memref<1x64xf32, #tpu.memory_space<vmem>>, vector<1x64xf32>
    %c0_139 = arith.constant 0 : index
    %c0_140 = arith.constant 0 : index
    %215 = vector.load %arg14[%c0_139, %c0_140] : memref<1x64xf32, #tpu.memory_space<vmem>>, vector<1x64xf32>
    %cst_141 = arith.constant dense<0.000000e+00> : vector<16xf32>
    %216 = vector.multi_reduction <add>, %213, %cst_141 [1] : vector<16x64xf32> to vector<16xf32>
    %217 = vector.shape_cast %216 : vector<16xf32> to vector<16x1xf32>
    %cst_142 = arith.constant 6.400000e+01 : f32
    %218 = vector.broadcast %cst_142 : f32 to vector<16x1xf32>
    %219 = arith.divf %217, %218 : vector<16x1xf32>
    %220 = vector.broadcast %219 : vector<16x1xf32> to vector<16x64xf32>
    %221 = arith.subf %213, %220 : vector<16x64xf32>
    %222 = arith.mulf %221, %221 : vector<16x64xf32>
    %cst_143 = arith.constant dense<0.000000e+00> : vector<16xf32>
    %223 = vector.multi_reduction <add>, %222, %cst_143 [1] : vector<16x64xf32> to vector<16xf32>
    %224 = vector.shape_cast %223 : vector<16xf32> to vector<16x1xf32>
    %cst_144 = arith.constant 6.400000e+01 : f32
    %225 = vector.broadcast %cst_144 : f32 to vector<16x1xf32>
    %226 = arith.divf %224, %225 : vector<16x1xf32>
    %227 = vector.broadcast %219 : vector<16x1xf32> to vector<16x64xf32>
    %228 = arith.subf %213, %227 : vector<16x64xf32>
    %cst_145 = arith.constant 9.99999974E-6 : f32
    %229 = vector.broadcast %cst_145 : f32 to vector<16x1xf32>
    %230 = arith.addf %226, %229 : vector<16x1xf32>
    %231 = math.rsqrt %230 : vector<16x1xf32>
    %232 = vector.broadcast %231 : vector<16x1xf32> to vector<16x64xf32>
    %233 = arith.mulf %228, %232 : vector<16x64xf32>
    %234 = vector.broadcast %214 : vector<1x64xf32> to vector<16x64xf32>
    %235 = arith.mulf %233, %234 : vector<16x64xf32>
    %236 = vector.broadcast %215 : vector<1x64xf32> to vector<16x64xf32>
    %237 = arith.addf %235, %236 : vector<16x64xf32>
    %c0_146 = arith.constant 0 : index
    %c0_147 = arith.constant 0 : index
    %c0_148 = arith.constant 0 : index
    %238 = vector.load %arg15[%c0_146, %c0_147, %c0_148] : memref<1x16x64xf32, #tpu.memory_space<vmem>>, vector<1x16x64xf32>
    %239 = vector.shape_cast %238 : vector<1x16x64xf32> to vector<16x64xf32>
    %240 = vector.shape_cast %237 : vector<16x64xf32> to vector<1x16x64xf32>
    tpu.vector_store %arg15[%c0_146, %c0_147, %c0_148], %240 {strides = array<i32>} : memref<1x16x64xf32, #tpu.memory_space<vmem>>, vector<1x16x64xf32>,
    return
  }
  func.func @transform_0(%arg0: i32) -> (i32, i32, i32) {
    %c0_i32 = arith.constant 0 : i32
    %c0_i32_0 = arith.constant 0 : i32
    %c0_i32_1 = arith.constant 0 : i32
    return %arg0, %c0_i32, %c0_i32_0 : i32, i32, i32
  }
  func.func @transform_1(%arg0: i32) -> (i32, i32, i32) {
    %c0_i32 = arith.constant 0 : i32
    %c0_i32_0 = arith.constant 0 : i32
    %c0_i32_1 = arith.constant 0 : i32
    return %arg0, %c0_i32, %c0_i32_0 : i32, i32, i32
  }
  func.func @transform_2(%arg0: i32) -> (i32, i32, i32) {
    %c0_i32 = arith.constant 0 : i32
    %c0_i32_0 = arith.constant 0 : i32
    %c0_i32_1 = arith.constant 0 : i32
    %c0_i32_2 = arith.constant 0 : i32
    return %c0_i32, %c0_i32_0, %c0_i32_1 : i32, i32, i32
  }
  func.func @transform_3(%arg0: i32) -> (i32, i32, i32) {
    %c0_i32 = arith.constant 0 : i32
    %c0_i32_0 = arith.constant 0 : i32
    %c0_i32_1 = arith.constant 0 : i32
    %c0_i32_2 = arith.constant 0 : i32
    return %c0_i32, %c0_i32_0, %c0_i32_1 : i32, i32, i32
  }
  func.func @transform_4(%arg0: i32) -> (i32, i32, i32) {
    %c0_i32 = arith.constant 0 : i32
    %c0_i32_0 = arith.constant 0 : i32
    %c0_i32_1 = arith.constant 0 : i32
    %c0_i32_2 = arith.constant 0 : i32
    return %c0_i32, %c0_i32_0, %c0_i32_1 : i32, i32, i32
  }
  func.func @transform_5(%arg0: i32) -> (i32, i32) {
    %c0_i32 = arith.constant 0 : i32
    %c0_i32_0 = arith.constant 0 : i32
    %c0_i32_1 = arith.constant 0 : i32
    return %c0_i32, %c0_i32_0 : i32, i32
  }
  func.func @transform_6(%arg0: i32) -> (i32, i32) {
    %c0_i32 = arith.constant 0 : i32
    %c0_i32_0 = arith.constant 0 : i32
    %c0_i32_1 = arith.constant 0 : i32
    return %c0_i32, %c0_i32_0 : i32, i32
  }
  func.func @transform_7(%arg0: i32) -> (i32, i32) {
    %c0_i32 = arith.constant 0 : i32
    %c0_i32_0 = arith.constant 0 : i32
    %c0_i32_1 = arith.constant 0 : i32
    return %c0_i32, %c0_i32_0 : i32, i32
  }
  func.func @transform_8(%arg0: i32) -> (i32, i32) {
    %c0_i32 = arith.constant 0 : i32
    %c0_i32_0 = arith.constant 0 : i32
    %c0_i32_1 = arith.constant 0 : i32
    return %c0_i32, %c0_i32_0 : i32, i32
  }
  func.func @transform_9(%arg0: i32) -> (i32, i32) {
    %c0_i32 = arith.constant 0 : i32
    %c0_i32_0 = arith.constant 0 : i32
    %c0_i32_1 = arith.constant 0 : i32
    return %c0_i32, %c0_i32_0 : i32, i32
  }
  func.func @transform_10(%arg0: i32) -> (i32, i32) {
    %c0_i32 = arith.constant 0 : i32
    %c0_i32_0 = arith.constant 0 : i32
    %c0_i32_1 = arith.constant 0 : i32
    return %c0_i32, %c0_i32_0 : i32, i32
  }
  func.func @transform_11(%arg0: i32) -> (i32, i32) {
    %c0_i32 = arith.constant 0 : i32
    %c0_i32_0 = arith.constant 0 : i32
    %c0_i32_1 = arith.constant 0 : i32
    return %c0_i32, %c0_i32_0 : i32, i32
  }
  func.func @transform_12(%arg0: i32) -> (i32, i32) {
    %c0_i32 = arith.constant 0 : i32
    %c0_i32_0 = arith.constant 0 : i32
    %c0_i32_1 = arith.constant 0 : i32
    return %c0_i32, %c0_i32_0 : i32, i32
  }
  func.func @transform_13(%arg0: i32) -> (i32, i32) {
    %c0_i32 = arith.constant 0 : i32
    %c0_i32_0 = arith.constant 0 : i32
    %c0_i32_1 = arith.constant 0 : i32
    return %c0_i32, %c0_i32_0 : i32, i32
  }
  func.func @transform_14(%arg0: i32) -> (i32, i32, i32) {
    %c0_i32 = arith.constant 0 : i32
    %c0_i32_0 = arith.constant 0 : i32
    %c0_i32_1 = arith.constant 0 : i32
    return %arg0, %c0_i32, %c0_i32_0 : i32, i32, i32
  }
}

module attributes {stable_mosaic.version = 11 : i64} {
  func.func @_layernorm_kernel(%arg0: i32, %arg1: memref<32x64xf32, #tpu.memory_space<vmem>>, %arg2: memref<1x64xf32, #tpu.memory_space<vmem>>, %arg3: memref<1x64xf32, #tpu.memory_space<vmem>>, %arg4: memref<32x64xf32, #tpu.memory_space<vmem>>) attributes {dimension_semantics = [#tpu.dimension_semantics<arbitrary>], iteration_bounds = array<i64: 1>, scalar_prefetch = 0 : i64, scratch_operands = 0 : i64, tpu.core_type = #tpu.core_type<tc>, window_params = [{pipeline_mode = #tpu.pipeline_mode<synchronous>, transform_indices = @transform_0, window_bounds = array<i64: 32, 64>}, {pipeline_mode = #tpu.pipeline_mode<synchronous>, transform_indices = @transform_1, window_bounds = array<i64: 1, 64>}, {pipeline_mode = #tpu.pipeline_mode<synchronous>, transform_indices = @transform_2, window_bounds = array<i64: 1, 64>}, {pipeline_mode = #tpu.pipeline_mode<synchronous>, transform_indices = @transform_3, window_bounds = array<i64: 32, 64>}]} {
    %c0 = arith.constant 0 : index
    %c0_0 = arith.constant 0 : index
    %0 = vector.load %arg1[%c0, %c0_0] : memref<32x64xf32, #tpu.memory_space<vmem>>, vector<32x64xf32>
    %c0_1 = arith.constant 0 : index
    %c0_2 = arith.constant 0 : index
    %1 = vector.load %arg2[%c0_1, %c0_2] : memref<1x64xf32, #tpu.memory_space<vmem>>, vector<1x64xf32>
    %c0_3 = arith.constant 0 : index
    %c0_4 = arith.constant 0 : index
    %2 = vector.load %arg3[%c0_3, %c0_4] : memref<1x64xf32, #tpu.memory_space<vmem>>, vector<1x64xf32>
    %cst = arith.constant dense<0.000000e+00> : vector<32xf32>
    %3 = vector.multi_reduction <add>, %0, %cst [1] : vector<32x64xf32> to vector<32xf32>
    %4 = vector.shape_cast %3 : vector<32xf32> to vector<32x1xf32>
    %cst_5 = arith.constant 6.400000e+01 : f32
    %5 = vector.broadcast %cst_5 : f32 to vector<32x1xf32>
    %6 = arith.divf %4, %5 : vector<32x1xf32>
    %7 = vector.broadcast %6 : vector<32x1xf32> to vector<32x64xf32>
    %8 = arith.subf %0, %7 : vector<32x64xf32>
    %9 = arith.mulf %8, %8 : vector<32x64xf32>
    %cst_6 = arith.constant dense<0.000000e+00> : vector<32xf32>
    %10 = vector.multi_reduction <add>, %9, %cst_6 [1] : vector<32x64xf32> to vector<32xf32>
    %11 = vector.shape_cast %10 : vector<32xf32> to vector<32x1xf32>
    %cst_7 = arith.constant 6.400000e+01 : f32
    %12 = vector.broadcast %cst_7 : f32 to vector<32x1xf32>
    %13 = arith.divf %11, %12 : vector<32x1xf32>
    %14 = vector.broadcast %6 : vector<32x1xf32> to vector<32x64xf32>
    %15 = arith.subf %0, %14 : vector<32x64xf32>
    %cst_8 = arith.constant 9.99999974E-6 : f32
    %16 = vector.broadcast %cst_8 : f32 to vector<32x1xf32>
    %17 = arith.addf %13, %16 : vector<32x1xf32>
    %18 = math.rsqrt %17 : vector<32x1xf32>
    %19 = vector.broadcast %18 : vector<32x1xf32> to vector<32x64xf32>
    %20 = arith.mulf %15, %19 : vector<32x64xf32>
    %21 = vector.broadcast %1 : vector<1x64xf32> to vector<32x64xf32>
    %22 = arith.mulf %20, %21 : vector<32x64xf32>
    %23 = vector.broadcast %2 : vector<1x64xf32> to vector<32x64xf32>
    %24 = arith.addf %22, %23 : vector<32x64xf32>
    %c0_9 = arith.constant 0 : index
    %c0_10 = arith.constant 0 : index
    %25 = vector.load %arg4[%c0_9, %c0_10] : memref<32x64xf32, #tpu.memory_space<vmem>>, vector<32x64xf32>
    tpu.vector_store %arg4[%c0_9, %c0_10], %24 {strides = array<i32>} : memref<32x64xf32, #tpu.memory_space<vmem>>, vector<32x64xf32>,
    return
  }
  func.func @transform_0(%arg0: i32) -> (i32, i32) {
    %c0_i32 = arith.constant 0 : i32
    %c0_i32_0 = arith.constant 0 : i32
    %c0_i32_1 = arith.constant 0 : i32
    return %c0_i32, %c0_i32_0 : i32, i32
  }
  func.func @transform_1(%arg0: i32) -> (i32, i32) {
    %c0_i32 = arith.constant 0 : i32
    %c0_i32_0 = arith.constant 0 : i32
    %c0_i32_1 = arith.constant 0 : i32
    return %c0_i32, %c0_i32_0 : i32, i32
  }
  func.func @transform_2(%arg0: i32) -> (i32, i32) {
    %c0_i32 = arith.constant 0 : i32
    %c0_i32_0 = arith.constant 0 : i32
    %c0_i32_1 = arith.constant 0 : i32
    return %c0_i32, %c0_i32_0 : i32, i32
  }
  func.func @transform_3(%arg0: i32) -> (i32, i32) {
    %c0_i32 = arith.constant 0 : i32
    %c0_i32_0 = arith.constant 0 : i32
    %c0_i32_1 = arith.constant 0 : i32
    return %c0_i32, %c0_i32_0 : i32, i32
  }
}

module attributes {stable_mosaic.version = 11 : i64} {
  func.func @_lf_layer_kernel(%arg0: i32, %arg1: memref<1x16x64xf32, #tpu.memory_space<vmem>>, %arg2: memref<1x16x16xf32, #tpu.memory_space<vmem>>, %arg3: memref<12x64x16xf32, #tpu.memory_space<vmem>>, %arg4: memref<12x1x16xf32, #tpu.memory_space<vmem>>, %arg5: memref<4x16x64xf32, #tpu.memory_space<vmem>>, %arg6: memref<1x64xf32, #tpu.memory_space<vmem>>, %arg7: memref<1x64xf32, #tpu.memory_space<vmem>>, %arg8: memref<1x64xf32, #tpu.memory_space<vmem>>, %arg9: memref<64x256xf32, #tpu.memory_space<vmem>>, %arg10: memref<1x256xf32, #tpu.memory_space<vmem>>, %arg11: memref<256x64xf32, #tpu.memory_space<vmem>>, %arg12: memref<1x64xf32, #tpu.memory_space<vmem>>, %arg13: memref<1x64xf32, #tpu.memory_space<vmem>>, %arg14: memref<1x64xf32, #tpu.memory_space<vmem>>, %arg15: memref<1x16x64xf32, #tpu.memory_space<vmem>>) attributes {dimension_semantics = [#tpu.dimension_semantics<parallel>], iteration_bounds = array<i64: 2>, scalar_prefetch = 0 : i64, scratch_operands = 0 : i64, tpu.core_type = #tpu.core_type<tc>, window_params = [{transform_indices = @transform_0, window_bounds = array<i64: 1, 16, 64>}, {transform_indices = @transform_1, window_bounds = array<i64: 1, 16, 16>}, {pipeline_mode = #tpu.pipeline_mode<synchronous>, transform_indices = @transform_2, window_bounds = array<i64: 12, 64, 16>}, {pipeline_mode = #tpu.pipeline_mode<synchronous>, transform_indices = @transform_3, window_bounds = array<i64: 12, 1, 16>}, {pipeline_mode = #tpu.pipeline_mode<synchronous>, transform_indices = @transform_4, window_bounds = array<i64: 4, 16, 64>}, {pipeline_mode = #tpu.pipeline_mode<synchronous>, transform_indices = @transform_5, window_bounds = array<i64: 1, 64>}, {pipeline_mode = #tpu.pipeline_mode<synchronous>, transform_indices = @transform_6, window_bounds = array<i64: 1, 64>}, {pipeline_mode = #tpu.pipeline_mode<synchronous>, transform_indices = @transform_7, window_bounds = array<i64: 1, 64>}, {pipeline_mode = #tpu.pipeline_mode<synchronous>, transform_indices = @transform_8, window_bounds = array<i64: 64, 256>}, {pipeline_mode = #tpu.pipeline_mode<synchronous>, transform_indices = @transform_9, window_bounds = array<i64: 1, 256>}, {pipeline_mode = #tpu.pipeline_mode<synchronous>, transform_indices = @transform_10, window_bounds = array<i64: 256, 64>}, {pipeline_mode = #tpu.pipeline_mode<synchronous>, transform_indices = @transform_11, window_bounds = array<i64: 1, 64>}, {pipeline_mode = #tpu.pipeline_mode<synchronous>, transform_indices = @transform_12, window_bounds = array<i64: 1, 64>}, {pipeline_mode = #tpu.pipeline_mode<synchronous>, transform_indices = @transform_13, window_bounds = array<i64: 1, 64>}, {transform_indices = @transform_14, window_bounds = array<i64: 1, 16, 64>}]} {
    %c0 = arith.constant 0 : index
    %c0_0 = arith.constant 0 : index
    %c0_1 = arith.constant 0 : index
    %0 = vector.load %arg1[%c0, %c0_0, %c0_1] : memref<1x16x64xf32, #tpu.memory_space<vmem>>, vector<1x16x64xf32>
    %1 = vector.shape_cast %0 : vector<1x16x64xf32> to vector<16x64xf32>
    %c0_2 = arith.constant 0 : index
    %c0_3 = arith.constant 0 : index
    %c0_4 = arith.constant 0 : index
    %2 = vector.load %arg2[%c0_2, %c0_3, %c0_4] : memref<1x16x16xf32, #tpu.memory_space<vmem>>, vector<1x16x16xf32>
    %3 = vector.shape_cast %2 : vector<1x16x16xf32> to vector<16x16xf32>
    %c0_5 = arith.constant 0 : index
    %c0_6 = arith.constant 0 : index
    %c0_7 = arith.constant 0 : index
    %4 = vector.load %arg3[%c0_5, %c0_6, %c0_7] : memref<12x64x16xf32, #tpu.memory_space<vmem>>, vector<1x64x16xf32>
    %5 = vector.shape_cast %4 : vector<1x64x16xf32> to vector<64x16xf32>
    %cst = arith.constant dense<0.000000e+00> : vector<16x16xf32>
    %6 = tpu.matmul %1, %5, %cst {dimension_numbers = #tpu.dot_dimension_numbers<[1], [0], [0], [1], [0, 0, 1, 1], [], []>} : vector<16x64xf32>, vector<64x16xf32>, vector<16x16xf32> -> vector<16x16xf32>
    %c0_8 = arith.constant 0 : index
    %c0_9 = arith.constant 0 : index
    %c0_10 = arith.constant 0 : index
    %7 = vector.load %arg4[%c0_8, %c0_9, %c0_10] : memref<12x1x16xf32, #tpu.memory_space<vmem>>, vector<1x1x16xf32>
    %8 = vector.shape_cast %7 : vector<1x1x16xf32> to vector<1x16xf32>
    %9 = vector.broadcast %8 : vector<1x16xf32> to vector<16x16xf32>
    %10 = arith.addf %6, %9 : vector<16x16xf32>
    %c4 = arith.constant 4 : index
    %c0_11 = arith.constant 0 : index
    %c0_12 = arith.constant 0 : index
    %11 = vector.load %arg3[%c4, %c0_11, %c0_12] : memref<12x64x16xf32, #tpu.memory_space<vmem>>, vector<1x64x16xf32>
    %12 = vector.shape_cast %11 : vector<1x64x16xf32> to vector<64x16xf32>
    %cst_13 = arith.constant dense<0.000000e+00> : vector<16x16xf32>
    %13 = tpu.matmul %1, %12, %cst_13 {dimension_numbers = #tpu.dot_dimension_numbers<[1], [0], [0], [1], [0, 0, 1, 1], [], []>} : vector<16x64xf32>, vector<64x16xf32>, vector<16x16xf32> -> vector<16x16xf32>
    %c4_14 = arith.constant 4 : index
    %c0_15 = arith.constant 0 : index
    %c0_16 = arith.constant 0 : index
    %14 = vector.load %arg4[%c4_14, %c0_15, %c0_16] : memref<12x1x16xf32, #tpu.memory_space<vmem>>, vector<1x1x16xf32>
    %15 = vector.shape_cast %14 : vector<1x1x16xf32> to vector<1x16xf32>
    %16 = vector.broadcast %15 : vector<1x16xf32> to vector<16x16xf32>
    %17 = arith.addf %13, %16 : vector<16x16xf32>
    %c8 = arith.constant 8 : index
    %c0_17 = arith.constant 0 : index
    %c0_18 = arith.constant 0 : index
    %18 = vector.load %arg3[%c8, %c0_17, %c0_18] : memref<12x64x16xf32, #tpu.memory_space<vmem>>, vector<1x64x16xf32>
    %19 = vector.shape_cast %18 : vector<1x64x16xf32> to vector<64x16xf32>
    %cst_19 = arith.constant dense<0.000000e+00> : vector<16x16xf32>
    %20 = tpu.matmul %1, %19, %cst_19 {dimension_numbers = #tpu.dot_dimension_numbers<[1], [0], [0], [1], [0, 0, 1, 1], [], []>} : vector<16x64xf32>, vector<64x16xf32>, vector<16x16xf32> -> vector<16x16xf32>
    %c8_20 = arith.constant 8 : index
    %c0_21 = arith.constant 0 : index
    %c0_22 = arith.constant 0 : index
    %21 = vector.load %arg4[%c8_20, %c0_21, %c0_22] : memref<12x1x16xf32, #tpu.memory_space<vmem>>, vector<1x1x16xf32>
    %22 = vector.shape_cast %21 : vector<1x1x16xf32> to vector<1x16xf32>
    %23 = vector.broadcast %22 : vector<1x16xf32> to vector<16x16xf32>
    %24 = arith.addf %20, %23 : vector<16x16xf32>
    %25 = tpu.transpose %17, [1, 0] : vector<16x16xf32> -> vector<16x16xf32>
    %cst_23 = arith.constant dense<0.000000e+00> : vector<16x16xf32>
    %26 = tpu.matmul %10, %25, %cst_23 {dimension_numbers = #tpu.dot_dimension_numbers<[1], [0], [0], [1], [0, 0, 1, 1], [], []>} : vector<16x16xf32>, vector<16x16xf32>, vector<16x16xf32> -> vector<16x16xf32>
    %cst_24 = arith.constant 2.500000e-01 : f32
    %27 = vector.broadcast %cst_24 : f32 to vector<16x16xf32>
    %28 = arith.mulf %26, %27 : vector<16x16xf32>
    %29 = arith.addf %28, %3 : vector<16x16xf32>
    %cst_25 = arith.constant dense<0xFF800000> : vector<16xf32>
    %30 = vector.multi_reduction <maximumf>, %29, %cst_25 [1] : vector<16x16xf32> to vector<16xf32>
    %31 = vector.shape_cast %30 : vector<16xf32> to vector<16x1xf32>
    %32 = vector.broadcast %31 : vector<16x1xf32> to vector<16x16xf32>
    %33 = arith.subf %29, %32 : vector<16x16xf32>
    %34 = math.exp %33 : vector<16x16xf32>
    %cst_26 = arith.constant dense<0.000000e+00> : vector<16xf32>
    %35 = vector.multi_reduction <add>, %34, %cst_26 [1] : vector<16x16xf32> to vector<16xf32>
    %36 = vector.shape_cast %35 : vector<16xf32> to vector<16x1xf32>
    %37 = tpu.reciprocal %36 {approx = true} : vector<16x1xf32> -> vector<16x1xf32>
    %38 = vector.broadcast %37 : vector<16x1xf32> to vector<16x16xf32>
    %39 = arith.mulf %34, %38 : vector<16x16xf32>
    %cst_27 = arith.constant dense<0.000000e+00> : vector<16x16xf32>
    %40 = tpu.matmul %39, %24, %cst_27 {dimension_numbers = #tpu.dot_dimension_numbers<[1], [0], [0], [1], [0, 0, 1, 1], [], []>} : vector<16x16xf32>, vector<16x16xf32>, vector<16x16xf32> -> vector<16x16xf32>
    %c0_28 = arith.constant 0 : index
    %c0_29 = arith.constant 0 : index
    %c0_30 = arith.constant 0 : index
    %41 = vector.load %arg5[%c0_28, %c0_29, %c0_30] : memref<4x16x64xf32, #tpu.memory_space<vmem>>, vector<1x16x64xf32>
    %42 = vector.shape_cast %41 : vector<1x16x64xf32> to vector<16x64xf32>
    %cst_31 = arith.constant dense<0.000000e+00> : vector<16x64xf32>
    %43 = tpu.matmul %40, %42, %cst_31 {dimension_numbers = #tpu.dot_dimension_numbers<[1], [0], [0], [1], [0, 0, 1, 1], [], []>} : vector<16x16xf32>, vector<16x64xf32>, vector<16x64xf32> -> vector<16x64xf32>
    %c1 = arith.constant 1 : index
    %c0_32 = arith.constant 0 : index
    %c0_33 = arith.constant 0 : index
    %44 = vector.load %arg3[%c1, %c0_32, %c0_33] : memref<12x64x16xf32, #tpu.memory_space<vmem>>, vector<1x64x16xf32>
    %45 = vector.shape_cast %44 : vector<1x64x16xf32> to vector<64x16xf32>
    %cst_34 = arith.constant dense<0.000000e+00> : vector<16x16xf32>
    %46 = tpu.matmul %1, %45, %cst_34 {dimension_numbers = #tpu.dot_dimension_numbers<[1], [0], [0], [1], [0, 0, 1, 1], [], []>} : vector<16x64xf32>, vector<64x16xf32>, vector<16x16xf32> -> vector<16x16xf32>
    %c1_35 = arith.constant 1 : index
    %c0_36 = arith.constant 0 : index
    %c0_37 = arith.constant 0 : index
    %47 = vector.load %arg4[%c1_35, %c0_36, %c0_37] : memref<12x1x16xf32, #tpu.memory_space<vmem>>, vector<1x1x16xf32>
    %48 = vector.shape_cast %47 : vector<1x1x16xf32> to vector<1x16xf32>
    %49 = vector.broadcast %48 : vector<1x16xf32> to vector<16x16xf32>
    %50 = arith.addf %46, %49 : vector<16x16xf32>
    %c5 = arith.constant 5 : index
    %c0_38 = arith.constant 0 : index
    %c0_39 = arith.constant 0 : index
    %51 = vector.load %arg3[%c5, %c0_38, %c0_39] : memref<12x64x16xf32, #tpu.memory_space<vmem>>, vector<1x64x16xf32>
    %52 = vector.shape_cast %51 : vector<1x64x16xf32> to vector<64x16xf32>
    %cst_40 = arith.constant dense<0.000000e+00> : vector<16x16xf32>
    %53 = tpu.matmul %1, %52, %cst_40 {dimension_numbers = #tpu.dot_dimension_numbers<[1], [0], [0], [1], [0, 0, 1, 1], [], []>} : vector<16x64xf32>, vector<64x16xf32>, vector<16x16xf32> -> vector<16x16xf32>
    %c5_41 = arith.constant 5 : index
    %c0_42 = arith.constant 0 : index
    %c0_43 = arith.constant 0 : index
    %54 = vector.load %arg4[%c5_41, %c0_42, %c0_43] : memref<12x1x16xf32, #tpu.memory_space<vmem>>, vector<1x1x16xf32>
    %55 = vector.shape_cast %54 : vector<1x1x16xf32> to vector<1x16xf32>
    %56 = vector.broadcast %55 : vector<1x16xf32> to vector<16x16xf32>
    %57 = arith.addf %53, %56 : vector<16x16xf32>
    %c9 = arith.constant 9 : index
    %c0_44 = arith.constant 0 : index
    %c0_45 = arith.constant 0 : index
    %58 = vector.load %arg3[%c9, %c0_44, %c0_45] : memref<12x64x16xf32, #tpu.memory_space<vmem>>, vector<1x64x16xf32>
    %59 = vector.shape_cast %58 : vector<1x64x16xf32> to vector<64x16xf32>
    %cst_46 = arith.constant dense<0.000000e+00> : vector<16x16xf32>
    %60 = tpu.matmul %1, %59, %cst_46 {dimension_numbers = #tpu.dot_dimension_numbers<[1], [0], [0], [1], [0, 0, 1, 1], [], []>} : vector<16x64xf32>, vector<64x16xf32>, vector<16x16xf32> -> vector<16x16xf32>
    %c9_47 = arith.constant 9 : index
    %c0_48 = arith.constant 0 : index
    %c0_49 = arith.constant 0 : index
    %61 = vector.load %arg4[%c9_47, %c0_48, %c0_49] : memref<12x1x16xf32, #tpu.memory_space<vmem>>, vector<1x1x16xf32>
    %62 = vector.shape_cast %61 : vector<1x1x16xf32> to vector<1x16xf32>
    %63 = vector.broadcast %62 : vector<1x16xf32> to vector<16x16xf32>
    %64 = arith.addf %60, %63 : vector<16x16xf32>
    %65 = tpu.transpose %57, [1, 0] : vector<16x16xf32> -> vector<16x16xf32>
    %cst_50 = arith.constant dense<0.000000e+00> : vector<16x16xf32>
    %66 = tpu.matmul %50, %65, %cst_50 {dimension_numbers = #tpu.dot_dimension_numbers<[1], [0], [0], [1], [0, 0, 1, 1], [], []>} : vector<16x16xf32>, vector<16x16xf32>, vector<16x16xf32> -> vector<16x16xf32>
    %cst_51 = arith.constant 2.500000e-01 : f32
    %67 = vector.broadcast %cst_51 : f32 to vector<16x16xf32>
    %68 = arith.mulf %66, %67 : vector<16x16xf32>
    %69 = arith.addf %68, %3 : vector<16x16xf32>
    %cst_52 = arith.constant dense<0xFF800000> : vector<16xf32>
    %70 = vector.multi_reduction <maximumf>, %69, %cst_52 [1] : vector<16x16xf32> to vector<16xf32>
    %71 = vector.shape_cast %70 : vector<16xf32> to vector<16x1xf32>
    %72 = vector.broadcast %71 : vector<16x1xf32> to vector<16x16xf32>
    %73 = arith.subf %69, %72 : vector<16x16xf32>
    %74 = math.exp %73 : vector<16x16xf32>
    %cst_53 = arith.constant dense<0.000000e+00> : vector<16xf32>
    %75 = vector.multi_reduction <add>, %74, %cst_53 [1] : vector<16x16xf32> to vector<16xf32>
    %76 = vector.shape_cast %75 : vector<16xf32> to vector<16x1xf32>
    %77 = tpu.reciprocal %76 {approx = true} : vector<16x1xf32> -> vector<16x1xf32>
    %78 = vector.broadcast %77 : vector<16x1xf32> to vector<16x16xf32>
    %79 = arith.mulf %74, %78 : vector<16x16xf32>
    %cst_54 = arith.constant dense<0.000000e+00> : vector<16x16xf32>
    %80 = tpu.matmul %79, %64, %cst_54 {dimension_numbers = #tpu.dot_dimension_numbers<[1], [0], [0], [1], [0, 0, 1, 1], [], []>} : vector<16x16xf32>, vector<16x16xf32>, vector<16x16xf32> -> vector<16x16xf32>
    %c1_55 = arith.constant 1 : index
    %c0_56 = arith.constant 0 : index
    %c0_57 = arith.constant 0 : index
    %81 = vector.load %arg5[%c1_55, %c0_56, %c0_57] : memref<4x16x64xf32, #tpu.memory_space<vmem>>, vector<1x16x64xf32>
    %82 = vector.shape_cast %81 : vector<1x16x64xf32> to vector<16x64xf32>
    %cst_58 = arith.constant dense<0.000000e+00> : vector<16x64xf32>
    %83 = tpu.matmul %80, %82, %cst_58 {dimension_numbers = #tpu.dot_dimension_numbers<[1], [0], [0], [1], [0, 0, 1, 1], [], []>} : vector<16x16xf32>, vector<16x64xf32>, vector<16x64xf32> -> vector<16x64xf32>
    %84 = arith.addf %43, %83 : vector<16x64xf32>
    %c2 = arith.constant 2 : index
    %c0_59 = arith.constant 0 : index
    %c0_60 = arith.constant 0 : index
    %85 = vector.load %arg3[%c2, %c0_59, %c0_60] : memref<12x64x16xf32, #tpu.memory_space<vmem>>, vector<1x64x16xf32>
    %86 = vector.shape_cast %85 : vector<1x64x16xf32> to vector<64x16xf32>
    %cst_61 = arith.constant dense<0.000000e+00> : vector<16x16xf32>
    %87 = tpu.matmul %1, %86, %cst_61 {dimension_numbers = #tpu.dot_dimension_numbers<[1], [0], [0], [1], [0, 0, 1, 1], [], []>} : vector<16x64xf32>, vector<64x16xf32>, vector<16x16xf32> -> vector<16x16xf32>
    %c2_62 = arith.constant 2 : index
    %c0_63 = arith.constant 0 : index
    %c0_64 = arith.constant 0 : index
    %88 = vector.load %arg4[%c2_62, %c0_63, %c0_64] : memref<12x1x16xf32, #tpu.memory_space<vmem>>, vector<1x1x16xf32>
    %89 = vector.shape_cast %88 : vector<1x1x16xf32> to vector<1x16xf32>
    %90 = vector.broadcast %89 : vector<1x16xf32> to vector<16x16xf32>
    %91 = arith.addf %87, %90 : vector<16x16xf32>
    %c6 = arith.constant 6 : index
    %c0_65 = arith.constant 0 : index
    %c0_66 = arith.constant 0 : index
    %92 = vector.load %arg3[%c6, %c0_65, %c0_66] : memref<12x64x16xf32, #tpu.memory_space<vmem>>, vector<1x64x16xf32>
    %93 = vector.shape_cast %92 : vector<1x64x16xf32> to vector<64x16xf32>
    %cst_67 = arith.constant dense<0.000000e+00> : vector<16x16xf32>
    %94 = tpu.matmul %1, %93, %cst_67 {dimension_numbers = #tpu.dot_dimension_numbers<[1], [0], [0], [1], [0, 0, 1, 1], [], []>} : vector<16x64xf32>, vector<64x16xf32>, vector<16x16xf32> -> vector<16x16xf32>
    %c6_68 = arith.constant 6 : index
    %c0_69 = arith.constant 0 : index
    %c0_70 = arith.constant 0 : index
    %95 = vector.load %arg4[%c6_68, %c0_69, %c0_70] : memref<12x1x16xf32, #tpu.memory_space<vmem>>, vector<1x1x16xf32>
    %96 = vector.shape_cast %95 : vector<1x1x16xf32> to vector<1x16xf32>
    %97 = vector.broadcast %96 : vector<1x16xf32> to vector<16x16xf32>
    %98 = arith.addf %94, %97 : vector<16x16xf32>
    %c10 = arith.constant 10 : index
    %c0_71 = arith.constant 0 : index
    %c0_72 = arith.constant 0 : index
    %99 = vector.load %arg3[%c10, %c0_71, %c0_72] : memref<12x64x16xf32, #tpu.memory_space<vmem>>, vector<1x64x16xf32>
    %100 = vector.shape_cast %99 : vector<1x64x16xf32> to vector<64x16xf32>
    %cst_73 = arith.constant dense<0.000000e+00> : vector<16x16xf32>
    %101 = tpu.matmul %1, %100, %cst_73 {dimension_numbers = #tpu.dot_dimension_numbers<[1], [0], [0], [1], [0, 0, 1, 1], [], []>} : vector<16x64xf32>, vector<64x16xf32>, vector<16x16xf32> -> vector<16x16xf32>
    %c10_74 = arith.constant 10 : index
    %c0_75 = arith.constant 0 : index
    %c0_76 = arith.constant 0 : index
    %102 = vector.load %arg4[%c10_74, %c0_75, %c0_76] : memref<12x1x16xf32, #tpu.memory_space<vmem>>, vector<1x1x16xf32>
    %103 = vector.shape_cast %102 : vector<1x1x16xf32> to vector<1x16xf32>
    %104 = vector.broadcast %103 : vector<1x16xf32> to vector<16x16xf32>
    %105 = arith.addf %101, %104 : vector<16x16xf32>
    %106 = tpu.transpose %98, [1, 0] : vector<16x16xf32> -> vector<16x16xf32>
    %cst_77 = arith.constant dense<0.000000e+00> : vector<16x16xf32>
    %107 = tpu.matmul %91, %106, %cst_77 {dimension_numbers = #tpu.dot_dimension_numbers<[1], [0], [0], [1], [0, 0, 1, 1], [], []>} : vector<16x16xf32>, vector<16x16xf32>, vector<16x16xf32> -> vector<16x16xf32>
    %cst_78 = arith.constant 2.500000e-01 : f32
    %108 = vector.broadcast %cst_78 : f32 to vector<16x16xf32>
    %109 = arith.mulf %107, %108 : vector<16x16xf32>
    %110 = arith.addf %109, %3 : vector<16x16xf32>
    %cst_79 = arith.constant dense<0xFF800000> : vector<16xf32>
    %111 = vector.multi_reduction <maximumf>, %110, %cst_79 [1] : vector<16x16xf32> to vector<16xf32>
    %112 = vector.shape_cast %111 : vector<16xf32> to vector<16x1xf32>
    %113 = vector.broadcast %112 : vector<16x1xf32> to vector<16x16xf32>
    %114 = arith.subf %110, %113 : vector<16x16xf32>
    %115 = math.exp %114 : vector<16x16xf32>
    %cst_80 = arith.constant dense<0.000000e+00> : vector<16xf32>
    %116 = vector.multi_reduction <add>, %115, %cst_80 [1] : vector<16x16xf32> to vector<16xf32>
    %117 = vector.shape_cast %116 : vector<16xf32> to vector<16x1xf32>
    %118 = tpu.reciprocal %117 {approx = true} : vector<16x1xf32> -> vector<16x1xf32>
    %119 = vector.broadcast %118 : vector<16x1xf32> to vector<16x16xf32>
    %120 = arith.mulf %115, %119 : vector<16x16xf32>
    %cst_81 = arith.constant dense<0.000000e+00> : vector<16x16xf32>
    %121 = tpu.matmul %120, %105, %cst_81 {dimension_numbers = #tpu.dot_dimension_numbers<[1], [0], [0], [1], [0, 0, 1, 1], [], []>} : vector<16x16xf32>, vector<16x16xf32>, vector<16x16xf32> -> vector<16x16xf32>
    %c2_82 = arith.constant 2 : index
    %c0_83 = arith.constant 0 : index
    %c0_84 = arith.constant 0 : index
    %122 = vector.load %arg5[%c2_82, %c0_83, %c0_84] : memref<4x16x64xf32, #tpu.memory_space<vmem>>, vector<1x16x64xf32>
    %123 = vector.shape_cast %122 : vector<1x16x64xf32> to vector<16x64xf32>
    %cst_85 = arith.constant dense<0.000000e+00> : vector<16x64xf32>
    %124 = tpu.matmul %121, %123, %cst_85 {dimension_numbers = #tpu.dot_dimension_numbers<[1], [0], [0], [1], [0, 0, 1, 1], [], []>} : vector<16x16xf32>, vector<16x64xf32>, vector<16x64xf32> -> vector<16x64xf32>
    %125 = arith.addf %84, %124 : vector<16x64xf32>
    %c3 = arith.constant 3 : index
    %c0_86 = arith.constant 0 : index
    %c0_87 = arith.constant 0 : index
    %126 = vector.load %arg3[%c3, %c0_86, %c0_87] : memref<12x64x16xf32, #tpu.memory_space<vmem>>, vector<1x64x16xf32>
    %127 = vector.shape_cast %126 : vector<1x64x16xf32> to vector<64x16xf32>
    %cst_88 = arith.constant dense<0.000000e+00> : vector<16x16xf32>
    %128 = tpu.matmul %1, %127, %cst_88 {dimension_numbers = #tpu.dot_dimension_numbers<[1], [0], [0], [1], [0, 0, 1, 1], [], []>} : vector<16x64xf32>, vector<64x16xf32>, vector<16x16xf32> -> vector<16x16xf32>
    %c3_89 = arith.constant 3 : index
    %c0_90 = arith.constant 0 : index
    %c0_91 = arith.constant 0 : index
    %129 = vector.load %arg4[%c3_89, %c0_90, %c0_91] : memref<12x1x16xf32, #tpu.memory_space<vmem>>, vector<1x1x16xf32>
    %130 = vector.shape_cast %129 : vector<1x1x16xf32> to vector<1x16xf32>
    %131 = vector.broadcast %130 : vector<1x16xf32> to vector<16x16xf32>
    %132 = arith.addf %128, %131 : vector<16x16xf32>
    %c7 = arith.constant 7 : index
    %c0_92 = arith.constant 0 : index
    %c0_93 = arith.constant 0 : index
    %133 = vector.load %arg3[%c7, %c0_92, %c0_93] : memref<12x64x16xf32, #tpu.memory_space<vmem>>, vector<1x64x16xf32>
    %134 = vector.shape_cast %133 : vector<1x64x16xf32> to vector<64x16xf32>
    %cst_94 = arith.constant dense<0.000000e+00> : vector<16x16xf32>
    %135 = tpu.matmul %1, %134, %cst_94 {dimension_numbers = #tpu.dot_dimension_numbers<[1], [0], [0], [1], [0, 0, 1, 1], [], []>} : vector<16x64xf32>, vector<64x16xf32>, vector<16x16xf32> -> vector<16x16xf32>
    %c7_95 = arith.constant 7 : index
    %c0_96 = arith.constant 0 : index
    %c0_97 = arith.constant 0 : index
    %136 = vector.load %arg4[%c7_95, %c0_96, %c0_97] : memref<12x1x16xf32, #tpu.memory_space<vmem>>, vector<1x1x16xf32>
    %137 = vector.shape_cast %136 : vector<1x1x16xf32> to vector<1x16xf32>
    %138 = vector.broadcast %137 : vector<1x16xf32> to vector<16x16xf32>
    %139 = arith.addf %135, %138 : vector<16x16xf32>
    %c11 = arith.constant 11 : index
    %c0_98 = arith.constant 0 : index
    %c0_99 = arith.constant 0 : index
    %140 = vector.load %arg3[%c11, %c0_98, %c0_99] : memref<12x64x16xf32, #tpu.memory_space<vmem>>, vector<1x64x16xf32>
    %141 = vector.shape_cast %140 : vector<1x64x16xf32> to vector<64x16xf32>
    %cst_100 = arith.constant dense<0.000000e+00> : vector<16x16xf32>
    %142 = tpu.matmul %1, %141, %cst_100 {dimension_numbers = #tpu.dot_dimension_numbers<[1], [0], [0], [1], [0, 0, 1, 1], [], []>} : vector<16x64xf32>, vector<64x16xf32>, vector<16x16xf32> -> vector<16x16xf32>
    %c11_101 = arith.constant 11 : index
    %c0_102 = arith.constant 0 : index
    %c0_103 = arith.constant 0 : index
    %143 = vector.load %arg4[%c11_101, %c0_102, %c0_103] : memref<12x1x16xf32, #tpu.memory_space<vmem>>, vector<1x1x16xf32>
    %144 = vector.shape_cast %143 : vector<1x1x16xf32> to vector<1x16xf32>
    %145 = vector.broadcast %144 : vector<1x16xf32> to vector<16x16xf32>
    %146 = arith.addf %142, %145 : vector<16x16xf32>
    %147 = tpu.transpose %139, [1, 0] : vector<16x16xf32> -> vector<16x16xf32>
    %cst_104 = arith.constant dense<0.000000e+00> : vector<16x16xf32>
    %148 = tpu.matmul %132, %147, %cst_104 {dimension_numbers = #tpu.dot_dimension_numbers<[1], [0], [0], [1], [0, 0, 1, 1], [], []>} : vector<16x16xf32>, vector<16x16xf32>, vector<16x16xf32> -> vector<16x16xf32>
    %cst_105 = arith.constant 2.500000e-01 : f32
    %149 = vector.broadcast %cst_105 : f32 to vector<16x16xf32>
    %150 = arith.mulf %148, %149 : vector<16x16xf32>
    %151 = arith.addf %150, %3 : vector<16x16xf32>
    %cst_106 = arith.constant dense<0xFF800000> : vector<16xf32>
    %152 = vector.multi_reduction <maximumf>, %151, %cst_106 [1] : vector<16x16xf32> to vector<16xf32>
    %153 = vector.shape_cast %152 : vector<16xf32> to vector<16x1xf32>
    %154 = vector.broadcast %153 : vector<16x1xf32> to vector<16x16xf32>
    %155 = arith.subf %151, %154 : vector<16x16xf32>
    %156 = math.exp %155 : vector<16x16xf32>
    %cst_107 = arith.constant dense<0.000000e+00> : vector<16xf32>
    %157 = vector.multi_reduction <add>, %156, %cst_107 [1] : vector<16x16xf32> to vector<16xf32>
    %158 = vector.shape_cast %157 : vector<16xf32> to vector<16x1xf32>
    %159 = tpu.reciprocal %158 {approx = true} : vector<16x1xf32> -> vector<16x1xf32>
    %160 = vector.broadcast %159 : vector<16x1xf32> to vector<16x16xf32>
    %161 = arith.mulf %156, %160 : vector<16x16xf32>
    %cst_108 = arith.constant dense<0.000000e+00> : vector<16x16xf32>
    %162 = tpu.matmul %161, %146, %cst_108 {dimension_numbers = #tpu.dot_dimension_numbers<[1], [0], [0], [1], [0, 0, 1, 1], [], []>} : vector<16x16xf32>, vector<16x16xf32>, vector<16x16xf32> -> vector<16x16xf32>
    %c3_109 = arith.constant 3 : index
    %c0_110 = arith.constant 0 : index
    %c0_111 = arith.constant 0 : index
    %163 = vector.load %arg5[%c3_109, %c0_110, %c0_111] : memref<4x16x64xf32, #tpu.memory_space<vmem>>, vector<1x16x64xf32>
    %164 = vector.shape_cast %163 : vector<1x16x64xf32> to vector<16x64xf32>
    %cst_112 = arith.constant dense<0.000000e+00> : vector<16x64xf32>
    %165 = tpu.matmul %162, %164, %cst_112 {dimension_numbers = #tpu.dot_dimension_numbers<[1], [0], [0], [1], [0, 0, 1, 1], [], []>} : vector<16x16xf32>, vector<16x64xf32>, vector<16x64xf32> -> vector<16x64xf32>
    %166 = arith.addf %125, %165 : vector<16x64xf32>
    %167 = arith.addf %1, %166 : vector<16x64xf32>
    %c0_113 = arith.constant 0 : index
    %c0_114 = arith.constant 0 : index
    %168 = vector.load %arg6[%c0_113, %c0_114] : memref<1x64xf32, #tpu.memory_space<vmem>>, vector<1x64xf32>
    %169 = vector.broadcast %168 : vector<1x64xf32> to vector<16x64xf32>
    %170 = arith.addf %167, %169 : vector<16x64xf32>
    %c0_115 = arith.constant 0 : index
    %c0_116 = arith.constant 0 : index
    %171 = vector.load %arg7[%c0_115, %c0_116] : memref<1x64xf32, #tpu.memory_space<vmem>>, vector<1x64xf32>
    %c0_117 = arith.constant 0 : index
    %c0_118 = arith.constant 0 : index
    %172 = vector.load %arg8[%c0_117, %c0_118] : memref<1x64xf32, #tpu.memory_space<vmem>>, vector<1x64xf32>
    %cst_119 = arith.constant dense<0.000000e+00> : vector<16xf32>
    %173 = vector.multi_reduction <add>, %170, %cst_119 [1] : vector<16x64xf32> to vector<16xf32>
    %174 = vector.shape_cast %173 : vector<16xf32> to vector<16x1xf32>
    %cst_120 = arith.constant 6.400000e+01 : f32
    %175 = vector.broadcast %cst_120 : f32 to vector<16x1xf32>
    %176 = arith.divf %174, %175 : vector<16x1xf32>
    %177 = vector.broadcast %176 : vector<16x1xf32> to vector<16x64xf32>
    %178 = arith.subf %170, %177 : vector<16x64xf32>
    %179 = arith.mulf %178, %178 : vector<16x64xf32>
    %cst_121 = arith.constant dense<0.000000e+00> : vector<16xf32>
    %180 = vector.multi_reduction <add>, %179, %cst_121 [1] : vector<16x64xf32> to vector<16xf32>
    %181 = vector.shape_cast %180 : vector<16xf32> to vector<16x1xf32>
    %cst_122 = arith.constant 6.400000e+01 : f32
    %182 = vector.broadcast %cst_122 : f32 to vector<16x1xf32>
    %183 = arith.divf %181, %182 : vector<16x1xf32>
    %184 = vector.broadcast %176 : vector<16x1xf32> to vector<16x64xf32>
    %185 = arith.subf %170, %184 : vector<16x64xf32>
    %cst_123 = arith.constant 9.99999974E-6 : f32
    %186 = vector.broadcast %cst_123 : f32 to vector<16x1xf32>
    %187 = arith.addf %183, %186 : vector<16x1xf32>
    %188 = math.rsqrt %187 : vector<16x1xf32>
    %189 = vector.broadcast %188 : vector<16x1xf32> to vector<16x64xf32>
    %190 = arith.mulf %185, %189 : vector<16x64xf32>
    %191 = vector.broadcast %171 : vector<1x64xf32> to vector<16x64xf32>
    %192 = arith.mulf %190, %191 : vector<16x64xf32>
    %193 = vector.broadcast %172 : vector<1x64xf32> to vector<16x64xf32>
    %194 = arith.addf %192, %193 : vector<16x64xf32>
    %c0_124 = arith.constant 0 : index
    %c0_125 = arith.constant 0 : index
    %195 = vector.load %arg9[%c0_124, %c0_125] : memref<64x256xf32, #tpu.memory_space<vmem>>, vector<64x256xf32>
    %cst_126 = arith.constant dense<0.000000e+00> : vector<16x256xf32>
    %196 = tpu.matmul %194, %195, %cst_126 {dimension_numbers = #tpu.dot_dimension_numbers<[1], [0], [0], [1], [0, 0, 1, 1], [], []>} : vector<16x64xf32>, vector<64x256xf32>, vector<16x256xf32> -> vector<16x256xf32>
    %c0_127 = arith.constant 0 : index
    %c0_128 = arith.constant 0 : index
    %197 = vector.load %arg10[%c0_127, %c0_128] : memref<1x256xf32, #tpu.memory_space<vmem>>, vector<1x256xf32>
    %198 = vector.broadcast %197 : vector<1x256xf32> to vector<16x256xf32>
    %199 = arith.addf %196, %198 : vector<16x256xf32>
    %cst_129 = arith.constant 5.000000e-01 : f32
    %200 = vector.broadcast %cst_129 : f32 to vector<16x256xf32>
    %201 = arith.mulf %200, %199 : vector<16x256xf32>
    %cst_130 = arith.constant 0.707106769 : f32
    %202 = vector.broadcast %cst_130 : f32 to vector<16x256xf32>
    %203 = arith.mulf %199, %202 : vector<16x256xf32>
    %204 = math.erf %203 : vector<16x256xf32>
    %cst_131 = arith.constant 1.000000e+00 : f32
    %205 = vector.broadcast %cst_131 : f32 to vector<16x256xf32>
    %206 = arith.addf %205, %204 : vector<16x256xf32>
    %207 = arith.mulf %201, %206 : vector<16x256xf32>
    %c0_132 = arith.constant 0 : index
    %c0_133 = arith.constant 0 : index
    %208 = vector.load %arg11[%c0_132, %c0_133] : memref<256x64xf32, #tpu.memory_space<vmem>>, vector<256x64xf32>
    %cst_134 = arith.constant dense<0.000000e+00> : vector<16x64xf32>
    %209 = tpu.matmul %207, %208, %cst_134 {dimension_numbers = #tpu.dot_dimension_numbers<[1], [0], [0], [1], [0, 0, 1, 1], [], []>} : vector<16x256xf32>, vector<256x64xf32>, vector<16x64xf32> -> vector<16x64xf32>
    %210 = arith.addf %194, %209 : vector<16x64xf32>
    %c0_135 = arith.constant 0 : index
    %c0_136 = arith.constant 0 : index
    %211 = vector.load %arg12[%c0_135, %c0_136] : memref<1x64xf32, #tpu.memory_space<vmem>>, vector<1x64xf32>
    %212 = vector.broadcast %211 : vector<1x64xf32> to vector<16x64xf32>
    %213 = arith.addf %210, %212 : vector<16x64xf32>
    %c0_137 = arith.constant 0 : index
    %c0_138 = arith.constant 0 : index
    %214 = vector.load %arg13[%c0_137, %c0_138] : memref<1x64xf32, #tpu.memory_space<vmem>>, vector<1x64xf32>
    %c0_139 = arith.constant 0 : index
    %c0_140 = arith.constant 0 : index
    %215 = vector.load %arg14[%c0_139, %c0_140] : memref<1x64xf32, #tpu.memory_space<vmem>>, vector<1x64xf32>
    %cst_141 = arith.constant dense<0.000000e+00> : vector<16xf32>
    %216 = vector.multi_reduction <add>, %213, %cst_141 [1] : vector<16x64xf32> to vector<16xf32>
    %217 = vector.shape_cast %216 : vector<16xf32> to vector<16x1xf32>
    %cst_142 = arith.constant 6.400000e+01 : f32
    %218 = vector.broadcast %cst_142 : f32 to vector<16x1xf32>
    %219 = arith.divf %217, %218 : vector<16x1xf32>
    %220 = vector.broadcast %219 : vector<16x1xf32> to vector<16x64xf32>
    %221 = arith.subf %213, %220 : vector<16x64xf32>
    %222 = arith.mulf %221, %221 : vector<16x64xf32>
    %cst_143 = arith.constant dense<0.000000e+00> : vector<16xf32>
    %223 = vector.multi_reduction <add>, %222, %cst_143 [1] : vector<16x64xf32> to vector<16xf32>
    %224 = vector.shape_cast %223 : vector<16xf32> to vector<16x1xf32>
    %cst_144 = arith.constant 6.400000e+01 : f32
    %225 = vector.broadcast %cst_144 : f32 to vector<16x1xf32>
    %226 = arith.divf %224, %225 : vector<16x1xf32>
    %227 = vector.broadcast %219 : vector<16x1xf32> to vector<16x64xf32>
    %228 = arith.subf %213, %227 : vector<16x64xf32>
    %cst_145 = arith.constant 9.99999974E-6 : f32
    %229 = vector.broadcast %cst_145 : f32 to vector<16x1xf32>
    %230 = arith.addf %226, %229 : vector<16x1xf32>
    %231 = math.rsqrt %230 : vector<16x1xf32>
    %232 = vector.broadcast %231 : vector<16x1xf32> to vector<16x64xf32>
    %233 = arith.mulf %228, %232 : vector<16x64xf32>
    %234 = vector.broadcast %214 : vector<1x64xf32> to vector<16x64xf32>
    %235 = arith.mulf %233, %234 : vector<16x64xf32>
    %236 = vector.broadcast %215 : vector<1x64xf32> to vector<16x64xf32>
    %237 = arith.addf %235, %236 : vector<16x64xf32>
    %c0_146 = arith.constant 0 : index
    %c0_147 = arith.constant 0 : index
    %c0_148 = arith.constant 0 : index
    %238 = vector.load %arg15[%c0_146, %c0_147, %c0_148] : memref<1x16x64xf32, #tpu.memory_space<vmem>>, vector<1x16x64xf32>
    %239 = vector.shape_cast %238 : vector<1x16x64xf32> to vector<16x64xf32>
    %240 = vector.shape_cast %237 : vector<16x64xf32> to vector<1x16x64xf32>
    tpu.vector_store %arg15[%c0_146, %c0_147, %c0_148], %240 {strides = array<i32>} : memref<1x16x64xf32, #tpu.memory_space<vmem>>, vector<1x16x64xf32>,
    return
  }
  func.func @transform_0(%arg0: i32) -> (i32, i32, i32) {
    %c0_i32 = arith.constant 0 : i32
    %c0_i32_0 = arith.constant 0 : i32
    %c0_i32_1 = arith.constant 0 : i32
    return %arg0, %c0_i32, %c0_i32_0 : i32, i32, i32
  }
  func.func @transform_1(%arg0: i32) -> (i32, i32, i32) {
    %c0_i32 = arith.constant 0 : i32
    %c0_i32_0 = arith.constant 0 : i32
    %c0_i32_1 = arith.constant 0 : i32
    return %arg0, %c0_i32, %c0_i32_0 : i32, i32, i32
  }
  func.func @transform_2(%arg0: i32) -> (i32, i32, i32) {
    %c0_i32 = arith.constant 0 : i32
    %c0_i32_0 = arith.constant 0 : i32
    %c0_i32_1 = arith.constant 0 : i32
    %c0_i32_2 = arith.constant 0 : i32
    return %c0_i32, %c0_i32_0, %c0_i32_1 : i32, i32, i32
  }
  func.func @transform_3(%arg0: i32) -> (i32, i32, i32) {
    %c0_i32 = arith.constant 0 : i32
    %c0_i32_0 = arith.constant 0 : i32
    %c0_i32_1 = arith.constant 0 : i32
    %c0_i32_2 = arith.constant 0 : i32
    return %c0_i32, %c0_i32_0, %c0_i32_1 : i32, i32, i32
  }
  func.func @transform_4(%arg0: i32) -> (i32, i32, i32) {
    %c0_i32 = arith.constant 0 : i32
    %c0_i32_0 = arith.constant 0 : i32
    %c0_i32_1 = arith.constant 0 : i32
    %c0_i32_2 = arith.constant 0 : i32
    return %c0_i32, %c0_i32_0, %c0_i32_1 : i32, i32, i32
  }
  func.func @transform_5(%arg0: i32) -> (i32, i32) {
    %c0_i32 = arith.constant 0 : i32
    %c0_i32_0 = arith.constant 0 : i32
    %c0_i32_1 = arith.constant 0 : i32
    return %c0_i32, %c0_i32_0 : i32, i32
  }
  func.func @transform_6(%arg0: i32) -> (i32, i32) {
    %c0_i32 = arith.constant 0 : i32
    %c0_i32_0 = arith.constant 0 : i32
    %c0_i32_1 = arith.constant 0 : i32
    return %c0_i32, %c0_i32_0 : i32, i32
  }
  func.func @transform_7(%arg0: i32) -> (i32, i32) {
    %c0_i32 = arith.constant 0 : i32
    %c0_i32_0 = arith.constant 0 : i32
    %c0_i32_1 = arith.constant 0 : i32
    return %c0_i32, %c0_i32_0 : i32, i32
  }
  func.func @transform_8(%arg0: i32) -> (i32, i32) {
    %c0_i32 = arith.constant 0 : i32
    %c0_i32_0 = arith.constant 0 : i32
    %c0_i32_1 = arith.constant 0 : i32
    return %c0_i32, %c0_i32_0 : i32, i32
  }
  func.func @transform_9(%arg0: i32) -> (i32, i32) {
    %c0_i32 = arith.constant 0 : i32
    %c0_i32_0 = arith.constant 0 : i32
    %c0_i32_1 = arith.constant 0 : i32
    return %c0_i32, %c0_i32_0 : i32, i32
  }
  func.func @transform_10(%arg0: i32) -> (i32, i32) {
    %c0_i32 = arith.constant 0 : i32
    %c0_i32_0 = arith.constant 0 : i32
    %c0_i32_1 = arith.constant 0 : i32
    return %c0_i32, %c0_i32_0 : i32, i32
  }
  func.func @transform_11(%arg0: i32) -> (i32, i32) {
    %c0_i32 = arith.constant 0 : i32
    %c0_i32_0 = arith.constant 0 : i32
    %c0_i32_1 = arith.constant 0 : i32
    return %c0_i32, %c0_i32_0 : i32, i32
  }
  func.func @transform_12(%arg0: i32) -> (i32, i32) {
    %c0_i32 = arith.constant 0 : i32
    %c0_i32_0 = arith.constant 0 : i32
    %c0_i32_1 = arith.constant 0 : i32
    return %c0_i32, %c0_i32_0 : i32, i32
  }
  func.func @transform_13(%arg0: i32) -> (i32, i32) {
    %c0_i32 = arith.constant 0 : i32
    %c0_i32_0 = arith.constant 0 : i32
    %c0_i32_1 = arith.constant 0 : i32
    return %c0_i32, %c0_i32_0 : i32, i32
  }
  func.func @transform_14(%arg0: i32) -> (i32, i32, i32) {
    %c0_i32 = arith.constant 0 : i32
    %c0_i32_0 = arith.constant 0 : i32
    %c0_i32_1 = arith.constant 0 : i32
    return %arg0, %c0_i32, %c0_i32_0 : i32, i32, i32
  }
}

module attributes {stable_mosaic.version = 11 : i64} {
  func.func @_head_kernel(%arg0: i32, %arg1: memref<32x64xf32, #tpu.memory_space<vmem>>, %arg2: memref<1x64xf32, #tpu.memory_space<vmem>>, %arg3: memref<1x64xf32, #tpu.memory_space<vmem>>, %arg4: memref<64x64xf32, #tpu.memory_space<vmem>>, %arg5: memref<1x64xf32, #tpu.memory_space<vmem>>, %arg6: memref<64x16xf32, #tpu.memory_space<vmem>>, %arg7: memref<1x16xf32, #tpu.memory_space<vmem>>, %arg8: memref<32x16xf32, #tpu.memory_space<vmem>>) attributes {dimension_semantics = [#tpu.dimension_semantics<arbitrary>], iteration_bounds = array<i64: 1>, scalar_prefetch = 0 : i64, scratch_operands = 0 : i64, tpu.core_type = #tpu.core_type<tc>, window_params = [{pipeline_mode = #tpu.pipeline_mode<synchronous>, transform_indices = @transform_0, window_bounds = array<i64: 32, 64>}, {pipeline_mode = #tpu.pipeline_mode<synchronous>, transform_indices = @transform_1, window_bounds = array<i64: 1, 64>}, {pipeline_mode = #tpu.pipeline_mode<synchronous>, transform_indices = @transform_2, window_bounds = array<i64: 1, 64>}, {pipeline_mode = #tpu.pipeline_mode<synchronous>, transform_indices = @transform_3, window_bounds = array<i64: 64, 64>}, {pipeline_mode = #tpu.pipeline_mode<synchronous>, transform_indices = @transform_4, window_bounds = array<i64: 1, 64>}, {pipeline_mode = #tpu.pipeline_mode<synchronous>, transform_indices = @transform_5, window_bounds = array<i64: 64, 16>}, {pipeline_mode = #tpu.pipeline_mode<synchronous>, transform_indices = @transform_6, window_bounds = array<i64: 1, 16>}, {pipeline_mode = #tpu.pipeline_mode<synchronous>, transform_indices = @transform_7, window_bounds = array<i64: 32, 16>}]} {
    %c0 = arith.constant 0 : index
    %c0_0 = arith.constant 0 : index
    %0 = vector.load %arg1[%c0, %c0_0] : memref<32x64xf32, #tpu.memory_space<vmem>>, vector<32x64xf32>
    %c0_1 = arith.constant 0 : index
    %c0_2 = arith.constant 0 : index
    %1 = vector.load %arg2[%c0_1, %c0_2] : memref<1x64xf32, #tpu.memory_space<vmem>>, vector<1x64xf32>
    %c0_3 = arith.constant 0 : index
    %c0_4 = arith.constant 0 : index
    %2 = vector.load %arg3[%c0_3, %c0_4] : memref<1x64xf32, #tpu.memory_space<vmem>>, vector<1x64xf32>
    %cst = arith.constant dense<0.000000e+00> : vector<32xf32>
    %3 = vector.multi_reduction <add>, %0, %cst [1] : vector<32x64xf32> to vector<32xf32>
    %4 = vector.shape_cast %3 : vector<32xf32> to vector<32x1xf32>
    %cst_5 = arith.constant 6.400000e+01 : f32
    %5 = vector.broadcast %cst_5 : f32 to vector<32x1xf32>
    %6 = arith.divf %4, %5 : vector<32x1xf32>
    %7 = vector.broadcast %6 : vector<32x1xf32> to vector<32x64xf32>
    %8 = arith.subf %0, %7 : vector<32x64xf32>
    %9 = arith.mulf %8, %8 : vector<32x64xf32>
    %cst_6 = arith.constant dense<0.000000e+00> : vector<32xf32>
    %10 = vector.multi_reduction <add>, %9, %cst_6 [1] : vector<32x64xf32> to vector<32xf32>
    %11 = vector.shape_cast %10 : vector<32xf32> to vector<32x1xf32>
    %cst_7 = arith.constant 6.400000e+01 : f32
    %12 = vector.broadcast %cst_7 : f32 to vector<32x1xf32>
    %13 = arith.divf %11, %12 : vector<32x1xf32>
    %14 = vector.broadcast %6 : vector<32x1xf32> to vector<32x64xf32>
    %15 = arith.subf %0, %14 : vector<32x64xf32>
    %cst_8 = arith.constant 9.99999974E-6 : f32
    %16 = vector.broadcast %cst_8 : f32 to vector<32x1xf32>
    %17 = arith.addf %13, %16 : vector<32x1xf32>
    %18 = math.rsqrt %17 : vector<32x1xf32>
    %19 = vector.broadcast %18 : vector<32x1xf32> to vector<32x64xf32>
    %20 = arith.mulf %15, %19 : vector<32x64xf32>
    %21 = vector.broadcast %1 : vector<1x64xf32> to vector<32x64xf32>
    %22 = arith.mulf %20, %21 : vector<32x64xf32>
    %23 = vector.broadcast %2 : vector<1x64xf32> to vector<32x64xf32>
    %24 = arith.addf %22, %23 : vector<32x64xf32>
    %c0_9 = arith.constant 0 : index
    %c0_10 = arith.constant 0 : index
    %25 = vector.load %arg4[%c0_9, %c0_10] : memref<64x64xf32, #tpu.memory_space<vmem>>, vector<64x64xf32>
    %cst_11 = arith.constant dense<0.000000e+00> : vector<32x64xf32>
    %26 = tpu.matmul %24, %25, %cst_11 {dimension_numbers = #tpu.dot_dimension_numbers<[1], [0], [0], [1], [0, 0, 1, 1], [], []>} : vector<32x64xf32>, vector<64x64xf32>, vector<32x64xf32> -> vector<32x64xf32>
    %c0_12 = arith.constant 0 : index
    %c0_13 = arith.constant 0 : index
    %27 = vector.load %arg5[%c0_12, %c0_13] : memref<1x64xf32, #tpu.memory_space<vmem>>, vector<1x64xf32>
    %28 = vector.broadcast %27 : vector<1x64xf32> to vector<32x64xf32>
    %29 = arith.addf %26, %28 : vector<32x64xf32>
    %cst_14 = arith.constant 5.000000e-01 : f32
    %30 = vector.broadcast %cst_14 : f32 to vector<32x64xf32>
    %31 = arith.mulf %30, %29 : vector<32x64xf32>
    %cst_15 = arith.constant 0.707106769 : f32
    %32 = vector.broadcast %cst_15 : f32 to vector<32x64xf32>
    %33 = arith.mulf %29, %32 : vector<32x64xf32>
    %34 = math.erf %33 : vector<32x64xf32>
    %cst_16 = arith.constant 1.000000e+00 : f32
    %35 = vector.broadcast %cst_16 : f32 to vector<32x64xf32>
    %36 = arith.addf %35, %34 : vector<32x64xf32>
    %37 = arith.mulf %31, %36 : vector<32x64xf32>
    %c0_17 = arith.constant 0 : index
    %c0_18 = arith.constant 0 : index
    %38 = vector.load %arg6[%c0_17, %c0_18] : memref<64x16xf32, #tpu.memory_space<vmem>>, vector<64x16xf32>
    %cst_19 = arith.constant dense<0.000000e+00> : vector<32x16xf32>
    %39 = tpu.matmul %37, %38, %cst_19 {dimension_numbers = #tpu.dot_dimension_numbers<[1], [0], [0], [1], [0, 0, 1, 1], [], []>} : vector<32x64xf32>, vector<64x16xf32>, vector<32x16xf32> -> vector<32x16xf32>
    %c0_20 = arith.constant 0 : index
    %c0_21 = arith.constant 0 : index
    %40 = vector.load %arg7[%c0_20, %c0_21] : memref<1x16xf32, #tpu.memory_space<vmem>>, vector<1x16xf32>
    %41 = vector.broadcast %40 : vector<1x16xf32> to vector<32x16xf32>
    %42 = arith.addf %39, %41 : vector<32x16xf32>
    %c0_22 = arith.constant 0 : index
    %c0_23 = arith.constant 0 : index
    %43 = vector.load %arg8[%c0_22, %c0_23] : memref<32x16xf32, #tpu.memory_space<vmem>>, vector<32x16xf32>
    tpu.vector_store %arg8[%c0_22, %c0_23], %42 {strides = array<i32>} : memref<32x16xf32, #tpu.memory_space<vmem>>, vector<32x16xf32>,
    return
  }
  func.func @transform_0(%arg0: i32) -> (i32, i32) {
    %c0_i32 = arith.constant 0 : i32
    %c0_i32_0 = arith.constant 0 : i32
    %c0_i32_1 = arith.constant 0 : i32
    return %c0_i32, %c0_i32_0 : i32, i32
  }
  func.func @transform_1(%arg0: i32) -> (i32, i32) {
    %c0_i32 = arith.constant 0 : i32
    %c0_i32_0 = arith.constant 0 : i32
    %c0_i32_1 = arith.constant 0 : i32
    return %c0_i32, %c0_i32_0 : i32, i32
  }
  func.func @transform_2(%arg0: i32) -> (i32, i32) {
    %c0_i32 = arith.constant 0 : i32
    %c0_i32_0 = arith.constant 0 : i32
    %c0_i32_1 = arith.constant 0 : i32
    return %c0_i32, %c0_i32_0 : i32, i32
  }
  func.func @transform_3(%arg0: i32) -> (i32, i32) {
    %c0_i32 = arith.constant 0 : i32
    %c0_i32_0 = arith.constant 0 : i32
    %c0_i32_1 = arith.constant 0 : i32
    return %c0_i32, %c0_i32_0 : i32, i32
  }
  func.func @transform_4(%arg0: i32) -> (i32, i32) {
    %c0_i32 = arith.constant 0 : i32
    %c0_i32_0 = arith.constant 0 : i32
    %c0_i32_1 = arith.constant 0 : i32
    return %c0_i32, %c0_i32_0 : i32, i32
  }
  func.func @transform_5(%arg0: i32) -> (i32, i32) {
    %c0_i32 = arith.constant 0 : i32
    %c0_i32_0 = arith.constant 0 : i32
    %c0_i32_1 = arith.constant 0 : i32
    return %c0_i32, %c0_i32_0 : i32, i32
  }
  func.func @transform_6(%arg0: i32) -> (i32, i32) {
    %c0_i32 = arith.constant 0 : i32
    %c0_i32_0 = arith.constant 0 : i32
    %c0_i32_1 = arith.constant 0 : i32
    return %c0_i32, %c0_i32_0 : i32, i32
  }
  func.func @transform_7(%arg0: i32) -> (i32, i32) {
    %c0_i32 = arith.constant 0 : i32
    %c0_i32_0 = arith.constant 0 : i32
    %c0_i32_1 = arith.constant 0 : i32
    return %c0_i32, %c0_i32_0 : i32, i32
  }
}

</mosaic_0001>

<bundles_post_ra>
// kernel: vtn_forward.9
= control target key start
LH: loop header
LB: loop body
LE: loop exit
PB: predicated region body
PF: predicated region fallthrough
CT: control target
= control target key end

     0   :  { %s604_s12 = smov 0   ;;  %s717_s0 = inlined_call_operand.vmem [shape: f32[256,48], index: 0, kind: input, shape index: {}]   ;;  %s718_s1 = inlined_call_operand.vmem [shape: f32[48,64], index: 1, kind: input, shape index: {}]   ;;  %s719_s2 = inlined_call_operand.vmem [shape: f32[1,64], index: 2, kind: input, shape index: {}]   ;;  %s720_s3 = inlined_call_operand.vmem [shape: f32[256,64], index: 3, kind: output, shape index: {}]  }
   0x1 LB: > { %s470_s13 = sadd.s32 4294967295, %s582_s12   ;;  %p474_p0 = scmp.ge.s32.totalorder %s582_s12, 1  ;;  %s582_s12 = sphi %s604_s12, %s13_s12  }
   0x2   : > { %p138_p1 = scmp.lt.s32.totalorder %s582_s12, 3 }
   0x4   : > { %p139_p2 = pnand %p474_p0, %p138_p1 }
   0x5   : > { %s475_s18 = sshll.u32 (!%p139_p2), %s470_s13, 4 }
   0x6   : > { %142 = sbr.rel (%p139_p2) target bundleno = 235 (0xeb), region = 32  ;;  %p163_p3 = scmp.lt.s32.totalorder (!%p139_p2), %s475_s18, 31 }
   0xb   : > { %v195_v0 = vld [vmem:[%s718_s1 + $0x28] sm:$0xff]  ;;  %v194_v1 = vld [vmem:[%s718_s1 + $0x20] sm:$0xff]  ;;  %v193_v2 = vld [vmem:[%s718_s1 + $0x18] sm:$0xff]  ;;  %s722_s18 = smov (!%p163_p3, %s475_s18), 31  ;;  %vm203_vm0 = vcmask 392192   ;;  %vm397_vm1 = vcmask 523264  }
   0xc   : > { %520 = vmatprep.subr.mxu0 %v195_v0  ;;  %556 = vmatprep.subr.mxu1 %v195_v0  ;;  %v192_v3 = vld [vmem:[%s718_s1 + $0x10] sm:$0xff]  ;;  %s476_s23 = sshll.u32 %s722_s18, 3  ;;  %v191_v4 = vld [vmem:[%s718_s1 + $0x8] sm:$0xff]  ;;  %v190_v5 = vld [vmem:[%s718_s1] sm:$0xff] }
   0xd   : > { %521 = vmatpush3.msra.mxu0 %v195_v0  ;;  %562 = vmatpush3.msra.mxu1 %v195_v0  ;;  %s635_s28 = scalar_lea.vmem %s717_s0, %s476_s23  ;;  %v479_v22 = vld [vmem:[%s719_s2] ss:$0 sm:$0xff]  ;;  %s680_s8 = scalar_lea.vmem %s720_s3, %s476_s23 }
   0xe   : > { %522 = vmatprep.subr.mxu0 %v194_v1  ;;  %557 = vmatprep.subr.mxu1 %v194_v1  ;;  %v174_v6 = vld [vmem:[%s635_s28] sm:$0xff]  ;;  %v175_v8 = vld [vmem:[%s635_s28 + $0x8] sm:$0xff]  ;;  %v176_v10 = vld [vmem:[%s635_s28 + $0x10] sm:$0xff] }
   0xf   : > { %523 = vmatpush3.msra.mxu0 %v194_v1  ;;  %563 = vmatpush3.msra.mxu1 %v194_v1  ;;  %v182_v7 = vld [vmem:[%s635_s28 + $0x40] sm:$0xff]  ;;  %v183_v9 = vld [vmem:[%s635_s28 + $0x48] sm:$0xff]  ;;  %v184_v11 = vld [vmem:[%s635_s28 + $0x50] sm:$0xff] }
  0x10   : > { %524 = vmatprep.subr.mxu0 %v193_v2  ;;  %558 = vmatprep.subr.mxu1 %v193_v2  ;;  %v177_v12 = vld [vmem:[%s635_s28 + $0x18] sm:$0xff]  ;;  %v178_v14 = vld [vmem:[%s635_s28 + $0x20] sm:$0xff]  ;;  %v179_v16 = vld [vmem:[%s635_s28 + $0x28] sm:$0xff] }
  0x11   : > { %525 = vmatpush3.msra.mxu0 %v193_v2  ;;  %564 = vmatpush3.msra.mxu1 %v193_v2  ;;  %v185_v13 = vld [vmem:[%s635_s28 + $0x58] sm:$0xff]  ;;  %v186_v15 = vld [vmem:[%s635_s28 + $0x60] sm:$0xff]  ;;  %v187_v17 = vld [vmem:[%s635_s28 + $0x68] sm:$0xff] }
  0x12   : > { %526 = vmatprep.subr.mxu0 %v192_v3  ;;  %559 = vmatprep.subr.mxu1 %v192_v3  ;;  %v180_v18 = vld [vmem:[%s635_s28 + $0x30] sm:$0xff]  ;;  %v181_v20 = vld [vmem:[%s635_s28 + $0x38] sm:$0xff] }
  0x13   : > { %527 = vmatpush3.msra.mxu0 %v192_v3  ;;  %565 = vmatpush3.msra.mxu1 %v192_v3  ;;  %v188_v19 = vld [vmem:[%s635_s28 + $0x70] sm:$0xff]  ;;  %v189_v21 = vld [vmem:[%s635_s28 + $0x78] sm:$0xff] }
  0x14   : > { %528 = vmatprep.subr.mxu0 %v191_v4  ;;  %560 = vmatprep.subr.mxu1 %v191_v4 }
  0x15   : > { %529 = vmatpush3.msra.mxu0 %v191_v4  ;;  %566 = vmatpush3.msra.mxu1 %v191_v4 }
  0x16   : > { %530 = vmatprep.subr.mxu0 %v190_v5  ;;  %561 = vmatprep.subr.mxu1 %v190_v5 }
  0x17   : > { %531 = vmatpush3.msra.mxu0 %v190_v5  ;;  %567 = vmatpush3.msra.mxu1 %v190_v5 }
  0x18   : > { %532 = vmatprep.mubr.msk.f32.mxu0 %vm203_vm0, %v174_v6  ;;  %544 = vmatprep.mubr.msk.f32.mxu1 %vm203_vm0, %v182_v7 }
  0x19   : > { %533 = vmatmul.mubr.msk.f32.vlgmr.msra.gmra.mxu0 %vm203_vm0, %v175_v8  ;;  %545 = vmatmul.mubr.msk.f32.vlgmr.msra.gmra.mxu1 %vm203_vm0, %v183_v9 }
  0x1a   : > { %535 = vmatprep.mubr.msk.f32.mxu0 %vm203_vm0, %v176_v10  ;;  %547 = vmatprep.mubr.msk.f32.mxu1 %vm203_vm0, %v184_v11 }
  0x1d   : > { %536 = vmatmul.mubr.msk.f32.gmra.mxu0 %vm203_vm0, %v177_v12  ;;  %548 = vmatmul.mubr.msk.f32.gmra.mxu1 %vm203_vm0, %v185_v13 }
  0x1e   : > { %538 = vmatprep.mubr.msk.f32.mxu0 %vm203_vm0, %v178_v14  ;;  %550 = vmatprep.mubr.msk.f32.mxu1 %vm203_vm0, %v186_v15 }
  0x21   : > { %539 = vmatmul.mubr.msk.f32.gmra.mxu0 %vm203_vm0, %v179_v16  ;;  %551 = vmatmul.mubr.msk.f32.gmra.mxu1 %vm203_vm0, %v187_v17 }
  0x22   : > { %541 = vmatprep.mubr.msk.f32.mxu0 %vm203_vm0, %v180_v18  ;;  %553 = vmatprep.mubr.msk.f32.mxu1 %vm203_vm0, %v188_v19 }
  0x25   : > { %542 = vmatmul.mubr.msk.f32.gmra.mxu0 %vm203_vm0, %v181_v20  ;;  %554 = vmatmul.mubr.msk.f32.gmra.mxu1 %vm203_vm0, %v189_v21 }
  0xd9   : > { %v534_v23 = vpop.f32.mrf.mxu0  ;;  %v546_v24 = vpop.f32.mrf.mxu1 }
  0xda   : > { %v324_v25 = vadd.f32 %v534_v23, %v479_v22  ;;  %v364_v26 = vadd.f32 %v546_v24, %v479_v22 }
  0xdb   : > { %v318_v27 = vpop.f32.mrf.mxu0  ;;  %v358_v28 = vpop.f32.mrf.mxu1 }
  0xdc   : > { %399 = vst.msk [vmem:[%s680_s8 + $0x8] sm:$0xff] %vm397_vm1, %v324_v25  ;;  %407 = vst.msk [vmem:[%s680_s8 + $0x48] sm:$0xff] %vm397_vm1, %v364_v26  ;;  %v319_v29 = vadd.f32 %v479_v22, %v318_v27  ;;  %v359_v30 = vadd.f32 %v479_v22, %v358_v28 }
  0xdd   : > { %v537_v31 = vpop.f32.mrf.mxu0  ;;  %v549_v32 = vpop.f32.mrf.mxu1 }
  0xde   : > { %398 = vst.msk [vmem:[%s680_s8] sm:$0xff] %vm397_vm1, %v319_v29  ;;  %406 = vst.msk [vmem:[%s680_s8 + $0x40] sm:$0xff] %vm397_vm1, %v359_v30  ;;  %v334_v33 = vadd.f32 %v537_v31, %v479_v22  ;;  %v374_v34 = vadd.f32 %v549_v32, %v479_v22 }
  0xdf   : > { %v328_v35 = vpop.f32.mrf.mxu0  ;;  %v368_v36 = vpop.f32.mrf.mxu1 }
  0xe0   : > { %401 = vst.msk [vmem:[%s680_s8 + $0x18] sm:$0xff] %vm397_vm1, %v334_v33  ;;  %409 = vst.msk [vmem:[%s680_s8 + $0x58] sm:$0xff] %vm397_vm1, %v374_v34  ;;  %v329_v37 = vadd.f32 %v479_v22, %v328_v35  ;;  %v369_v38 = vadd.f32 %v479_v22, %v368_v36 }
  0xe1   : > { %v540_v39 = vpop.f32.mrf.mxu0  ;;  %v552_v40 = vpop.f32.mrf.mxu1 }
  0xe2   : > { %400 = vst.msk [vmem:[%s680_s8 + $0x10] sm:$0xff] %vm397_vm1, %v329_v37  ;;  %408 = vst.msk [vmem:[%s680_s8 + $0x50] sm:$0xff] %vm397_vm1, %v369_v38  ;;  %v344_v41 = vadd.f32 %v540_v39, %v479_v22  ;;  %v384_v42 = vadd.f32 %v552_v40, %v479_v22 }
  0xe3   : > { %v338_v43 = vpop.f32.mrf.mxu0  ;;  %v378_v44 = vpop.f32.mrf.mxu1 }
  0xe4   : > { %403 = vst.msk [vmem:[%s680_s8 + $0x28] sm:$0xff] %vm397_vm1, %v344_v41  ;;  %411 = vst.msk [vmem:[%s680_s8 + $0x68] sm:$0xff] %vm397_vm1, %v384_v42  ;;  %v339_v45 = vadd.f32 %v479_v22, %v338_v43  ;;  %v379_v46 = vadd.f32 %v479_v22, %v378_v44 }
  0xe5   : > { %v543_v47 = vpop.f32.mrf.mxu0  ;;  %v555_v48 = vpop.f32.mrf.mxu1 }
  0xe6   : > { %402 = vst.msk [vmem:[%s680_s8 + $0x20] sm:$0xff] %vm397_vm1, %v339_v45  ;;  %410 = vst.msk [vmem:[%s680_s8 + $0x60] sm:$0xff] %vm397_vm1, %v379_v46  ;;  %v354_v49 = vadd.f32 %v543_v47, %v479_v22  ;;  %v394_v50 = vadd.f32 %v555_v48, %v479_v22 }
  0xe7   : > { %v348_v51 = vpop.f32.mrf.mxu0  ;;  %v388_v52 = vpop.f32.mrf.mxu1 }
  0xe8   : > { %405 = vst.msk [vmem:[%s680_s8 + $0x38] sm:$0xff] %vm397_vm1, %v354_v49  ;;  %413 = vst.msk [vmem:[%s680_s8 + $0x78] sm:$0xff] %vm397_vm1, %v394_v50  ;;  %v349_v53 = vadd.f32 %v479_v22, %v348_v51  ;;  %v389_v54 = vadd.f32 %v479_v22, %v388_v52 }
  0xea   : > { %404 = vst.msk [vmem:[%s680_s8 + $0x30] sm:$0xff] %vm397_vm1, %v349_v53  ;;  %412 = vst.msk [vmem:[%s680_s8 + $0x70] sm:$0xff] %vm397_vm1, %v389_v54 }
  0xeb PF: > { %s13_s12 = sadd.s32 1, %s582_s12  }
  0xec   : > { %p10_p4 = scmp.ge.s32.totalorder %s13_s12, 4  }
  0xee   :  { %12 = sbr.rel (!%p10_p4) target bundleno = 1 (0x1), region = 62 }

// kernel: vtn_forward.12
= control target key start
LH: loop header
LB: loop body
LE: loop exit
PB: predicated region body
PF: predicated region fallthrough
CT: control target
= control target key end

     0   :  { %vm18_vm0 = vcmask 523264   ;;  %s118_s0 = inlined_call_operand.vmem [shape: f32[16,64], index: 0, kind: input, shape index: {}]   ;;  %s119_s1 = inlined_call_operand.vmem [shape: f32[1,64], index: 1, kind: input, shape index: {}]   ;;  %s120_s2 = inlined_call_operand.vmem [shape: f32[1,64], index: 2, kind: input, shape index: {}]   ;;  %s121_s3 = inlined_call_operand.vmem [shape: f32[16,64], index: 3, kind: output, shape index: {}]  }
   0x1   :  { %v14_v0 = vld [vmem:[%s118_s0] sm:$0xff]  ;;  %v15_v1 = vld [vmem:[%s118_s0 + $0x8] sm:$0xff] }
   0x2   :  { %v19_v2 = vsel %vm18_vm0, %v14_v0, 0.0  ;;  %v22_v3 = vsel %vm18_vm0, %v15_v1, 0.0  ;;  %v68_v21 = vld [vmem:[%s119_s1] ss:$0 sm:$0xff] }
   0x3   :  { %20 = vadd.xlane.f32.xlu0 %v19_v2  ;;  %v69_v23 = vld [vmem:[%s120_s2] ss:$0 sm:$0xff] }
   0x7   :  { %23 = vadd.xlane.f32.xlu0 %v22_v3 }
  0x8c   :  { %v21_v4 = vpop.xlane.xlu0 %20 }
  0x8d   :  { %v26_v5 = vmul.f32 0.015625, %v21_v4 }
  0x8f   :  { %v28_v6 = vsub.f32 %v14_v0, %v26_v5 }
  0x90   :  { %v24_v7 = vpop.xlane.xlu0 %23 }
  0x91   :  { %v27_v8 = vmul.f32 0.015625, %v24_v7  ;;  %v30_v9 = vmul.f32 %v28_v6, %v28_v6 }
  0x93   :  { %v29_v10 = vsub.f32 %v15_v1, %v27_v8  ;;  %v32_v11 = vsel %vm18_vm0, %v30_v9, 0.0 }
  0x94   :  { %33 = vadd.xlane.f32.xlu1 %v32_v11 }
  0x95   :  { %v31_v12 = vmul.f32 %v29_v10, %v29_v10 }
  0x97   :  { %v35_v13 = vsel %vm18_vm0, %v31_v12, 0.0 }
  0x98   :  { %36 = vadd.xlane.f32.xlu1 %v35_v13 }
 0x11d   :  { %v34_v14 = vpop.xlane.xlu1 %33 }
 0x11e   :  { %v38_v15 = vmul.f32 0.015625, %v34_v14 }
 0x120   :  { %v40_v16 = vadd.f32 1e-05, %v38_v15 }
 0x121   :  { %v37_v17 = vpop.xlane.xlu1 %36 }
 0x122   :  { %70 = vrsqrt.f32 %v40_v16  ;;  %v39_v18 = vmul.f32 0.015625, %v37_v17 }
 0x124   :  { %v41_v19 = vadd.f32 1e-05, %v39_v18 }
 0x126   :  { %72 = vrsqrt.f32 %v41_v19 }
 0x12f   :  { %v71_v20 = vpop.eup %70 }
 0x130   :  { %v44_v22 = vmul.f32 %v71_v20, %v28_v6 }
 0x132   :  { %v52_v24 = vmul.f32 %v68_v21, %v44_v22 }
 0x133   :  { %v73_v25 = vpop.eup %72 }
 0x134   :  { %v60_v26 = vadd.f32 %v69_v23, %v52_v24  ;;  %v45_v27 = vmul.f32 %v73_v25, %v29_v10 }
 0x136   :  { %62 = vst.msk [vmem:[%s121_s3] sm:$0xff] %vm18_vm0, %v60_v26  ;;  %v53_v28 = vmul.f32 %v68_v21, %v45_v27 }
 0x138   :  { %v61_v29 = vadd.f32 %v69_v23, %v53_v28 }
 0x13a   :  { %63 = vst.msk [vmem:[%s121_s3 + $0x8] sm:$0xff] %vm18_vm0, %v61_v29 }

// kernel: vtn_forward.13
= control target key start
LH: loop header
LB: loop body
LE: loop exit
PB: predicated region body
PF: predicated region fallthrough
CT: control target
= control target key end

     0   :  { %vm20_vm0 = vcmask 523264   ;;  %s174_s0 = inlined_call_operand.vmem [shape: f32[32,64], index: 0, kind: input, shape index: {}]   ;;  %s175_s1 = inlined_call_operand.vmem [shape: f32[1,64], index: 1, kind: input, shape index: {}]   ;;  %s176_s2 = inlined_call_operand.vmem [shape: f32[1,64], index: 2, kind: input, shape index: {}]   ;;  %s177_s3 = inlined_call_operand.vmem [shape: f32[32,64], index: 3, kind: output, shape index: {}]  }
   0x1   :  { %v14_v0 = vld [vmem:[%s174_s0] sm:$0xff]  ;;  %v16_v1 = vld [vmem:[%s174_s0 + $0x10] sm:$0xff]  ;;  %v15_v2 = vld [vmem:[%s174_s0 + $0x8] sm:$0xff] }
   0x2   :  { %v21_v3 = vsel %vm20_vm0, %v14_v0, 0.0  ;;  %v27_v4 = vsel %vm20_vm0, %v16_v1, 0.0  ;;  %v17_v5 = vld [vmem:[%s174_s0 + $0x18] sm:$0xff]  ;;  %v24_v6 = vsel %vm20_vm0, %v15_v2, 0.0  ;;  %v102_v41 = vld [vmem:[%s175_s1] ss:$0 sm:$0xff] }
   0x3   :  { %22 = vadd.xlane.f32.xlu0 %v21_v3  ;;  %28 = vadd.xlane.f32.xlu1 %v27_v4  ;;  %v30_v7 = vsel %vm20_vm0, %v17_v5, 0.0  ;;  %v103_v43 = vld [vmem:[%s176_s2] ss:$0 sm:$0xff] }
   0x7   :  { %25 = vadd.xlane.f32.xlu0 %v24_v6  ;;  %31 = vadd.xlane.f32.xlu1 %v30_v7 }
  0x8c   :  { %v23_v8 = vpop.xlane.xlu0 %22  ;;  %v29_v9 = vpop.xlane.xlu1 %28 }
  0x8d   :  { %v34_v10 = vmul.f32 0.015625, %v23_v8  ;;  %v36_v11 = vmul.f32 0.015625, %v29_v9 }
  0x8f   :  { %v38_v12 = vsub.f32 %v14_v0, %v34_v10  ;;  %v40_v13 = vsub.f32 %v16_v1, %v36_v11 }
  0x90   :  { %v26_v14 = vpop.xlane.xlu0 %25  ;;  %v32_v15 = vpop.xlane.xlu1 %31 }
  0x91   :  { %v35_v16 = vmul.f32 0.015625, %v26_v14  ;;  %v37_v17 = vmul.f32 0.015625, %v32_v15  ;;  %v42_v18 = vmul.f32 %v38_v12, %v38_v12  ;;  %v44_v19 = vmul.f32 %v40_v13, %v40_v13 }
  0x93   :  { %v39_v20 = vsub.f32 %v15_v2, %v35_v16  ;;  %v41_v21 = vsub.f32 %v17_v5, %v37_v17  ;;  %v46_v22 = vsel %vm20_vm0, %v42_v18, 0.0  ;;  %v52_v23 = vsel %vm20_vm0, %v44_v19, 0.0 }
  0x94   :  { %47 = vadd.xlane.f32.xlu0 %v46_v22 }
  0x95   :  { %v43_v24 = vmul.f32 %v39_v20, %v39_v20  ;;  %v45_v25 = vmul.f32 %v41_v21, %v41_v21 }
  0x97   :  { %v49_v26 = vsel %vm20_vm0, %v43_v24, 0.0  ;;  %v55_v27 = vsel %vm20_vm0, %v45_v25, 0.0 }
  0x98   :  { %53 = vadd.xlane.f32.xlu0 %v52_v23  ;;  %50 = vadd.xlane.f32.xlu1 %v49_v26 }
  0x9c   :  { %56 = vadd.xlane.f32.xlu1 %v55_v27 }
 0x11d   :  { %v48_v28 = vpop.xlane.xlu0 %47 }
 0x11e   :  { %v58_v29 = vmul.f32 0.015625, %v48_v28 }
 0x120   :  { %v62_v30 = vadd.f32 1e-05, %v58_v29 }
 0x121   :  { %v51_v31 = vpop.xlane.xlu1 %50  ;;  %v54_v32 = vpop.xlane.xlu0 %53 }
 0x122   :  { %104 = vrsqrt.f32 %v62_v30  ;;  %v59_v33 = vmul.f32 0.015625, %v51_v31  ;;  %v60_v34 = vmul.f32 0.015625, %v54_v32 }
 0x124   :  { %v63_v35 = vadd.f32 1e-05, %v59_v33  ;;  %v64_v36 = vadd.f32 1e-05, %v60_v34 }
 0x125   :  { %v57_v37 = vpop.xlane.xlu1 %56 }
 0x126   :  { %106 = vrsqrt.f32 %v63_v35  ;;  %v61_v38 = vmul.f32 0.015625, %v57_v37 }
 0x127   :  { %108 = vrsqrt.f32 %v64_v36 }
 0x128   :  { %v65_v39 = vadd.f32 1e-05, %v61_v38 }
 0x12a   :  { %110 = vrsqrt.f32 %v65_v39 }
 0x12f   :  { %v105_v40 = vpop.eup %104 }
 0x130   :  { %v70_v42 = vmul.f32 %v105_v40, %v38_v12 }
 0x132   :  { %v80_v44 = vmul.f32 %v102_v41, %v70_v42 }
 0x133   :  { %v107_v45 = vpop.eup %106 }
 0x134   :  { %v109_v46 = vpop.eup %108  ;;  %v90_v47 = vadd.f32 %v103_v43, %v80_v44  ;;  %v71_v48 = vmul.f32 %v107_v45, %v39_v20 }
 0x135   :  { %v72_v49 = vmul.f32 %v109_v46, %v40_v13 }
 0x136   :  { %94 = vst.msk [vmem:[%s177_s3] sm:$0xff] %vm20_vm0, %v90_v47  ;;  %v81_v50 = vmul.f32 %v102_v41, %v71_v48 }
 0x137   :  { %v111_v51 = vpop.eup %110  ;;  %v82_v52 = vmul.f32 %v102_v41, %v72_v49 }
 0x138   :  { %v91_v53 = vadd.f32 %v103_v43, %v81_v50  ;;  %v73_v54 = vmul.f32 %v111_v51, %v41_v21 }
 0x139   :  { %v92_v55 = vadd.f32 %v103_v43, %v82_v52 }
 0x13a   :  { %95 = vst.msk [vmem:[%s177_s3 + $0x8] sm:$0xff] %vm20_vm0, %v91_v53  ;;  %v83_v56 = vmul.f32 %v102_v41, %v73_v54 }
 0x13b   :  { %96 = vst.msk [vmem:[%s177_s3 + $0x10] sm:$0xff] %vm20_vm0, %v92_v55 }
 0x13c   :  { %v93_v57 = vadd.f32 %v103_v43, %v83_v56 }
 0x13e   :  { %97 = vst.msk [vmem:[%s177_s3 + $0x18] sm:$0xff] %vm20_vm0, %v93_v57 }

// kernel: vtn_forward.10
= control target key start
LH: loop header
LB: loop body
LE: loop exit
PB: predicated region body
PF: predicated region fallthrough
CT: control target
= control target key end

     0   :  { %s4471_s25 = smov 0   ;;  %s5568_s0 = inlined_call_operand.vmem [shape: f32[16,17,64], index: 0, kind: input, shape index: {}]   ;;  %s5569_s1 = inlined_call_operand.vmem [shape: f32[1,64], index: 1, kind: input, shape index: {}]   ;;  %s5570_s2 = inlined_call_operand.vmem [shape: f32[1,64], index: 2, kind: input, shape index: {}]   ;;  %s5571_s3 = inlined_call_operand.vmem [shape: f32[12,64,16], index: 3, kind: input, shape index: {}]   ;;  %s5572_s4 = inlined_call_operand.vmem [shape: f32[12,1,16], index: 4, kind: input, shape index: {}]   ;;  %s5573_s5 = inlined_call_operand.vmem [shape: f32[4,16,64], index: 5, kind: input, shape index: {}]   ;;  %s5574_s6 = inlined_call_operand.vmem [shape: f32[1,64], index: 6, kind: input, shape index: {}]   ;;  %s5575_s7 = inlined_call_operand.vmem [shape: f32[1,64], index: 7, kind: input, shape index: {}]   ;;  %s5576_s8 = inlined_call_operand.vmem [shape: f32[1,64], index: 8, kind: input, shape index: {}]   ;;  %s5577_s9 = inlined_call_operand.vmem [shape: f32[64,256], index: 9, kind: input, shape index: {}]   ;;  %s5578_s10 = inlined_call_operand.vmem [shape: f32[1,256], index: 10, kind: input, shape index: {}]   ;;  %s5579_s11 = inlined_call_operand.vmem [shape: f32[256,64], index: 11, kind: input, shape index: {}]   ;;  %s5580_s12 = inlined_call_operand.vmem [shape: f32[1,64], index: 12, kind: input, shape index: {}]   ;;  %s5581_s13 = inlined_call_operand.vmem [shape: f32[16,17,64], index: 13, kind: output, shape index: {}]  }
   0x1 LB: > { %s3363_s26 = sadd.s32 4294967295, %s4397_s25   ;;  %p3367_p0 = scmp.ge.s32.totalorder %s4397_s25, 1  ;;  %s4397_s25 = sphi %s4471_s25, %s23_s25  }
   0x2   : > { %p387_p1 = scmp.lt.s32.totalorder %s4397_s25, 17 }
   0x4   : > { %p388_p2 = pnand %p3367_p0, %p387_p1 }
   0x5   : > { %p431_p3 = scmp.lt.s32.totalorder (!%p388_p2), %s3363_s26, 15 }
   0x6   : > { %391 = sbr.rel (%p388_p2) target bundleno = 4754 (0x1292), region = 72 }
   0xb   : > { %s5583_s26 = smov (!%p431_p3, %s3363_s26), 15  ;;  %vm446_vm0 = vcmask 523264   ;;  %vm453_vm1 = vcmask 516096   ;;  %v4399_v21 = vmov 0.0   ;;  %v513_v22 = vld [vmem:[%s5571_s3 + $0x38] sm:$0xff]  ;;  %v512_v24 = vld [vmem:[%s5571_s3 + $0x30] sm:$0xff] }
   0xc   : > { %s4305_s27 = smul.u32 24, %s5583_s26  ;;  %3827 = vmatprep.subr.mxu0 %v4399_v21  ;;  %3852 = vmatprep.subr.mxu1 %v4399_v21  ;;  %v3383_v23 = vld [vmem:[%s5571_s3 + $0x138] sm:$0xff]  ;;  %v3382_v25 = vld [vmem:[%s5571_s3 + $0x130] sm:$0xff]  ;;  %v511_v26 = vld [vmem:[%s5571_s3 + $0x28] sm:$0xff]  ;;  %vm4400_vm2 = vmmov 0   ;;  %vm804_vm3 = vcmask 130048  }
   0xd   : > { %3828 = vmatpush3.msra.mxu0 %v513_v22  ;;  %3853 = vmatpush3.msra.mxu1 %v3383_v23  ;;  %v3381_v27 = vld [vmem:[%s5571_s3 + $0x128] sm:$0xff]  ;;  %v510_v28 = vld [vmem:[%s5571_s3 + $0x20] sm:$0xff]  ;;  %v509_v30 = vld [vmem:[%s5571_s3 + $0x18] sm:$0xff]  ;;  %vm950_vm4 = vcmask 1040384   ;;  %vm906_vm5 = vcmask 138240   ;;  %vm913_vm6 = vcmask 131072  }
   0xe   : > { %s4487_s30 = scalar_lea.vmem %s5568_s0, %s4305_s27  ;;  %3829 = vmatprep.subr.mxu0 %v4399_v21  ;;  %3854 = vmatprep.subr.mxu1 %v4399_v21  ;;  %v3380_v29 = vld [vmem:[%s5571_s3 + $0x120] sm:$0xff]  ;;  %v3379_v31 = vld [vmem:[%s5571_s3 + $0x118] sm:$0xff]  ;;  %v508_v32 = vld [vmem:[%s5571_s3 + $0x10] sm:$0xff]  ;;  %s440_s28 = scalar_lea.vmem %s5581_s13, %s4305_s27 }
   0xf   : > { %v441_v0 = vld [vmem:[%s4487_s30] sm:$0xff]  ;;  %v443_v1 = vld [vmem:[%s4487_s30 + $0x10] sm:$0x1]  ;;  %v442_v2 = vld [vmem:[%s4487_s30 + $0x8] sm:$0xff]  ;;  %3830 = vmatpush3.msra.mxu0 %v512_v24  ;;  %3855 = vmatpush3.msra.mxu1 %v3382_v25 }
  0x10   : > { %v447_v3 = vsel %vm446_vm0, %v441_v0, 0.0  ;;  %v454_v4 = vsel %vm453_vm1, %v443_v1, 0.0  ;;  %v450_v5 = vsel %vm446_vm0, %v442_v2, 0.0  ;;  %3831 = vmatprep.subr.mxu0 %v4399_v21  ;;  %3856 = vmatprep.subr.mxu1 %v4399_v21  ;;  %v3378_v33 = vld [vmem:[%s5571_s3 + $0x110] sm:$0xff]  ;;  %v507_v34 = vld [vmem:[%s5571_s3 + $0x8] sm:$0xff]  ;;  %v506_v36 = vld [vmem:[%s5571_s3] sm:$0xff] }
  0x11   : > { %448 = vadd.xlane.f32.xlu0 %v447_v3  ;;  %455 = vadd.xlane.f32.xlu1 %v454_v4  ;;  %v3377_v35 = vld [vmem:[%s5571_s3 + $0x108] sm:$0xff]  ;;  %v3376_v37 = vld [vmem:[%s5571_s3 + $0x100] sm:$0xff]  ;;  %v3396_v55 = vld [vmem:[%s5571_s3 + $0x238] sm:$0xff] }
  0x12   : > { %3832 = vmatpush3.msra.mxu0 %v511_v26  ;;  %3857 = vmatpush3.msra.mxu1 %v3381_v27  ;;  %v3370_v48 = vld [vmem:[%s5569_s1] ss:$0 sm:$0xff]  ;;  %v3395_v58 = vld [vmem:[%s5571_s3 + $0x230] sm:$0xff]  ;;  %v3394_v62 = vld [vmem:[%s5571_s3 + $0x228] sm:$0xff] }
  0x13   : > { %3833 = vmatprep.subr.mxu0 %v4399_v21  ;;  %3858 = vmatprep.subr.mxu1 %v4399_v21  ;;  %v3371_v50 = vld [vmem:[%s5570_s2] ss:$0 sm:$0xff]  ;;  %v3390_v3 = vld [vmem:[%s5571_s3 + $0x208] sm:$0xff] }
  0x14   : > { %3834 = vmatpush3.msra.mxu0 %v510_v28  ;;  %3859 = vmatpush3.msra.mxu1 %v3380_v29  ;;  %v3393_v63 = vld [vmem:[%s5571_s3 + $0x220] sm:$0xff] }
  0x15   : > { %451 = vadd.xlane.f32.xlu0 %v450_v5  ;;  %3835 = vmatprep.subr.mxu0 %v4399_v21  ;;  %v3389_v4 = vld [vmem:[%s5571_s3 + $0x200] sm:$0xff]  ;;  %v3419_v5 = vld [vmem:[%s5571_s3 + $0x78] sm:$0xff] }
  0x16   : > { %3836 = vmatpush3.msra.mxu0 %v509_v30  ;;  %3860 = vmatprep.subr.mxu1 %v4399_v21 }
  0x17   : > { %3837 = vmatprep.subr.mxu0 %v4399_v21  ;;  %3861 = vmatpush3.msra.mxu1 %v3379_v31  ;;  %v3385_v31 = vld [vmem:[%s5572_s4 + $0x4] ss:$0 sm:$0xff] }
  0x18   : > { %3838 = vmatpush3.msra.mxu0 %v508_v32  ;;  %3862 = vmatprep.subr.mxu1 %v4399_v21 }
  0x19   : > { %3839 = vmatprep.subr.mxu0 %v4399_v21  ;;  %3863 = vmatpush3.msra.mxu1 %v3378_v33 }
  0x1a   : > { %3840 = vmatpush3.msra.mxu0 %v507_v34  ;;  %3864 = vmatprep.subr.mxu1 %v4399_v21 }
  0x1b   : > { %3841 = vmatprep.subr.mxu0 %v4399_v21  ;;  %3865 = vmatpush3.msra.mxu1 %v3377_v35 }
  0x1c   : > { %3842 = vmatpush3.msra.mxu0 %v506_v36  ;;  %3866 = vmatprep.subr.mxu1 %v4399_v21 }
  0x1d   : > { %3843 = vmatprep.mubr.msk.f32.mxu0 %vm4400_vm2, %v4399_v21  ;;  %3867 = vmatpush3.msra.mxu1 %v3376_v37 }
  0x1e   : > { %3868 = vmatprep.mubr.msk.f32.mxu1 %vm4400_vm2, %v4399_v21  ;;  %3877 = vmatprep.subr.mxu0 %v4399_v21 }
  0x1f   : > { %3902 = vmatprep.subr.mxu1 %v4399_v21 }
  0x9a   : > { %v449_v6 = vpop.xlane.xlu0 %448  ;;  %v456_v7 = vpop.xlane.xlu1 %455 }
  0x9b   : > { %v458_v8 = vmul.f32 0.015625, %v449_v6  ;;  %v460_v9 = vmul.f32 0.015625, %v456_v7  ;;  %v3418_v6 = vld [vmem:[%s5571_s3 + $0x70] sm:$0xff]  ;;  %v3417_v7 = vld [vmem:[%s5571_s3 + $0x68] sm:$0xff] }
  0x9d   : > { %v4495_v10 = vsub.f32 %v441_v0, %v458_v8  ;;  %v4497_v11 = vsub.f32 %v443_v1, %v460_v9  ;;  %v3392_v1 = vld [vmem:[%s5571_s3 + $0x218] sm:$0xff]  ;;  %v3416_v8 = vld [vmem:[%s5571_s3 + $0x60] sm:$0xff] }
  0x9e   : > { %v452_v12 = vpop.xlane.xlu0 %451  ;;  %v3415_v9 = vld [vmem:[%s5571_s3 + $0x58] sm:$0xff] }
  0x9f   : > { %v459_v13 = vmul.f32 0.015625, %v452_v12  ;;  %v464_v14 = vmul.f32 %v4495_v10, %v4495_v10  ;;  %v466_v15 = vmul.f32 %v4497_v11, %v4497_v11  ;;  %v3412_v12 = vld [vmem:[%s5571_s3 + $0x40] sm:$0xff] }
  0xa1   : > { %v4503_v16 = vsub.f32 %v442_v2, %v459_v13  ;;  %v467_v17 = vsel %vm446_vm0, %v464_v14, 0.0  ;;  %v473_v18 = vsel %vm453_vm1, %v466_v15, 0.0  ;;  %v3391_v2 = vld [vmem:[%s5571_s3 + $0x210] sm:$0xff]  ;;  %v3445_v13 = vld [vmem:[%s5571_s3 + $0x278] sm:$0xff]  ;;  %v3443_v15 = vld [vmem:[%s5571_s3 + $0x268] sm:$0xff] }
  0xa2   : > { %468 = vadd.xlane.f32.xlu1 %v467_v17  ;;  %v3444_v14 = vld [vmem:[%s5571_s3 + $0x270] sm:$0xff]  ;;  %v3441_v17 = vld [vmem:[%s5571_s3 + $0x258] sm:$0xff] }
  0xa3   : > { %v465_v19 = vmul.f32 %v4503_v16, %v4503_v16 }
  0xa5   : > { %v470_v20 = vsel %vm446_vm0, %v465_v19, 0.0  ;;  %v3439_v19 = vld [vmem:[%s5571_s3 + $0x248] sm:$0xff] }
  0xa6   : > { %474 = vadd.xlane.f32.xlu1 %v473_v18  ;;  %471 = vadd.xlane.f32.xlu0 %v470_v20  ;;  %v3440_v18 = vld [vmem:[%s5571_s3 + $0x250] sm:$0xff]  ;;  %v3438_v20 = vld [vmem:[%s5571_s3 + $0x240] sm:$0xff] }
 0x12b   : > { %v469_v38 = vpop.xlane.xlu1 %468 }
 0x12c   : > { %v476_v39 = vmul.f32 0.015625, %v469_v38  ;;  %v3372_v38 = vld [vmem:[%s5572_s4] ss:$0 sm:$0xff] }
 0x12e   : > { %v479_v40 = vadd.f32 1e-05, %v476_v39 }
 0x12f   : > { %v475_v41 = vpop.xlane.xlu1 %474  ;;  %v472_v42 = vpop.xlane.xlu0 %471 }
 0x130   : > { %4316 = vrsqrt.f32 %v479_v40  ;;  %v478_v43 = vmul.f32 0.015625, %v475_v41  ;;  %v477_v44 = vmul.f32 0.015625, %v472_v42 }
 0x132   : > { %v481_v45 = vadd.f32 1e-05, %v478_v43  ;;  %v480_v46 = vadd.f32 1e-05, %v477_v44  ;;  %v3398_v44 = vld [vmem:[%s5572_s4 + $0x8] ss:$0 sm:$0xff] }
 0x134   : > { %4318 = vrsqrt.f32 %v481_v45 }
 0x135   : > { %4320 = vrsqrt.f32 %v480_v46 }
 0x13d   : > { %v4317_v47 = vpop.eup %4316 }
 0x13e   : > { %v485_v49 = vmul.f32 %v4317_v47, %v4495_v10  ;;  %v3414_v10 = vld [vmem:[%s5571_s3 + $0x50] sm:$0xff] }
 0x140   : > { %v494_v51 = vmul.f32 %v3370_v48, %v485_v49 }
 0x141   : > { %v4319_v52 = vpop.eup %4318 }
 0x142   : > { %v4321_v53 = vpop.eup %4320  ;;  %v4587_v54 = vadd.f32 %v3371_v50, %v494_v51  ;;  %v487_v56 = vmul.f32 %v4319_v52, %v4497_v11  ;;  %v3413_v11 = vld [vmem:[%s5571_s3 + $0x48] sm:$0xff] }
 0x143   : > { %v486_v57 = vmul.f32 %v4321_v53, %v4503_v16  ;;  %v3442_v16 = vld [vmem:[%s5571_s3 + $0x260] sm:$0xff] }
 0x144   : > { %3844 = vmatmul.mubr.msk.f32.vlgmr.msra.gmra.mxu0 %vm446_vm0, %v4587_v54  ;;  %3869 = vmatmul.mubr.msk.f32.vlgmr.msra.gmra.mxu1 %vm446_vm0, %v4587_v54  ;;  %v496_v60 = vmul.f32 %v3370_v48, %v487_v56 }
 0x145   : > { %v495_v59 = vmul.f32 %v3370_v48, %v486_v57  ;;  %3878 = vmatpush3.msra.mxu0 %v3396_v55  ;;  %3846 = vmatprep.mubr.msk.f32.mxu0 %vm4400_vm2, %v4399_v21 }
 0x146   : > { %3879 = vmatprep.subr.mxu0 %v4399_v21  ;;  %3871 = vmatprep.mubr.msk.f32.mxu1 %vm4400_vm2, %v4399_v21  ;;  %v4621_v0 = vadd.f32 %v3371_v50, %v496_v60 }
 0x147   : > { %v4606_v61 = vadd.f32 %v3371_v50, %v495_v59  ;;  %3880 = vmatpush3.msra.mxu0 %v3395_v58 }
 0x148   : > { %3881 = vmatprep.subr.mxu0 %v4399_v21 }
 0x149   : > { %3847 = vmatmul.mubr.msk.f32.gmra.mxu0 %vm446_vm0, %v4606_v61  ;;  %3872 = vmatmul.mubr.msk.f32.gmra.mxu1 %vm446_vm0, %v4606_v61 }
 0x14a   : > { %3882 = vmatpush3.msra.mxu0 %v3394_v62  ;;  %3849 = vmatprep.mubr.msk.f32.mxu0 %vm4400_vm2, %v4399_v21 }
 0x14b   : > { %3883 = vmatprep.subr.mxu0 %v4399_v21  ;;  %3874 = vmatprep.mubr.msk.f32.mxu1 %vm4400_vm2, %v4399_v21 }
 0x14c   : > { %3884 = vmatpush3.msra.mxu0 %v3393_v63 }
 0x14d   : > { %3885 = vmatprep.subr.mxu0 %v4399_v21  ;;  %3850 = vmatmul.mubr.msk.f32.gmra.mxu0 %vm446_vm0, %v4621_v0 }
 0x14e   : > { %3875 = vmatmul.mubr.msk.f32.gmra.mxu1 %vm446_vm0, %v4621_v0  ;;  %3886 = vmatpush3.msra.mxu0 %v3392_v1 }
 0x14f   : > { %3887 = vmatprep.subr.mxu0 %v4399_v21  ;;  %3893 = vmatprep.mubr.msk.f32.mxu0 %vm4400_vm2, %v4399_v21 }
 0x150   : > { %3888 = vmatpush3.msra.mxu0 %v3391_v2  ;;  %3908 = vmatprep.mubr.msk.f32.mxu1 %vm4400_vm2, %v4399_v21 }
 0x151   : > { %3889 = vmatprep.subr.mxu0 %v4399_v21 }
 0x152   : > { %3890 = vmatpush3.msra.mxu0 %v3390_v3 }
 0x153   : > { %3891 = vmatprep.subr.mxu0 %v4399_v21 }
 0x154   : > { %3892 = vmatpush3.msra.mxu0 %v3389_v4 }
 0x155   : > { %3894 = vmatmul.mubr.msk.f32.vlgmr.msra.gmra.mxu0 %vm446_vm0, %v4587_v54  ;;  %3932 = vmatprep.subr.mxu0 %v4399_v21 }
 0x156   : > { %3933 = vmatpush3.msra.mxu0 %v3419_v5  ;;  %3896 = vmatprep.mubr.msk.f32.mxu0 %vm4400_vm2, %v4399_v21 }
 0x157   : > { %3934 = vmatprep.subr.mxu0 %v4399_v21 }
 0x158   : > { %3935 = vmatpush3.msra.mxu0 %v3418_v6 }
 0x159   : > { %3897 = vmatmul.mubr.msk.f32.gmra.mxu0 %vm446_vm0, %v4606_v61  ;;  %3936 = vmatprep.subr.mxu0 %v4399_v21 }
 0x15a   : > { %3937 = vmatpush3.msra.mxu0 %v3417_v7  ;;  %3899 = vmatprep.mubr.msk.f32.mxu0 %vm4400_vm2, %v4399_v21 }
 0x15b   : > { %3938 = vmatprep.subr.mxu0 %v4399_v21 }
 0x15c   : > { %3939 = vmatpush3.msra.mxu0 %v3416_v8 }
 0x15d   : > { %3900 = vmatmul.mubr.msk.f32.gmra.mxu0 %vm446_vm0, %v4621_v0  ;;  %3940 = vmatprep.subr.mxu0 %v4399_v21 }
 0x15e   : > { %3941 = vmatpush3.msra.mxu0 %v3415_v9  ;;  %3948 = vmatprep.mubr.msk.f32.mxu0 %vm4400_vm2, %v4399_v21 }
 0x15f   : > { %3942 = vmatprep.subr.mxu0 %v4399_v21 }
 0x160   : > { %3943 = vmatpush3.msra.mxu0 %v3414_v10 }
 0x161   : > { %3944 = vmatprep.subr.mxu0 %v4399_v21 }
 0x162   : > { %3945 = vmatpush3.msra.mxu0 %v3413_v11 }
 0x163   : > { %3946 = vmatprep.subr.mxu0 %v4399_v21 }
 0x164   : > { %3947 = vmatpush3.msra.mxu0 %v3412_v12 }
 0x165   : > { %3949 = vmatmul.mubr.msk.f32.vlgmr.msra.gmra.mxu0 %vm446_vm0, %v4587_v54  ;;  %3982 = vmatprep.subr.mxu0 %v4399_v21 }
 0x166   : > { %3983 = vmatpush3.msra.mxu0 %v3445_v13  ;;  %3951 = vmatprep.mubr.msk.f32.mxu0 %vm4400_vm2, %v4399_v21 }
 0x167   : > { %3984 = vmatprep.subr.mxu0 %v4399_v21 }
 0x168   : > { %3985 = vmatpush3.msra.mxu0 %v3444_v14 }
 0x169   : > { %3952 = vmatmul.mubr.msk.f32.gmra.mxu0 %vm446_vm0, %v4606_v61  ;;  %3986 = vmatprep.subr.mxu0 %v4399_v21 }
 0x16a   : > { %3987 = vmatpush3.msra.mxu0 %v3443_v15  ;;  %3954 = vmatprep.mubr.msk.f32.mxu0 %vm4400_vm2, %v4399_v21 }
 0x16b   : > { %3988 = vmatprep.subr.mxu0 %v4399_v21 }
 0x16c   : > { %3989 = vmatpush3.msra.mxu0 %v3442_v16 }
 0x16d   : > { %3955 = vmatmul.mubr.msk.f32.gmra.mxu0 %vm446_vm0, %v4621_v0  ;;  %3990 = vmatprep.subr.mxu0 %v4399_v21 }
 0x16e   : > { %3991 = vmatpush3.msra.mxu0 %v3441_v17  ;;  %3998 = vmatprep.mubr.msk.f32.mxu0 %vm4400_vm2, %v4399_v21 }
 0x16f   : > { %3992 = vmatprep.subr.mxu0 %v4399_v21 }
 0x170   : > { %3993 = vmatpush3.msra.mxu0 %v3440_v18 }
 0x171   : > { %3994 = vmatprep.subr.mxu0 %v4399_v21 }
 0x172   : > { %3995 = vmatpush3.msra.mxu0 %v3439_v19 }
 0x173   : > { %3996 = vmatprep.subr.mxu0 %v4399_v21 }
 0x174   : > { %3997 = vmatpush3.msra.mxu0 %v3438_v20 }
 0x175   : > { %3999 = vmatmul.mubr.msk.f32.vlgmr.msra.gmra.mxu0 %vm446_vm0, %v4587_v54  ;;  %4007 = vmatprep.subr.mxu0 %v4399_v21 }
 0x176   : > { %4001 = vmatprep.mubr.msk.f32.mxu0 %vm4400_vm2, %v4399_v21 }
 0x179   : > { %4002 = vmatmul.mubr.msk.f32.gmra.mxu0 %vm446_vm0, %v4606_v61 }
 0x17a   : > { %4004 = vmatprep.mubr.msk.f32.mxu0 %vm4400_vm2, %v4399_v21 }
 0x17d   : > { %4005 = vmatmul.mubr.msk.f32.gmra.mxu0 %vm446_vm0, %v4621_v0 }
 0x17e   : > { %4013 = vmatprep.mubr.msk.f32.mxu0 %vm4400_vm2, %v4399_v21 }
 0x204   : > { %v596_v22 = vpop.f32.mrf.mxu0  ;;  %v693_v23 = vpop.f32.mrf.mxu1 }
 0x205   : > { %v694_v39 = vadd.f32 %v3385_v31, %v693_v23  ;;  %v597_v42 = vadd.f32 %v3372_v38, %v596_v22 }
 0x206   : > { %v3845_v24 = vpop.f32.mrf.mxu0  ;;  %v3870_v25 = vpop.f32.mrf.mxu1 }
 0x209   : > { %v601_v26 = vpop.f32.mrf.mxu0  ;;  %v698_v27 = vpop.f32.mrf.mxu1 }
 0x20a   : > { %v699_v36 = vadd.f32 %v3385_v31, %v698_v27  ;;  %v602_v46 = vadd.f32 %v3372_v38, %v601_v26 }
 0x20b   : > { %v3848_v28 = vpop.f32.mrf.mxu0  ;;  %v3873_v29 = vpop.f32.mrf.mxu1 }
 0x20d   : > { %v606_v30 = vpop.f32.mrf.mxu0 }
 0x20e   : > { %v703_v32 = vpop.f32.mrf.mxu1  ;;  %v607_v50 = vadd.f32 %v3372_v38, %v606_v30 }
 0x20f   : > { %v704_v33 = vadd.f32 %v3385_v31, %v703_v32  ;;  %v3851_v34 = vpop.f32.mrf.mxu0 }
 0x210   : > { %v3876_v35 = vpop.f32.mrf.mxu1 }
 0x211   : > { %3903 = vmatpush3.xpose.msk.msra.mxu1 %vm804_vm3, %v704_v33 }
 0x212   : > { %3904 = vmatprep.subr.mxu1 %v4399_v21 }
 0x215   : > { %v790_v37 = vpop.f32.mrf.mxu0  ;;  %3905 = vmatpush3.xpose.msk.msra.mxu1 %vm804_vm3, %v699_v36  ;;  %v3432_v36 = vld [vmem:[%s5571_s3 + $0x178] sm:$0xff] }
 0x216   : > { %3906 = vmatprep.subr.mxu1 %v4399_v21  ;;  %v791_v51 = vadd.f32 %v3398_v44, %v790_v37  ;;  %v3431_v37 = vld [vmem:[%s5571_s3 + $0x170] sm:$0xff] }
 0x217   : > { %v3895_v40 = vpop.f32.mrf.mxu0 }
 0x218   : > { %v3430_v40 = vld [vmem:[%s5571_s3 + $0x168] sm:$0xff] }
 0x219   : > { %v795_v41 = vpop.f32.mrf.mxu0  ;;  %3907 = vmatpush3.xpose.msk.msra.mxu1 %vm804_vm3, %v694_v39 }
 0x21a   : > { %3917 = vmatprep.subr.mxu1 %v4399_v21  ;;  %v796_v49 = vadd.f32 %v3398_v44, %v795_v41  ;;  %v3429_v41 = vld [vmem:[%s5571_s3 + $0x160] sm:$0xff] }
 0x21b   : > { %v3898_v43 = vpop.f32.mrf.mxu0 }
 0x21c   : > { %3909 = vmatmul.mubr.msk.f32.vlgmr.msra.gmra.mxu1 %vm804_vm3, %v597_v42 }
 0x21d   : > { %v800_v45 = vpop.f32.mrf.mxu0  ;;  %3911 = vmatprep.mubr.msk.f32.mxu1 %vm4400_vm2, %v4399_v21 }
 0x21e   : > { %v801_v47 = vadd.f32 %v3398_v44, %v800_v45  ;;  %v3428_v44 = vld [vmem:[%s5571_s3 + $0x158] sm:$0xff]  ;;  %v3427_v45 = vld [vmem:[%s5571_s3 + $0x150] sm:$0xff] }
 0x21f   : > { %v3901_v48 = vpop.f32.mrf.mxu0 }
 0x220   : > { %3912 = vmatmul.mubr.msk.f32.gmra.mxu1 %vm804_vm3, %v602_v46  ;;  %v3426_v46 = vld [vmem:[%s5571_s3 + $0x148] sm:$0xff] }
 0x221   : > { %3918 = vmatpush3.msk.msra.mxu1 %vm950_vm4, %v801_v47  ;;  %3914 = vmatprep.mubr.msk.f32.mxu1 %vm4400_vm2, %v4399_v21  ;;  %v3425_v47 = vld [vmem:[%s5571_s3 + $0x140] sm:$0xff] }
 0x222   : > { %3919 = vmatprep.subr.mxu1 %v4399_v21 }
 0x223   : > { %3920 = vmatpush3.msra.mxu1 %v796_v49 }
 0x224   : > { %3921 = vmatprep.subr.mxu1 %v4399_v21  ;;  %3915 = vmatmul.mubr.msk.f32.gmra.mxu1 %vm804_vm3, %v607_v50 }
 0x225   : > { %3922 = vmatpush3.msra.mxu1 %v791_v51  ;;  %v4776_v52 = vpop.f32.mrf.mxu0  ;;  %3923 = vmatprep.mubr.msk.f32.mxu1 %vm4400_vm2, %v4399_v21 }
 0x226   : > { %3957 = vmatprep.subr.mxu1 %v4399_v21 }
 0x227   : > { %v3950_v53 = vpop.f32.mrf.mxu0 }
 0x229   : > { %v4781_v55 = vpop.f32.mrf.mxu0 }
 0x22b   : > { %v3953_v56 = vpop.f32.mrf.mxu0 }
 0x22d   : > { %v4783_v57 = vpop.f32.mrf.mxu0 }
 0x22f   : > { %v3956_v58 = vpop.f32.mrf.mxu0 }
 0x235   : > { %v4785_v59 = vpop.f32.mrf.mxu0 }
 0x237   : > { %v4000_v60 = vpop.f32.mrf.mxu0 }
 0x239   : > { %v4787_v62 = vpop.f32.mrf.mxu0 }
 0x23b   : > { %v4003_v63 = vpop.f32.mrf.mxu0 }
 0x23d   : > { %v4789_v1 = vpop.f32.mrf.mxu0 }
 0x23f   : > { %v4006_v2 = vpop.f32.mrf.mxu0 }
 0x2dc   : > { %v889_v3 = vpop.f32.mrf.mxu1 }
 0x2dd   : > { %v903_v4 = vmul.f32 0.25, %v889_v3  ;;  %v3434_v3 = vld [vmem:[%s5572_s4 + $0x5] ss:$0 sm:$0xff] }
 0x2de   : > { %v3910_v5 = vpop.f32.mrf.mxu1 }
 0x2df   : > { %v907_v6 = vsel %vm906_vm5, %v903_v4, -inf }
 0x2e0   : > { %908 = vmax.xlane.f32.xlu0 %v907_v6  ;;  %v894_v7 = vpop.f32.mrf.mxu1 }
 0x2e1   : > { %v904_v8 = vmul.f32 0.25, %v894_v7 }
 0x2e2   : > { %v3913_v9 = vpop.f32.mrf.mxu1 }
 0x2e3   : > { %v910_v10 = vsel %vm906_vm5, %v904_v8, -inf }
 0x2e4   : > { %911 = vmax.xlane.f32.xlu1 %v910_v10  ;;  %v899_v11 = vpop.f32.mrf.mxu1 }
 0x2e5   : > { %v905_v12 = vmul.f32 0.25, %v899_v11 }
 0x2e6   : > { %v3916_v13 = vpop.f32.mrf.mxu1 }
 0x2e7   : > { %v914_v14 = vsel %vm913_vm6, %v905_v12, -inf }
 0x2e8   : > { %915 = vmax.xlane.f32.xlu0 %v914_v14 }
 0x369   : > { %v909_v15 = vpop.xlane.xlu0 %908 }
 0x36a   : > { %v917_v16 = vsub.f32 %v903_v4, %v909_v15 }
 0x36c   : > { %v920_v17 = vmul.f32 1.442695, %v917_v16 }
 0x36d   : > { %v912_v18 = vpop.xlane.xlu1 %911 }
 0x36e   : > { %4322 = vpow2.f32 %v920_v17  ;;  %v918_v19 = vsub.f32 %v904_v8, %v912_v18  ;;  %v3421_v8 = vld [vmem:[%s5572_s4 + $0x1] ss:$0 sm:$0xff] }
 0x36f   : > { %v1120_v10 = vadd.f32 %v3421_v8, %v4776_v52  ;;  %v1130_v11 = vadd.f32 %v3421_v8, %v4783_v57  ;;  %v1125_v52 = vadd.f32 %v3421_v8, %v4781_v55 }
 0x370   : > { %v922_v20 = vmul.f32 1.442695, %v918_v19 }
 0x371   : > { %v916_v22 = vpop.xlane.xlu0 %915 }
 0x372   : > { %4324 = vpow2.f32 %v922_v20  ;;  %v919_v23 = vsub.f32 %v905_v12, %v916_v22  ;;  %v3447_v12 = vld [vmem:[%s5572_s4 + $0x9] ss:$0 sm:$0xff] }
 0x373   : > { %v1324_v13 = vadd.f32 %v3447_v12, %v4789_v1  ;;  %v1319_v14 = vadd.f32 %v3447_v12, %v4787_v62  ;;  %v1314_v57 = vadd.f32 %v3447_v12, %v4785_v59 }
 0x374   : > { %v924_v24 = vmul.f32 1.442695, %v919_v23 }
 0x376   : > { %4326 = vpow2.f32 %v924_v24 }
 0x37b   : > { %v4323_v25 = vpop.eup %4322 }
 0x37c   : > { %v926_v26 = vsel %vm906_vm5, %v4323_v25, 0.0 }
 0x37d   : > { %927 = vadd.xlane.f32.xlu1 %v926_v26 }
 0x37f   : > { %v4325_v27 = vpop.eup %4324 }
 0x380   : > { %v929_v28 = vsel %vm906_vm5, %v4325_v27, 0.0 }
 0x381   : > { %930 = vadd.xlane.f32.xlu0 %v929_v28 }
 0x383   : > { %v4327_v29 = vpop.eup %4326 }
 0x384   : > { %v932_v30 = vsel %vm913_vm6, %v4327_v29, 0.0 }
 0x385   : > { %933 = vadd.xlane.f32.xlu1 %v932_v30 }
 0x406   : > { %v928_v31 = vpop.xlane.xlu1 %927 }
 0x407   : > { %4328 = vrcp.f32 %v928_v31 }
 0x40a   : > { %v931_v32 = vpop.xlane.xlu0 %930 }
 0x40b   : > { %4330 = vrcp.f32 %v931_v32 }
 0x40e   : > { %v934_v33 = vpop.xlane.xlu1 %933 }
 0x40f   : > { %4332 = vrcp.f32 %v934_v33 }
 0x414   : > { %v4329_v34 = vpop.eup %4328 }
 0x415   : > { %v938_v35 = vmul.f32 %v4329_v34, %v4323_v25 }
 0x417   : > { %3924 = vmatmul.mubr.msk.f32.vlgmr.msra.gmra.mxu1 %vm906_vm5, %v938_v35 }
 0x418   : > { %v4331_v38 = vpop.eup %4330  ;;  %3958 = vmatpush3.msra.mxu1 %v3432_v36  ;;  %3926 = vmatprep.mubr.msk.f32.mxu1 %vm4400_vm2, %v4399_v21 }
 0x419   : > { %3959 = vmatprep.subr.mxu1 %v4399_v21  ;;  %v939_v39 = vmul.f32 %v4331_v38, %v4325_v27 }
 0x41a   : > { %3960 = vmatpush3.msra.mxu1 %v3431_v37 }
 0x41b   : > { %3961 = vmatprep.subr.mxu1 %v4399_v21  ;;  %3927 = vmatmul.mubr.msk.f32.gmra.mxu1 %vm906_vm5, %v939_v39  ;;  %v3462_v39 = vld [vmem:[%s5573_s5 + $0x18] sm:$0xff] }
 0x41c   : > { %v4333_v42 = vpop.eup %4332  ;;  %3962 = vmatpush3.msra.mxu1 %v3430_v40  ;;  %3929 = vmatprep.mubr.msk.f32.mxu1 %vm4400_vm2, %v4399_v21  ;;  %v3461_v40 = vld [vmem:[%s5573_s5 + $0x10] sm:$0xff] }
 0x41d   : > { %3963 = vmatprep.subr.mxu1 %v4399_v21  ;;  %v940_v43 = vmul.f32 %v4333_v42, %v4327_v29 }
 0x41e   : > { %3964 = vmatpush3.msra.mxu1 %v3429_v41 }
 0x41f   : > { %3965 = vmatprep.subr.mxu1 %v4399_v21  ;;  %3930 = vmatmul.mubr.msk.f32.gmra.mxu1 %vm906_vm5, %v940_v43 }
 0x420   : > { %3966 = vmatpush3.msra.mxu1 %v3428_v44  ;;  %3973 = vmatprep.mubr.msk.f32.mxu1 %vm4400_vm2, %v4399_v21 }
 0x421   : > { %3967 = vmatprep.subr.mxu1 %v4399_v21 }
 0x422   : > { %3968 = vmatpush3.msra.mxu1 %v3427_v45 }
 0x423   : > { %3969 = vmatprep.subr.mxu1 %v4399_v21 }
 0x424   : > { %3970 = vmatpush3.msra.mxu1 %v3426_v46  ;;  %v1035_v46 = vld [vmem:[%s5573_s5 + $0x8] sm:$0xff] }
 0x425   : > { %3971 = vmatprep.subr.mxu1 %v4399_v21 }
 0x426   : > { %3972 = vmatpush3.msra.mxu1 %v3425_v47  ;;  %v1034_v47 = vld [vmem:[%s5573_s5] sm:$0xff] }
 0x427   : > { %3974 = vmatmul.mubr.msk.f32.vlgmr.msra.gmra.mxu1 %vm446_vm0, %v4587_v54  ;;  %4299 = vmatprep.subr.mxu1 %v4399_v21 }
 0x428   : > { %3976 = vmatprep.mubr.msk.f32.mxu1 %vm4400_vm2, %v4399_v21 }
 0x42b   : > { %3977 = vmatmul.mubr.msk.f32.gmra.mxu1 %vm446_vm0, %v4606_v61 }
 0x42c   : > { %3979 = vmatprep.mubr.msk.f32.mxu1 %vm4400_vm2, %v4399_v21 }
 0x42f   : > { %3980 = vmatmul.mubr.msk.f32.gmra.mxu1 %vm446_vm0, %v4621_v0 }
 0x430   : > { %4019 = vmatprep.mubr.msk.f32.mxu1 %vm4400_vm2, %v4399_v21 }
 0x4d7   : > { %v4850_v48 = vpop.f32.mrf.mxu1 }
 0x4d9   : > { %v3925_v49 = vpop.f32.mrf.mxu1 }
 0x4db   : > { %v4852_v50 = vpop.f32.mrf.mxu1 }
 0x4dd   : > { %v3928_v51 = vpop.f32.mrf.mxu1 }
 0x4df   : > { %v4854_v53 = vpop.f32.mrf.mxu1 }
 0x4e1   : > { %v3931_v56 = vpop.f32.mrf.mxu1 }
 0x4e7   : > { %v1216_v58 = vpop.f32.mrf.mxu1 }
 0x4e8   : > { %v1217_v9 = vadd.f32 %v3434_v3, %v1216_v58 }
 0x4e9   : > { %v3975_v60 = vpop.f32.mrf.mxu1 }
 0x4ea   : > { %v3489_v60 = vld [vmem:[%s5571_s3 + $0x1b8] sm:$0xff] }
 0x4eb   : > { %v1221_v63 = vpop.f32.mrf.mxu1 }
 0x4ec   : > { %v1222_v7 = vadd.f32 %v3434_v3, %v1221_v63  ;;  %v3488_v63 = vld [vmem:[%s5571_s3 + $0x1b0] sm:$0xff] }
 0x4ed   : > { %v3978_v2 = vpop.f32.mrf.mxu1 }
 0x4ee   : > { %v3487_v2 = vld [vmem:[%s5571_s3 + $0x1a8] sm:$0xff] }
 0x4ef   : > { %v1226_v4 = vpop.f32.mrf.mxu1 }
 0x4f0   : > { %v1227_v5 = vadd.f32 %v3434_v3, %v1226_v4  ;;  %v3485_v3 = vld [vmem:[%s5571_s3 + $0x198] sm:$0xff]  ;;  %v3483_v4 = vld [vmem:[%s5571_s3 + $0x188] sm:$0xff] }
 0x4f1   : > { %v3981_v6 = vpop.f32.mrf.mxu1 }
 0x4f2   : > { %4008 = vmatpush3.xpose.msk.msra.mxu0 %vm804_vm3, %v1227_v5  ;;  %4302 = vmatpush3.xpose.msk.msra.mxu1 %vm804_vm3, %v1227_v5  ;;  %v3476_v5 = vld [vmem:[%s5571_s3 + $0xb8] sm:$0xff] }
 0x4f3   : > { %4009 = vmatprep.subr.mxu0 %v4399_v21  ;;  %4300 = vmatprep.subr.mxu1 %v4399_v21 }
 0x4f6   : > { %4010 = vmatpush3.xpose.msk.msra.mxu0 %vm804_vm3, %v1222_v7  ;;  %4303 = vmatpush3.xpose.msk.msra.mxu1 %vm804_vm3, %v1222_v7  ;;  %v3475_v7 = vld [vmem:[%s5571_s3 + $0xb0] sm:$0xff] }
 0x4f7   : > { %4011 = vmatprep.subr.mxu0 %v4399_v21  ;;  %4301 = vmatprep.subr.mxu1 %v4399_v21 }
 0x4fa   : > { %4012 = vmatpush3.xpose.msk.msra.mxu0 %vm804_vm3, %v1217_v9  ;;  %4304 = vmatpush3.xpose.msk.msra.mxu1 %vm804_vm3, %v1217_v9  ;;  %v3474_v9 = vld [vmem:[%s5571_s3 + $0xa8] sm:$0xff] }
 0x4fb   : > { %4022 = vmatprep.subr.mxu0 %v4399_v21  ;;  %4037 = vmatprep.subr.mxu1 %v4399_v21 }
 0x4fd   : > { %4014 = vmatmul.mubr.msk.f32.vlgmr.msra.gmra.mxu0 %vm804_vm3, %v1120_v10  ;;  %4020 = vmatmul.mubr.msk.f32.vlgmr.msra.gmra.mxu1 %vm804_vm3, %v1130_v11  ;;  %v3473_v11 = vld [vmem:[%s5571_s3 + $0xa0] sm:$0xff] }
 0x4fe   : > { %4023 = vmatpush3.msk.msra.mxu0 %vm950_vm4, %v1324_v13  ;;  %4016 = vmatprep.mubr.msk.f32.mxu0 %vm4400_vm2, %v4399_v21  ;;  %v3472_v13 = vld [vmem:[%s5571_s3 + $0x98] sm:$0xff] }
 0x4ff   : > { %4024 = vmatprep.subr.mxu0 %v4399_v21  ;;  %4041 = vmatprep.mubr.msk.f32.mxu1 %vm4400_vm2, %v4399_v21 }
 0x500   : > { %4025 = vmatpush3.msra.mxu0 %v1319_v14  ;;  %4038 = vmatpush3.msra.mxu1 %v3462_v39 }
 0x501   : > { %4017 = vmatmul.mubr.msk.f32.gmra.mxu0 %vm804_vm3, %v1125_v52  ;;  %4026 = vmatprep.subr.mxu0 %v4399_v21  ;;  %v3471_v52 = vld [vmem:[%s5571_s3 + $0x90] sm:$0xff] }
 0x502   : > { %4027 = vmatpush3.msra.mxu0 %v1314_v57  ;;  %4028 = vmatprep.mubr.msk.f32.mxu0 %vm4400_vm2, %v4399_v21 }
 0x503   : > { %4050 = vmatprep.subr.mxu0 %v4399_v21  ;;  %4039 = vmatprep.subr.mxu1 %v4399_v21 }
 0x504   : > { %4040 = vmatpush3.msra.mxu1 %v3461_v40 }
 0x505   : > { %4063 = vmatprep.subr.mxu1 %v4399_v21 }
 0x5bd   : > { %v1411_v62 = vpop.f32.mrf.mxu0  ;;  %v1421_v55 = vpop.f32.mrf.mxu1 }
 0x5be   : > { %v1425_v1 = vmul.f32 0.25, %v1411_v62  ;;  %v1427_v17 = vmul.f32 0.25, %v1421_v55  ;;  %v3470_v62 = vld [vmem:[%s5571_s3 + $0x88] sm:$0xff] }
 0x5bf   : > { %v4015_v15 = vpop.f32.mrf.mxu0  ;;  %v4021_v16 = vpop.f32.mrf.mxu1 }
 0x5c0   : > { %v1428_v18 = vsel %vm906_vm5, %v1425_v1, -inf  ;;  %v1434_v22 = vsel %vm913_vm6, %v1427_v17, -inf  ;;  %v3502_v16 = vld [vmem:[%s5571_s3 + $0x2b8] sm:$0xff] }
 0x5c1   : > { %1429 = vmax.xlane.f32.xlu0 %v1428_v18  ;;  %v1416_v59 = vpop.f32.mrf.mxu0  ;;  %v3501_v18 = vld [vmem:[%s5571_s3 + $0x2b0] sm:$0xff] }
 0x5c2   : > { %v1426_v19 = vmul.f32 0.25, %v1416_v59 }
 0x5c3   : > { %v4018_v20 = vpop.f32.mrf.mxu0 }
 0x5c4   : > { %v1431_v23 = vsel %vm906_vm5, %v1426_v19, -inf }
 0x5c5   : > { %1435 = vmax.xlane.f32.xlu0 %v1434_v22  ;;  %1432 = vmax.xlane.f32.xlu1 %v1431_v23  ;;  %v3499_v22 = vld [vmem:[%s5571_s3 + $0x2a0] sm:$0xff] }
 0x64a   : > { %v1430_v24 = vpop.xlane.xlu0 %1429 }
 0x64b   : > { %v1437_v25 = vsub.f32 %v1425_v1, %v1430_v24  ;;  %v3469_v1 = vld [vmem:[%s5571_s3 + $0x80] sm:$0xff]  ;;  %v3498_v24 = vld [vmem:[%s5571_s3 + $0x298] sm:$0xff] }
 0x64d   : > { %v1440_v26 = vmul.f32 1.442695, %v1437_v25  ;;  %v3497_v25 = vld [vmem:[%s5571_s3 + $0x290] sm:$0xff] }
 0x64e   : > { %v1436_v27 = vpop.xlane.xlu0 %1435  ;;  %v1433_v28 = vpop.xlane.xlu1 %1432 }
 0x64f   : > { %4334 = vpow2.f32 %v1440_v26  ;;  %v1439_v29 = vsub.f32 %v1427_v17, %v1436_v27  ;;  %v1438_v30 = vsub.f32 %v1426_v19, %v1433_v28  ;;  %v3500_v19 = vld [vmem:[%s5571_s3 + $0x2a8] sm:$0xff]  ;;  %v3495_v28 = vld [vmem:[%s5571_s3 + $0x280] sm:$0xff] }
 0x650   : > { %v3496_v26 = vld [vmem:[%s5571_s3 + $0x288] sm:$0xff] }
 0x651   : > { %v1444_v31 = vmul.f32 1.442695, %v1439_v29  ;;  %v1442_v32 = vmul.f32 1.442695, %v1438_v30 }
 0x653   : > { %4336 = vpow2.f32 %v1444_v31 }
 0x654   : > { %4338 = vpow2.f32 %v1442_v32  ;;  %v3491_v32 = vld [vmem:[%s5572_s4 + $0x6] ss:$0 sm:$0xff] }
 0x65c   : > { %v4335_v33 = vpop.eup %4334 }
 0x65d   : > { %v1446_v34 = vsel %vm906_vm5, %v4335_v33, 0.0 }
 0x65e   : > { %1447 = vadd.xlane.f32.xlu1 %v1446_v34 }
 0x660   : > { %v4337_v35 = vpop.eup %4336 }
 0x661   : > { %v4339_v36 = vpop.eup %4338  ;;  %v1452_v37 = vsel %vm913_vm6, %v4337_v35, 0.0 }
 0x662   : > { %1453 = vadd.xlane.f32.xlu1 %v1452_v37  ;;  %v1449_v38 = vsel %vm906_vm5, %v4339_v36, 0.0 }
 0x663   : > { %1450 = vadd.xlane.f32.xlu0 %v1449_v38 }
 0x6e7   : > { %v1448_v41 = vpop.xlane.xlu1 %1447 }
 0x6e8   : > { %4340 = vrcp.f32 %v1448_v41 }
 0x6eb   : > { %v1454_v43 = vpop.xlane.xlu1 %1453 }
 0x6ec   : > { %v1451_v42 = vpop.xlane.xlu0 %1450 }
 0x6ed   : > { %4342 = vrcp.f32 %v1451_v42 }
 0x6ee   : > { %4344 = vrcp.f32 %v1454_v43 }
 0x6f5   : > { %v4341_v44 = vpop.eup %4340 }
 0x6f6   : > { %v1458_v45 = vmul.f32 %v4341_v44, %v4335_v33  ;;  %v3478_v44 = vld [vmem:[%s5572_s4 + $0x2] ss:$0 sm:$0xff] }
 0x6f8   : > { %4029 = vmatmul.mubr.msk.f32.vlgmr.msra.gmra.mxu0 %vm906_vm5, %v1458_v45 }
 0x6f9   : > { %4031 = vmatprep.mubr.msk.f32.mxu0 %vm4400_vm2, %v4399_v21  ;;  %4051 = vmatpush3.msra.mxu0 %v1035_v46 }
 0x6fa   : > { %v4343_v49 = vpop.eup %4342  ;;  %4052 = vmatprep.subr.mxu0 %v4399_v21 }
 0x6fb   : > { %v1459_v51 = vmul.f32 %v4343_v49, %v4339_v36  ;;  %4053 = vmatpush3.msra.mxu0 %v1034_v47  ;;  %v4345_v56 = vpop.eup %4344 }
 0x6fc   : > { %4088 = vmatprep.subr.mxu0 %v4399_v21  ;;  %v1460_v58 = vmul.f32 %v4345_v56, %v4337_v35 }
 0x6fd   : > { %4032 = vmatmul.mubr.msk.f32.gmra.mxu0 %vm906_vm5, %v1459_v51 }
 0x6fe   : > { %4034 = vmatprep.mubr.msk.f32.mxu0 %vm4400_vm2, %v4399_v21 }
 0x701   : > { %4035 = vmatmul.mubr.msk.f32.gmra.mxu0 %vm906_vm5, %v1460_v58 }
 0x702   : > { %4054 = vmatprep.mubr.msk.f32.mxu0 %vm4400_vm2, %v4399_v21 }
 0x705   : > { %4055 = vmatmul.mubr.msk.f32.vlgmr.msra.gmra.mxu0 %vm804_vm3, %v4850_v48  ;;  %v3486_v48 = vld [vmem:[%s5571_s3 + $0x1a0] sm:$0xff] }
 0x706   : > { %4089 = vmatpush3.msra.mxu0 %v3489_v60  ;;  %4057 = vmatprep.mubr.msk.f32.mxu0 %vm4400_vm2, %v4399_v21 }
 0x707   : > { %4090 = vmatprep.subr.mxu0 %v4399_v21 }
 0x708   : > { %4091 = vmatpush3.msra.mxu0 %v3488_v63 }
 0x709   : > { %4092 = vmatprep.subr.mxu0 %v4399_v21  ;;  %4058 = vmatmul.mubr.msk.f32.gmra.mxu0 %vm804_vm3, %v4852_v50  ;;  %v3484_v50 = vld [vmem:[%s5571_s3 + $0x190] sm:$0xff] }
 0x70a   : > { %4093 = vmatpush3.msra.mxu0 %v3487_v2  ;;  %4060 = vmatprep.mubr.msk.f32.mxu0 %vm4400_vm2, %v4399_v21 }
 0x70b   : > { %4094 = vmatprep.subr.mxu0 %v4399_v21 }
 0x70c   : > { %4095 = vmatpush3.msra.mxu0 %v3486_v48 }
 0x70d   : > { %4096 = vmatprep.subr.mxu0 %v4399_v21  ;;  %4061 = vmatmul.mubr.msk.f32.gmra.mxu0 %vm804_vm3, %v4854_v53  ;;  %v3482_v53 = vld [vmem:[%s5571_s3 + $0x180] sm:$0xff] }
 0x70e   : > { %4097 = vmatpush3.msra.mxu0 %v3485_v3  ;;  %4104 = vmatprep.mubr.msk.f32.mxu0 %vm4400_vm2, %v4399_v21 }
 0x70f   : > { %4098 = vmatprep.subr.mxu0 %v4399_v21 }
 0x710   : > { %4099 = vmatpush3.msra.mxu0 %v3484_v50 }
 0x711   : > { %4100 = vmatprep.subr.mxu0 %v4399_v21 }
 0x712   : > { %4101 = vmatpush3.msra.mxu0 %v3483_v4  ;;  %v3504_v4 = vld [vmem:[%s5572_s4 + $0xa] ss:$0 sm:$0xff] }
 0x713   : > { %4102 = vmatprep.subr.mxu0 %v4399_v21 }
 0x714   : > { %4103 = vmatpush3.msra.mxu0 %v3482_v53 }
 0x715   : > { %4105 = vmatmul.mubr.msk.f32.vlgmr.msra.gmra.mxu0 %vm446_vm0, %v4587_v54  ;;  %4138 = vmatprep.subr.mxu0 %v4399_v21 }
 0x716   : > { %4107 = vmatprep.mubr.msk.f32.mxu0 %vm4400_vm2, %v4399_v21 }
 0x719   : > { %4108 = vmatmul.mubr.msk.f32.gmra.mxu0 %vm446_vm0, %v4606_v61 }
 0x71a   : > { %4110 = vmatprep.mubr.msk.f32.mxu0 %vm4400_vm2, %v4399_v21 }
 0x71d   : > { %4111 = vmatmul.mubr.msk.f32.gmra.mxu0 %vm446_vm0, %v4621_v0 }
 0x71e   : > { %4144 = vmatprep.mubr.msk.f32.mxu0 %vm4400_vm2, %v4399_v21 }
 0x7b8   : > { %v1539_v6 = vpop.f32.mrf.mxu0 }
 0x7b9   : > { %4042 = vmatmul.mubr.msk.f32.vlgmr.msra.gmra.mxu1 %vm804_vm3, %v1539_v6 }
 0x7ba   : > { %4064 = vmatpush3.msra.mxu1 %v3476_v5  ;;  %v4030_v8 = vpop.f32.mrf.mxu0  ;;  %4044 = vmatprep.mubr.msk.f32.mxu1 %vm4400_vm2, %v4399_v21 }
 0x7bb   : > { %4065 = vmatprep.subr.mxu1 %v4399_v21 }
 0x7bc   : > { %4066 = vmatpush3.msra.mxu1 %v3475_v7 }
 0x7bd   : > { %v1544_v10 = vpop.f32.mrf.mxu0  ;;  %4067 = vmatprep.subr.mxu1 %v4399_v21 }
 0x7be   : > { %4045 = vmatmul.mubr.msk.f32.gmra.mxu1 %vm804_vm3, %v1544_v10 }
 0x7bf   : > { %4068 = vmatpush3.msra.mxu1 %v3474_v9  ;;  %v4033_v12 = vpop.f32.mrf.mxu0  ;;  %4047 = vmatprep.mubr.msk.f32.mxu1 %vm4400_vm2, %v4399_v21 }
 0x7c0   : > { %4069 = vmatprep.subr.mxu1 %v4399_v21 }
 0x7c1   : > { %4070 = vmatpush3.msra.mxu1 %v3473_v11  ;;  %v1549_v14 = vpop.f32.mrf.mxu0 }
 0x7c2   : > { %4071 = vmatprep.subr.mxu1 %v4399_v21  ;;  %4048 = vmatmul.mubr.msk.f32.gmra.mxu1 %vm804_vm3, %v1549_v14 }
 0x7c3   : > { %4072 = vmatpush3.msra.mxu1 %v3472_v13  ;;  %v4036_v57 = vpop.f32.mrf.mxu0  ;;  %4079 = vmatprep.mubr.msk.f32.mxu1 %vm4400_vm2, %v4399_v21 }
 0x7c4   : > { %4073 = vmatprep.subr.mxu1 %v4399_v21 }
 0x7c5   : > { %4074 = vmatpush3.msra.mxu1 %v3471_v52  ;;  %v5018_v55 = vpop.f32.mrf.mxu0 }
 0x7c6   : > { %4075 = vmatprep.subr.mxu1 %v4399_v21 }
 0x7c7   : > { %4076 = vmatpush3.msra.mxu1 %v3470_v62  ;;  %v4056_v15 = vpop.f32.mrf.mxu0 }
 0x7c8   : > { %4077 = vmatprep.subr.mxu1 %v4399_v21 }
 0x7c9   : > { %4078 = vmatpush3.msra.mxu1 %v3469_v1  ;;  %v5028_v17 = vpop.f32.mrf.mxu0 }
 0x7ca   : > { %4080 = vmatmul.mubr.msk.f32.vlgmr.msra.gmra.mxu1 %vm446_vm0, %v4587_v54  ;;  %4113 = vmatprep.subr.mxu1 %v4399_v21 }
 0x7cb   : > { %4114 = vmatpush3.msra.mxu1 %v3502_v16  ;;  %v4059_v59 = vpop.f32.mrf.mxu0  ;;  %4082 = vmatprep.mubr.msk.f32.mxu1 %vm4400_vm2, %v4399_v21 }
 0x7cc   : > { %4115 = vmatprep.subr.mxu1 %v4399_v21 }
 0x7cd   : > { %4116 = vmatpush3.msra.mxu1 %v3501_v18  ;;  %v5042_v20 = vpop.f32.mrf.mxu0 }
 0x7ce   : > { %4083 = vmatmul.mubr.msk.f32.gmra.mxu1 %vm446_vm0, %v4606_v61  ;;  %4117 = vmatprep.subr.mxu1 %v4399_v21 }
 0x7cf   : > { %4118 = vmatpush3.msra.mxu1 %v3500_v19  ;;  %v4062_v23 = vpop.f32.mrf.mxu0  ;;  %4085 = vmatprep.mubr.msk.f32.mxu1 %vm4400_vm2, %v4399_v21 }
 0x7d0   : > { %4119 = vmatprep.subr.mxu1 %v4399_v21 }
 0x7d1   : > { %4120 = vmatpush3.msra.mxu1 %v3499_v22 }
 0x7d2   : > { %4086 = vmatmul.mubr.msk.f32.gmra.mxu1 %vm446_vm0, %v4621_v0  ;;  %4121 = vmatprep.subr.mxu1 %v4399_v21 }
 0x7d3   : > { %4122 = vmatpush3.msra.mxu1 %v3498_v24  ;;  %4129 = vmatprep.mubr.msk.f32.mxu1 %vm4400_vm2, %v4399_v21 }
 0x7d4   : > { %4123 = vmatprep.subr.mxu1 %v4399_v21 }
 0x7d5   : > { %v1914_v27 = vpop.f32.mrf.mxu0  ;;  %4124 = vmatpush3.msra.mxu1 %v3497_v25 }
 0x7d6   : > { %4125 = vmatprep.subr.mxu1 %v4399_v21  ;;  %v1915_v37 = vadd.f32 %v3491_v32, %v1914_v27 }
 0x7d7   : > { %v4106_v29 = vpop.f32.mrf.mxu0  ;;  %4126 = vmatpush3.msra.mxu1 %v3496_v26 }
 0x7d8   : > { %4127 = vmatprep.subr.mxu1 %v4399_v21 }
 0x7d9   : > { %v1919_v30 = vpop.f32.mrf.mxu0  ;;  %4128 = vmatpush3.msra.mxu1 %v3495_v28 }
 0x7da   : > { %4130 = vmatmul.mubr.msk.f32.vlgmr.msra.gmra.mxu1 %vm446_vm0, %v4587_v54  ;;  %4153 = vmatprep.subr.mxu1 %v4399_v21  ;;  %v1920_v36 = vadd.f32 %v3491_v32, %v1919_v30 }
 0x7db   : > { %v4109_v31 = vpop.f32.mrf.mxu0  ;;  %4132 = vmatprep.mubr.msk.f32.mxu1 %vm4400_vm2, %v4399_v21 }
 0x7dd   : > { %v1924_v33 = vpop.f32.mrf.mxu0 }
 0x7de   : > { %v1925_v34 = vadd.f32 %v3491_v32, %v1924_v33  ;;  %4133 = vmatmul.mubr.msk.f32.gmra.mxu1 %vm446_vm0, %v4606_v61 }
 0x7df   : > { %v4112_v35 = vpop.f32.mrf.mxu0  ;;  %4135 = vmatprep.mubr.msk.f32.mxu1 %vm4400_vm2, %v4399_v21 }
 0x7e0   : > { %4139 = vmatpush3.xpose.msk.msra.mxu0 %vm804_vm3, %v1925_v34  ;;  %v3519_v34 = vld [vmem:[%s5573_s5 + $0x28] sm:$0xff]  ;;  %v3518_v35 = vld [vmem:[%s5573_s5 + $0x20] sm:$0xff] }
 0x7e1   : > { %4140 = vmatprep.subr.mxu0 %v4399_v21 }
 0x7e2   : > { %4136 = vmatmul.mubr.msk.f32.gmra.mxu1 %vm446_vm0, %v4621_v0 }
 0x7e3   : > { %4159 = vmatprep.mubr.msk.f32.mxu1 %vm4400_vm2, %v4399_v21 }
 0x7e4   : > { %4141 = vmatpush3.xpose.msk.msra.mxu0 %vm804_vm3, %v1920_v36 }
 0x7e5   : > { %4142 = vmatprep.subr.mxu0 %v4399_v21 }
 0x7e8   : > { %4143 = vmatpush3.xpose.msk.msra.mxu0 %vm804_vm3, %v1915_v37 }
 0x7e9   : > { %4168 = vmatprep.subr.mxu0 %v4399_v21 }
 0x879   : > { %v5095_v38 = vpop.f32.mrf.mxu1 }
 0x87b   : > { %v4043_v39 = vpop.f32.mrf.mxu1 }
 0x87e   : > { %v5097_v40 = vpop.f32.mrf.mxu1 }
 0x880   : > { %v4046_v41 = vpop.f32.mrf.mxu1 }
 0x882   : > { %v5099_v42 = vpop.f32.mrf.mxu1 }
 0x884   : > { %v4049_v43 = vpop.f32.mrf.mxu1 }
 0x88a   : > { %v1817_v45 = vpop.f32.mrf.mxu1 }
 0x88b   : > { %v1818_v46 = vadd.f32 %v3478_v44, %v1817_v45  ;;  %v3529_v45 = vld [vmem:[%s5571_s3 + $0xf0] sm:$0xff] }
 0x88c   : > { %v4081_v47 = vpop.f32.mrf.mxu1 }
 0x88d   : > { %4145 = vmatmul.mubr.msk.f32.vlgmr.msra.gmra.mxu0 %vm804_vm3, %v1818_v46 }
 0x88e   : > { %v1822_v49 = vpop.f32.mrf.mxu1  ;;  %4147 = vmatprep.mubr.msk.f32.mxu0 %vm4400_vm2, %v4399_v21  ;;  %4169 = vmatpush3.msra.mxu0 %v3519_v34 }
 0x88f   : > { %v1823_v51 = vadd.f32 %v3478_v44, %v1822_v49  ;;  %4170 = vmatprep.subr.mxu0 %v4399_v21  ;;  %v3528_v49 = vld [vmem:[%s5571_s3 + $0xe8] sm:$0xff] }
 0x890   : > { %v4084_v56 = vpop.f32.mrf.mxu1  ;;  %4171 = vmatpush3.msra.mxu0 %v3518_v35 }
 0x891   : > { %4148 = vmatmul.mubr.msk.f32.gmra.mxu0 %vm804_vm3, %v1823_v51  ;;  %4206 = vmatprep.subr.mxu0 %v4399_v21  ;;  %v3527_v51 = vld [vmem:[%s5571_s3 + $0xe0] sm:$0xff] }
 0x892   : > { %v1827_v58 = vpop.f32.mrf.mxu1  ;;  %4150 = vmatprep.mubr.msk.f32.mxu0 %vm4400_vm2, %v4399_v21 }
 0x893   : > { %v1828_v60 = vadd.f32 %v3478_v44, %v1827_v58  ;;  %v3530_v44 = vld [vmem:[%s5571_s3 + $0xf8] sm:$0xff] }
 0x894   : > { %v4087_v63 = vpop.f32.mrf.mxu1 }
 0x895   : > { %4151 = vmatmul.mubr.msk.f32.gmra.mxu0 %vm804_vm3, %v1828_v60  ;;  %v3526_v60 = vld [vmem:[%s5571_s3 + $0xd8] sm:$0xff]  ;;  %v3525_v63 = vld [vmem:[%s5571_s3 + $0xd0] sm:$0xff] }
 0x896   : > { %4172 = vmatprep.mubr.msk.f32.mxu0 %vm4400_vm2, %v4399_v21 }
 0x89a   : > { %v2011_v2 = vpop.f32.mrf.mxu1 }
 0x89b   : > { %v2012_v8 = vadd.f32 %v3504_v4, %v2011_v2  ;;  %v3524_v2 = vld [vmem:[%s5571_s3 + $0xc8] sm:$0xff] }
 0x89c   : > { %v4131_v48 = vpop.f32.mrf.mxu1 }
 0x89d   : > { %v3523_v48 = vld [vmem:[%s5571_s3 + $0xc0] sm:$0xff] }
 0x89e   : > { %v2016_v3 = vpop.f32.mrf.mxu1 }
 0x89f   : > { %v2017_v7 = vadd.f32 %v3504_v4, %v2016_v3  ;;  %v3556_v3 = vld [vmem:[%s5571_s3 + $0x2f8] sm:$0xff] }
 0x8a0   : > { %v4134_v50 = vpop.f32.mrf.mxu1 }
 0x8a1   : > { %v3555_v50 = vld [vmem:[%s5571_s3 + $0x2f0] sm:$0xff] }
 0x8a2   : > { %v2021_v53 = vpop.f32.mrf.mxu1 }
 0x8a3   : > { %v2022_v5 = vadd.f32 %v3504_v4, %v2021_v53  ;;  %v3554_v4 = vld [vmem:[%s5571_s3 + $0x2e8] sm:$0xff]  ;;  %v3553_v53 = vld [vmem:[%s5571_s3 + $0x2e0] sm:$0xff] }
 0x8a4   : > { %v4137_v6 = vpop.f32.mrf.mxu1 }
 0x8a5   : > { %4154 = vmatpush3.msk.msra.mxu1 %vm950_vm4, %v2022_v5  ;;  %v3552_v5 = vld [vmem:[%s5571_s3 + $0x2d8] sm:$0xff]  ;;  %v3551_v6 = vld [vmem:[%s5571_s3 + $0x2d0] sm:$0xff] }
 0x8a6   : > { %4155 = vmatprep.subr.mxu1 %v4399_v21 }
 0x8a7   : > { %4156 = vmatpush3.msra.mxu1 %v2017_v7  ;;  %v3550_v7 = vld [vmem:[%s5571_s3 + $0x2c8] sm:$0xff] }
 0x8a8   : > { %4157 = vmatprep.subr.mxu1 %v4399_v21 }
 0x8a9   : > { %4158 = vmatpush3.msra.mxu1 %v2012_v8  ;;  %v3549_v8 = vld [vmem:[%s5571_s3 + $0x2c0] sm:$0xff] }
 0x8aa   : > { %4181 = vmatprep.subr.mxu1 %v4399_v21 }
 0x94d   : > { %v2109_v9 = vpop.f32.mrf.mxu0 }
 0x94e   : > { %v2123_v10 = vmul.f32 0.25, %v2109_v9  ;;  %v3543_v9 = vld [vmem:[%s5571_s3 + $0x1f8] sm:$0xff] }
 0x94f   : > { %v4146_v11 = vpop.f32.mrf.mxu0 }
 0x950   : > { %v2126_v12 = vsel %vm906_vm5, %v2123_v10, -inf  ;;  %v3542_v11 = vld [vmem:[%s5571_s3 + $0x1f0] sm:$0xff] }
 0x951   : > { %2127 = vmax.xlane.f32.xlu0 %v2126_v12  ;;  %v2114_v13 = vpop.f32.mrf.mxu0 }
 0x952   : > { %v2124_v14 = vmul.f32 0.25, %v2114_v13  ;;  %v3541_v13 = vld [vmem:[%s5571_s3 + $0x1e8] sm:$0xff] }
 0x953   : > { %v4149_v52 = vpop.f32.mrf.mxu0 }
 0x954   : > { %v2129_v57 = vsel %vm906_vm5, %v2124_v14, -inf  ;;  %v3540_v52 = vld [vmem:[%s5571_s3 + $0x1e0] sm:$0xff] }
 0x955   : > { %2130 = vmax.xlane.f32.xlu1 %v2129_v57  ;;  %v2119_v62 = vpop.f32.mrf.mxu0 }
 0x956   : > { %v2125_v1 = vmul.f32 0.25, %v2119_v62  ;;  %v3539_v62 = vld [vmem:[%s5571_s3 + $0x1d8] sm:$0xff] }
 0x957   : > { %v4152_v15 = vpop.f32.mrf.mxu0 }
 0x958   : > { %v2132_v16 = vsel %vm913_vm6, %v2125_v1, -inf  ;;  %v3538_v15 = vld [vmem:[%s5571_s3 + $0x1d0] sm:$0xff] }
 0x959   : > { %2133 = vmax.xlane.f32.xlu0 %v2132_v16 }
 0x9da   : > { %v2128_v18 = vpop.xlane.xlu0 %2127 }
 0x9db   : > { %v2135_v59 = vsub.f32 %v2123_v10, %v2128_v18  ;;  %v3537_v18 = vld [vmem:[%s5571_s3 + $0x1c8] sm:$0xff] }
 0x9dd   : > { %v2138_v19 = vmul.f32 1.442695, %v2135_v59  ;;  %v3536_v59 = vld [vmem:[%s5571_s3 + $0x1c0] sm:$0xff] }
 0x9de   : > { %v2131_v22 = vpop.xlane.xlu1 %2130 }
 0x9df   : > { %4346 = vpow2.f32 %v2138_v19  ;;  %v2136_v23 = vsub.f32 %v2124_v14, %v2131_v22 }
 0x9e1   : > { %v2140_v24 = vmul.f32 1.442695, %v2136_v23 }
 0x9e2   : > { %v2134_v25 = vpop.xlane.xlu0 %2133 }
 0x9e3   : > { %4348 = vpow2.f32 %v2140_v24  ;;  %v2137_v26 = vsub.f32 %v2125_v1, %v2134_v25 }
 0x9e5   : > { %v2142_v27 = vmul.f32 1.442695, %v2137_v26 }
 0x9e7   : > { %4350 = vpow2.f32 %v2142_v27 }
 0x9ec   : > { %v4347_v28 = vpop.eup %4346 }
 0x9ed   : > { %v2144_v29 = vsel %vm906_vm5, %v4347_v28, 0.0 }
 0x9ee   : > { %2145 = vadd.xlane.f32.xlu1 %v2144_v29 }
 0x9f0   : > { %v4349_v30 = vpop.eup %4348 }
 0x9f1   : > { %v2147_v31 = vsel %vm906_vm5, %v4349_v30, 0.0 }
 0x9f2   : > { %2148 = vadd.xlane.f32.xlu0 %v2147_v31 }
 0x9f4   : > { %v4351_v32 = vpop.eup %4350 }
 0x9f5   : > { %v2150_v33 = vsel %vm913_vm6, %v4351_v32, 0.0 }
 0x9f6   : > { %2151 = vadd.xlane.f32.xlu1 %v2150_v33 }
 0xa77   : > { %v2146_v36 = vpop.xlane.xlu1 %2145 }
 0xa78   : > { %4352 = vrcp.f32 %v2146_v36 }
 0xa7b   : > { %v2149_v37 = vpop.xlane.xlu0 %2148 }
 0xa7c   : > { %4354 = vrcp.f32 %v2149_v37 }
 0xa7f   : > { %v2152_v39 = vpop.xlane.xlu1 %2151 }
 0xa80   : > { %4356 = vrcp.f32 %v2152_v39  ;;  %v1731_v39 = vadd.f32 %v5042_v20, %v5099_v42  ;;  %v3532_v42 = vld [vmem:[%s5572_s4 + $0x3] ss:$0 sm:$0xff] }
 0xa85   : > { %v4353_v41 = vpop.eup %4352 }
 0xa86   : > { %v2156_v43 = vmul.f32 %v4353_v41, %v4347_v28 }
 0xa88   : > { %4160 = vmatmul.mubr.msk.f32.vlgmr.msra.gmra.mxu1 %vm906_vm5, %v2156_v43 }
 0xa89   : > { %v4355_v46 = vpop.eup %4354  ;;  %4182 = vmatpush3.msra.mxu1 %v3530_v44  ;;  %4162 = vmatprep.mubr.msk.f32.mxu1 %vm4400_vm2, %v4399_v21 }
 0xa8a   : > { %4183 = vmatprep.subr.mxu1 %v4399_v21  ;;  %v2157_v47 = vmul.f32 %v4355_v46, %v4349_v30 }
 0xa8b   : > { %4184 = vmatpush3.msra.mxu1 %v3529_v45 }
 0xa8c   : > { %4185 = vmatprep.subr.mxu1 %v4399_v21  ;;  %4163 = vmatmul.mubr.msk.f32.gmra.mxu1 %vm906_vm5, %v2157_v47  ;;  %v3545_v47 = vld [vmem:[%s5572_s4 + $0x7] ss:$0 sm:$0xff] }
 0xa8d   : > { %v4357_v56 = vpop.eup %4356  ;;  %4186 = vmatpush3.msra.mxu1 %v3528_v49  ;;  %4165 = vmatprep.mubr.msk.f32.mxu1 %vm4400_vm2, %v4399_v21 }
 0xa8e   : > { %4187 = vmatprep.subr.mxu1 %v4399_v21  ;;  %v2158_v58 = vmul.f32 %v4357_v56, %v4351_v32 }
 0xa8f   : > { %4188 = vmatpush3.msra.mxu1 %v3527_v51 }
 0xa90   : > { %4189 = vmatprep.subr.mxu1 %v4399_v21  ;;  %4166 = vmatmul.mubr.msk.f32.gmra.mxu1 %vm906_vm5, %v2158_v58  ;;  %v3558_v58 = vld [vmem:[%s5572_s4 + $0xb] ss:$0 sm:$0xff] }
 0xa91   : > { %4190 = vmatpush3.msra.mxu1 %v3526_v60  ;;  %4197 = vmatprep.mubr.msk.f32.mxu1 %vm4400_vm2, %v4399_v21 }
 0xa92   : > { %4191 = vmatprep.subr.mxu1 %v4399_v21 }
 0xa93   : > { %4192 = vmatpush3.msra.mxu1 %v3525_v63 }
 0xa94   : > { %4193 = vmatprep.subr.mxu1 %v4399_v21 }
 0xa95   : > { %4194 = vmatpush3.msra.mxu1 %v3524_v2 }
 0xa96   : > { %4195 = vmatprep.subr.mxu1 %v4399_v21 }
 0xa97   : > { %4196 = vmatpush3.msra.mxu1 %v3523_v48 }
 0xa98   : > { %4198 = vmatmul.mubr.msk.f32.vlgmr.msra.gmra.mxu1 %vm446_vm0, %v4587_v54  ;;  %4231 = vmatprep.subr.mxu1 %v4399_v21 }
 0xa99   : > { %4232 = vmatpush3.msra.mxu1 %v3556_v3  ;;  %4200 = vmatprep.mubr.msk.f32.mxu1 %vm4400_vm2, %v4399_v21 }
 0xa9a   : > { %4233 = vmatprep.subr.mxu1 %v4399_v21 }
 0xa9b   : > { %4234 = vmatpush3.msra.mxu1 %v3555_v50 }
 0xa9c   : > { %4201 = vmatmul.mubr.msk.f32.gmra.mxu1 %vm446_vm0, %v4606_v61  ;;  %4235 = vmatprep.subr.mxu1 %v4399_v21 }
 0xa9d   : > { %4236 = vmatpush3.msra.mxu1 %v3554_v4  ;;  %4203 = vmatprep.mubr.msk.f32.mxu1 %vm4400_vm2, %v4399_v21 }
 0xa9e   : > { %4237 = vmatprep.subr.mxu1 %v4399_v21 }
 0xa9f   : > { %4238 = vmatpush3.msra.mxu1 %v3553_v53 }
 0xaa0   : > { %4204 = vmatmul.mubr.msk.f32.gmra.mxu1 %vm446_vm0, %v4621_v0  ;;  %4239 = vmatprep.subr.mxu1 %v4399_v21 }
 0xaa1   : > { %4240 = vmatpush3.msra.mxu1 %v3552_v5  ;;  %4247 = vmatprep.mubr.msk.f32.mxu1 %vm4400_vm2, %v4399_v21 }
 0xaa2   : > { %4241 = vmatprep.subr.mxu1 %v4399_v21 }
 0xaa3   : > { %4242 = vmatpush3.msra.mxu1 %v3551_v6 }
 0xaa4   : > { %4243 = vmatprep.subr.mxu1 %v4399_v21 }
 0xaa5   : > { %4244 = vmatpush3.msra.mxu1 %v3550_v7 }
 0xaa6   : > { %4245 = vmatprep.subr.mxu1 %v4399_v21 }
 0xaa7   : > { %4246 = vmatpush3.msra.mxu1 %v3549_v8 }
 0xaa8   : > { %4248 = vmatmul.mubr.msk.f32.vlgmr.msra.gmra.mxu1 %vm446_vm0, %v4587_v54  ;;  %4286 = vmatprep.subr.mxu1 %v4399_v21 }
 0xaa9   : > { %4250 = vmatprep.mubr.msk.f32.mxu1 %vm4400_vm2, %v4399_v21 }
 0xaac   : > { %4251 = vmatmul.mubr.msk.f32.gmra.mxu1 %vm446_vm0, %v4606_v61 }
 0xaad   : > { %4253 = vmatprep.mubr.msk.f32.mxu1 %vm4400_vm2, %v4399_v21 }
 0xab0   : > { %4254 = vmatmul.mubr.msk.f32.gmra.mxu1 %vm446_vm0, %v4621_v0 }
 0xab1   : > { %4290 = vmatprep.mubr.msk.f32.mxu1 %vm4400_vm2, %v4399_v21 }
 0xb48   : > { %v2237_v10 = vpop.f32.mrf.mxu1 }
 0xb49   : > { %4173 = vmatmul.mubr.msk.f32.vlgmr.msra.gmra.mxu0 %vm804_vm3, %v2237_v10 }
 0xb4a   : > { %4207 = vmatpush3.msra.mxu0 %v3543_v9  ;;  %v4161_v12 = vpop.f32.mrf.mxu1  ;;  %4175 = vmatprep.mubr.msk.f32.mxu0 %vm4400_vm2, %v4399_v21 }
 0xb4b   : > { %4208 = vmatprep.subr.mxu0 %v4399_v21 }
 0xb4c   : > { %4209 = vmatpush3.msra.mxu0 %v3542_v11  ;;  %v2242_v14 = vpop.f32.mrf.mxu1 }
 0xb4d   : > { %4210 = vmatprep.subr.mxu0 %v4399_v21  ;;  %4176 = vmatmul.mubr.msk.f32.gmra.mxu0 %vm804_vm3, %v2242_v14 }
 0xb4e   : > { %4211 = vmatpush3.msra.mxu0 %v3541_v13  ;;  %v4164_v57 = vpop.f32.mrf.mxu1  ;;  %4178 = vmatprep.mubr.msk.f32.mxu0 %vm4400_vm2, %v4399_v21 }
 0xb4f   : > { %4212 = vmatprep.subr.mxu0 %v4399_v21 }
 0xb50   : > { %4213 = vmatpush3.msra.mxu0 %v3540_v52  ;;  %v2247_v1 = vpop.f32.mrf.mxu1 }
 0xb51   : > { %4214 = vmatprep.subr.mxu0 %v4399_v21  ;;  %4179 = vmatmul.mubr.msk.f32.gmra.mxu0 %vm804_vm3, %v2247_v1 }
 0xb52   : > { %4215 = vmatpush3.msra.mxu0 %v3539_v62  ;;  %v4167_v16 = vpop.f32.mrf.mxu1  ;;  %4222 = vmatprep.mubr.msk.f32.mxu0 %vm4400_vm2, %v4399_v21 }
 0xb53   : > { %4216 = vmatprep.subr.mxu0 %v4399_v21 }
 0xb54   : > { %4217 = vmatpush3.msra.mxu0 %v3538_v15 }
 0xb55   : > { %4218 = vmatprep.subr.mxu0 %v4399_v21 }
 0xb56   : > { %4219 = vmatpush3.msra.mxu0 %v3537_v18 }
 0xb57   : > { %4220 = vmatprep.subr.mxu0 %v4399_v21 }
 0xb58   : > { %v2429_v19 = vpop.f32.mrf.mxu1  ;;  %4221 = vmatpush3.msra.mxu0 %v3536_v59 }
 0xb59   : > { %4223 = vmatmul.mubr.msk.f32.vlgmr.msra.gmra.mxu0 %vm446_vm0, %v4587_v54  ;;  %4256 = vmatprep.subr.mxu0 %v4399_v21  ;;  %v2430_v56 = vadd.f32 %v3532_v42, %v2429_v19 }
 0xb5a   : > { %v4199_v22 = vpop.f32.mrf.mxu1  ;;  %4225 = vmatprep.mubr.msk.f32.mxu0 %vm4400_vm2, %v4399_v21 }
 0xb5c   : > { %v2434_v23 = vpop.f32.mrf.mxu1 }
 0xb5d   : > { %4226 = vmatmul.mubr.msk.f32.gmra.mxu0 %vm446_vm0, %v4606_v61  ;;  %v1721_v61 = vadd.f32 %v5018_v55, %v5095_v38  ;;  %v2435_v2 = vadd.f32 %v3532_v42, %v2434_v23 }
 0xb5e   : > { %v4202_v24 = vpop.f32.mrf.mxu1  ;;  %4228 = vmatprep.mubr.msk.f32.mxu0 %vm4400_vm2, %v4399_v21 }
 0xb60   : > { %v2439_v25 = vpop.f32.mrf.mxu1 }
 0xb61   : > { %4229 = vmatmul.mubr.msk.f32.gmra.mxu0 %vm446_vm0, %v4621_v0  ;;  %v1726_v0 = vadd.f32 %v5028_v17, %v5097_v40  ;;  %v2440_v3 = vadd.f32 %v3532_v42, %v2439_v25 }
 0xb62   : > { %v4205_v26 = vpop.f32.mrf.mxu1  ;;  %4262 = vmatprep.mubr.msk.f32.mxu0 %vm4400_vm2, %v4399_v21 }
 0xb68   : > { %v2623_v54 = vpop.f32.mrf.mxu1 }
 0xb69   : > { %v2624_v48 = vadd.f32 %v3558_v58, %v2623_v54  ;;  %v3573_v54 = vld [vmem:[%s5573_s5 + $0x38] sm:$0xff] }
 0xb6a   : > { %v4249_v27 = vpop.f32.mrf.mxu1  ;;  %4287 = vmatpush3.msra.mxu1 %v3573_v54  ;;  %v3036_v54 = vld [vmem:[%s5577_s9 + $0x30] sm:$0xff] }
 0xb6b   : > { %v3572_v27 = vld [vmem:[%s5573_s5 + $0x30] sm:$0xff]  ;;  %4288 = vmatprep.subr.mxu1 %v4399_v21 }
 0xb6c   : > { %v2628_v28 = vpop.f32.mrf.mxu1  ;;  %4289 = vmatpush3.msra.mxu1 %v3572_v27  ;;  %v3035_v27 = vld [vmem:[%s5577_s9 + $0x28] sm:$0xff] }
 0xb6d   : > { %v2629_v63 = vadd.f32 %v3558_v58, %v2628_v28 }
 0xb6e   : > { %v4252_v29 = vpop.f32.mrf.mxu1 }
 0xb70   : > { %v2633_v30 = vpop.f32.mrf.mxu1 }
 0xb71   : > { %v2634_v60 = vadd.f32 %v3558_v58, %v2633_v30  ;;  %v4389_v58 = vld [vmem:[%s4487_s30 + $0x8] sm:$0xff] }
 0xb72   : > { %v4255_v31 = vpop.f32.mrf.mxu1 }
 0xc09   : > { %v2329_v32 = vpop.f32.mrf.mxu0 }
 0xc0a   : > { %v5286_v33 = vadd.f32 %v2329_v32, %v1721_v61 }
 0xc0b   : > { %v4174_v34 = vpop.f32.mrf.mxu0 }
 0xc0d   : > { %v2334_v35 = vpop.f32.mrf.mxu0 }
 0xc0e   : > { %v5290_v36 = vadd.f32 %v2334_v35, %v1726_v0 }
 0xc0f   : > { %v4177_v37 = vpop.f32.mrf.mxu0 }
 0xc11   : > { %v2339_v41 = vpop.f32.mrf.mxu0 }
 0xc12   : > { %v5294_v43 = vadd.f32 %v2339_v41, %v1731_v39 }
 0xc13   : > { %v4180_v44 = vpop.f32.mrf.mxu0 }
 0xc19   : > { %v2526_v45 = vpop.f32.mrf.mxu0 }
 0xc1a   : > { %v2527_v51 = vadd.f32 %v3545_v47, %v2526_v45 }
 0xc1b   : > { %v4224_v55 = vpop.f32.mrf.mxu0 }
 0xc1d   : > { %v2531_v38 = vpop.f32.mrf.mxu0 }
 0xc1e   : > { %v2532_v20 = vadd.f32 %v3545_v47, %v2531_v38 }
 0xc1f   : > { %v4227_v46 = vpop.f32.mrf.mxu0 }
 0xc21   : > { %v2536_v17 = vpop.f32.mrf.mxu0 }
 0xc22   : > { %v2537_v40 = vadd.f32 %v3545_v47, %v2536_v17  ;;  %v3577_v47 = vld [vmem:[%s5574_s6] ss:$0 sm:$0xff] }
 0xc23   : > { %v4230_v49 = vpop.f32.mrf.mxu0 }
 0xc24   : > { %4257 = vmatpush3.xpose.msk.msra.mxu0 %vm804_vm3, %v2537_v40  ;;  %v4388_v40 = vld [vmem:[%s4487_s30] sm:$0xff] }
 0xc25   : > { %4258 = vmatprep.subr.mxu0 %v4399_v21 }
 0xc28   : > { %4259 = vmatpush3.xpose.msk.msra.mxu0 %vm804_vm3, %v2532_v20 }
 0xc29   : > { %4260 = vmatprep.subr.mxu0 %v4399_v21 }
 0xc2c   : > { %4261 = vmatpush3.xpose.msk.msra.mxu0 %vm804_vm3, %v2527_v51 }
 0xc2d   : > { %4271 = vmatprep.subr.mxu0 %v4399_v21 }
 0xc2f   : > { %4263 = vmatmul.mubr.msk.f32.vlgmr.msra.gmra.mxu0 %vm804_vm3, %v2430_v56 }
 0xc30   : > { %4272 = vmatpush3.msk.msra.mxu0 %vm950_vm4, %v2634_v60  ;;  %4265 = vmatprep.mubr.msk.f32.mxu0 %vm4400_vm2, %v4399_v21 }
 0xc31   : > { %4273 = vmatprep.subr.mxu0 %v4399_v21 }
 0xc32   : > { %4274 = vmatpush3.msra.mxu0 %v2629_v63 }
 0xc33   : > { %4266 = vmatmul.mubr.msk.f32.gmra.mxu0 %vm804_vm3, %v2435_v2  ;;  %4275 = vmatprep.subr.mxu0 %v4399_v21 }
 0xc34   : > { %4276 = vmatpush3.msra.mxu0 %v2624_v48  ;;  %4268 = vmatprep.mubr.msk.f32.mxu0 %vm4400_vm2, %v4399_v21 }
 0xc37   : > { %4269 = vmatmul.mubr.msk.f32.gmra.mxu0 %vm804_vm3, %v2440_v3 }
 0xc38   : > { %4277 = vmatprep.mubr.msk.f32.mxu0 %vm4400_vm2, %v4399_v21 }
 0xcef   : > { %v2721_v50 = vpop.f32.mrf.mxu0 }
 0xcf0   : > { %v2735_v4 = vmul.f32 0.25, %v2721_v50  ;;  %v4390_v50 = vld [vmem:[%s4487_s30 + $0x10] sm:$0x1] }
 0xcf1   : > { %v4264_v53 = vpop.f32.mrf.mxu0 }
 0xcf2   : > { %v2738_v5 = vsel %vm906_vm5, %v2735_v4, -inf }
 0xcf3   : > { %2739 = vmax.xlane.f32.xlu0 %v2738_v5  ;;  %v2726_v6 = vpop.f32.mrf.mxu0 }
 0xcf4   : > { %v2736_v7 = vmul.f32 0.25, %v2726_v6 }
 0xcf5   : > { %v4267_v8 = vpop.f32.mrf.mxu0 }
 0xcf6   : > { %v2741_v9 = vsel %vm906_vm5, %v2736_v7, -inf }
 0xcf7   : > { %2742 = vmax.xlane.f32.xlu1 %v2741_v9  ;;  %v2731_v10 = vpop.f32.mrf.mxu0 }
 0xcf8   : > { %v2737_v11 = vmul.f32 0.25, %v2731_v10 }
 0xcf9   : > { %v4270_v12 = vpop.f32.mrf.mxu0 }
 0xcfa   : > { %v2744_v13 = vsel %vm913_vm6, %v2737_v11, -inf }
 0xcfb   : > { %2745 = vmax.xlane.f32.xlu0 %v2744_v13 }
 0xd7c   : > { %v2740_v14 = vpop.xlane.xlu0 %2739 }
 0xd7d   : > { %v2747_v52 = vsub.f32 %v2735_v4, %v2740_v14 }
 0xd7f   : > { %v2750_v57 = vmul.f32 1.442695, %v2747_v52 }
 0xd80   : > { %v2743_v62 = vpop.xlane.xlu1 %2742 }
 0xd81   : > { %4358 = vpow2.f32 %v2750_v57  ;;  %v2748_v1 = vsub.f32 %v2736_v7, %v2743_v62 }
 0xd83   : > { %v2752_v15 = vmul.f32 1.442695, %v2748_v1 }
 0xd84   : > { %v2746_v16 = vpop.xlane.xlu0 %2745 }
 0xd85   : > { %4360 = vpow2.f32 %v2752_v15  ;;  %v2749_v18 = vsub.f32 %v2737_v11, %v2746_v16  ;;  %v3045_v16 = vld [vmem:[%s5577_s9 + $0x78] sm:$0xff] }
 0xd86   : > { %3083 = vmatprep.subr.mxu0 %v3045_v16  ;;  %v3200_v16 = vld [vmem:[%s5579_s11 + $0xa0] sm:$0xff] }
 0xd87   : > { %v2754_v59 = vmul.f32 1.442695, %v2749_v18  ;;  %v3044_v18 = vld [vmem:[%s5577_s9 + $0x70] sm:$0xff] }
 0xd89   : > { %4362 = vpow2.f32 %v2754_v59  ;;  %v3043_v59 = vld [vmem:[%s5577_s9 + $0x68] sm:$0xff] }
 0xd8e   : > { %v4359_v19 = vpop.eup %4358 }
 0xd8f   : > { %v2756_v22 = vsel %vm906_vm5, %v4359_v19, 0.0 }
 0xd90   : > { %2757 = vadd.xlane.f32.xlu1 %v2756_v22  ;;  %v3041_v22 = vld [vmem:[%s5577_s9 + $0x58] sm:$0xff] }
 0xd92   : > { %v4361_v23 = vpop.eup %4360 }
 0xd93   : > { %v2759_v24 = vsel %vm906_vm5, %v4361_v23, 0.0 }
 0xd94   : > { %2760 = vadd.xlane.f32.xlu0 %v2759_v24  ;;  %v3039_v24 = vld [vmem:[%s5577_s9 + $0x48] sm:$0xff] }
 0xd96   : > { %v4363_v25 = vpop.eup %4362 }
 0xd97   : > { %v2762_v26 = vsel %vm913_vm6, %v4363_v25, 0.0 }
 0xd98   : > { %2763 = vadd.xlane.f32.xlu1 %v2762_v26  ;;  %v3037_v26 = vld [vmem:[%s5577_s9 + $0x38] sm:$0xff] }
 0xe19   : > { %v2758_v28 = vpop.xlane.xlu1 %2757 }
 0xe1a   : > { %4364 = vrcp.f32 %v2758_v28  ;;  %v3034_v28 = vld [vmem:[%s5577_s9 + $0x20] sm:$0xff] }
 0xe1d   : > { %v2761_v29 = vpop.xlane.xlu0 %2760 }
 0xe1e   : > { %4366 = vrcp.f32 %v2761_v29  ;;  %v3033_v29 = vld [vmem:[%s5577_s9 + $0x18] sm:$0xff] }
 0xe21   : > { %v2764_v30 = vpop.xlane.xlu1 %2763 }
 0xe22   : > { %4368 = vrcp.f32 %v2764_v30  ;;  %v3032_v30 = vld [vmem:[%s5577_s9 + $0x10] sm:$0xff] }
 0xe27   : > { %v4365_v31 = vpop.eup %4364 }
 0xe28   : > { %v2768_v61 = vmul.f32 %v4365_v31, %v4359_v19  ;;  %v3042_v19 = vld [vmem:[%s5577_s9 + $0x60] sm:$0xff]  ;;  %v3031_v31 = vld [vmem:[%s5577_s9 + $0x8] sm:$0xff] }
 0xe2a   : > { %4278 = vmatmul.mubr.msk.f32.vlgmr.msra.gmra.mxu0 %vm906_vm5, %v2768_v61  ;;  %v3030_v61 = vld [vmem:[%s5577_s9] sm:$0xff] }
 0xe2b   : > { %v4367_v32 = vpop.eup %4366  ;;  %4280 = vmatprep.mubr.msk.f32.mxu0 %vm4400_vm2, %v4399_v21  ;;  %3084 = vmatpush1.msra.mxu0 %v3044_v18  ;;  %v3184_v18 = vld [vmem:[%s5579_s11 + $0x20] sm:$0xff] }
 0xe2c   : > { %v2769_v34 = vmul.f32 %v4367_v32, %v4361_v23  ;;  %3085 = vmatprep.subr.mxu0 %v3043_v59  ;;  %v3040_v23 = vld [vmem:[%s5577_s9 + $0x50] sm:$0xff]  ;;  %v3211_v32 = vld [vmem:[%s5579_s11 + $0xf8] sm:$0xff] }
 0xe2d   : > { %3086 = vmatpush1.msra.mxu0 %v3042_v19  ;;  %3786 = vmatprep.subr.mxu1 %v3211_v32  ;;  %v3199_v59 = vld [vmem:[%s5579_s11 + $0x98] sm:$0xff] }
 0xe2e   : > { %4281 = vmatmul.mubr.msk.f32.gmra.mxu0 %vm906_vm5, %v2769_v34  ;;  %3087 = vmatprep.subr.mxu0 %v3041_v22  ;;  %v3195_v34 = vld [vmem:[%s5579_s11 + $0x78] sm:$0xff]  ;;  %v3198_v22 = vld [vmem:[%s5579_s11 + $0x90] sm:$0xff] }
 0xe2f   : > { %v4369_v0 = vpop.eup %4368  ;;  %4283 = vmatprep.mubr.msk.f32.mxu0 %vm4400_vm2, %v4399_v21  ;;  %3088 = vmatpush1.msra.mxu0 %v3040_v23  ;;  %v3183_v19 = vld [vmem:[%s5579_s11 + $0x18] sm:$0xff]  ;;  %v3182_v23 = vld [vmem:[%s5579_s11 + $0x10] sm:$0xff] }
 0xe30   : > { %v2770_v35 = vmul.f32 %v4369_v0, %v4363_v25  ;;  %3089 = vmatprep.subr.mxu0 %v3039_v24  ;;  %v3038_v25 = vld [vmem:[%s5577_s9 + $0x40] sm:$0xff]  ;;  %v3210_v0 = vld [vmem:[%s5579_s11 + $0xf0] sm:$0xff]  ;;  %v3197_v24 = vld [vmem:[%s5579_s11 + $0x88] sm:$0xff] }
 0xe31   : > { %3090 = vmatpush1.msra.mxu0 %v3038_v25  ;;  %v3181_v25 = vld [vmem:[%s5579_s11 + $0x8] sm:$0xff] }
 0xe32   : > { %4284 = vmatmul.mubr.msk.f32.gmra.mxu0 %vm906_vm5, %v2770_v35  ;;  %3091 = vmatprep.subr.mxu0 %v3037_v26  ;;  %v3194_v35 = vld [vmem:[%s5579_s11 + $0x70] sm:$0xff]  ;;  %v3196_v26 = vld [vmem:[%s5579_s11 + $0x80] sm:$0xff] }
 0xe33   : > { %3131 = vmatprep.mubr.f32.mxu0 %v4399_v21  ;;  %3092 = vmatpush1.msra.mxu0 %v3036_v54  ;;  %v3180_v54 = vld [vmem:[%s5579_s11] sm:$0xff] }
 0xe34   : > { %3093 = vmatprep.subr.mxu0 %v3035_v27  ;;  %v3048_v27 = vlaneseq }
 0xe35   : > { %3094 = vmatpush1.msra.mxu0 %v3034_v28 }
 0xe36   : > { %3095 = vmatprep.subr.mxu0 %v3033_v29  ;;  %v3049_v28 = vshrl.u32 %v3048_v27, 7 }
 0xe37   : > { %3096 = vmatpush1.msra.mxu0 %v3032_v30  ;;  %v3046_v30 = vld [vmem:[%s5578_s10] sm:$0x3] }
 0xe38   : > { %3097 = vmatprep.subr.mxu0 %v3031_v31  ;;  %v3050_v29 = vsub.s32 0, %v3049_v28  ;;  %v3054_v31 = vsub.s32 1, %v3049_v28 }
 0xe39   : > { %3098 = vmatpush1.msra.mxu0 %v3030_v61 }
 0xe3a   : > { %v3051_v61 = vrot.slane %v3046_v30, %v3050_v29  ;;  %v3055_v32 = vrot.slane %v3046_v30, %v3054_v31 }
 0xeea   : > { %v2849_v37 = vpop.f32.mrf.mxu0 }
 0xeeb   : > { %4291 = vmatmul.mubr.msk.f32.vlgmr.msra.gmra.mxu1 %vm804_vm3, %v2849_v37  ;;  %v3209_v37 = vld [vmem:[%s5579_s11 + $0xe8] sm:$0xff] }
 0xeec   : > { %v4279_v39 = vpop.f32.mrf.mxu0  ;;  %4293 = vmatprep.mubr.msk.f32.mxu1 %vm4400_vm2, %v4399_v21  ;;  %3787 = vmatpush3.msra.mxu1 %v3195_v34 }
 0xeed   : > { %3788 = vmatprep.subr.mxu1 %v3210_v0  ;;  %v3193_v39 = vld [vmem:[%s5579_s11 + $0x68] sm:$0xff] }
 0xeee   : > { %v2854_v41 = vpop.f32.mrf.mxu0  ;;  %3789 = vmatpush3.msra.mxu1 %v3194_v35 }
 0xeef   : > { %4294 = vmatmul.mubr.msk.f32.gmra.mxu1 %vm804_vm3, %v2854_v41  ;;  %3790 = vmatprep.subr.mxu1 %v3209_v37 }
 0xef0   : > { %v4282_v44 = vpop.f32.mrf.mxu0  ;;  %4296 = vmatprep.mubr.msk.f32.mxu1 %vm4400_vm2, %v4399_v21  ;;  %3791 = vmatpush3.msra.mxu1 %v3193_v39 }
 0xef2   : > { %v2859_v45 = vpop.f32.mrf.mxu0 }
 0xef3   : > { %4297 = vmatmul.mubr.msk.f32.gmra.mxu1 %vm804_vm3, %v2859_v45 }
 0xef4   : > { %v4285_v55 = vpop.f32.mrf.mxu0 }
 0xfab   : > { %v2941_v38 = vpop.f32.mrf.mxu1 }
 0xfac   : > { %v2955_v46 = vadd.f32 %v2941_v38, %v5286_v33 }
 0xfad   : > { %v4292_v17 = vpop.f32.mrf.mxu1 }
 0xfae   : > { %v2958_v49 = vadd.f32 %v4388_v40, %v2955_v46 }
 0xfaf   : > { %v2946_v20 = vpop.f32.mrf.mxu1 }
 0xfb0   : > { %v5356_v42 = vadd.f32 %v3577_v47, %v2958_v49  ;;  %v2956_v51 = vadd.f32 %v2946_v20, %v5290_v36  ;;  %v3578_v20 = vld [vmem:[%s5575_s7] ss:$0 sm:$0xff] }
 0xfb1   : > { %v4295_v56 = vpop.f32.mrf.mxu1 }
 0xfb2   : > { %v2959_v60 = vadd.f32 %v4389_v58, %v2956_v51  ;;  %v2973_v63 = vsel %vm446_vm0, %v5356_v42, 0.0  ;;  %v3579_v56 = vld [vmem:[%s5576_s8] ss:$0 sm:$0xff] }
 0xfb3   : > { %2974 = vadd.xlane.f32.xlu0 %v2973_v63  ;;  %v2951_v33 = vpop.f32.mrf.mxu1 }
 0xfb4   : > { %v5362_v2 = vadd.f32 %v3577_v47, %v2959_v60  ;;  %v2957_v48 = vadd.f32 %v2951_v33, %v5294_v43 }
 0xfb5   : > { %v4298_v3 = vpop.f32.mrf.mxu1 }
 0xfb6   : > { %v2960_v4 = vadd.f32 %v4390_v50, %v2957_v48  ;;  %v2976_v53 = vsel %vm446_vm0, %v5362_v2, 0.0 }
 0xfb7   : > { %2977 = vadd.xlane.f32.xlu1 %v2976_v53 }
 0xfb8   : > { %v5368_v36 = vadd.f32 %v3577_v47, %v2960_v4 }
 0xfba   : > { %v2979_v5 = vsel %vm453_vm1, %v5368_v36, 0.0 }
 0xfbb   : > { %2980 = vadd.xlane.f32.xlu0 %v2979_v5 }
0x103c   : > { %v2975_v6 = vpop.xlane.xlu0 %2974 }
0x103d   : > { %v2982_v7 = vmul.f32 0.015625, %v2975_v6  ;;  %v3208_v6 = vld [vmem:[%s5579_s11 + $0xe0] sm:$0xff] }
0x103e   : > { %3792 = vmatprep.subr.mxu1 %v3208_v6 }
0x103f   : > { %v5373_v8 = vsub.f32 %v5356_v42, %v2982_v7  ;;  %v3192_v7 = vld [vmem:[%s5579_s11 + $0x60] sm:$0xff] }
0x1040   : > { %v2978_v9 = vpop.xlane.xlu1 %2977  ;;  %3793 = vmatpush3.msra.mxu1 %v3192_v7 }
0x1041   : > { %v2983_v43 = vmul.f32 0.015625, %v2978_v9  ;;  %v2988_v10 = vmul.f32 %v5373_v8, %v5373_v8  ;;  %v3206_v9 = vld [vmem:[%s5579_s11 + $0xd0] sm:$0xff] }
0x1043   : > { %v5378_v11 = vsub.f32 %v5362_v2, %v2983_v43  ;;  %v2991_v12 = vsel %vm446_vm0, %v2988_v10, 0.0  ;;  %v3190_v43 = vld [vmem:[%s5579_s11 + $0x50] sm:$0xff]  ;;  %v3205_v10 = vld [vmem:[%s5579_s11 + $0xc8] sm:$0xff] }
0x1044   : > { %2992 = vadd.xlane.f32.xlu1 %v2991_v12  ;;  %v2981_v13 = vpop.xlane.xlu0 %2980  ;;  %v3204_v12 = vld [vmem:[%s5579_s11 + $0xc0] sm:$0xff] }
0x1045   : > { %v2984_v14 = vmul.f32 0.015625, %v2981_v13  ;;  %v2989_v52 = vmul.f32 %v5378_v11, %v5378_v11  ;;  %v3188_v13 = vld [vmem:[%s5579_s11 + $0x40] sm:$0xff] }
0x1047   : > { %v5384_v57 = vsub.f32 %v5368_v36, %v2984_v14  ;;  %v2994_v62 = vsel %vm446_vm0, %v2989_v52, 0.0  ;;  %v3203_v14 = vld [vmem:[%s5579_s11 + $0xb8] sm:$0xff] }
0x1048   : > { %2995 = vadd.xlane.f32.xlu0 %v2994_v62  ;;  %v3187_v52 = vld [vmem:[%s5579_s11 + $0x38] sm:$0xff]  ;;  %v3186_v62 = vld [vmem:[%s5579_s11 + $0x30] sm:$0xff] }
0x1049   : > { %v2990_v1 = vmul.f32 %v5384_v57, %v5384_v57 }
0x104b   : > { %v2997_v15 = vsel %vm453_vm1, %v2990_v1, 0.0  ;;  %v3201_v1 = vld [vmem:[%s5579_s11 + $0xa8] sm:$0xff] }
0x104c   : > { %2998 = vadd.xlane.f32.xlu1 %v2997_v15  ;;  %v3185_v15 = vld [vmem:[%s5579_s11 + $0x28] sm:$0xff] }
0x10cd   : > { %v2993_v41 = vpop.xlane.xlu1 %2992 }
0x10ce   : > { %v3000_v44 = vmul.f32 0.015625, %v2993_v41 }
0x10d0   : > { %v3003_v45 = vadd.f32 1e-05, %v3000_v44 }
0x10d1   : > { %v2996_v55 = vpop.xlane.xlu0 %2995 }
0x10d2   : > { %4370 = vrsqrt.f32 %v3003_v45  ;;  %v3001_v38 = vmul.f32 0.015625, %v2996_v55 }
0x10d4   : > { %v3004_v46 = vadd.f32 1e-05, %v3001_v38 }
0x10d5   : > { %v2999_v47 = vpop.xlane.xlu1 %2998 }
0x10d6   : > { %4372 = vrsqrt.f32 %v3004_v46  ;;  %v3002_v17 = vmul.f32 0.015625, %v2999_v47 }
0x10d8   : > { %v3005_v40 = vadd.f32 1e-05, %v3002_v17 }
0x10da   : > { %4374 = vrsqrt.f32 %v3005_v40 }
0x10df   : > { %v4371_v49 = vpop.eup %4370 }
0x10e0   : > { %v3009_v51 = vmul.f32 %v4371_v49, %v5373_v8  ;;  %v3207_v8 = vld [vmem:[%s5579_s11 + $0xd8] sm:$0xff] }
0x10e1   : > { %3794 = vmatprep.subr.mxu1 %v3207_v8 }
0x10e2   : > { %v3018_v58 = vmul.f32 %v3578_v20, %v3009_v51 }
0x10e3   : > { %v4373_v60 = vpop.eup %4372 }
0x10e4   : > { %v3027_v63 = vadd.f32 %v3579_v56, %v3018_v58  ;;  %v3010_v33 = vmul.f32 %v4373_v60, %v5378_v11  ;;  %v3189_v11 = vld [vmem:[%s5579_s11 + $0x48] sm:$0xff] }
0x10e6   : > { %3580 = vmatmul.mubr.msk.f32.vlgmr.msra.gmra.mxu0 %vm446_vm0, %v3027_v63  ;;  %v3019_v48 = vmul.f32 %v3578_v20, %v3010_v33 }
0x10e7   : > { %v4375_v3 = vpop.eup %4374  ;;  %3137 = vmatprep.mubr.f32.mxu0 %v4399_v21 }
0x10e8   : > { %v3028_v50 = vadd.f32 %v3579_v56, %v3019_v48  ;;  %v3011_v4 = vmul.f32 %v4375_v3, %v5384_v57  ;;  %v3202_v57 = vld [vmem:[%s5579_s11 + $0xb0] sm:$0xff] }
0x10ea   : > { %3581 = vmatmul.mubr.msk.f32.gmra.mxu0 %vm446_vm0, %v3028_v50  ;;  %v3020_v53 = vmul.f32 %v3578_v20, %v3011_v4 }
0x10eb   : > { %3143 = vmatprep.mubr.f32.mxu0 %v4399_v21  ;;  %v3191_v21 = vld [vmem:[%s5579_s11 + $0x58] sm:$0xff] }
0x10ec   : > { %v3029_v5 = vadd.f32 %v3579_v56, %v3020_v53  ;;  %3795 = vmatpush3.msra.mxu1 %v3191_v21 }
0x10ed   : > { %3796 = vmatprep.subr.mxu1 %v3206_v9 }
0x10ee   : > { %3582 = vmatmul.mubr.msk.f32.gmra.mxu0 %vm446_vm0, %v3029_v5  ;;  %3797 = vmatpush3.msra.mxu1 %v3190_v43 }
0x10ef   : > { %3798 = vmatprep.subr.mxu1 %v3205_v10 }
0x10f0   : > { %3799 = vmatpush3.msra.mxu1 %v3189_v11 }
0x10f1   : > { %3800 = vmatprep.subr.mxu1 %v3204_v12 }
0x10f2   : > { %3801 = vmatpush3.msra.mxu1 %v3188_v13 }
0x10f3   : > { %3802 = vmatprep.subr.mxu1 %v3203_v14 }
0x10f4   : > { %3803 = vmatpush3.msra.mxu1 %v3187_v52 }
0x10f5   : > { %3804 = vmatprep.subr.mxu1 %v3202_v57 }
0x10f6   : > { %3805 = vmatpush3.msra.mxu1 %v3186_v62 }
0x10f7   : > { %3806 = vmatprep.subr.mxu1 %v3201_v1 }
0x10f8   : > { %3807 = vmatpush3.msra.mxu1 %v3185_v15 }
0x10f9   : > { %3808 = vmatprep.subr.mxu1 %v3200_v16 }
0x10fa   : > { %3809 = vmatpush3.msra.mxu1 %v3184_v18  ;;  %v3583_v18 = vld [vmem:[%s5580_s12] ss:$0 sm:$0xff] }
0x10fb   : > { %3810 = vmatprep.subr.mxu1 %v3199_v59 }
0x10fc   : > { %3811 = vmatpush3.msra.mxu1 %v3183_v19 }
0x10fd   : > { %3812 = vmatprep.subr.mxu1 %v3198_v22 }
0x10fe   : > { %3813 = vmatpush3.msra.mxu1 %v3182_v23 }
0x10ff   : > { %3814 = vmatprep.subr.mxu1 %v3197_v24 }
0x1100   : > { %3815 = vmatpush3.msra.mxu1 %v3181_v25 }
0x1101   : > { %3816 = vmatprep.subr.mxu1 %v3196_v26 }
0x1102   : > { %3817 = vmatpush3.msra.mxu1 %v3180_v54 }
0x11a6   : > { %v3133_v34 = vpop.f32.mrf.mxu0 }
0x11a7   : > { %v3134_v0 = vadd.f32 %v3133_v34, %v3051_v61 }
0x11a8   : > { %v3135_v35 = vpop.f32.mrf.mxu0 }
0x11a9   : > { %v3156_v37 = vmul.f32 0.70710677, %v3134_v0  ;;  %v3136_v39 = vadd.f32 %v3135_v35, %v3055_v32  ;;  %v3150_v50 = vmul.f32 0.5, %v3134_v0 }
0x11aa   : > { %v3139_v41 = vpop.f32.mrf.mxu0 }
0x11ab   : > { %4376 = verf.f32 %v3156_v37  ;;  %v3157_v44 = vmul.f32 0.70710677, %v3136_v39  ;;  %v3140_v45 = vadd.f32 %v3139_v41, %v3051_v61  ;;  %v3151_v33 = vmul.f32 0.5, %v3136_v39 }
0x11ac   : > { %v3141_v55 = vpop.f32.mrf.mxu0 }
0x11ad   : > { %4378 = verf.f32 %v3157_v44  ;;  %v3158_v38 = vmul.f32 0.70710677, %v3140_v45  ;;  %v3142_v46 = vadd.f32 %v3141_v55, %v3055_v32  ;;  %v3152_v9 = vmul.f32 0.5, %v3140_v45 }
0x11ae   : > { %v3145_v47 = vpop.f32.mrf.mxu0 }
0x11af   : > { %4380 = verf.f32 %v3158_v38  ;;  %v3159_v17 = vmul.f32 0.70710677, %v3142_v46  ;;  %v3146_v40 = vadd.f32 %v3145_v47, %v3051_v61  ;;  %v3153_v7 = vmul.f32 0.5, %v3142_v46 }
0x11b0   : > { %v3147_v49 = vpop.f32.mrf.mxu0 }
0x11b1   : > { %4382 = verf.f32 %v3159_v17  ;;  %v3160_v20 = vmul.f32 0.70710677, %v3146_v40  ;;  %v3148_v51 = vadd.f32 %v3147_v49, %v3055_v32  ;;  %v3154_v52 = vmul.f32 0.5, %v3146_v40 }
0x11b3   : > { %4384 = verf.f32 %v3160_v20  ;;  %v3161_v56 = vmul.f32 0.70710677, %v3148_v51  ;;  %v3155_v13 = vmul.f32 0.5, %v3148_v51 }
0x11b5   : > { %4386 = verf.f32 %v3161_v56 }
0x11b8   : > { %v4377_v58 = vpop.eup %4376 }
0x11b9   : > { %v3168_v63 = vadd.f32 1.0, %v4377_v58 }
0x11ba   : > { %v4379_v60 = vpop.eup %4378 }
0x11bb   : > { %v3169_v48 = vadd.f32 1.0, %v4379_v60  ;;  %v3174_v5 = vmul.f32 %v3168_v63, %v3150_v50 }
0x11bc   : > { %v4381_v3 = vpop.eup %4380 }
0x11bd   : > { %v3175_v4 = vmul.f32 %v3169_v48, %v3151_v33  ;;  %v3170_v6 = vadd.f32 1.0, %v4381_v3 }
0x11be   : > { %v4383_v53 = vpop.eup %4382 }
0x11bf   : > { %3276 = vmatprep.mubr.f32.mxu1 %v3175_v4  ;;  %v3171_v8 = vadd.f32 1.0, %v4383_v53  ;;  %v3176_v11 = vmul.f32 %v3170_v6, %v3152_v9 }
0x11c0   : > { %v4385_v21 = vpop.eup %4384  ;;  %3277 = vmatmul.mubr.f32.vlgmr.msra.gmra.mxu1 %v3174_v5 }
0x11c1   : > { %v3177_v43 = vmul.f32 %v3171_v8, %v3153_v7  ;;  %v3172_v12 = vadd.f32 1.0, %v4385_v21 }
0x11c2   : > { %v4387_v10 = vpop.eup %4386 }
0x11c3   : > { %3281 = vmatprep.mubr.f32.mxu1 %v3177_v43  ;;  %v3173_v14 = vadd.f32 1.0, %v4387_v10  ;;  %v3178_v62 = vmul.f32 %v3172_v12, %v3154_v52 }
0x11c4   : > { %3282 = vmatmul.mubr.f32.gmra.mxu1 %v3176_v11 }
0x11c5   : > { %v3179_v57 = vmul.f32 %v3173_v14, %v3155_v13 }
0x11c7   : > { %3286 = vmatprep.mubr.f32.mxu1 %v3179_v57 }
0x11c8   : > { %3287 = vmatmul.mubr.f32.gmra.mxu1 %v3178_v62 }
0x1280   : > { %v3818_v1 = vpop.f32.mrf.mxu1 }
0x1282   : > { %v3819_v15 = vpop.f32.mrf.mxu1 }
0x1283   : > { %v3820_v16 = vadd.f32 %v3819_v15, %v3818_v1 }
0x1284   : > { %v3821_v59 = vpop.f32.mrf.mxu1 }
0x1285   : > { %v3292_v19 = vadd.f32 %v3820_v16, %v5356_v42 }
0x1286   : > { %v3822_v22 = vpop.f32.mrf.mxu1 }
0x1287   : > { %v3302_v23 = vadd.f32 %v3583_v18, %v3292_v19  ;;  %v3823_v24 = vadd.f32 %v3822_v22, %v3821_v59 }
0x1288   : > { %v3824_v25 = vpop.f32.mrf.mxu1 }
0x1289   : > { %3305 = vst.msk [vmem:[%s440_s28] sm:$0xff] %vm446_vm0, %v3302_v23  ;;  %v3293_v26 = vadd.f32 %v3823_v24, %v5362_v2 }
0x128a   : > { %v3825_v54 = vpop.f32.mrf.mxu1 }
0x128b   : > { %v3303_v27 = vadd.f32 %v3583_v18, %v3293_v26  ;;  %v3826_v28 = vadd.f32 %v3825_v54, %v3824_v25 }
0x128d   : > { %3306 = vst.msk [vmem:[%s440_s28 + $0x8] sm:$0xff] %vm446_vm0, %v3303_v27  ;;  %v3294_v42 = vadd.f32 %v3826_v28, %v5368_v36 }
0x128f   : > { %v3304_v29 = vadd.f32 %v3583_v18, %v3294_v42 }
0x1291   : > { %3307 = vst.msk [vmem:[%s440_s28 + $0x10] sm:$0x1] %vm453_vm1, %v3304_v29 }
0x1292 PF: > { %s23_s25 = sadd.s32 1, %s4397_s25  }
0x1293   : > { %p20_p4 = scmp.ge.s32.totalorder %s23_s25, 18  }
0x1295   :  { %22 = sbr.rel (!%p20_p4) target bundleno = 1 (0x1), region = 127 }

// kernel: vtn_forward.15
= control target key start
LH: loop header
LB: loop body
LE: loop exit
PB: predicated region body
PF: predicated region fallthrough
CT: control target
= control target key end

     0   :  { %s3993_s29 = smov 0   ;;  %s4705_s0 = inlined_call_operand.vmem [shape: f32[2,16,64], index: 0, kind: input, shape index: {}]   ;;  %s4706_s1 = inlined_call_operand.vmem [shape: f32[2,16,16], index: 1, kind: input, shape index: {}]   ;;  %s4707_s2 = inlined_call_operand.vmem [shape: f32[12,64,16], index: 2, kind: input, shape index: {}]   ;;  %s4708_s3 = inlined_call_operand.vmem [shape: f32[12,1,16], index: 3, kind: input, shape index: {}]   ;;  %s4709_s4 = inlined_call_operand.vmem [shape: f32[4,16,64], index: 4, kind: input, shape index: {}]   ;;  %s4710_s5 = inlined_call_operand.vmem [shape: f32[1,64], index: 5, kind: input, shape index: {}]   ;;  %s4711_s6 = inlined_call_operand.vmem [shape: f32[1,64], index: 6, kind: input, shape index: {}]   ;;  %s4712_s7 = inlined_call_operand.vmem [shape: f32[1,64], index: 7, kind: input, shape index: {}]   ;;  %s4713_s8 = inlined_call_operand.vmem [shape: f32[64,256], index: 8, kind: input, shape index: {}]   ;;  %s4714_s9 = inlined_call_operand.vmem [shape: f32[1,256], index: 9, kind: input, shape index: {}]   ;;  %s4715_s10 = inlined_call_operand.vmem [shape: f32[256,64], index: 10, kind: input, shape index: {}]   ;;  %s4716_s11 = inlined_call_operand.vmem [shape: f32[1,64], index: 11, kind: input, shape index: {}]   ;;  %s4717_s12 = inlined_call_operand.vmem [shape: f32[1,64], index: 12, kind: input, shape index: {}]   ;;  %s4718_s13 = inlined_call_operand.vmem [shape: f32[1,64], index: 13, kind: input, shape index: {}]   ;;  %s4719_s14 = inlined_call_operand.vmem [shape: f32[2,16,64], index: 14, kind: output, shape index: {}]  }
   0x1 LB: > { %s3135_s30 = sadd.s32 4294967295, %s3915_s29   ;;  %p3139_p0 = scmp.ge.s32.totalorder %s3915_s29, 1  ;;  %s3915_s29 = sphi %s3993_s29, %s24_s29  }
   0x2   : > { %p422_p1 = scmp.lt.s32.totalorder %s3915_s29, 3 }
   0x4   : > { %p423_p2 = pnand %p3139_p0, %p422_p1 }
   0x5   : > { %p473_p3 = scmp.lt.s32.totalorder (!%p423_p2), %s3135_s30, 1 }
   0x6   : > { %426 = sbr.rel (%p423_p2) target bundleno = 4758 (0x1296), region = 76 }
   0xb   : > { %v3156_v0 = vld [vmem:[%s4707_s2 + $0x138] sm:$0xff]  ;;  %v3155_v1 = vld [vmem:[%s4707_s2 + $0x130] sm:$0xff]  ;;  %v3154_v4 = vld [vmem:[%s4707_s2 + $0x128] sm:$0xff]  ;;  %s4721_s30 = smov (!%p473_p3, %s3135_s30), 1  ;;  %vm507_vm0 = vcmask 523264   ;;  %vm773_vm1 = vcmask 130048  }
   0xc   : > { %v499_v2 = vld [vmem:[%s4707_s2 + $0x38] sm:$0xff]  ;;  %3557 = vmatprep.subr.mxu1 %v3156_v0  ;;  %v498_v3 = vld [vmem:[%s4707_s2 + $0x30] sm:$0xff]  ;;  %v497_v5 = vld [vmem:[%s4707_s2 + $0x28] sm:$0xff]  ;;  %s4025_s17 = sshll.u32 %s4721_s30, 4 }
   0xd   : > { %3538 = vmatprep.subr.mxu0 %v499_v2  ;;  %3558 = vmatpush3.msra.mxu1 %v3156_v0  ;;  %v3153_v6 = vld [vmem:[%s4707_s2 + $0x120] sm:$0xff]  ;;  %v3152_v8 = vld [vmem:[%s4707_s2 + $0x118] sm:$0xff]  ;;  %v3151_v10 = vld [vmem:[%s4707_s2 + $0x110] sm:$0xff]  ;;  %s4043_s27 = scalar_lea.vmem %s4705_s0, %s4025_s17  ;;  %s482_s21 = scalar_lea.vmem %s4706_s1, %s4025_s17 }
   0xe   : > { %3539 = vmatpush3.msra.mxu0 %v499_v2  ;;  %3559 = vmatprep.subr.mxu1 %v3155_v1  ;;  %v496_v7 = vld [vmem:[%s4707_s2 + $0x20] sm:$0xff]  ;;  %v495_v9 = vld [vmem:[%s4707_s2 + $0x18] sm:$0xff]  ;;  %v494_v11 = vld [vmem:[%s4707_s2 + $0x10] sm:$0xff]  ;;  %s487_s18 = scalar_lea.vmem %s4719_s14, %s4025_s17 }
   0xf   : > { %3540 = vmatprep.subr.mxu0 %v498_v3  ;;  %3560 = vmatpush3.msra.mxu1 %v3155_v1  ;;  %v3150_v12 = vld [vmem:[%s4707_s2 + $0x108] sm:$0xff]  ;;  %v4052_v14 = vld [vmem:[%s4043_s27] sm:$0xff]  ;;  %v3168_v18 = vld [vmem:[%s4707_s2 + $0x238] sm:$0xff] }
  0x10   : > { %3541 = vmatpush3.msra.mxu0 %v498_v3  ;;  %3561 = vmatprep.subr.mxu1 %v3154_v4  ;;  %v493_v13 = vld [vmem:[%s4707_s2 + $0x8] sm:$0xff]  ;;  %v3149_v15 = vld [vmem:[%s4707_s2 + $0x100] sm:$0xff]  ;;  %v3167_v19 = vld [vmem:[%s4707_s2 + $0x230] sm:$0xff] }
  0x11   : > { %3542 = vmatprep.subr.mxu0 %v497_v5  ;;  %3562 = vmatpush3.msra.mxu1 %v3154_v4  ;;  %v492_v16 = vld [vmem:[%s4707_s2] sm:$0xff]  ;;  %v4063_v17 = vld [vmem:[%s4043_s27 + $0x8] sm:$0xff]  ;;  %v3164_v22 = vld [vmem:[%s4707_s2 + $0x218] sm:$0xff] }
  0x12   : > { %3543 = vmatpush3.msra.mxu0 %v497_v5  ;;  %3563 = vmatprep.subr.mxu1 %v3153_v6  ;;  %v3166_v20 = vld [vmem:[%s4707_s2 + $0x228] sm:$0xff]  ;;  %v3165_v21 = vld [vmem:[%s4707_s2 + $0x220] sm:$0xff]  ;;  %v3163_v23 = vld [vmem:[%s4707_s2 + $0x210] sm:$0xff] }
  0x13   : > { %3544 = vmatprep.subr.mxu0 %v496_v7  ;;  %3564 = vmatpush3.msra.mxu1 %v3153_v6  ;;  %v3162_v24 = vld [vmem:[%s4707_s2 + $0x208] sm:$0xff]  ;;  %v3161_v25 = vld [vmem:[%s4707_s2 + $0x200] sm:$0xff]  ;;  %v3198_v61 = vld [vmem:[%s4707_s2 + $0x178] sm:$0xff] }
  0x14   : > { %3545 = vmatpush3.msra.mxu0 %v496_v7  ;;  %3565 = vmatprep.subr.mxu1 %v3152_v8  ;;  %v3158_v26 = vld [vmem:[%s4708_s3 + $0x4] ss:$0 sm:$0xff]  ;;  %v3146_v31 = vld [vmem:[%s4708_s3] ss:$0 sm:$0xff]  ;;  %v3170_v36 = vld [vmem:[%s4708_s3 + $0x8] ss:$0 sm:$0xff] }
  0x15   : > { %3546 = vmatprep.subr.mxu0 %v495_v9  ;;  %3566 = vmatpush3.msra.mxu1 %v3152_v8  ;;  %v4120_v43 = vld [vmem:[%s482_s21] sm:$0xff]  ;;  %v4122_v46 = vld [vmem:[%s482_s21 + $0x8] sm:$0xff]  ;;  %v3197_v62 = vld [vmem:[%s4707_s2 + $0x170] sm:$0xff] }
  0x16   : > { %3547 = vmatpush3.msra.mxu0 %v495_v9  ;;  %3567 = vmatprep.subr.mxu1 %v3151_v10  ;;  %v3196_v63 = vld [vmem:[%s4707_s2 + $0x168] sm:$0xff]  ;;  %v3195_v0 = vld [vmem:[%s4707_s2 + $0x160] sm:$0xff]  ;;  %v3194_v1 = vld [vmem:[%s4707_s2 + $0x158] sm:$0xff] }
  0x17   : > { %3548 = vmatprep.subr.mxu0 %v494_v11  ;;  %3568 = vmatpush3.msra.mxu1 %v3151_v10  ;;  %v3186_v2 = vld [vmem:[%s4707_s2 + $0x78] sm:$0xff]  ;;  %v3193_v3 = vld [vmem:[%s4707_s2 + $0x150] sm:$0xff]  ;;  %v3192_v4 = vld [vmem:[%s4707_s2 + $0x148] sm:$0xff] }
  0x18   : > { %3549 = vmatpush3.msra.mxu0 %v494_v11  ;;  %3569 = vmatprep.subr.mxu1 %v3150_v12  ;;  %v3191_v5 = vld [vmem:[%s4707_s2 + $0x140] sm:$0xff] }
  0x19   : > { %3550 = vmatprep.subr.mxu0 %v493_v13  ;;  %3570 = vmatpush3.msra.mxu1 %v3150_v12  ;;  %v3185_v12 = vld [vmem:[%s4707_s2 + $0x70] sm:$0xff] }
  0x1a   : > { %3573 = vmatprep.mubr.msk.f32.mxu1 %vm507_vm0, %v4052_v14  ;;  %3571 = vmatprep.subr.mxu1 %v3149_v15 }
  0x1b   : > { %3551 = vmatpush3.msra.mxu0 %v493_v13  ;;  %3572 = vmatpush3.msra.mxu1 %v3149_v15  ;;  %v3184_v13 = vld [vmem:[%s4707_s2 + $0x68] sm:$0xff]  ;;  %v3183_v15 = vld [vmem:[%s4707_s2 + $0x60] sm:$0xff] }
  0x1c   : > { %3552 = vmatprep.subr.mxu0 %v492_v16  ;;  %3574 = vmatmul.mubr.msk.f32.vlgmr.msra.gmra.mxu1 %vm507_vm0, %v4063_v17 }
  0x1d   : > { %3553 = vmatpush3.msra.mxu0 %v492_v16  ;;  %3554 = vmatprep.mubr.msk.f32.mxu0 %vm507_vm0, %v4052_v14  ;;  %v3182_v16 = vld [vmem:[%s4707_s2 + $0x58] sm:$0xff] }
  0x1e   : > { %3576 = vmatprep.subr.mxu0 %v3168_v18  ;;  %3555 = vmatmul.mubr.msk.f32.vlgmr.msra.gmra.mxu0 %vm507_vm0, %v4063_v17 }
  0x1f   : > { %3577 = vmatpush3.msra.mxu0 %v3168_v18  ;;  %3592 = vmatprep.mubr.msk.f32.mxu0 %vm507_vm0, %v4052_v14  ;;  %v3181_v18 = vld [vmem:[%s4707_s2 + $0x50] sm:$0xff] }
  0x20   : > { %3578 = vmatprep.subr.mxu0 %v3167_v19 }
  0x21   : > { %3579 = vmatpush3.msra.mxu0 %v3167_v19  ;;  %v3180_v19 = vld [vmem:[%s4707_s2 + $0x48] sm:$0xff] }
  0x22   : > { %3580 = vmatprep.subr.mxu0 %v3166_v20 }
  0x23   : > { %3581 = vmatpush3.msra.mxu0 %v3166_v20  ;;  %v3179_v20 = vld [vmem:[%s4707_s2 + $0x40] sm:$0xff] }
  0x24   : > { %3582 = vmatprep.subr.mxu0 %v3165_v21 }
  0x25   : > { %3583 = vmatpush3.msra.mxu0 %v3165_v21  ;;  %v3210_v21 = vld [vmem:[%s4707_s2 + $0x278] sm:$0xff] }
  0x26   : > { %3584 = vmatprep.subr.mxu0 %v3164_v22 }
  0x27   : > { %3585 = vmatpush3.msra.mxu0 %v3164_v22  ;;  %v3209_v22 = vld [vmem:[%s4707_s2 + $0x270] sm:$0xff] }
  0x28   : > { %3586 = vmatprep.subr.mxu0 %v3163_v23 }
  0x29   : > { %3587 = vmatpush3.msra.mxu0 %v3163_v23  ;;  %v3208_v23 = vld [vmem:[%s4707_s2 + $0x268] sm:$0xff] }
  0x2a   : > { %3588 = vmatprep.subr.mxu0 %v3162_v24 }
  0x2b   : > { %3589 = vmatpush3.msra.mxu0 %v3162_v24  ;;  %v3207_v24 = vld [vmem:[%s4707_s2 + $0x260] sm:$0xff] }
  0x2c   : > { %3590 = vmatprep.subr.mxu0 %v3161_v25 }
  0x2d   : > { %3591 = vmatpush3.msra.mxu0 %v3161_v25  ;;  %v3206_v25 = vld [vmem:[%s4707_s2 + $0x258] sm:$0xff] }
  0x2e   : > { %3593 = vmatmul.mubr.msk.f32.vlgmr.msra.gmra.mxu0 %vm507_vm0, %v4063_v17 }
  0xdc   : > { %v3575_v27 = vpop.f32.mrf.mxu1 }
  0xdd   : > { %v678_v28 = vadd.f32 %v3575_v27, %v3158_v26  ;;  %v3204_v27 = vld [vmem:[%s4707_s2 + $0x248] sm:$0xff] }
  0xde   : > { %v672_v29 = vpop.f32.mrf.mxu1  ;;  %v3556_v30 = vpop.f32.mrf.mxu0 }
  0xdf   : > { %v673_v32 = vadd.f32 %v3158_v26, %v672_v29  ;;  %3595 = vmatprep.subr.msk.mxu0 %vm773_vm1, %v678_v28  ;;  %v586_v35 = vadd.f32 %v3556_v30, %v3146_v31  ;;  %v3205_v26 = vld [vmem:[%s4707_s2 + $0x250] sm:$0xff]  ;;  %v969_v29 = vld [vmem:[%s4709_s4 + $0x8] sm:$0xff]  ;;  %v968_v30 = vld [vmem:[%s4709_s4] sm:$0xff] }
  0xe0   : > { %3596 = vmatpush3.xpose.msk.msra.mxu0 %vm773_vm1, %v678_v28  ;;  %v580_v33 = vpop.f32.mrf.mxu0  ;;  %v3203_v28 = vld [vmem:[%s4707_s2 + $0x240] sm:$0xff] }
  0xe1   : > { %v581_v34 = vadd.f32 %v3146_v31, %v580_v33  ;;  %3597 = vmatprep.subr.msk.mxu0 %vm773_vm1, %v673_v32  ;;  %v3200_v31 = vld [vmem:[%s4708_s3 + $0x5] ss:$0 sm:$0xff] }
  0xe3   : > { %3599 = vmatprep.mubr.msk.f32.mxu0 %vm773_vm1, %v581_v34 }
  0xe4   : > { %3598 = vmatpush3.xpose.msk.msra.mxu0 %vm773_vm1, %v673_v32 }
  0xe5   : > { %3628 = vmatprep.subr.mxu0 %v3198_v61 }
  0xe7   : > { %3600 = vmatmul.mubr.msk.f32.vlgmr.msra.gmra.mxu0 %vm773_vm1, %v586_v35 }
  0xe8   : > { %3644 = vmatprep.mubr.msk.f32.mxu0 %vm507_vm0, %v4052_v14  ;;  %3629 = vmatpush3.msra.mxu0 %v3198_v61 }
  0xe9   : > { %3630 = vmatprep.subr.mxu0 %v3197_v62 }
  0xea   : > { %3631 = vmatpush3.msra.mxu0 %v3197_v62 }
  0xeb   : > { %3632 = vmatprep.subr.mxu0 %v3196_v63 }
  0xec   : > { %3633 = vmatpush3.msra.mxu0 %v3196_v63 }
  0xed   : > { %3634 = vmatprep.subr.mxu0 %v3195_v0 }
  0xee   : > { %v3594_v37 = vpop.f32.mrf.mxu0  ;;  %3635 = vmatpush3.msra.mxu0 %v3195_v0 }
  0xef   : > { %v770_v38 = vadd.f32 %v3594_v37, %v3170_v36  ;;  %3636 = vmatprep.subr.mxu0 %v3194_v1 }
  0xf0   : > { %v764_v39 = vpop.f32.mrf.mxu0  ;;  %3637 = vmatpush3.msra.mxu0 %v3194_v1 }
  0xf1   : > { %v765_v40 = vadd.f32 %v3170_v36, %v764_v39  ;;  %3602 = vmatprep.subr.mxu1 %v770_v38  ;;  %3638 = vmatprep.subr.mxu0 %v3193_v3  ;;  %v3188_v39 = vld [vmem:[%s4708_s3 + $0x1] ss:$0 sm:$0xff] }
  0xf2   : > { %3603 = vmatpush3.msra.mxu1 %v770_v38  ;;  %3639 = vmatpush3.msra.mxu0 %v3193_v3 }
  0xf3   : > { %3604 = vmatprep.subr.mxu1 %v765_v40  ;;  %3640 = vmatprep.subr.mxu0 %v3192_v4 }
  0xf4   : > { %3605 = vmatpush3.msra.mxu1 %v765_v40  ;;  %3641 = vmatpush3.msra.mxu0 %v3192_v4  ;;  %v3246_v4 = vld [vmem:[%s4707_s2 + $0x1b8] sm:$0xff] }
  0xf5   : > { %3609 = vmatprep.subr.mxu1 %v3186_v2  ;;  %3642 = vmatprep.subr.mxu0 %v3191_v5 }
  0xf6   : > { %3643 = vmatpush3.msra.mxu0 %v3191_v5  ;;  %v3245_v5 = vld [vmem:[%s4707_s2 + $0x1b0] sm:$0xff] }
  0xf7   : > { %3645 = vmatmul.mubr.msk.f32.vlgmr.msra.gmra.mxu0 %vm507_vm0, %v4063_v17 }
 0x1a7   : > { %v3601_v41 = vpop.f32.mrf.mxu0 }
 0x1a8   : > { %v862_v44 = vmul.f32 0.25, %v3601_v41 }
 0x1a9   : > { %v852_v42 = vpop.f32.mrf.mxu0 }
 0x1aa   : > { %v861_v45 = vmul.f32 0.25, %v852_v42  ;;  %v864_v49 = vadd.f32 %v862_v44, %v4122_v46  ;;  %v3212_v44 = vld [vmem:[%s4708_s3 + $0x9] ss:$0 sm:$0xff] }
 0x1ac   : > { %v863_v47 = vadd.f32 %v861_v45, %v4120_v43  ;;  %v868_v50 = vsel %vm773_vm1, %v864_v49, -inf }
 0x1ae   : > { %v865_v48 = vsel %vm773_vm1, %v863_v47, -inf }
 0x1af   : > { %866 = vmax.xlane.f32.xlu0 %v865_v48 }
 0x1b3   : > { %869 = vmax.xlane.f32.xlu0 %v868_v50 }
 0x1b7   : > { %v3646_v32 = vpop.f32.mrf.mxu0 }
 0x1b8   : > { %v1151_v33 = vadd.f32 %v3646_v32, %v3200_v31 }
 0x1b9   : > { %v1145_v34 = vpop.f32.mrf.mxu0 }
 0x1ba   : > { %3666 = vmatprep.subr.msk.mxu0 %vm773_vm1, %v1151_v33  ;;  %v1146_v35 = vadd.f32 %v3200_v31, %v1145_v34  ;;  %v3227_v31 = vld [vmem:[%s4707_s2 + $0x80] sm:$0xff] }
 0x1bb   : > { %3667 = vmatpush3.xpose.msk.msra.mxu0 %vm773_vm1, %v1151_v33  ;;  %v3248_v34 = vld [vmem:[%s4708_s3 + $0x6] ss:$0 sm:$0xff] }
 0x1bc   : > { %3668 = vmatprep.subr.msk.mxu0 %vm773_vm1, %v1146_v35 }
 0x1bf   : > { %3669 = vmatpush3.xpose.msk.msra.mxu0 %vm773_vm1, %v1146_v35 }
 0x238   : > { %v867_v51 = vpop.xlane.xlu0 %866 }
 0x239   : > { %v871_v52 = vsub.f32 %v863_v47, %v867_v51 }
 0x23b   : > { %v873_v53 = vmul.f32 1.442695, %v871_v52 }
 0x23c   : > { %v870_v54 = vpop.xlane.xlu0 %869 }
 0x23d   : > { %3859 = vpow2.f32 %v873_v53  ;;  %v872_v55 = vsub.f32 %v864_v49, %v870_v54 }
 0x23f   : > { %v875_v56 = vmul.f32 1.442695, %v872_v55 }
 0x241   : > { %3861 = vpow2.f32 %v875_v56 }
 0x24a   : > { %v3860_v57 = vpop.eup %3859 }
 0x24b   : > { %v877_v58 = vsel %vm773_vm1, %v3860_v57, 0.0 }
 0x24c   : > { %878 = vadd.xlane.f32.xlu1 %v877_v58 }
 0x24e   : > { %v3862_v59 = vpop.eup %3861 }
 0x24f   : > { %v880_v60 = vsel %vm773_vm1, %v3862_v59, 0.0 }
 0x250   : > { %881 = vadd.xlane.f32.xlu1 %v880_v60 }
 0x2d5   : > { %v879_v6 = vpop.xlane.xlu1 %878 }
 0x2d6   : > { %3863 = vrcp.f32 %v879_v6  ;;  %v3222_v6 = vld [vmem:[%s4709_s4 + $0x18] sm:$0xff] }
 0x2d9   : > { %v882_v7 = vpop.xlane.xlu1 %881 }
 0x2da   : > { %3865 = vrcp.f32 %v882_v7  ;;  %v3244_v7 = vld [vmem:[%s4707_s2 + $0x1a8] sm:$0xff] }
 0x2e3   : > { %v3864_v8 = vpop.eup %3863 }
 0x2e4   : > { %v885_v9 = vmul.f32 %v3864_v8, %v3860_v57  ;;  %v3243_v8 = vld [vmem:[%s4707_s2 + $0x1a0] sm:$0xff] }
 0x2e6   : > { %3606 = vmatprep.mubr.msk.f32.mxu1 %vm773_vm1, %v885_v9 }
 0x2e7   : > { %v3866_v10 = vpop.eup %3865 }
 0x2e8   : > { %v886_v11 = vmul.f32 %v3866_v10, %v3862_v59 }
 0x2ea   : > { %3607 = vmatmul.mubr.msk.f32.vlgmr.msra.gmra.mxu1 %vm773_vm1, %v886_v11 }
 0x2eb   : > { %3610 = vmatpush3.msra.mxu1 %v3186_v2  ;;  %3625 = vmatprep.mubr.msk.f32.mxu1 %vm507_vm0, %v4052_v14 }
 0x2ec   : > { %3611 = vmatprep.subr.mxu1 %v3185_v12 }
 0x2ed   : > { %3612 = vmatpush3.msra.mxu1 %v3185_v12 }
 0x2ee   : > { %3613 = vmatprep.subr.mxu1 %v3184_v13 }
 0x2ef   : > { %3614 = vmatpush3.msra.mxu1 %v3184_v13 }
 0x2f0   : > { %3615 = vmatprep.subr.mxu1 %v3183_v15 }
 0x2f1   : > { %3616 = vmatpush3.msra.mxu1 %v3183_v15 }
 0x2f2   : > { %3617 = vmatprep.subr.mxu1 %v3182_v16 }
 0x2f3   : > { %3618 = vmatpush3.msra.mxu1 %v3182_v16  ;;  %v3221_v16 = vld [vmem:[%s4709_s4 + $0x10] sm:$0xff] }
 0x2f4   : > { %3619 = vmatprep.subr.mxu1 %v3181_v18 }
 0x2f5   : > { %3620 = vmatpush3.msra.mxu1 %v3181_v18  ;;  %v3242_v18 = vld [vmem:[%s4707_s2 + $0x198] sm:$0xff] }
 0x2f6   : > { %3621 = vmatprep.subr.mxu1 %v3180_v19 }
 0x2f7   : > { %3622 = vmatpush3.msra.mxu1 %v3180_v19  ;;  %v3234_v19 = vld [vmem:[%s4707_s2 + $0xb8] sm:$0xff] }
 0x2f8   : > { %3623 = vmatprep.subr.mxu1 %v3179_v20 }
 0x2f9   : > { %3624 = vmatpush3.msra.mxu1 %v3179_v20  ;;  %v3241_v20 = vld [vmem:[%s4707_s2 + $0x190] sm:$0xff] }
 0x2fa   : > { %3626 = vmatmul.mubr.msk.f32.vlgmr.msra.gmra.mxu1 %vm507_vm0, %v4063_v17  ;;  %3647 = vmatprep.subr.mxu1 %v3210_v21 }
 0x2fb   : > { %3648 = vmatpush3.msra.mxu1 %v3210_v21  ;;  %3663 = vmatprep.mubr.msk.f32.mxu1 %vm507_vm0, %v4052_v14  ;;  %v3240_v21 = vld [vmem:[%s4707_s2 + $0x188] sm:$0xff] }
 0x2fc   : > { %3649 = vmatprep.subr.mxu1 %v3209_v22 }
 0x2fd   : > { %3650 = vmatpush3.msra.mxu1 %v3209_v22  ;;  %v3239_v22 = vld [vmem:[%s4707_s2 + $0x180] sm:$0xff] }
 0x2fe   : > { %3651 = vmatprep.subr.mxu1 %v3208_v23 }
 0x2ff   : > { %3652 = vmatpush3.msra.mxu1 %v3208_v23 }
 0x300   : > { %3653 = vmatprep.subr.mxu1 %v3207_v24 }
 0x301   : > { %3654 = vmatpush3.msra.mxu1 %v3207_v24 }
 0x302   : > { %3655 = vmatprep.subr.mxu1 %v3206_v25 }
 0x303   : > { %3656 = vmatpush3.msra.mxu1 %v3206_v25  ;;  %v3233_v25 = vld [vmem:[%s4707_s2 + $0xb0] sm:$0xff] }
 0x304   : > { %3657 = vmatprep.subr.mxu1 %v3205_v26 }
 0x305   : > { %3658 = vmatpush3.msra.mxu1 %v3205_v26  ;;  %v3232_v26 = vld [vmem:[%s4707_s2 + $0xa8] sm:$0xff] }
 0x306   : > { %3659 = vmatprep.subr.mxu1 %v3204_v27 }
 0x307   : > { %3660 = vmatpush3.msra.mxu1 %v3204_v27  ;;  %v3231_v27 = vld [vmem:[%s4707_s2 + $0xa0] sm:$0xff] }
 0x308   : > { %3661 = vmatprep.subr.mxu1 %v3203_v28 }
 0x309   : > { %3662 = vmatpush3.msra.mxu1 %v3203_v28  ;;  %v3230_v28 = vld [vmem:[%s4707_s2 + $0x98] sm:$0xff] }
 0x30a   : > { %3664 = vmatmul.mubr.msk.f32.vlgmr.msra.gmra.mxu1 %vm507_vm0, %v4063_v17  ;;  %3687 = vmatprep.subr.mxu1 %v969_v29 }
 0x30b   : > { %3688 = vmatpush3.msra.mxu1 %v969_v29  ;;  %v3229_v29 = vld [vmem:[%s4707_s2 + $0x90] sm:$0xff] }
 0x30c   : > { %3689 = vmatprep.subr.mxu1 %v968_v30 }
 0x30d   : > { %3690 = vmatpush3.msra.mxu1 %v968_v30  ;;  %v3228_v30 = vld [vmem:[%s4707_s2 + $0x88] sm:$0xff] }
 0x30e   : > { %3713 = vmatprep.subr.mxu1 %v3246_v4 }
 0x3aa   : > { %v3608_v36 = vpop.f32.mrf.mxu1 }
 0x3ac   : > { %v959_v37 = vpop.f32.mrf.mxu1 }
 0x3ad   : > { %3691 = vmatprep.mubr.msk.f32.mxu1 %vm773_vm1, %v959_v37 }
 0x3ae   : > { %3692 = vmatmul.mubr.msk.f32.vlgmr.msra.gmra.mxu1 %vm773_vm1, %v3608_v36 }
 0x3af   : > { %3729 = vmatprep.mubr.msk.f32.mxu1 %vm507_vm0, %v4052_v14  ;;  %3714 = vmatpush3.msra.mxu1 %v3246_v4 }
 0x3b0   : > { %3715 = vmatprep.subr.mxu1 %v3245_v5 }
 0x3b1   : > { %3716 = vmatpush3.msra.mxu1 %v3245_v5 }
 0x3b2   : > { %3717 = vmatprep.subr.mxu1 %v3244_v7 }
 0x3b3   : > { %3718 = vmatpush3.msra.mxu1 %v3244_v7 }
 0x3b4   : > { %3719 = vmatprep.subr.mxu1 %v3243_v8 }
 0x3b5   : > { %3720 = vmatpush3.msra.mxu1 %v3243_v8 }
 0x3b6   : > { %3721 = vmatprep.subr.mxu1 %v3242_v18 }
 0x3b7   : > { %3722 = vmatpush3.msra.mxu1 %v3242_v18 }
 0x3b8   : > { %3723 = vmatprep.subr.mxu1 %v3241_v20 }
 0x3b9   : > { %3724 = vmatpush3.msra.mxu1 %v3241_v20 }
 0x3ba   : > { %v3627_v38 = vpop.f32.mrf.mxu1  ;;  %3725 = vmatprep.subr.mxu1 %v3240_v21 }
 0x3bb   : > { %v1059_v42 = vadd.f32 %v3627_v38, %v3188_v39  ;;  %3726 = vmatpush3.msra.mxu1 %v3240_v21 }
 0x3bc   : > { %v1053_v40 = vpop.f32.mrf.mxu1  ;;  %3727 = vmatprep.subr.mxu1 %v3239_v22 }
 0x3bd   : > { %v1054_v41 = vadd.f32 %v3188_v39, %v1053_v40  ;;  %3728 = vmatpush3.msra.mxu1 %v3239_v22 }
 0x3be   : > { %3730 = vmatmul.mubr.msk.f32.vlgmr.msra.gmra.mxu1 %vm507_vm0, %v4063_v17 }
 0x3bf   : > { %3670 = vmatprep.mubr.msk.f32.mxu0 %vm773_vm1, %v1054_v41 }
 0x3c0   : > { %3671 = vmatmul.mubr.msk.f32.vlgmr.msra.gmra.mxu0 %vm773_vm1, %v1059_v42  ;;  %v3236_v42 = vld [vmem:[%s4708_s3 + $0x2] ss:$0 sm:$0xff] }
 0x3ca   : > { %v3665_v45 = vpop.f32.mrf.mxu1 }
 0x3cb   : > { %v1243_v47 = vadd.f32 %v3665_v45, %v3212_v44 }
 0x3cc   : > { %v1237_v48 = vpop.f32.mrf.mxu1 }
 0x3cd   : > { %v1238_v49 = vadd.f32 %v3212_v44, %v1237_v48  ;;  %3673 = vmatprep.subr.mxu0 %v1243_v47  ;;  %v3258_v48 = vld [vmem:[%s4707_s2 + $0x2b8] sm:$0xff] }
 0x3ce   : > { %3674 = vmatpush3.msra.mxu0 %v1243_v47 }
 0x3cf   : > { %3675 = vmatprep.subr.mxu0 %v1238_v49 }
 0x3d0   : > { %3676 = vmatpush3.msra.mxu0 %v1238_v49  ;;  %v3257_v49 = vld [vmem:[%s4707_s2 + $0x2b0] sm:$0xff] }
 0x3d1   : > { %3680 = vmatprep.subr.mxu0 %v3222_v6 }
 0x46e   : > { %v4311_v32 = vpop.f32.mrf.mxu1 }
 0x470   : > { %v4313_v33 = vpop.f32.mrf.mxu1 }
 0x47e   : > { %v3731_v35 = vpop.f32.mrf.mxu1 }
 0x47f   : > { %v1786_v36 = vadd.f32 %v3731_v35, %v3248_v34  ;;  %v3273_v35 = vld [vmem:[%s4707_s2 + $0xc0] sm:$0xff] }
 0x480   : > { %v3672_v50 = vpop.f32.mrf.mxu0  ;;  %v1780_v37 = vpop.f32.mrf.mxu1 }
 0x481   : > { %v1334_v51 = vmul.f32 0.25, %v3672_v50  ;;  %3751 = vmatprep.subr.msk.mxu1 %vm773_vm1, %v1786_v36  ;;  %v1781_v38 = vadd.f32 %v3248_v34, %v1780_v37  ;;  %v3256_v50 = vld [vmem:[%s4707_s2 + $0x2a8] sm:$0xff] }
 0x482   : > { %v1324_v52 = vpop.f32.mrf.mxu0  ;;  %3752 = vmatpush3.xpose.msk.msra.mxu1 %vm773_vm1, %v1786_v36  ;;  %v3274_v34 = vld [vmem:[%s4707_s2 + $0xc8] sm:$0xff] }
 0x483   : > { %v1333_v53 = vmul.f32 0.25, %v1324_v52  ;;  %v1336_v54 = vadd.f32 %v1334_v51, %v4122_v46  ;;  %3753 = vmatprep.subr.msk.mxu1 %vm773_vm1, %v1781_v38  ;;  %v3255_v51 = vld [vmem:[%s4707_s2 + $0x2a0] sm:$0xff]  ;;  %v3254_v52 = vld [vmem:[%s4707_s2 + $0x298] sm:$0xff] }
 0x485   : > { %v1340_v55 = vsel %vm773_vm1, %v1336_v54, -inf  ;;  %v1335_v56 = vadd.f32 %v1333_v53, %v4120_v43  ;;  %v3253_v53 = vld [vmem:[%s4707_s2 + $0x290] sm:$0xff] }
 0x486   : > { %1341 = vmax.xlane.f32.xlu1 %v1340_v55  ;;  %3754 = vmatpush3.xpose.msk.msra.mxu1 %vm773_vm1, %v1781_v38  ;;  %v3251_v55 = vld [vmem:[%s4707_s2 + $0x280] sm:$0xff]  ;;  %v3291_v38 = vld [vmem:[%s4707_s2 + $0x1f0] sm:$0xff] }
 0x487   : > { %v1337_v57 = vsel %vm773_vm1, %v1335_v56, -inf }
 0x488   : > { %1338 = vmax.xlane.f32.xlu0 %v1337_v57 }
 0x50f   : > { %v1342_v58 = vpop.xlane.xlu1 %1341 }
 0x510   : > { %v1344_v59 = vsub.f32 %v1336_v54, %v1342_v58  ;;  %v3252_v54 = vld [vmem:[%s4707_s2 + $0x288] sm:$0xff] }
 0x511   : > { %v1339_v60 = vpop.xlane.xlu0 %1338 }
 0x512   : > { %v1347_v61 = vmul.f32 1.442695, %v1344_v59  ;;  %v1343_v62 = vsub.f32 %v1335_v56, %v1339_v60 }
 0x514   : > { %3867 = vpow2.f32 %v1347_v61  ;;  %v1345_v63 = vmul.f32 1.442695, %v1343_v62 }
 0x516   : > { %3869 = vpow2.f32 %v1345_v63 }
 0x521   : > { %v3868_v0 = vpop.eup %3867 }
 0x522   : > { %v1352_v1 = vsel %vm773_vm1, %v3868_v0, 0.0 }
 0x523   : > { %v3870_v2 = vpop.eup %3869  ;;  %1353 = vadd.xlane.f32.xlu1 %v1352_v1 }
 0x524   : > { %v1349_v3 = vsel %vm773_vm1, %v3870_v2, 0.0 }
 0x525   : > { %1350 = vadd.xlane.f32.xlu0 %v1349_v3 }
 0x5ac   : > { %v1354_v9 = vpop.xlane.xlu1 %1353 }
 0x5ad   : > { %3871 = vrcp.f32 %v1354_v9 }
 0x5ae   : > { %v1351_v10 = vpop.xlane.xlu0 %1350 }
 0x5af   : > { %3873 = vrcp.f32 %v1351_v10 }
 0x5ba   : > { %v3872_v11 = vpop.eup %3871 }
 0x5bb   : > { %v1358_v15 = vmul.f32 %v3872_v11, %v3868_v0  ;;  %v3260_v11 = vld [vmem:[%s4708_s3 + $0xa] ss:$0 sm:$0xff] }
 0x5bc   : > { %v3874_v12 = vpop.eup %3873 }
 0x5bd   : > { %v1357_v13 = vmul.f32 %v3874_v12, %v3870_v2 }
 0x5bf   : > { %3677 = vmatprep.mubr.msk.f32.mxu0 %vm773_vm1, %v1357_v13 }
 0x5c0   : > { %3678 = vmatmul.mubr.msk.f32.vlgmr.msra.gmra.mxu0 %vm773_vm1, %v1358_v15 }
 0x5c1   : > { %3681 = vmatpush3.msra.mxu0 %v3222_v6 }
 0x5c2   : > { %3682 = vmatprep.subr.mxu0 %v3221_v16 }
 0x5c3   : > { %3683 = vmatpush3.msra.mxu0 %v3221_v16  ;;  %v3270_v16 = vld [vmem:[%s4709_s4 + $0x28] sm:$0xff] }
 0x5c4   : > { %3694 = vmatprep.subr.mxu0 %v3234_v19 }
 0x680   : > { %v3679_v23 = vpop.f32.mrf.mxu0 }
 0x682   : > { %v1431_v24 = vpop.f32.mrf.mxu0 }
 0x683   : > { %3684 = vmatprep.mubr.msk.f32.mxu0 %vm773_vm1, %v1431_v24  ;;  %v3269_v24 = vld [vmem:[%s4709_s4 + $0x20] sm:$0xff] }
 0x684   : > { %3685 = vmatmul.mubr.msk.f32.vlgmr.msra.gmra.mxu0 %vm773_vm1, %v3679_v23 }
 0x685   : > { %3695 = vmatpush3.msra.mxu0 %v3234_v19  ;;  %3710 = vmatprep.mubr.msk.f32.mxu0 %vm507_vm0, %v4052_v14 }
 0x686   : > { %3696 = vmatprep.subr.mxu0 %v3233_v25 }
 0x687   : > { %3697 = vmatpush3.msra.mxu0 %v3233_v25  ;;  %v3292_v25 = vld [vmem:[%s4707_s2 + $0x1f8] sm:$0xff] }
 0x688   : > { %3698 = vmatprep.subr.mxu0 %v3232_v26 }
 0x689   : > { %3699 = vmatpush3.msra.mxu0 %v3232_v26  ;;  %v3280_v26 = vld [vmem:[%s4707_s2 + $0xf8] sm:$0xff] }
 0x68a   : > { %3700 = vmatprep.subr.mxu0 %v3231_v27 }
 0x68b   : > { %3701 = vmatpush3.msra.mxu0 %v3231_v27  ;;  %v3279_v27 = vld [vmem:[%s4707_s2 + $0xf0] sm:$0xff] }
 0x68c   : > { %3702 = vmatprep.subr.mxu0 %v3230_v28 }
 0x68d   : > { %3703 = vmatpush3.msra.mxu0 %v3230_v28  ;;  %v3278_v28 = vld [vmem:[%s4707_s2 + $0xe8] sm:$0xff] }
 0x68e   : > { %3704 = vmatprep.subr.mxu0 %v3229_v29 }
 0x68f   : > { %3705 = vmatpush3.msra.mxu0 %v3229_v29  ;;  %v3277_v29 = vld [vmem:[%s4707_s2 + $0xe0] sm:$0xff] }
 0x690   : > { %3706 = vmatprep.subr.mxu0 %v3228_v30 }
 0x691   : > { %3707 = vmatpush3.msra.mxu0 %v3228_v30  ;;  %v3276_v30 = vld [vmem:[%s4707_s2 + $0xd8] sm:$0xff] }
 0x692   : > { %3708 = vmatprep.subr.mxu0 %v3227_v31 }
 0x693   : > { %3709 = vmatpush3.msra.mxu0 %v3227_v31  ;;  %v3275_v31 = vld [vmem:[%s4707_s2 + $0xd0] sm:$0xff] }
 0x694   : > { %3711 = vmatmul.mubr.msk.f32.vlgmr.msra.gmra.mxu0 %vm507_vm0, %v4063_v17  ;;  %3732 = vmatprep.subr.mxu0 %v3258_v48 }
 0x695   : > { %3748 = vmatprep.mubr.msk.f32.mxu0 %vm507_vm0, %v4052_v14  ;;  %3733 = vmatpush3.msra.mxu0 %v3258_v48 }
 0x696   : > { %3734 = vmatprep.subr.mxu0 %v3257_v49 }
 0x697   : > { %3735 = vmatpush3.msra.mxu0 %v3257_v49  ;;  %v3282_v49 = vld [vmem:[%s4708_s3 + $0x3] ss:$0 sm:$0xff] }
 0x698   : > { %3736 = vmatprep.subr.mxu0 %v3256_v50 }
 0x699   : > { %3737 = vmatpush3.msra.mxu0 %v3256_v50 }
 0x69a   : > { %3738 = vmatprep.subr.mxu0 %v3255_v51 }
 0x69b   : > { %3739 = vmatpush3.msra.mxu0 %v3255_v51 }
 0x69c   : > { %3740 = vmatprep.subr.mxu0 %v3254_v52 }
 0x69d   : > { %3741 = vmatpush3.msra.mxu0 %v3254_v52 }
 0x69e   : > { %3742 = vmatprep.subr.mxu0 %v3253_v53 }
 0x69f   : > { %3743 = vmatpush3.msra.mxu0 %v3253_v53 }
 0x6a0   : > { %3744 = vmatprep.subr.mxu0 %v3252_v54 }
 0x6a1   : > { %3745 = vmatpush3.msra.mxu0 %v3252_v54 }
 0x6a2   : > { %3746 = vmatprep.subr.mxu0 %v3251_v55 }
 0x6a3   : > { %3747 = vmatpush3.msra.mxu0 %v3251_v55 }
 0x6a4   : > { %3749 = vmatmul.mubr.msk.f32.vlgmr.msra.gmra.mxu0 %vm507_vm0, %v4063_v17  ;;  %3772 = vmatprep.subr.mxu0 %v3280_v26 }
 0x6a5   : > { %3788 = vmatprep.mubr.msk.f32.mxu0 %vm507_vm0, %v4052_v14  ;;  %3773 = vmatpush3.msra.mxu0 %v3280_v26  ;;  %v3316_v26 = vld [vmem:[%s4709_s4 + $0x38] sm:$0xff] }
 0x6a6   : > { %3774 = vmatprep.subr.mxu0 %v3279_v27 }
 0x6a7   : > { %3775 = vmatpush3.msra.mxu0 %v3279_v27 }
 0x6a8   : > { %3776 = vmatprep.subr.mxu0 %v3278_v28 }
 0x6a9   : > { %3777 = vmatpush3.msra.mxu0 %v3278_v28 }
 0x6aa   : > { %3778 = vmatprep.subr.mxu0 %v3277_v29 }
 0x6ab   : > { %3779 = vmatpush3.msra.mxu0 %v3277_v29 }
 0x6ac   : > { %3780 = vmatprep.subr.mxu0 %v3276_v30 }
 0x6ad   : > { %3781 = vmatpush3.msra.mxu0 %v3276_v30 }
 0x6ae   : > { %3782 = vmatprep.subr.mxu0 %v3275_v31 }
 0x6af   : > { %3783 = vmatpush3.msra.mxu0 %v3275_v31 }
 0x6b0   : > { %3784 = vmatprep.subr.mxu0 %v3274_v34 }
 0x6b1   : > { %3785 = vmatpush3.msra.mxu0 %v3274_v34 }
 0x6b2   : > { %3786 = vmatprep.subr.mxu0 %v3273_v35 }
 0x6b3   : > { %3787 = vmatpush3.msra.mxu0 %v3273_v35  ;;  %v3315_v35 = vld [vmem:[%s4709_s4 + $0x30] sm:$0xff] }
 0x6b4   : > { %3789 = vmatmul.mubr.msk.f32.vlgmr.msra.gmra.mxu0 %vm507_vm0, %v4063_v17 }
 0x6b5   : > { %3826 = vmatprep.mubr.msk.f32.mxu0 %vm507_vm0, %v4052_v14 }
 0x744   : > { %v4322_v39 = vpop.f32.mrf.mxu0 }
 0x745   : > { %v1602_v53 = vadd.f32 %v4311_v32, %v4322_v39  ;;  %v3304_v32 = vld [vmem:[%s4707_s2 + $0x2f8] sm:$0xff]  ;;  %v3302_v39 = vld [vmem:[%s4707_s2 + $0x2e8] sm:$0xff] }
 0x746   : > { %v4324_v40 = vpop.f32.mrf.mxu0  ;;  %3810 = vmatprep.subr.mxu0 %v3304_v32 }
 0x747   : > { %v1597_v55 = vadd.f32 %v4313_v33, %v4324_v40  ;;  %v3303_v33 = vld [vmem:[%s4707_s2 + $0x2f0] sm:$0xff]  ;;  %3811 = vmatpush3.msra.mxu0 %v3304_v32  ;;  %v3301_v40 = vld [vmem:[%s4707_s2 + $0x2e0] sm:$0xff]  ;;  %v2788_v32 = vld [vmem:[%s4713_s8 + $0x78] sm:$0xff] }
 0x748   : > { %3812 = vmatprep.subr.mxu0 %v3303_v33 }
 0x749   : > { %3813 = vmatpush3.msra.mxu0 %v3303_v33  ;;  %v2787_v33 = vld [vmem:[%s4713_s8 + $0x70] sm:$0xff] }
 0x74a   : > { %3814 = vmatprep.subr.mxu0 %v3302_v39 }
 0x74b   : > { %3815 = vmatpush3.msra.mxu0 %v3302_v39  ;;  %v2786_v39 = vld [vmem:[%s4713_s8 + $0x68] sm:$0xff] }
 0x74c   : > { %3816 = vmatprep.subr.mxu0 %v3301_v40 }
 0x74d   : > { %3817 = vmatpush3.msra.mxu0 %v3301_v40  ;;  %v2785_v40 = vld [vmem:[%s4713_s8 + $0x60] sm:$0xff] }
 0x754   : > { %v3712_v41 = vpop.f32.mrf.mxu0 }
 0x755   : > { %v1694_v47 = vadd.f32 %v3712_v41, %v3236_v42  ;;  %v3290_v41 = vld [vmem:[%s4707_s2 + $0x1e8] sm:$0xff] }
 0x756   : > { %v1688_v44 = vpop.f32.mrf.mxu0 }
 0x757   : > { %v1689_v45 = vadd.f32 %v3236_v42, %v1688_v44  ;;  %v3289_v42 = vld [vmem:[%s4707_s2 + $0x1e0] sm:$0xff]  ;;  %v3288_v44 = vld [vmem:[%s4707_s2 + $0x1d8] sm:$0xff] }
 0x759   : > { %3755 = vmatprep.mubr.msk.f32.mxu1 %vm773_vm1, %v1689_v45  ;;  %v3287_v45 = vld [vmem:[%s4707_s2 + $0x1d0] sm:$0xff] }
 0x75a   : > { %3756 = vmatmul.mubr.msk.f32.vlgmr.msra.gmra.mxu1 %vm773_vm1, %v1694_v47  ;;  %v3285_v47 = vld [vmem:[%s4707_s2 + $0x1c0] sm:$0xff] }
 0x764   : > { %v3750_v10 = vpop.f32.mrf.mxu0 }
 0x765   : > { %v1878_v12 = vadd.f32 %v3750_v10, %v3260_v11 }
 0x766   : > { %v1872_v13 = vpop.f32.mrf.mxu0 }
 0x767   : > { %v1873_v15 = vadd.f32 %v3260_v11, %v1872_v13  ;;  %3758 = vmatprep.subr.mxu1 %v1878_v12 }
 0x768   : > { %3759 = vmatpush3.msra.mxu1 %v1878_v12 }
 0x769   : > { %3760 = vmatprep.subr.mxu1 %v1873_v15 }
 0x76a   : > { %3761 = vmatpush3.msra.mxu1 %v1873_v15 }
 0x76b   : > { %3765 = vmatprep.subr.mxu1 %v3270_v16 }
 0x774   : > { %v3790_v48 = vpop.f32.mrf.mxu0 }
 0x775   : > { %v2250_v50 = vadd.f32 %v3790_v48, %v3282_v49  ;;  %v3908_v48 = vld [vmem:[%s4043_s27] sm:$0xff] }
 0x776   : > { %v2244_v51 = vpop.f32.mrf.mxu0 }
 0x777   : > { %v2245_v52 = vadd.f32 %v3282_v49, %v2244_v51 }
 0x81a   : > { %v3757_v56 = vpop.f32.mrf.mxu1 }
 0x81b   : > { %v1969_v57 = vmul.f32 0.25, %v3757_v56 }
 0x81c   : > { %v1959_v58 = vpop.f32.mrf.mxu1 }
 0x81d   : > { %v1968_v59 = vmul.f32 0.25, %v1959_v58  ;;  %v1971_v60 = vadd.f32 %v1969_v57, %v4122_v46 }
 0x81f   : > { %v1975_v61 = vsel %vm773_vm1, %v1971_v60, -inf  ;;  %v1970_v62 = vadd.f32 %v1968_v59, %v4120_v43  ;;  %v3294_v59 = vld [vmem:[%s4708_s3 + $0x7] ss:$0 sm:$0xff] }
 0x820   : > { %1976 = vmax.xlane.f32.xlu1 %v1975_v61 }
 0x821   : > { %v1972_v63 = vsel %vm773_vm1, %v1970_v62, -inf }
 0x822   : > { %1973 = vmax.xlane.f32.xlu0 %v1972_v63 }
 0x8a9   : > { %v1977_v0 = vpop.xlane.xlu1 %1976 }
 0x8aa   : > { %v1979_v1 = vsub.f32 %v1971_v60, %v1977_v0  ;;  %v3300_v0 = vld [vmem:[%s4707_s2 + $0x2d8] sm:$0xff] }
 0x8ab   : > { %v1974_v2 = vpop.xlane.xlu0 %1973  ;;  %3818 = vmatprep.subr.mxu0 %v3300_v0 }
 0x8ac   : > { %v1982_v3 = vmul.f32 1.442695, %v1979_v1  ;;  %v1978_v4 = vsub.f32 %v1970_v62, %v1974_v2  ;;  %v3299_v1 = vld [vmem:[%s4707_s2 + $0x2d0] sm:$0xff]  ;;  %3819 = vmatpush3.msra.mxu0 %v3300_v0  ;;  %v3298_v2 = vld [vmem:[%s4707_s2 + $0x2c8] sm:$0xff]  ;;  %v2784_v0 = vld [vmem:[%s4713_s8 + $0x58] sm:$0xff] }
 0x8ad   : > { %3820 = vmatprep.subr.mxu0 %v3299_v1 }
 0x8ae   : > { %3875 = vpow2.f32 %v1982_v3  ;;  %v1980_v5 = vmul.f32 1.442695, %v1978_v4  ;;  %3821 = vmatpush3.msra.mxu0 %v3299_v1  ;;  %v3297_v3 = vld [vmem:[%s4707_s2 + $0x2c0] sm:$0xff]  ;;  %v2783_v1 = vld [vmem:[%s4713_s8 + $0x50] sm:$0xff] }
 0x8af   : > { %3822 = vmatprep.subr.mxu0 %v3298_v2 }
 0x8b0   : > { %3877 = vpow2.f32 %v1980_v5  ;;  %3823 = vmatpush3.msra.mxu0 %v3298_v2  ;;  %v2782_v2 = vld [vmem:[%s4713_s8 + $0x48] sm:$0xff] }
 0x8b1   : > { %3824 = vmatprep.subr.mxu0 %v3297_v3 }
 0x8b2   : > { %3825 = vmatpush3.msra.mxu0 %v3297_v3  ;;  %v2781_v3 = vld [vmem:[%s4713_s8 + $0x40] sm:$0xff] }
 0x8b3   : > { %3827 = vmatmul.mubr.msk.f32.vlgmr.msra.gmra.mxu0 %vm507_vm0, %v4063_v17  ;;  %2823 = vmatprep.subr.mxu0 %v2788_v32  ;;  %v2904_v32 = vld [vmem:[%s4715_s10] sm:$0xff] }
 0x8b4   : > { %2824 = vmatpush1.msra.mxu0 %v2787_v33  ;;  %v2791_v33 = vlaneseq }
 0x8b5   : > { %2825 = vmatprep.subr.mxu0 %v2786_v39 }
 0x8b6   : > { %2826 = vmatpush1.msra.mxu0 %v2785_v40  ;;  %v2792_v39 = vshrl.u32 %v2791_v33, 7 }
 0x8b7   : > { %2827 = vmatprep.subr.mxu0 %v2784_v0  ;;  %v2789_v0 = vld [vmem:[%s4714_s9] sm:$0x3] }
 0x8b8   : > { %2828 = vmatpush1.msra.mxu0 %v2783_v1  ;;  %v2793_v40 = vsub.s32 0, %v2792_v39  ;;  %v2797_v1 = vsub.s32 1, %v2792_v39  ;;  %v3325_v39 = vld [vmem:[%s4717_s12] ss:$0 sm:$0xff] }
 0x8b9   : > { %2829 = vmatprep.subr.mxu0 %v2782_v2 }
 0x8ba   : > { %2830 = vmatpush1.msra.mxu0 %v2781_v3  ;;  %v2794_v2 = vrot.slane %v2789_v0, %v2793_v40  ;;  %v2798_v3 = vrot.slane %v2789_v0, %v2797_v1  ;;  %v3326_v0 = vld [vmem:[%s4718_s13] ss:$0 sm:$0xff] }
 0x8bb   : > { %v3876_v6 = vpop.eup %3875 }
 0x8bc   : > { %v1987_v7 = vsel %vm773_vm1, %v3876_v6, 0.0 }
 0x8bd   : > { %v3878_v8 = vpop.eup %3877  ;;  %1988 = vadd.xlane.f32.xlu1 %v1987_v7 }
 0x8be   : > { %v1984_v9 = vsel %vm773_vm1, %v3878_v8, 0.0 }
 0x8bf   : > { %1985 = vadd.xlane.f32.xlu0 %v1984_v9 }
 0x946   : > { %v1989_v18 = vpop.xlane.xlu1 %1988 }
 0x947   : > { %3879 = vrcp.f32 %v1989_v18 }
 0x948   : > { %v1986_v19 = vpop.xlane.xlu0 %1985 }
 0x949   : > { %3881 = vrcp.f32 %v1986_v19 }
 0x954   : > { %v3880_v20 = vpop.eup %3879 }
 0x955   : > { %v1993_v23 = vmul.f32 %v3880_v20, %v3876_v6 }
 0x956   : > { %v3882_v21 = vpop.eup %3881 }
 0x957   : > { %v1992_v22 = vmul.f32 %v3882_v21, %v3878_v8 }
 0x959   : > { %3762 = vmatprep.mubr.msk.f32.mxu1 %vm773_vm1, %v1992_v22  ;;  %v3306_v22 = vld [vmem:[%s4708_s3 + $0xb] ss:$0 sm:$0xff] }
 0x95a   : > { %3763 = vmatmul.mubr.msk.f32.vlgmr.msra.gmra.mxu1 %vm773_vm1, %v1993_v23 }
 0x95b   : > { %3766 = vmatpush3.msra.mxu1 %v3270_v16 }
 0x95c   : > { %3767 = vmatprep.subr.mxu1 %v3269_v24 }
 0x95d   : > { %3768 = vmatpush3.msra.mxu1 %v3269_v24 }
 0x95e   : > { %3791 = vmatprep.subr.mxu1 %v3292_v25 }
 0xa1a   : > { %v3764_v36 = vpop.f32.mrf.mxu1 }
 0xa1c   : > { %v2066_v37 = vpop.f32.mrf.mxu1 }
 0xa1d   : > { %3769 = vmatprep.mubr.msk.f32.mxu1 %vm773_vm1, %v2066_v37 }
 0xa1e   : > { %3770 = vmatmul.mubr.msk.f32.vlgmr.msra.gmra.mxu1 %vm773_vm1, %v3764_v36 }
 0xa1f   : > { %3792 = vmatpush3.msra.mxu1 %v3292_v25  ;;  %3807 = vmatprep.mubr.msk.f32.mxu1 %vm507_vm0, %v4052_v14  ;;  %v3286_v14 = vld [vmem:[%s4707_s2 + $0x1c8] sm:$0xff] }
 0xa20   : > { %3793 = vmatprep.subr.mxu1 %v3291_v38 }
 0xa21   : > { %3794 = vmatpush3.msra.mxu1 %v3291_v38 }
 0xa22   : > { %3795 = vmatprep.subr.mxu1 %v3290_v41 }
 0xa23   : > { %3796 = vmatpush3.msra.mxu1 %v3290_v41 }
 0xa24   : > { %3797 = vmatprep.subr.mxu1 %v3289_v42 }
 0xa25   : > { %3798 = vmatpush3.msra.mxu1 %v3289_v42 }
 0xa26   : > { %3799 = vmatprep.subr.mxu1 %v3288_v44 }
 0xa27   : > { %3800 = vmatpush3.msra.mxu1 %v3288_v44  ;;  %v3319_v44 = vld [vmem:[%s4710_s5] ss:$0 sm:$0xff] }
 0xa28   : > { %3801 = vmatprep.subr.mxu1 %v3287_v45 }
 0xa29   : > { %3802 = vmatpush3.msra.mxu1 %v3287_v45  ;;  %v3907_v45 = vld [vmem:[%s4043_s27 + $0x8] sm:$0xff] }
 0xa2a   : > { %3803 = vmatprep.subr.mxu1 %v3286_v14 }
 0xa2b   : > { %3804 = vmatpush3.msra.mxu1 %v3286_v14 }
 0xa2c   : > { %3805 = vmatprep.subr.mxu1 %v3285_v47 }
 0xa2d   : > { %3806 = vmatpush3.msra.mxu1 %v3285_v47 }
 0xa2e   : > { %3808 = vmatmul.mubr.msk.f32.vlgmr.msra.gmra.mxu1 %vm507_vm0, %v4063_v17 }
 0xa2f   : > { %3833 = vmatprep.mubr.msk.f32.mxu1 %vm773_vm1, %v2245_v52 }
 0xade   : > { %v3771_v54 = vpop.f32.mrf.mxu1 }
 0xadf   : > { %v4442_v56 = vadd.f32 %v3771_v54, %v1602_v53 }
 0xae0   : > { %v2150_v57 = vpop.f32.mrf.mxu1 }
 0xae1   : > { %v4444_v58 = vadd.f32 %v2150_v57, %v1597_v55 }
 0xaee   : > { %v3809_v60 = vpop.f32.mrf.mxu1 }
 0xaef   : > { %v2342_v61 = vadd.f32 %v3809_v60, %v3294_v59 }
 0xaf0   : > { %v2336_v62 = vpop.f32.mrf.mxu1 }
 0xaf1   : > { %v2337_v63 = vadd.f32 %v3294_v59, %v2336_v62  ;;  %3829 = vmatprep.subr.msk.mxu1 %vm773_vm1, %v2342_v61 }
 0xaf2   : > { %3830 = vmatpush3.xpose.msk.msra.mxu1 %vm773_vm1, %v2342_v61 }
 0xaf3   : > { %3831 = vmatprep.subr.msk.mxu1 %vm773_vm1, %v2337_v63 }
 0xaf6   : > { %3832 = vmatpush3.xpose.msk.msra.mxu1 %vm773_vm1, %v2337_v63 }
 0xaf9   : > { %3834 = vmatmul.mubr.msk.f32.vlgmr.msra.gmra.mxu1 %vm773_vm1, %v2250_v50 }
 0xbb9   : > { %v3835_v4 = vpop.f32.mrf.mxu1 }
 0xbba   : > { %v2525_v5 = vmul.f32 0.25, %v3835_v4  ;;  %v2780_v4 = vld [vmem:[%s4713_s8 + $0x38] sm:$0xff] }
 0xbbb   : > { %v2515_v6 = vpop.f32.mrf.mxu1  ;;  %2831 = vmatprep.subr.mxu0 %v2780_v4 }
 0xbbc   : > { %v2524_v7 = vmul.f32 0.25, %v2515_v6  ;;  %v2527_v8 = vadd.f32 %v2525_v5, %v4122_v46  ;;  %v2779_v5 = vld [vmem:[%s4713_s8 + $0x30] sm:$0xff]  ;;  %v2778_v6 = vld [vmem:[%s4713_s8 + $0x28] sm:$0xff] }
 0xbbd   : > { %2832 = vmatpush1.msra.mxu0 %v2779_v5 }
 0xbbe   : > { %v2531_v9 = vsel %vm773_vm1, %v2527_v8, -inf  ;;  %v2526_v10 = vadd.f32 %v2524_v7, %v4120_v43  ;;  %v3828_v43 = vpop.f32.mrf.mxu0  ;;  %2833 = vmatprep.subr.mxu0 %v2778_v6  ;;  %v2777_v7 = vld [vmem:[%s4713_s8 + $0x20] sm:$0xff] }
 0xbbf   : > { %2532 = vmax.xlane.f32.xlu1 %v2531_v9  ;;  %v2434_v23 = vadd.f32 %v3828_v43, %v3306_v22  ;;  %v2775_v9 = vld [vmem:[%s4713_s8 + $0x10] sm:$0xff]  ;;  %2834 = vmatpush1.msra.mxu0 %v2777_v7 }
 0xbc0   : > { %v2528_v11 = vsel %vm773_vm1, %v2526_v10, -inf  ;;  %v2428_v24 = vpop.f32.mrf.mxu0 }
 0xbc1   : > { %2529 = vmax.xlane.f32.xlu0 %v2528_v11  ;;  %v2429_v25 = vadd.f32 %v3306_v22, %v2428_v24  ;;  %3836 = vmatprep.subr.mxu1 %v2434_v23  ;;  %v3917_v11 = vmov 0.0  }
 0xbc2   : > { %3837 = vmatpush3.msra.mxu1 %v2434_v23  ;;  %2871 = vmatprep.mubr.f32.mxu0 %v3917_v11 }
 0xbc3   : > { %3838 = vmatprep.subr.mxu1 %v2429_v25 }
 0xbc4   : > { %3839 = vmatpush3.msra.mxu1 %v2429_v25 }
 0xbc5   : > { %3843 = vmatprep.subr.mxu1 %v3316_v26 }
 0xc48   : > { %v2533_v12 = vpop.xlane.xlu1 %2532 }
 0xc49   : > { %v2535_v13 = vsub.f32 %v2527_v8, %v2533_v12  ;;  %v2776_v8 = vld [vmem:[%s4713_s8 + $0x18] sm:$0xff]  ;;  %v2773_v12 = vld [vmem:[%s4713_s8] sm:$0xff] }
 0xc4a   : > { %v2530_v15 = vpop.xlane.xlu0 %2529  ;;  %2835 = vmatprep.subr.mxu0 %v2776_v8 }
 0xc4b   : > { %v2538_v16 = vmul.f32 1.442695, %v2535_v13  ;;  %v2534_v18 = vsub.f32 %v2526_v10, %v2530_v15  ;;  %v2774_v10 = vld [vmem:[%s4713_s8 + $0x8] sm:$0xff]  ;;  %2836 = vmatpush1.msra.mxu0 %v2775_v9  ;;  %v2935_v13 = vld [vmem:[%s4715_s10 + $0xf8] sm:$0xff] }
 0xc4c   : > { %2837 = vmatprep.subr.mxu0 %v2774_v10  ;;  %v2919_v15 = vld [vmem:[%s4715_s10 + $0x78] sm:$0xff] }
 0xc4d   : > { %3883 = vpow2.f32 %v2538_v16  ;;  %v2536_v17 = vmul.f32 1.442695, %v2534_v18  ;;  %2838 = vmatpush1.msra.mxu0 %v2773_v12  ;;  %v2934_v16 = vld [vmem:[%s4715_s10 + $0xf0] sm:$0xff] }
 0xc4e   : > { %v2918_v18 = vld [vmem:[%s4715_s10 + $0x70] sm:$0xff] }
 0xc4f   : > { %3885 = vpow2.f32 %v2536_v17  ;;  %v2933_v17 = vld [vmem:[%s4715_s10 + $0xe8] sm:$0xff] }
 0xc5a   : > { %v3884_v19 = vpop.eup %3883 }
 0xc5b   : > { %v2543_v20 = vsel %vm773_vm1, %v3884_v19, 0.0 }
 0xc5c   : > { %v3886_v46 = vpop.eup %3885  ;;  %2544 = vadd.xlane.f32.xlu1 %v2543_v20 }
 0xc5d   : > { %v2540_v21 = vsel %vm773_vm1, %v3886_v46, 0.0 }
 0xc5e   : > { %2541 = vadd.xlane.f32.xlu0 %v2540_v21 }
 0xce5   : > { %v2545_v27 = vpop.xlane.xlu1 %2544 }
 0xce6   : > { %3887 = vrcp.f32 %v2545_v27 }
 0xce7   : > { %v2542_v28 = vpop.xlane.xlu0 %2541 }
 0xce8   : > { %3889 = vrcp.f32 %v2542_v28  ;;  %v3320_v28 = vld [vmem:[%s4711_s6] ss:$0 sm:$0xff] }
 0xcf3   : > { %v3888_v29 = vpop.eup %3887 }
 0xcf4   : > { %v2549_v34 = vmul.f32 %v3888_v29, %v3884_v19  ;;  %v2917_v19 = vld [vmem:[%s4715_s10 + $0x68] sm:$0xff] }
 0xcf5   : > { %v3890_v30 = vpop.eup %3889 }
 0xcf6   : > { %v2548_v31 = vmul.f32 %v3890_v30, %v3886_v46  ;;  %v3321_v30 = vld [vmem:[%s4712_s7] ss:$0 sm:$0xff] }
 0xcf8   : > { %3840 = vmatprep.mubr.msk.f32.mxu1 %vm773_vm1, %v2548_v31 }
 0xcf9   : > { %3841 = vmatmul.mubr.msk.f32.vlgmr.msra.gmra.mxu1 %vm773_vm1, %v2549_v34 }
 0xcfa   : > { %3844 = vmatpush3.msra.mxu1 %v3316_v26 }
 0xcfb   : > { %3845 = vmatprep.subr.mxu1 %v3315_v35 }
 0xcfc   : > { %3846 = vmatpush3.msra.mxu1 %v3315_v35 }
 0xcfd   : > { %3500 = vmatprep.subr.mxu1 %v2935_v13 }
 0xdb9   : > { %v3842_v36 = vpop.f32.mrf.mxu1 }
 0xdbb   : > { %v2622_v37 = vpop.f32.mrf.mxu1 }
 0xdbc   : > { %3847 = vmatprep.mubr.msk.f32.mxu1 %vm773_vm1, %v2622_v37  ;;  %v2916_v37 = vld [vmem:[%s4715_s10 + $0x60] sm:$0xff] }
 0xdbd   : > { %3848 = vmatmul.mubr.msk.f32.vlgmr.msra.gmra.mxu1 %vm773_vm1, %v3842_v36  ;;  %v2932_v36 = vld [vmem:[%s4715_s10 + $0xe0] sm:$0xff] }
 0xdbe   : > { %3501 = vmatpush3.msra.mxu1 %v2919_v15 }
 0xdbf   : > { %3502 = vmatprep.subr.mxu1 %v2934_v16 }
 0xdc0   : > { %3503 = vmatpush3.msra.mxu1 %v2918_v18 }
 0xdc1   : > { %3504 = vmatprep.subr.mxu1 %v2933_v17 }
 0xdc2   : > { %3505 = vmatpush3.msra.mxu1 %v2917_v19 }
 0xdc3   : > { %3506 = vmatprep.subr.mxu1 %v2932_v36 }
 0xdc4   : > { %3507 = vmatpush3.msra.mxu1 %v2916_v37 }
 0xe7d   : > { %v3849_v38 = vpop.f32.mrf.mxu1 }
 0xe7e   : > { %v2716_v41 = vadd.f32 %v3849_v38, %v4442_v56  ;;  %v2931_v38 = vld [vmem:[%s4715_s10 + $0xd8] sm:$0xff] }
 0xe7f   : > { %v2706_v42 = vpop.f32.mrf.mxu1  ;;  %3508 = vmatprep.subr.mxu1 %v2931_v38 }
 0xe80   : > { %v2718_v14 = vadd.f32 %v3907_v45, %v2716_v41  ;;  %v2715_v47 = vadd.f32 %v2706_v42, %v4444_v58  ;;  %v2915_v41 = vld [vmem:[%s4715_s10 + $0x58] sm:$0xff]  ;;  %v2930_v42 = vld [vmem:[%s4715_s10 + $0xd0] sm:$0xff]  ;;  %v2929_v45 = vld [vmem:[%s4715_s10 + $0xc8] sm:$0xff] }
 0xe81   : > { %3509 = vmatpush3.msra.mxu1 %v2915_v41  ;;  %v3324_v41 = vld [vmem:[%s4716_s11] ss:$0 sm:$0xff] }
 0xe82   : > { %v2717_v49 = vadd.f32 %v3908_v48, %v2715_v47  ;;  %v2727_v50 = vadd.f32 %v3319_v44, %v2718_v14  ;;  %3510 = vmatprep.subr.mxu1 %v2930_v42  ;;  %v2913_v14 = vld [vmem:[%s4715_s10 + $0x48] sm:$0xff]  ;;  %v2928_v47 = vld [vmem:[%s4715_s10 + $0xc0] sm:$0xff] }
 0xe83   : > { %v2912_v48 = vld [vmem:[%s4715_s10 + $0x40] sm:$0xff] }
 0xe84   : > { %v2733_v51 = vsel %vm507_vm0, %v2727_v50, 0.0  ;;  %v2726_v52 = vadd.f32 %v3319_v44, %v2717_v49  ;;  %v2914_v44 = vld [vmem:[%s4715_s10 + $0x50] sm:$0xff]  ;;  %v2927_v49 = vld [vmem:[%s4715_s10 + $0xb8] sm:$0xff] }
 0xe85   : > { %2734 = vadd.xlane.f32.xlu1 %v2733_v51  ;;  %3511 = vmatpush3.msra.mxu1 %v2914_v44  ;;  %v2926_v51 = vld [vmem:[%s4715_s10 + $0xb0] sm:$0xff] }
 0xe86   : > { %v2730_v53 = vsel %vm507_vm0, %v2726_v52, 0.0  ;;  %3512 = vmatprep.subr.mxu1 %v2929_v45 }
 0xe87   : > { %2731 = vadd.xlane.f32.xlu0 %v2730_v53  ;;  %3513 = vmatpush3.msra.mxu1 %v2913_v14  ;;  %v2925_v53 = vld [vmem:[%s4715_s10 + $0xa8] sm:$0xff] }
 0xe88   : > { %3514 = vmatprep.subr.mxu1 %v2928_v47 }
 0xe89   : > { %3515 = vmatpush3.msra.mxu1 %v2912_v48 }
 0xe8a   : > { %3516 = vmatprep.subr.mxu1 %v2927_v49 }
 0xf0e   : > { %v2735_v54 = vpop.xlane.xlu1 %2734 }
 0xf0f   : > { %v2738_v55 = vmul.f32 0.015625, %v2735_v54  ;;  %v2909_v54 = vld [vmem:[%s4715_s10 + $0x28] sm:$0xff] }
 0xf10   : > { %v2732_v56 = vpop.xlane.xlu0 %2731 }
 0xf11   : > { %v4508_v57 = vsub.f32 %v2727_v50, %v2738_v55  ;;  %v2737_v59 = vmul.f32 0.015625, %v2732_v56  ;;  %v2911_v50 = vld [vmem:[%s4715_s10 + $0x38] sm:$0xff]  ;;  %v2924_v55 = vld [vmem:[%s4715_s10 + $0xa0] sm:$0xff] }
 0xf12   : > { %3517 = vmatpush3.msra.mxu1 %v2911_v50  ;;  %v2908_v56 = vld [vmem:[%s4715_s10 + $0x20] sm:$0xff] }
 0xf13   : > { %v4510_v60 = vsub.f32 %v2726_v52, %v2737_v59  ;;  %v2742_v58 = vmul.f32 %v4508_v57, %v4508_v57  ;;  %3518 = vmatprep.subr.mxu1 %v2926_v51  ;;  %v2910_v52 = vld [vmem:[%s4715_s10 + $0x30] sm:$0xff]  ;;  %v2907_v59 = vld [vmem:[%s4715_s10 + $0x18] sm:$0xff] }
 0xf14   : > { %3519 = vmatpush3.msra.mxu1 %v2910_v52 }
 0xf15   : > { %v2746_v61 = vsel %vm507_vm0, %v2742_v58, 0.0  ;;  %v2741_v62 = vmul.f32 %v4510_v60, %v4510_v60  ;;  %3520 = vmatprep.subr.mxu1 %v2925_v53  ;;  %v2906_v58 = vld [vmem:[%s4715_s10 + $0x10] sm:$0xff] }
 0xf16   : > { %2747 = vadd.xlane.f32.xlu1 %v2746_v61  ;;  %3521 = vmatpush3.msra.mxu1 %v2909_v54  ;;  %v2921_v61 = vld [vmem:[%s4715_s10 + $0x88] sm:$0xff] }
 0xf17   : > { %v2743_v63 = vsel %vm507_vm0, %v2741_v62, 0.0  ;;  %3522 = vmatprep.subr.mxu1 %v2924_v55  ;;  %v2905_v62 = vld [vmem:[%s4715_s10 + $0x8] sm:$0xff] }
 0xf18   : > { %2744 = vadd.xlane.f32.xlu0 %v2743_v63  ;;  %3523 = vmatpush3.msra.mxu1 %v2908_v56  ;;  %v2920_v63 = vld [vmem:[%s4715_s10 + $0x80] sm:$0xff] }
 0xf9f   : > { %v2748_v20 = vpop.xlane.xlu1 %2747 }
 0xfa0   : > { %v2750_v46 = vmul.f32 0.015625, %v2748_v20 }
 0xfa1   : > { %v2745_v21 = vpop.xlane.xlu0 %2744 }
 0xfa2   : > { %v2752_v43 = vadd.f32 1e-05, %v2750_v46  ;;  %v2749_v22 = vmul.f32 0.015625, %v2745_v21 }
 0xfa4   : > { %3891 = vrsqrt.f32 %v2752_v43  ;;  %v2751_v23 = vadd.f32 1e-05, %v2749_v22 }
 0xfa6   : > { %3893 = vrsqrt.f32 %v2751_v23 }
 0xfb1   : > { %v3892_v24 = vpop.eup %3891 }
 0xfb2   : > { %v2756_v27 = vmul.f32 %v3892_v24, %v4508_v57  ;;  %v2923_v57 = vld [vmem:[%s4715_s10 + $0x98] sm:$0xff] }
 0xfb3   : > { %v3894_v25 = vpop.eup %3893  ;;  %3524 = vmatprep.subr.mxu1 %v2923_v57 }
 0xfb4   : > { %v2755_v26 = vmul.f32 %v3894_v25, %v4510_v60  ;;  %v2764_v34 = vmul.f32 %v3320_v28, %v2756_v27  ;;  %3525 = vmatpush3.msra.mxu1 %v2907_v59  ;;  %v2922_v60 = vld [vmem:[%s4715_s10 + $0x90] sm:$0xff] }
 0xfb5   : > { %3526 = vmatprep.subr.mxu1 %v2922_v60 }
 0xfb6   : > { %v2763_v29 = vmul.f32 %v3320_v28, %v2755_v26  ;;  %v4596_v35 = vadd.f32 %v3321_v30, %v2764_v34  ;;  %3527 = vmatpush3.msra.mxu1 %v2906_v58 }
 0xfb7   : > { %3528 = vmatprep.subr.mxu1 %v2921_v61 }
 0xfb8   : > { %v4592_v31 = vadd.f32 %v3321_v30, %v2763_v29  ;;  %3529 = vmatpush3.msra.mxu1 %v2905_v62 }
 0xfb9   : > { %3530 = vmatprep.subr.mxu1 %v2920_v63 }
 0xfba   : > { %3322 = vmatmul.mubr.msk.f32.vlgmr.msra.gmra.mxu0 %vm507_vm0, %v4592_v31  ;;  %3531 = vmatpush3.msra.mxu1 %v2904_v32 }
 0xfbb   : > { %2877 = vmatprep.mubr.f32.mxu0 %v3917_v11 }
 0xfbe   : > { %3323 = vmatmul.mubr.msk.f32.gmra.mxu0 %vm507_vm0, %v4596_v35 }
0x107a   : > { %v2873_v4 = vpop.f32.mrf.mxu0 }
0x107b   : > { %v2874_v5 = vadd.f32 %v2873_v4, %v2794_v2 }
0x107c   : > { %v2875_v6 = vpop.f32.mrf.mxu0 }
0x107d   : > { %v2888_v7 = vmul.f32 0.70710677, %v2874_v5  ;;  %v2876_v8 = vadd.f32 %v2875_v6, %v2798_v3  ;;  %v2884_v43 = vmul.f32 0.5, %v2874_v5 }
0x107e   : > { %v2879_v9 = vpop.f32.mrf.mxu0 }
0x107f   : > { %3895 = verf.f32 %v2888_v7  ;;  %v2889_v10 = vmul.f32 0.70710677, %v2876_v8  ;;  %v2880_v11 = vadd.f32 %v2879_v9, %v2794_v2  ;;  %v2885_v20 = vmul.f32 0.5, %v2876_v8 }
0x1080   : > { %v2881_v12 = vpop.f32.mrf.mxu0 }
0x1081   : > { %3897 = verf.f32 %v2889_v10  ;;  %v2890_v13 = vmul.f32 0.70710677, %v2880_v11  ;;  %v2882_v15 = vadd.f32 %v2881_v12, %v2798_v3  ;;  %v2886_v28 = vmul.f32 0.5, %v2880_v11 }
0x1083   : > { %3899 = verf.f32 %v2890_v13  ;;  %v2891_v16 = vmul.f32 0.70710677, %v2882_v15  ;;  %v2887_v26 = vmul.f32 0.5, %v2882_v15 }
0x1085   : > { %3901 = verf.f32 %v2891_v16 }
0x108c   : > { %v3896_v18 = vpop.eup %3895 }
0x108d   : > { %v2896_v19 = vadd.f32 1.0, %v3896_v18 }
0x108e   : > { %v3898_v17 = vpop.eup %3897 }
0x108f   : > { %v2897_v46 = vadd.f32 1.0, %v3898_v17  ;;  %v2900_v24 = vmul.f32 %v2896_v19, %v2884_v43 }
0x1090   : > { %v3900_v21 = vpop.eup %3899 }
0x1091   : > { %v2901_v22 = vmul.f32 %v2897_v46, %v2885_v20  ;;  %v2898_v25 = vadd.f32 1.0, %v3900_v21 }
0x1092   : > { %v3902_v23 = vpop.eup %3901 }
0x1093   : > { %3000 = vmatprep.mubr.f32.mxu1 %v2901_v22  ;;  %v2899_v27 = vadd.f32 1.0, %v3902_v23  ;;  %v2902_v30 = vmul.f32 %v2898_v25, %v2886_v28 }
0x1094   : > { %3001 = vmatmul.mubr.f32.vlgmr.msra.gmra.mxu1 %v2900_v24 }
0x1095   : > { %v2903_v29 = vmul.f32 %v2899_v27, %v2887_v26 }
0x1097   : > { %3005 = vmatprep.mubr.f32.mxu1 %v2903_v29 }
0x1098   : > { %3006 = vmatmul.mubr.f32.gmra.mxu1 %v2902_v30 }
0x1154   : > { %v3532_v34 = vpop.f32.mrf.mxu1 }
0x1156   : > { %v3533_v36 = vpop.f32.mrf.mxu1 }
0x1157   : > { %v3534_v37 = vadd.f32 %v3533_v36, %v3532_v34 }
0x1158   : > { %v3535_v38 = vpop.f32.mrf.mxu1 }
0x1159   : > { %v3011_v42 = vadd.f32 %v3534_v37, %v4592_v31 }
0x115a   : > { %v3536_v44 = vpop.f32.mrf.mxu1 }
0x115b   : > { %v3537_v45 = vadd.f32 %v3536_v44, %v3535_v38  ;;  %v3020_v14 = vadd.f32 %v3324_v41, %v3011_v42 }
0x115d   : > { %v3012_v47 = vadd.f32 %v3537_v45, %v4596_v35  ;;  %v3024_v48 = vsel %vm507_vm0, %v3020_v14, 0.0 }
0x115e   : > { %3025 = vadd.xlane.f32.xlu0 %v3024_v48 }
0x115f   : > { %v3021_v49 = vadd.f32 %v3324_v41, %v3012_v47 }
0x1161   : > { %v3027_v50 = vsel %vm507_vm0, %v3021_v49, 0.0 }
0x1162   : > { %3028 = vadd.xlane.f32.xlu1 %v3027_v50 }
0x11e7   : > { %v3026_v51 = vpop.xlane.xlu0 %3025 }
0x11e8   : > { %v3030_v52 = vmul.f32 0.015625, %v3026_v51 }
0x11ea   : > { %v3032_v53 = vsub.f32 %v3020_v14, %v3030_v52 }
0x11eb   : > { %v3029_v54 = vpop.xlane.xlu1 %3028 }
0x11ec   : > { %v3031_v55 = vmul.f32 0.015625, %v3029_v54  ;;  %v3034_v56 = vmul.f32 %v3032_v53, %v3032_v53 }
0x11ee   : > { %v3033_v57 = vsub.f32 %v3021_v49, %v3031_v55  ;;  %v3036_v31 = vsel %vm507_vm0, %v3034_v56, 0.0 }
0x11ef   : > { %3037 = vadd.xlane.f32.xlu0 %v3036_v31 }
0x11f0   : > { %v3035_v59 = vmul.f32 %v3033_v57, %v3033_v57 }
0x11f2   : > { %v3039_v35 = vsel %vm507_vm0, %v3035_v59, 0.0 }
0x11f3   : > { %3040 = vadd.xlane.f32.xlu1 %v3039_v35 }
0x1278   : > { %v3038_v60 = vpop.xlane.xlu0 %3037 }
0x1279   : > { %v3042_v58 = vmul.f32 0.015625, %v3038_v60 }
0x127b   : > { %v3044_v61 = vadd.f32 1e-05, %v3042_v58 }
0x127c   : > { %v3041_v62 = vpop.xlane.xlu1 %3040 }
0x127d   : > { %3903 = vrsqrt.f32 %v3044_v61  ;;  %v3043_v63 = vmul.f32 0.015625, %v3041_v62 }
0x127f   : > { %v3045_v32 = vadd.f32 1e-05, %v3043_v63 }
0x1281   : > { %3905 = vrsqrt.f32 %v3045_v32 }
0x128a   : > { %v3904_v33 = vpop.eup %3903 }
0x128b   : > { %v3048_v40 = vmul.f32 %v3904_v33, %v3032_v53 }
0x128d   : > { %v3056_v1 = vmul.f32 %v3325_v39, %v3048_v40 }
0x128e   : > { %v3906_v2 = vpop.eup %3905 }
0x128f   : > { %v3064_v3 = vadd.f32 %v3326_v0, %v3056_v1  ;;  %v3049_v4 = vmul.f32 %v3906_v2, %v3033_v57 }
0x1291   : > { %3066 = vst.msk [vmem:[%s487_s18] sm:$0xff] %vm507_vm0, %v3064_v3  ;;  %v3057_v5 = vmul.f32 %v3325_v39, %v3049_v4 }
0x1293   : > { %v3065_v6 = vadd.f32 %v3326_v0, %v3057_v5 }
0x1295   : > { %3067 = vst.msk [vmem:[%s487_s18 + $0x8] sm:$0xff] %vm507_vm0, %v3065_v6 }
0x1296 PF: > { %s24_s29 = sadd.s32 1, %s3915_s29  }
0x1297   : > { %p21_p4 = scmp.ge.s32.totalorder %s24_s29, 4  }
0x1299   :  { %23 = sbr.rel (!%p21_p4) target bundleno = 1 (0x1), region = 134 }

// kernel: vtn_forward.14
= control target key start
LH: loop header
LB: loop body
LE: loop exit
PB: predicated region body
PF: predicated region fallthrough
CT: control target
= control target key end

     0   :  { %19 = vsyncpa [#allocation3], 0  ;;  %s5181_s0 = inlined_call_operand.vmem [shape: f32[2,16,64], index: 0, kind: input, shape index: {}]   ;;  %s5182_s1 = inlined_call_operand.vmem [shape: f32[2,16,16], index: 1, kind: input, shape index: {}]   ;;  %s5183_s2 = inlined_call_operand.vmem [shape: f32[12,64,16], index: 2, kind: input, shape index: {}]   ;;  %s5184_s3 = inlined_call_operand.vmem [shape: f32[12,1,16], index: 3, kind: input, shape index: {}]   ;;  %s5185_s4 = inlined_call_operand.vmem [shape: f32[4,16,64], index: 4, kind: input, shape index: {}]   ;;  %s5186_s5 = inlined_call_operand.hbm [shape: f32[1,64], index: 5, kind: input, shape index: {}]   ;;  %s5187_s6 = inlined_call_operand.hbm [shape: f32[1,64], index: 6, kind: input, shape index: {}]   ;;  %s5188_s7 = inlined_call_operand.hbm [shape: f32[1,64], index: 7, kind: input, shape index: {}]   ;;  %s5189_s8 = inlined_call_operand.vmem [shape: f32[64,256], index: 8, kind: input, shape index: {}]   ;;  %s5190_s9 = inlined_call_operand.vmem [shape: f32[1,256], index: 9, kind: input, shape index: {}]   ;;  %s5191_s10 = inlined_call_operand.vmem [shape: f32[256,64], index: 10, kind: input, shape index: {}]   ;;  %s5192_s11 = inlined_call_operand.hbm [shape: f32[1,64], index: 11, kind: input, shape index: {}]   ;;  %s5193_s12 = inlined_call_operand.hbm [shape: f32[1,64], index: 12, kind: input, shape index: {}]   ;;  %s5194_s13 = inlined_call_operand.hbm [shape: f32[1,64], index: 13, kind: input, shape index: {}]   ;;  %s5195_s14 = inlined_call_operand.vmem [shape: f32[2,16,64], index: 14, kind: output, shape index: {}]  }
   0x1   :  { %20 = vsyncpa [#allocation5], 0 }
   0x2   :  { %21 = vsyncpa [#allocation8], 0 }
   0x3   :  { %22 = vsyncpa [#allocation11], 0  ;;  %s4380_s29 = smov 0  }
   0x4 LB: > { %s4298_s30 = smov [#allocation4]   ;;  %s4386_s16 = sadd.s32 4294967295, %s4296_s29   ;;  %s4296_s29 = sphi %s4380_s29, %s28_s29  }
   0x5   : > { %s396_s15 = sshll.u32 %s4298_s30, 4  ;;  %p3273_p0 = scmp.ge.s32.totalorder %s4296_s29, 1  ;;  %s397_s15 = int_to_ptr.vmem [resolvable:$true] %s396_s15 }
   0x6   : > { %p363_p1 = scmp.lt.s32.totalorder %s4296_s29, 3  ;;  %p5196_p2 = scmp.eq.s32.totalorder %s4386_s16, 0 }
   0x7   : > { %s4299_s18 = smov [#allocation7]   ;;  %s4300_s20 = smov [#allocation2]  }
   0x8   : > { %p4391_p3 = pnand %p3273_p0, %p363_p1  ;;  %s427_s19 = sshll.u32 %s4299_s18, 4  ;;  %s4397_s19 = int_to_ptr.vmem [resolvable:$true] %s427_s19 }
   0x9   : > { %s385_s21 = sshll.u32 %s4300_s20, 4  ;;  %s4301_s23 = smov [#allocation6]   ;;  %s4405_s21 = int_to_ptr.vmem [resolvable:$true] %s385_s21 }
   0xa   : > { %p4022_p4 = pneg %p4391_p3  ;;  %s407_s24 = sshll.u32 %s4301_s23, 4  ;;  %s4407_s24 = int_to_ptr.vmem [resolvable:$true] %s407_s24 }
   0xb   : > { %s4129_s26 = scalar_lea.vmem %s397_s15, 16  ;;  %s4136_s27 = scalar_lea.vmem %s397_s15, 32 }
   0xc   : > { %p4401_p5 = pnand %p5196_p2, %p4022_p4  ;;  %p4130_p7 = scmp.ne.s32.totalorder %s397_s15, %s4129_s26 }
   0xd   : > { %p4137_p10 = scmp.lt.s32.totalorder %s397_s15, %s397_s15  ;;  %p4138_p11 = scmp.lt.s32.totalorder %s4136_s27, %s4129_s26 }
   0xe   : > { %p4411_p6 = pneg %p4401_p5 }
   0xf   : > { %p4139_p12 = por %p4138_p11, %p4137_p10 }
  0x10   : > { %p4132_p8 = pnand %p4130_p7, %p4411_p6 }
  0x12   : > { %p4133_p9 = pneg %p4132_p8 }
  0x14   : > { %p4140_p13 = pnand %p4139_p12, %p4133_p9 }
  0x16   : > { %4143 = shalt.err (!%p4140_p13)
}
  0x17   : > { %4028 = dma.hbm_to_vmem [thread:$0]  (!%p4401_p5), %s5187_s6, 16, %s397_s15, [#allocation5]  }
  0x18   : > { %s4155_s18 = scalar_lea.vmem %s4397_s19, 16  ;;  %s4162_s20 = scalar_lea.vmem %s4397_s19, 32 }
  0x19   : > { %p4156_p0 = scmp.ne.s32.totalorder %s4397_s19, %s4155_s18  ;;  %p4163_p7 = scmp.lt.s32.totalorder %s4397_s19, %s4397_s19 }
  0x1a   : > { %p4164_p8 = scmp.lt.s32.totalorder %s4162_s20, %s4155_s18 }
  0x1b   : > { %p4158_p1 = pnand %p4156_p0, %p4411_p6 }
  0x1c   : > { %p4165_p9 = por %p4164_p8, %p4163_p7 }
  0x1d   : > { %p4159_p4 = pneg %p4158_p1 }
  0x1f   : > { %p4166_p10 = pnand %p4165_p9, %p4159_p4 }
  0x21   : > { %4169 = shalt.err (!%p4166_p10)
}
  0x22   : > { %4034 = dma.hbm_to_vmem [thread:$0]  (!%p4401_p5), %s5192_s11, 16, %s4397_s19, [#allocation8]  }
  0x23   : > { %s4181_s15 = scalar_lea.vmem %s4405_s21, 16  ;;  %s4188_s27 = scalar_lea.vmem %s4405_s21, 32 }
  0x24   : > { %p4182_p11 = scmp.ne.s32.totalorder %s4405_s21, %s4181_s15  ;;  %p4189_p0 = scmp.lt.s32.totalorder %s4405_s21, %s4405_s21 }
  0x25   : > { %p4190_p1 = scmp.lt.s32.totalorder %s4188_s27, %s4181_s15 }
  0x26   : > { %p4184_p12 = pnand %p4182_p11, %p4411_p6 }
  0x27   : > { %p4191_p4 = por %p4190_p1, %p4189_p0 }
  0x28   : > { %p4185_p13 = pneg %p4184_p12 }
  0x2a   : > { %p4192_p7 = pnand %p4191_p4, %p4185_p13 }
  0x2c   : > { %4195 = shalt.err (!%p4192_p7)
}
  0x2d   : > { %4025 = dma.hbm_to_vmem [thread:$0]  (!%p4401_p5), %s5186_s5, 16, %s4405_s21, [#allocation3]  }
  0x2e   : > { %s4207_s19 = scalar_lea.vmem %s4407_s24, 16  ;;  %s4214_s18 = scalar_lea.vmem %s4407_s24, 32 }
  0x2f   : > { %p4208_p8 = scmp.ne.s32.totalorder %s4407_s24, %s4207_s19  ;;  %p4215_p11 = scmp.lt.s32.totalorder %s4407_s24, %s4407_s24 }
  0x30   : > { %p4216_p12 = scmp.lt.s32.totalorder %s4214_s18, %s4207_s19 }
  0x31   : > { %p4210_p9 = pnand %p4208_p8, %p4411_p6 }
  0x32   : > { %p4217_p13 = por %p4216_p12, %p4215_p11 }
  0x33   : > { %p4211_p10 = pneg %p4210_p9 }
  0x35   : > { %p4218_p0 = pnand %p4217_p13, %p4211_p10 }
  0x37   : > { %4221 = shalt.err (!%p4218_p0)
}
  0x38   : > { %4031 = dma.hbm_to_vmem [thread:$0]  (!%p4401_p5), %s5188_s7, 16, %s4407_s24, [#allocation5]  }
  0x39   : > { %s4302_s21 = smov [#allocation9]   ;;  %s4303_s15 = smov [#allocation10]  }
  0x3a   : > { %s438_s26 = sshll.u32 %s4302_s21, 4  ;;  %s449_s27 = sshll.u32 %s4303_s15, 4  ;;  %s439_s26 = int_to_ptr.vmem [resolvable:$true] %s438_s26  ;;  %s450_s27 = int_to_ptr.vmem [resolvable:$true] %s449_s27 }
  0x3b   : > { %s4233_s28 = scalar_lea.vmem %s439_s26, 16  ;;  %s4240_s30 = scalar_lea.vmem %s439_s26, 32 }
  0x3c   : > { %p4234_p1 = scmp.ne.s32.totalorder %s439_s26, %s4233_s28  ;;  %p4241_p8 = scmp.lt.s32.totalorder %s439_s26, %s439_s26 }
  0x3d   : > { %p4242_p9 = scmp.lt.s32.totalorder %s4240_s30, %s4233_s28 }
  0x3e   : > { %p4236_p4 = pnand %p4234_p1, %p4411_p6 }
  0x3f   : > { %p4243_p10 = por %p4242_p9, %p4241_p8 }
  0x40   : > { %p4237_p7 = pneg %p4236_p4 }
  0x42   : > { %p4244_p11 = pnand %p4243_p10, %p4237_p7 }
  0x44   : > { %4247 = shalt.err (!%p4244_p11)
}
  0x45   : > { %4037 = dma.hbm_to_vmem [thread:$0]  (!%p4401_p5), %s5193_s12, 16, %s439_s26, [#allocation8]  }
  0x46   : > { %s4259_s18 = scalar_lea.vmem %s450_s27, 16  ;;  %s4266_s20 = scalar_lea.vmem %s450_s27, 32 }
  0x47   : > { %p4260_p12 = scmp.ne.s32.totalorder %s450_s27, %s4259_s18  ;;  %p4267_p1 = scmp.lt.s32.totalorder %s450_s27, %s450_s27 }
  0x48   : > { %p4268_p4 = scmp.lt.s32.totalorder %s4266_s20, %s4259_s18 }
  0x49   : > { %p4262_p13 = pnand %p4260_p12, %p4411_p6 }
  0x4a   : > { %p4269_p2 = por %p4268_p4, %p4267_p1 }
  0x4b   : > { %p4263_p0 = pneg %p4262_p13 }
  0x4d   : > { %p4270_p8 = pnand %p4269_p2, %p4263_p0 }
  0x4f   : > { %4273 = shalt.err (!%p4270_p8)
}
  0x50   : > { %4040 = dma.hbm_to_vmem [thread:$0]  (!%p4401_p5), %s5194_s13, 16, %s450_s27, [#allocation11]  }
  0x51   : > { %478 = sbr.rel (%p4391_p3) target bundleno = 4844 (0x12ec), region = 76  ;;  %p5200_p7 = scmp.eq.s32.totalorder (!%p4391_p3), %s4386_s16, 0 }
  0x56   : > { %4279 = dma.done.wait (%p5200_p7), [#allocation3], 16   ;;  %p5201_p6 = pmov %p5200_p7 }
  0x58   : > { %4281 = vsyncadd (%p5201_p6), [#allocation3], 4294967280  ;;  %p5202_p9 = pmov %p5201_p6 }
  0x59   : > { %p5203_p2 = pmov %p5201_p6 }
  0x5a   : > { %4283 = dma.done.wait (%p5202_p9), [#allocation5], 32  }
  0x5b   : > { %4285 = vsyncadd (%p5203_p2), [#allocation5], 4294967264  ;;  %p5204_p10 = pmov %p5203_p2 }
  0x5c   : > { %p5205_p5 = pmov %p5203_p2 }
  0x5d   : > { %4287 = dma.done.wait (%p5204_p10), [#allocation8], 32  }
  0x5e   : > { %4289 = vsyncadd (%p5205_p5), [#allocation8], 4294967264  ;;  %p5206_p3 = pmov %p5203_p2 }
  0x5f   : > { %p5207_p11 = pmov %p5203_p2 }
  0x60   : > { %4291 = dma.done.wait (%p5206_p3), [#allocation11], 16  }
  0x61   : > { %4293 = vsyncadd (%p5207_p11), [#allocation11], 4294967280  ;;  %p549_p12 = scmp.lt.s32.totalorder %s4386_s16, 1  ;;  %v3304_v0 = vld [vmem:[%s5183_s2 + $0x138] sm:$0xff]  ;;  %v3303_v1 = vld [vmem:[%s5183_s2 + $0x130] sm:$0xff]  ;;  %vm583_vm0 = vcmask 523264  }
  0x62   : > { %v575_v2 = vld [vmem:[%s5183_s2 + $0x38] sm:$0xff]  ;;  %3705 = vmatprep.subr.mxu1 %v3304_v0  ;;  %v574_v3 = vld [vmem:[%s5183_s2 + $0x30] sm:$0xff]  ;;  %v3302_v4 = vld [vmem:[%s5183_s2 + $0x128] sm:$0xff]  ;;  %vm849_vm1 = vcmask 130048  }
  0x63   : > { %3686 = vmatprep.subr.mxu0 %v575_v2  ;;  %s5209_s16 = smov (!%p549_p12, %s4386_s16), 1  ;;  %3706 = vmatpush3.msra.mxu1 %v3304_v0  ;;  %v573_v5 = vld [vmem:[%s5183_s2 + $0x28] sm:$0xff]  ;;  %v3301_v6 = vld [vmem:[%s5183_s2 + $0x120] sm:$0xff]  ;;  %v3300_v8 = vld [vmem:[%s5183_s2 + $0x118] sm:$0xff] }
  0x64   : > { %3687 = vmatpush3.msra.mxu0 %v575_v2  ;;  %3707 = vmatprep.subr.mxu1 %v3303_v1  ;;  %v572_v7 = vld [vmem:[%s5183_s2 + $0x20] sm:$0xff]  ;;  %s4519_s25 = sshll.u32 %s5209_s16, 4  ;;  %v571_v9 = vld [vmem:[%s5183_s2 + $0x18] sm:$0xff]  ;;  %v3299_v10 = vld [vmem:[%s5183_s2 + $0x110] sm:$0xff] }
  0x65   : > { %3688 = vmatprep.subr.mxu0 %v574_v3  ;;  %3708 = vmatpush3.msra.mxu1 %v3303_v1  ;;  %v570_v11 = vld [vmem:[%s5183_s2 + $0x10] sm:$0xff]  ;;  %s4537_s23 = scalar_lea.vmem %s5181_s0, %s4519_s25  ;;  %v3298_v12 = vld [vmem:[%s5183_s2 + $0x108] sm:$0xff]  ;;  %v3297_v15 = vld [vmem:[%s5183_s2 + $0x100] sm:$0xff]  ;;  %s558_s28 = scalar_lea.vmem %s5182_s1, %s4519_s25 }
  0x66   : > { %3689 = vmatpush3.msra.mxu0 %v574_v3  ;;  %3709 = vmatprep.subr.mxu1 %v3302_v4  ;;  %v569_v13 = vld [vmem:[%s5183_s2 + $0x8] sm:$0xff]  ;;  %v4546_v14 = vld [vmem:[%s4537_s23] sm:$0xff]  ;;  %v3316_v18 = vld [vmem:[%s5183_s2 + $0x238] sm:$0xff]  ;;  %s563_s15 = scalar_lea.vmem %s5195_s14, %s4519_s25 }
  0x67   : > { %3690 = vmatprep.subr.mxu0 %v573_v5  ;;  %3710 = vmatpush3.msra.mxu1 %v3302_v4  ;;  %v568_v16 = vld [vmem:[%s5183_s2] sm:$0xff]  ;;  %v4557_v17 = vld [vmem:[%s4537_s23 + $0x8] sm:$0xff]  ;;  %v3315_v19 = vld [vmem:[%s5183_s2 + $0x230] sm:$0xff] }
  0x68   : > { %3691 = vmatpush3.msra.mxu0 %v573_v5  ;;  %3711 = vmatprep.subr.mxu1 %v3301_v6  ;;  %v3314_v20 = vld [vmem:[%s5183_s2 + $0x228] sm:$0xff]  ;;  %v3313_v21 = vld [vmem:[%s5183_s2 + $0x220] sm:$0xff]  ;;  %v3312_v22 = vld [vmem:[%s5183_s2 + $0x218] sm:$0xff] }
  0x69   : > { %3692 = vmatprep.subr.mxu0 %v572_v7  ;;  %3712 = vmatpush3.msra.mxu1 %v3301_v6  ;;  %v3311_v23 = vld [vmem:[%s5183_s2 + $0x210] sm:$0xff]  ;;  %v3310_v24 = vld [vmem:[%s5183_s2 + $0x208] sm:$0xff]  ;;  %v3309_v25 = vld [vmem:[%s5183_s2 + $0x200] sm:$0xff] }
  0x6a   : > { %3693 = vmatpush3.msra.mxu0 %v572_v7  ;;  %3713 = vmatprep.subr.mxu1 %v3300_v8  ;;  %v3306_v26 = vld [vmem:[%s5184_s3 + $0x4] ss:$0 sm:$0xff]  ;;  %v3294_v31 = vld [vmem:[%s5184_s3] ss:$0 sm:$0xff]  ;;  %v3318_v36 = vld [vmem:[%s5184_s3 + $0x8] ss:$0 sm:$0xff] }
  0x6b   : > { %3694 = vmatprep.subr.mxu0 %v571_v9  ;;  %3714 = vmatpush3.msra.mxu1 %v3300_v8  ;;  %v4614_v43 = vld [vmem:[%s558_s28] sm:$0xff]  ;;  %v4616_v46 = vld [vmem:[%s558_s28 + $0x8] sm:$0xff]  ;;  %v3346_v61 = vld [vmem:[%s5183_s2 + $0x178] sm:$0xff] }
  0x6c   : > { %3695 = vmatpush3.msra.mxu0 %v571_v9  ;;  %3715 = vmatprep.subr.mxu1 %v3299_v10  ;;  %v3345_v62 = vld [vmem:[%s5183_s2 + $0x170] sm:$0xff]  ;;  %v3344_v63 = vld [vmem:[%s5183_s2 + $0x168] sm:$0xff]  ;;  %v3343_v0 = vld [vmem:[%s5183_s2 + $0x160] sm:$0xff] }
  0x6d   : > { %3696 = vmatprep.subr.mxu0 %v570_v11  ;;  %3716 = vmatpush3.msra.mxu1 %v3299_v10  ;;  %v3342_v1 = vld [vmem:[%s5183_s2 + $0x158] sm:$0xff]  ;;  %v3341_v3 = vld [vmem:[%s5183_s2 + $0x150] sm:$0xff]  ;;  %v3340_v4 = vld [vmem:[%s5183_s2 + $0x148] sm:$0xff] }
  0x6e   : > { %3697 = vmatpush3.msra.mxu0 %v570_v11  ;;  %3717 = vmatprep.subr.mxu1 %v3298_v12  ;;  %v3334_v2 = vld [vmem:[%s5183_s2 + $0x78] sm:$0xff]  ;;  %v3339_v5 = vld [vmem:[%s5183_s2 + $0x140] sm:$0xff] }
  0x6f   : > { %3698 = vmatprep.subr.mxu0 %v569_v13  ;;  %3718 = vmatpush3.msra.mxu1 %v3298_v12  ;;  %v3333_v12 = vld [vmem:[%s5183_s2 + $0x70] sm:$0xff] }
  0x70   : > { %3721 = vmatprep.mubr.msk.f32.mxu1 %vm583_vm0, %v4546_v14  ;;  %3719 = vmatprep.subr.mxu1 %v3297_v15 }
  0x71   : > { %3699 = vmatpush3.msra.mxu0 %v569_v13  ;;  %3720 = vmatpush3.msra.mxu1 %v3297_v15  ;;  %v3332_v13 = vld [vmem:[%s5183_s2 + $0x68] sm:$0xff]  ;;  %v3331_v15 = vld [vmem:[%s5183_s2 + $0x60] sm:$0xff] }
  0x72   : > { %3700 = vmatprep.subr.mxu0 %v568_v16  ;;  %3722 = vmatmul.mubr.msk.f32.vlgmr.msra.gmra.mxu1 %vm583_vm0, %v4557_v17 }
  0x73   : > { %3701 = vmatpush3.msra.mxu0 %v568_v16  ;;  %3702 = vmatprep.mubr.msk.f32.mxu0 %vm583_vm0, %v4546_v14  ;;  %v3330_v16 = vld [vmem:[%s5183_s2 + $0x58] sm:$0xff] }
  0x74   : > { %3724 = vmatprep.subr.mxu0 %v3316_v18  ;;  %3703 = vmatmul.mubr.msk.f32.vlgmr.msra.gmra.mxu0 %vm583_vm0, %v4557_v17 }
  0x75   : > { %3725 = vmatpush3.msra.mxu0 %v3316_v18  ;;  %3740 = vmatprep.mubr.msk.f32.mxu0 %vm583_vm0, %v4546_v14  ;;  %v3329_v18 = vld [vmem:[%s5183_s2 + $0x50] sm:$0xff] }
  0x76   : > { %3726 = vmatprep.subr.mxu0 %v3315_v19 }
  0x77   : > { %3727 = vmatpush3.msra.mxu0 %v3315_v19  ;;  %v3328_v19 = vld [vmem:[%s5183_s2 + $0x48] sm:$0xff] }
  0x78   : > { %3728 = vmatprep.subr.mxu0 %v3314_v20 }
  0x79   : > { %3729 = vmatpush3.msra.mxu0 %v3314_v20  ;;  %v3327_v20 = vld [vmem:[%s5183_s2 + $0x40] sm:$0xff] }
  0x7a   : > { %3730 = vmatprep.subr.mxu0 %v3313_v21 }
  0x7b   : > { %3731 = vmatpush3.msra.mxu0 %v3313_v21  ;;  %v3358_v21 = vld [vmem:[%s5183_s2 + $0x278] sm:$0xff] }
  0x7c   : > { %3732 = vmatprep.subr.mxu0 %v3312_v22 }
  0x7d   : > { %3733 = vmatpush3.msra.mxu0 %v3312_v22  ;;  %v3357_v22 = vld [vmem:[%s5183_s2 + $0x270] sm:$0xff] }
  0x7e   : > { %3734 = vmatprep.subr.mxu0 %v3311_v23 }
  0x7f   : > { %3735 = vmatpush3.msra.mxu0 %v3311_v23  ;;  %v3356_v23 = vld [vmem:[%s5183_s2 + $0x268] sm:$0xff] }
  0x80   : > { %3736 = vmatprep.subr.mxu0 %v3310_v24 }
  0x81   : > { %3737 = vmatpush3.msra.mxu0 %v3310_v24  ;;  %v3355_v24 = vld [vmem:[%s5183_s2 + $0x260] sm:$0xff] }
  0x82   : > { %3738 = vmatprep.subr.mxu0 %v3309_v25 }
  0x83   : > { %3739 = vmatpush3.msra.mxu0 %v3309_v25  ;;  %v3354_v25 = vld [vmem:[%s5183_s2 + $0x258] sm:$0xff] }
  0x84   : > { %3741 = vmatmul.mubr.msk.f32.vlgmr.msra.gmra.mxu0 %vm583_vm0, %v4557_v17 }
 0x132   : > { %v3723_v27 = vpop.f32.mrf.mxu1 }
 0x133   : > { %v754_v28 = vadd.f32 %v3723_v27, %v3306_v26  ;;  %v3352_v27 = vld [vmem:[%s5183_s2 + $0x248] sm:$0xff] }
 0x134   : > { %v748_v29 = vpop.f32.mrf.mxu1  ;;  %v3704_v30 = vpop.f32.mrf.mxu0 }
 0x135   : > { %v749_v32 = vadd.f32 %v3306_v26, %v748_v29  ;;  %3743 = vmatprep.subr.msk.mxu0 %vm849_vm1, %v754_v28  ;;  %v662_v35 = vadd.f32 %v3704_v30, %v3294_v31  ;;  %v3353_v26 = vld [vmem:[%s5183_s2 + $0x250] sm:$0xff]  ;;  %v1045_v29 = vld [vmem:[%s5185_s4 + $0x8] sm:$0xff]  ;;  %v1044_v30 = vld [vmem:[%s5185_s4] sm:$0xff] }
 0x136   : > { %3744 = vmatpush3.xpose.msk.msra.mxu0 %vm849_vm1, %v754_v28  ;;  %v656_v33 = vpop.f32.mrf.mxu0  ;;  %v3351_v28 = vld [vmem:[%s5183_s2 + $0x240] sm:$0xff] }
 0x137   : > { %v657_v34 = vadd.f32 %v3294_v31, %v656_v33  ;;  %3745 = vmatprep.subr.msk.mxu0 %vm849_vm1, %v749_v32  ;;  %v3348_v31 = vld [vmem:[%s5184_s3 + $0x5] ss:$0 sm:$0xff] }
 0x139   : > { %3747 = vmatprep.mubr.msk.f32.mxu0 %vm849_vm1, %v657_v34 }
 0x13a   : > { %3746 = vmatpush3.xpose.msk.msra.mxu0 %vm849_vm1, %v749_v32 }
 0x13b   : > { %3776 = vmatprep.subr.mxu0 %v3346_v61 }
 0x13d   : > { %3748 = vmatmul.mubr.msk.f32.vlgmr.msra.gmra.mxu0 %vm849_vm1, %v662_v35 }
 0x13e   : > { %3792 = vmatprep.mubr.msk.f32.mxu0 %vm583_vm0, %v4546_v14  ;;  %3777 = vmatpush3.msra.mxu0 %v3346_v61 }
 0x13f   : > { %3778 = vmatprep.subr.mxu0 %v3345_v62 }
 0x140   : > { %3779 = vmatpush3.msra.mxu0 %v3345_v62 }
 0x141   : > { %3780 = vmatprep.subr.mxu0 %v3344_v63 }
 0x142   : > { %3781 = vmatpush3.msra.mxu0 %v3344_v63 }
 0x143   : > { %3782 = vmatprep.subr.mxu0 %v3343_v0 }
 0x144   : > { %v3742_v37 = vpop.f32.mrf.mxu0  ;;  %3783 = vmatpush3.msra.mxu0 %v3343_v0 }
 0x145   : > { %v846_v38 = vadd.f32 %v3742_v37, %v3318_v36  ;;  %3784 = vmatprep.subr.mxu0 %v3342_v1 }
 0x146   : > { %v840_v39 = vpop.f32.mrf.mxu0  ;;  %3785 = vmatpush3.msra.mxu0 %v3342_v1 }
 0x147   : > { %v841_v40 = vadd.f32 %v3318_v36, %v840_v39  ;;  %3750 = vmatprep.subr.mxu1 %v846_v38  ;;  %3786 = vmatprep.subr.mxu0 %v3341_v3  ;;  %v3336_v39 = vld [vmem:[%s5184_s3 + $0x1] ss:$0 sm:$0xff] }
 0x148   : > { %3751 = vmatpush3.msra.mxu1 %v846_v38  ;;  %3787 = vmatpush3.msra.mxu0 %v3341_v3 }
 0x149   : > { %3752 = vmatprep.subr.mxu1 %v841_v40  ;;  %3788 = vmatprep.subr.mxu0 %v3340_v4 }
 0x14a   : > { %3753 = vmatpush3.msra.mxu1 %v841_v40  ;;  %3789 = vmatpush3.msra.mxu0 %v3340_v4  ;;  %v3394_v4 = vld [vmem:[%s5183_s2 + $0x1b8] sm:$0xff] }
 0x14b   : > { %3757 = vmatprep.subr.mxu1 %v3334_v2  ;;  %3790 = vmatprep.subr.mxu0 %v3339_v5 }
 0x14c   : > { %3791 = vmatpush3.msra.mxu0 %v3339_v5  ;;  %v3393_v5 = vld [vmem:[%s5183_s2 + $0x1b0] sm:$0xff] }
 0x14d   : > { %3793 = vmatmul.mubr.msk.f32.vlgmr.msra.gmra.mxu0 %vm583_vm0, %v4557_v17 }
 0x1fd   : > { %v3749_v41 = vpop.f32.mrf.mxu0 }
 0x1fe   : > { %v938_v44 = vmul.f32 0.25, %v3749_v41 }
 0x1ff   : > { %v928_v42 = vpop.f32.mrf.mxu0 }
 0x200   : > { %v937_v45 = vmul.f32 0.25, %v928_v42  ;;  %v940_v49 = vadd.f32 %v938_v44, %v4616_v46  ;;  %v3360_v44 = vld [vmem:[%s5184_s3 + $0x9] ss:$0 sm:$0xff] }
 0x202   : > { %v939_v47 = vadd.f32 %v937_v45, %v4614_v43  ;;  %v944_v50 = vsel %vm849_vm1, %v940_v49, -inf }
 0x204   : > { %v941_v48 = vsel %vm849_vm1, %v939_v47, -inf }
 0x205   : > { %942 = vmax.xlane.f32.xlu0 %v941_v48 }
 0x209   : > { %945 = vmax.xlane.f32.xlu0 %v944_v50 }
 0x20d   : > { %v3794_v32 = vpop.f32.mrf.mxu0 }
 0x20e   : > { %v1227_v33 = vadd.f32 %v3794_v32, %v3348_v31 }
 0x20f   : > { %v1221_v34 = vpop.f32.mrf.mxu0 }
 0x210   : > { %3814 = vmatprep.subr.msk.mxu0 %vm849_vm1, %v1227_v33  ;;  %v1222_v35 = vadd.f32 %v3348_v31, %v1221_v34  ;;  %v3375_v31 = vld [vmem:[%s5183_s2 + $0x80] sm:$0xff] }
 0x211   : > { %3815 = vmatpush3.xpose.msk.msra.mxu0 %vm849_vm1, %v1227_v33  ;;  %v3396_v34 = vld [vmem:[%s5184_s3 + $0x6] ss:$0 sm:$0xff] }
 0x212   : > { %3816 = vmatprep.subr.msk.mxu0 %vm849_vm1, %v1222_v35 }
 0x215   : > { %3817 = vmatpush3.xpose.msk.msra.mxu0 %vm849_vm1, %v1222_v35 }
 0x28e   : > { %v943_v51 = vpop.xlane.xlu0 %942 }
 0x28f   : > { %v947_v52 = vsub.f32 %v939_v47, %v943_v51 }
 0x291   : > { %v949_v53 = vmul.f32 1.442695, %v947_v52 }
 0x292   : > { %v946_v54 = vpop.xlane.xlu0 %945 }
 0x293   : > { %4068 = vpow2.f32 %v949_v53  ;;  %v948_v55 = vsub.f32 %v940_v49, %v946_v54 }
 0x295   : > { %v951_v56 = vmul.f32 1.442695, %v948_v55 }
 0x297   : > { %4070 = vpow2.f32 %v951_v56 }
 0x2a0   : > { %v4069_v57 = vpop.eup %4068 }
 0x2a1   : > { %v953_v58 = vsel %vm849_vm1, %v4069_v57, 0.0 }
 0x2a2   : > { %954 = vadd.xlane.f32.xlu1 %v953_v58 }
 0x2a4   : > { %v4071_v59 = vpop.eup %4070 }
 0x2a5   : > { %v956_v60 = vsel %vm849_vm1, %v4071_v59, 0.0 }
 0x2a6   : > { %957 = vadd.xlane.f32.xlu1 %v956_v60 }
 0x32b   : > { %v955_v6 = vpop.xlane.xlu1 %954 }
 0x32c   : > { %4072 = vrcp.f32 %v955_v6  ;;  %v3370_v6 = vld [vmem:[%s5185_s4 + $0x18] sm:$0xff] }
 0x32f   : > { %v958_v7 = vpop.xlane.xlu1 %957 }
 0x330   : > { %4074 = vrcp.f32 %v958_v7  ;;  %v3392_v7 = vld [vmem:[%s5183_s2 + $0x1a8] sm:$0xff] }
 0x339   : > { %v4073_v8 = vpop.eup %4072 }
 0x33a   : > { %v961_v9 = vmul.f32 %v4073_v8, %v4069_v57  ;;  %v3391_v8 = vld [vmem:[%s5183_s2 + $0x1a0] sm:$0xff] }
 0x33c   : > { %3754 = vmatprep.mubr.msk.f32.mxu1 %vm849_vm1, %v961_v9 }
 0x33d   : > { %v4075_v10 = vpop.eup %4074 }
 0x33e   : > { %v962_v11 = vmul.f32 %v4075_v10, %v4071_v59 }
 0x340   : > { %3755 = vmatmul.mubr.msk.f32.vlgmr.msra.gmra.mxu1 %vm849_vm1, %v962_v11 }
 0x341   : > { %3758 = vmatpush3.msra.mxu1 %v3334_v2  ;;  %3773 = vmatprep.mubr.msk.f32.mxu1 %vm583_vm0, %v4546_v14 }
 0x342   : > { %3759 = vmatprep.subr.mxu1 %v3333_v12 }
 0x343   : > { %3760 = vmatpush3.msra.mxu1 %v3333_v12 }
 0x344   : > { %3761 = vmatprep.subr.mxu1 %v3332_v13 }
 0x345   : > { %3762 = vmatpush3.msra.mxu1 %v3332_v13 }
 0x346   : > { %3763 = vmatprep.subr.mxu1 %v3331_v15 }
 0x347   : > { %3764 = vmatpush3.msra.mxu1 %v3331_v15 }
 0x348   : > { %3765 = vmatprep.subr.mxu1 %v3330_v16 }
 0x349   : > { %3766 = vmatpush3.msra.mxu1 %v3330_v16  ;;  %v3369_v16 = vld [vmem:[%s5185_s4 + $0x10] sm:$0xff] }
 0x34a   : > { %3767 = vmatprep.subr.mxu1 %v3329_v18 }
 0x34b   : > { %3768 = vmatpush3.msra.mxu1 %v3329_v18  ;;  %v3390_v18 = vld [vmem:[%s5183_s2 + $0x198] sm:$0xff] }
 0x34c   : > { %3769 = vmatprep.subr.mxu1 %v3328_v19 }
 0x34d   : > { %3770 = vmatpush3.msra.mxu1 %v3328_v19  ;;  %v3382_v19 = vld [vmem:[%s5183_s2 + $0xb8] sm:$0xff] }
 0x34e   : > { %3771 = vmatprep.subr.mxu1 %v3327_v20 }
 0x34f   : > { %3772 = vmatpush3.msra.mxu1 %v3327_v20  ;;  %v3389_v20 = vld [vmem:[%s5183_s2 + $0x190] sm:$0xff] }
 0x350   : > { %3774 = vmatmul.mubr.msk.f32.vlgmr.msra.gmra.mxu1 %vm583_vm0, %v4557_v17  ;;  %3795 = vmatprep.subr.mxu1 %v3358_v21 }
 0x351   : > { %3796 = vmatpush3.msra.mxu1 %v3358_v21  ;;  %3811 = vmatprep.mubr.msk.f32.mxu1 %vm583_vm0, %v4546_v14  ;;  %v3388_v21 = vld [vmem:[%s5183_s2 + $0x188] sm:$0xff] }
 0x352   : > { %3797 = vmatprep.subr.mxu1 %v3357_v22 }
 0x353   : > { %3798 = vmatpush3.msra.mxu1 %v3357_v22  ;;  %v3387_v22 = vld [vmem:[%s5183_s2 + $0x180] sm:$0xff] }
 0x354   : > { %3799 = vmatprep.subr.mxu1 %v3356_v23 }
 0x355   : > { %3800 = vmatpush3.msra.mxu1 %v3356_v23 }
 0x356   : > { %3801 = vmatprep.subr.mxu1 %v3355_v24 }
 0x357   : > { %3802 = vmatpush3.msra.mxu1 %v3355_v24 }
 0x358   : > { %3803 = vmatprep.subr.mxu1 %v3354_v25 }
 0x359   : > { %3804 = vmatpush3.msra.mxu1 %v3354_v25  ;;  %v3381_v25 = vld [vmem:[%s5183_s2 + $0xb0] sm:$0xff] }
 0x35a   : > { %3805 = vmatprep.subr.mxu1 %v3353_v26 }
 0x35b   : > { %3806 = vmatpush3.msra.mxu1 %v3353_v26  ;;  %v3380_v26 = vld [vmem:[%s5183_s2 + $0xa8] sm:$0xff] }
 0x35c   : > { %3807 = vmatprep.subr.mxu1 %v3352_v27 }
 0x35d   : > { %3808 = vmatpush3.msra.mxu1 %v3352_v27  ;;  %v3379_v27 = vld [vmem:[%s5183_s2 + $0xa0] sm:$0xff] }
 0x35e   : > { %3809 = vmatprep.subr.mxu1 %v3351_v28 }
 0x35f   : > { %3810 = vmatpush3.msra.mxu1 %v3351_v28  ;;  %v3378_v28 = vld [vmem:[%s5183_s2 + $0x98] sm:$0xff] }
 0x360   : > { %3812 = vmatmul.mubr.msk.f32.vlgmr.msra.gmra.mxu1 %vm583_vm0, %v4557_v17  ;;  %3835 = vmatprep.subr.mxu1 %v1045_v29 }
 0x361   : > { %3836 = vmatpush3.msra.mxu1 %v1045_v29  ;;  %v3377_v29 = vld [vmem:[%s5183_s2 + $0x90] sm:$0xff] }
 0x362   : > { %3837 = vmatprep.subr.mxu1 %v1044_v30 }
 0x363   : > { %3838 = vmatpush3.msra.mxu1 %v1044_v30  ;;  %v3376_v30 = vld [vmem:[%s5183_s2 + $0x88] sm:$0xff] }
 0x364   : > { %3861 = vmatprep.subr.mxu1 %v3394_v4 }
 0x400   : > { %v3756_v36 = vpop.f32.mrf.mxu1 }
 0x402   : > { %v1035_v37 = vpop.f32.mrf.mxu1 }
 0x403   : > { %3839 = vmatprep.mubr.msk.f32.mxu1 %vm849_vm1, %v1035_v37 }
 0x404   : > { %3840 = vmatmul.mubr.msk.f32.vlgmr.msra.gmra.mxu1 %vm849_vm1, %v3756_v36 }
 0x405   : > { %3877 = vmatprep.mubr.msk.f32.mxu1 %vm583_vm0, %v4546_v14  ;;  %3862 = vmatpush3.msra.mxu1 %v3394_v4 }
 0x406   : > { %3863 = vmatprep.subr.mxu1 %v3393_v5 }
 0x407   : > { %3864 = vmatpush3.msra.mxu1 %v3393_v5 }
 0x408   : > { %3865 = vmatprep.subr.mxu1 %v3392_v7 }
 0x409   : > { %3866 = vmatpush3.msra.mxu1 %v3392_v7 }
 0x40a   : > { %3867 = vmatprep.subr.mxu1 %v3391_v8 }
 0x40b   : > { %3868 = vmatpush3.msra.mxu1 %v3391_v8 }
 0x40c   : > { %3869 = vmatprep.subr.mxu1 %v3390_v18 }
 0x40d   : > { %3870 = vmatpush3.msra.mxu1 %v3390_v18 }
 0x40e   : > { %3871 = vmatprep.subr.mxu1 %v3389_v20 }
 0x40f   : > { %3872 = vmatpush3.msra.mxu1 %v3389_v20 }
 0x410   : > { %v3775_v38 = vpop.f32.mrf.mxu1  ;;  %3873 = vmatprep.subr.mxu1 %v3388_v21 }
 0x411   : > { %v1135_v42 = vadd.f32 %v3775_v38, %v3336_v39  ;;  %3874 = vmatpush3.msra.mxu1 %v3388_v21 }
 0x412   : > { %v1129_v40 = vpop.f32.mrf.mxu1  ;;  %3875 = vmatprep.subr.mxu1 %v3387_v22 }
 0x413   : > { %v1130_v41 = vadd.f32 %v3336_v39, %v1129_v40  ;;  %3876 = vmatpush3.msra.mxu1 %v3387_v22 }
 0x414   : > { %3878 = vmatmul.mubr.msk.f32.vlgmr.msra.gmra.mxu1 %vm583_vm0, %v4557_v17 }
 0x415   : > { %3818 = vmatprep.mubr.msk.f32.mxu0 %vm849_vm1, %v1130_v41 }
 0x416   : > { %3819 = vmatmul.mubr.msk.f32.vlgmr.msra.gmra.mxu0 %vm849_vm1, %v1135_v42  ;;  %v3384_v42 = vld [vmem:[%s5184_s3 + $0x2] ss:$0 sm:$0xff] }
 0x420   : > { %v3813_v45 = vpop.f32.mrf.mxu1 }
 0x421   : > { %v1319_v47 = vadd.f32 %v3813_v45, %v3360_v44 }
 0x422   : > { %v1313_v48 = vpop.f32.mrf.mxu1 }
 0x423   : > { %v1314_v49 = vadd.f32 %v3360_v44, %v1313_v48  ;;  %3821 = vmatprep.subr.mxu0 %v1319_v47  ;;  %v3406_v48 = vld [vmem:[%s5183_s2 + $0x2b8] sm:$0xff] }
 0x424   : > { %3822 = vmatpush3.msra.mxu0 %v1319_v47 }
 0x425   : > { %3823 = vmatprep.subr.mxu0 %v1314_v49 }
 0x426   : > { %3824 = vmatpush3.msra.mxu0 %v1314_v49  ;;  %v3405_v49 = vld [vmem:[%s5183_s2 + $0x2b0] sm:$0xff] }
 0x427   : > { %3828 = vmatprep.subr.mxu0 %v3370_v6 }
 0x4c4   : > { %v4805_v32 = vpop.f32.mrf.mxu1 }
 0x4c6   : > { %v4807_v33 = vpop.f32.mrf.mxu1 }
 0x4d4   : > { %v3879_v35 = vpop.f32.mrf.mxu1 }
 0x4d5   : > { %v1862_v36 = vadd.f32 %v3879_v35, %v3396_v34  ;;  %v3421_v35 = vld [vmem:[%s5183_s2 + $0xc0] sm:$0xff] }
 0x4d6   : > { %v3820_v50 = vpop.f32.mrf.mxu0  ;;  %v1856_v37 = vpop.f32.mrf.mxu1 }
 0x4d7   : > { %v1410_v51 = vmul.f32 0.25, %v3820_v50  ;;  %3899 = vmatprep.subr.msk.mxu1 %vm849_vm1, %v1862_v36  ;;  %v1857_v38 = vadd.f32 %v3396_v34, %v1856_v37  ;;  %v3404_v50 = vld [vmem:[%s5183_s2 + $0x2a8] sm:$0xff] }
 0x4d8   : > { %v1400_v52 = vpop.f32.mrf.mxu0  ;;  %3900 = vmatpush3.xpose.msk.msra.mxu1 %vm849_vm1, %v1862_v36  ;;  %v3422_v34 = vld [vmem:[%s5183_s2 + $0xc8] sm:$0xff] }
 0x4d9   : > { %v1409_v53 = vmul.f32 0.25, %v1400_v52  ;;  %v1412_v54 = vadd.f32 %v1410_v51, %v4616_v46  ;;  %3901 = vmatprep.subr.msk.mxu1 %vm849_vm1, %v1857_v38  ;;  %v3403_v51 = vld [vmem:[%s5183_s2 + $0x2a0] sm:$0xff]  ;;  %v3402_v52 = vld [vmem:[%s5183_s2 + $0x298] sm:$0xff] }
 0x4db   : > { %v1416_v55 = vsel %vm849_vm1, %v1412_v54, -inf  ;;  %v1411_v56 = vadd.f32 %v1409_v53, %v4614_v43  ;;  %v3401_v53 = vld [vmem:[%s5183_s2 + $0x290] sm:$0xff] }
 0x4dc   : > { %1417 = vmax.xlane.f32.xlu1 %v1416_v55  ;;  %3902 = vmatpush3.xpose.msk.msra.mxu1 %vm849_vm1, %v1857_v38  ;;  %v3399_v55 = vld [vmem:[%s5183_s2 + $0x280] sm:$0xff]  ;;  %v3439_v38 = vld [vmem:[%s5183_s2 + $0x1f0] sm:$0xff] }
 0x4dd   : > { %v1413_v57 = vsel %vm849_vm1, %v1411_v56, -inf }
 0x4de   : > { %1414 = vmax.xlane.f32.xlu0 %v1413_v57 }
 0x565   : > { %v1418_v58 = vpop.xlane.xlu1 %1417 }
 0x566   : > { %v1420_v59 = vsub.f32 %v1412_v54, %v1418_v58  ;;  %v3400_v54 = vld [vmem:[%s5183_s2 + $0x288] sm:$0xff] }
 0x567   : > { %v1415_v60 = vpop.xlane.xlu0 %1414 }
 0x568   : > { %v1423_v61 = vmul.f32 1.442695, %v1420_v59  ;;  %v1419_v62 = vsub.f32 %v1411_v56, %v1415_v60 }
 0x56a   : > { %4076 = vpow2.f32 %v1423_v61  ;;  %v1421_v63 = vmul.f32 1.442695, %v1419_v62 }
 0x56c   : > { %4078 = vpow2.f32 %v1421_v63 }
 0x577   : > { %v4077_v0 = vpop.eup %4076 }
 0x578   : > { %v1428_v1 = vsel %vm849_vm1, %v4077_v0, 0.0 }
 0x579   : > { %v4079_v2 = vpop.eup %4078  ;;  %1429 = vadd.xlane.f32.xlu1 %v1428_v1 }
 0x57a   : > { %v1425_v3 = vsel %vm849_vm1, %v4079_v2, 0.0 }
 0x57b   : > { %1426 = vadd.xlane.f32.xlu0 %v1425_v3 }
 0x602   : > { %v1430_v9 = vpop.xlane.xlu1 %1429 }
 0x603   : > { %4080 = vrcp.f32 %v1430_v9 }
 0x604   : > { %v1427_v10 = vpop.xlane.xlu0 %1426 }
 0x605   : > { %4082 = vrcp.f32 %v1427_v10 }
 0x610   : > { %v4081_v11 = vpop.eup %4080 }
 0x611   : > { %v1434_v15 = vmul.f32 %v4081_v11, %v4077_v0  ;;  %v3408_v11 = vld [vmem:[%s5184_s3 + $0xa] ss:$0 sm:$0xff] }
 0x612   : > { %v4083_v12 = vpop.eup %4082 }
 0x613   : > { %v1433_v13 = vmul.f32 %v4083_v12, %v4079_v2 }
 0x615   : > { %3825 = vmatprep.mubr.msk.f32.mxu0 %vm849_vm1, %v1433_v13 }
 0x616   : > { %3826 = vmatmul.mubr.msk.f32.vlgmr.msra.gmra.mxu0 %vm849_vm1, %v1434_v15 }
 0x617   : > { %3829 = vmatpush3.msra.mxu0 %v3370_v6 }
 0x618   : > { %3830 = vmatprep.subr.mxu0 %v3369_v16 }
 0x619   : > { %3831 = vmatpush3.msra.mxu0 %v3369_v16  ;;  %v3418_v16 = vld [vmem:[%s5185_s4 + $0x28] sm:$0xff] }
 0x61a   : > { %3842 = vmatprep.subr.mxu0 %v3382_v19 }
 0x6d6   : > { %v3827_v23 = vpop.f32.mrf.mxu0 }
 0x6d8   : > { %v1507_v24 = vpop.f32.mrf.mxu0 }
 0x6d9   : > { %3832 = vmatprep.mubr.msk.f32.mxu0 %vm849_vm1, %v1507_v24  ;;  %v3417_v24 = vld [vmem:[%s5185_s4 + $0x20] sm:$0xff] }
 0x6da   : > { %3833 = vmatmul.mubr.msk.f32.vlgmr.msra.gmra.mxu0 %vm849_vm1, %v3827_v23 }
 0x6db   : > { %3843 = vmatpush3.msra.mxu0 %v3382_v19  ;;  %3858 = vmatprep.mubr.msk.f32.mxu0 %vm583_vm0, %v4546_v14 }
 0x6dc   : > { %3844 = vmatprep.subr.mxu0 %v3381_v25 }
 0x6dd   : > { %3845 = vmatpush3.msra.mxu0 %v3381_v25  ;;  %v3440_v25 = vld [vmem:[%s5183_s2 + $0x1f8] sm:$0xff] }
 0x6de   : > { %3846 = vmatprep.subr.mxu0 %v3380_v26 }
 0x6df   : > { %3847 = vmatpush3.msra.mxu0 %v3380_v26  ;;  %v3428_v26 = vld [vmem:[%s5183_s2 + $0xf8] sm:$0xff] }
 0x6e0   : > { %3848 = vmatprep.subr.mxu0 %v3379_v27 }
 0x6e1   : > { %3849 = vmatpush3.msra.mxu0 %v3379_v27  ;;  %v3427_v27 = vld [vmem:[%s5183_s2 + $0xf0] sm:$0xff] }
 0x6e2   : > { %3850 = vmatprep.subr.mxu0 %v3378_v28 }
 0x6e3   : > { %3851 = vmatpush3.msra.mxu0 %v3378_v28  ;;  %v3426_v28 = vld [vmem:[%s5183_s2 + $0xe8] sm:$0xff] }
 0x6e4   : > { %3852 = vmatprep.subr.mxu0 %v3377_v29 }
 0x6e5   : > { %3853 = vmatpush3.msra.mxu0 %v3377_v29  ;;  %v3425_v29 = vld [vmem:[%s5183_s2 + $0xe0] sm:$0xff] }
 0x6e6   : > { %3854 = vmatprep.subr.mxu0 %v3376_v30 }
 0x6e7   : > { %3855 = vmatpush3.msra.mxu0 %v3376_v30  ;;  %v3424_v30 = vld [vmem:[%s5183_s2 + $0xd8] sm:$0xff] }
 0x6e8   : > { %3856 = vmatprep.subr.mxu0 %v3375_v31 }
 0x6e9   : > { %3857 = vmatpush3.msra.mxu0 %v3375_v31  ;;  %v3423_v31 = vld [vmem:[%s5183_s2 + $0xd0] sm:$0xff] }
 0x6ea   : > { %3859 = vmatmul.mubr.msk.f32.vlgmr.msra.gmra.mxu0 %vm583_vm0, %v4557_v17  ;;  %3880 = vmatprep.subr.mxu0 %v3406_v48 }
 0x6eb   : > { %3896 = vmatprep.mubr.msk.f32.mxu0 %vm583_vm0, %v4546_v14  ;;  %3881 = vmatpush3.msra.mxu0 %v3406_v48 }
 0x6ec   : > { %3882 = vmatprep.subr.mxu0 %v3405_v49 }
 0x6ed   : > { %3883 = vmatpush3.msra.mxu0 %v3405_v49  ;;  %v3430_v49 = vld [vmem:[%s5184_s3 + $0x3] ss:$0 sm:$0xff] }
 0x6ee   : > { %3884 = vmatprep.subr.mxu0 %v3404_v50 }
 0x6ef   : > { %3885 = vmatpush3.msra.mxu0 %v3404_v50 }
 0x6f0   : > { %3886 = vmatprep.subr.mxu0 %v3403_v51 }
 0x6f1   : > { %3887 = vmatpush3.msra.mxu0 %v3403_v51 }
 0x6f2   : > { %3888 = vmatprep.subr.mxu0 %v3402_v52 }
 0x6f3   : > { %3889 = vmatpush3.msra.mxu0 %v3402_v52 }
 0x6f4   : > { %3890 = vmatprep.subr.mxu0 %v3401_v53 }
 0x6f5   : > { %3891 = vmatpush3.msra.mxu0 %v3401_v53 }
 0x6f6   : > { %3892 = vmatprep.subr.mxu0 %v3400_v54 }
 0x6f7   : > { %3893 = vmatpush3.msra.mxu0 %v3400_v54 }
 0x6f8   : > { %3894 = vmatprep.subr.mxu0 %v3399_v55 }
 0x6f9   : > { %3895 = vmatpush3.msra.mxu0 %v3399_v55 }
 0x6fa   : > { %3897 = vmatmul.mubr.msk.f32.vlgmr.msra.gmra.mxu0 %vm583_vm0, %v4557_v17  ;;  %3920 = vmatprep.subr.mxu0 %v3428_v26 }
 0x6fb   : > { %3936 = vmatprep.mubr.msk.f32.mxu0 %vm583_vm0, %v4546_v14  ;;  %3921 = vmatpush3.msra.mxu0 %v3428_v26  ;;  %v3464_v26 = vld [vmem:[%s5185_s4 + $0x38] sm:$0xff] }
 0x6fc   : > { %3922 = vmatprep.subr.mxu0 %v3427_v27 }
 0x6fd   : > { %3923 = vmatpush3.msra.mxu0 %v3427_v27 }
 0x6fe   : > { %3924 = vmatprep.subr.mxu0 %v3426_v28 }
 0x6ff   : > { %3925 = vmatpush3.msra.mxu0 %v3426_v28 }
 0x700   : > { %3926 = vmatprep.subr.mxu0 %v3425_v29 }
 0x701   : > { %3927 = vmatpush3.msra.mxu0 %v3425_v29 }
 0x702   : > { %3928 = vmatprep.subr.mxu0 %v3424_v30 }
 0x703   : > { %3929 = vmatpush3.msra.mxu0 %v3424_v30 }
 0x704   : > { %3930 = vmatprep.subr.mxu0 %v3423_v31 }
 0x705   : > { %3931 = vmatpush3.msra.mxu0 %v3423_v31 }
 0x706   : > { %3932 = vmatprep.subr.mxu0 %v3422_v34 }
 0x707   : > { %3933 = vmatpush3.msra.mxu0 %v3422_v34 }
 0x708   : > { %3934 = vmatprep.subr.mxu0 %v3421_v35 }
 0x709   : > { %3935 = vmatpush3.msra.mxu0 %v3421_v35  ;;  %v3463_v35 = vld [vmem:[%s5185_s4 + $0x30] sm:$0xff] }
 0x70a   : > { %3937 = vmatmul.mubr.msk.f32.vlgmr.msra.gmra.mxu0 %vm583_vm0, %v4557_v17 }
 0x70b   : > { %3974 = vmatprep.mubr.msk.f32.mxu0 %vm583_vm0, %v4546_v14 }
 0x79a   : > { %v4816_v39 = vpop.f32.mrf.mxu0 }
 0x79b   : > { %v1678_v53 = vadd.f32 %v4805_v32, %v4816_v39  ;;  %v3452_v32 = vld [vmem:[%s5183_s2 + $0x2f8] sm:$0xff]  ;;  %v3450_v39 = vld [vmem:[%s5183_s2 + $0x2e8] sm:$0xff] }
 0x79c   : > { %v4818_v40 = vpop.f32.mrf.mxu0  ;;  %3958 = vmatprep.subr.mxu0 %v3452_v32 }
 0x79d   : > { %v1673_v55 = vadd.f32 %v4807_v33, %v4818_v40  ;;  %v3451_v33 = vld [vmem:[%s5183_s2 + $0x2f0] sm:$0xff]  ;;  %3959 = vmatpush3.msra.mxu0 %v3452_v32  ;;  %v3449_v40 = vld [vmem:[%s5183_s2 + $0x2e0] sm:$0xff]  ;;  %v2864_v32 = vld [vmem:[%s5189_s8 + $0x78] sm:$0xff] }
 0x79e   : > { %3960 = vmatprep.subr.mxu0 %v3451_v33 }
 0x79f   : > { %3961 = vmatpush3.msra.mxu0 %v3451_v33  ;;  %v2863_v33 = vld [vmem:[%s5189_s8 + $0x70] sm:$0xff] }
 0x7a0   : > { %3962 = vmatprep.subr.mxu0 %v3450_v39 }
 0x7a1   : > { %3963 = vmatpush3.msra.mxu0 %v3450_v39  ;;  %v2862_v39 = vld [vmem:[%s5189_s8 + $0x68] sm:$0xff] }
 0x7a2   : > { %3964 = vmatprep.subr.mxu0 %v3449_v40 }
 0x7a3   : > { %3965 = vmatpush3.msra.mxu0 %v3449_v40  ;;  %v2861_v40 = vld [vmem:[%s5189_s8 + $0x60] sm:$0xff] }
 0x7aa   : > { %v3860_v41 = vpop.f32.mrf.mxu0 }
 0x7ab   : > { %v1770_v47 = vadd.f32 %v3860_v41, %v3384_v42  ;;  %v3438_v41 = vld [vmem:[%s5183_s2 + $0x1e8] sm:$0xff] }
 0x7ac   : > { %v1764_v44 = vpop.f32.mrf.mxu0 }
 0x7ad   : > { %v1765_v45 = vadd.f32 %v3384_v42, %v1764_v44  ;;  %v3437_v42 = vld [vmem:[%s5183_s2 + $0x1e0] sm:$0xff]  ;;  %v3436_v44 = vld [vmem:[%s5183_s2 + $0x1d8] sm:$0xff] }
 0x7af   : > { %3903 = vmatprep.mubr.msk.f32.mxu1 %vm849_vm1, %v1765_v45  ;;  %v3435_v45 = vld [vmem:[%s5183_s2 + $0x1d0] sm:$0xff] }
 0x7b0   : > { %3904 = vmatmul.mubr.msk.f32.vlgmr.msra.gmra.mxu1 %vm849_vm1, %v1770_v47  ;;  %v3433_v47 = vld [vmem:[%s5183_s2 + $0x1c0] sm:$0xff] }
 0x7ba   : > { %v3898_v10 = vpop.f32.mrf.mxu0 }
 0x7bb   : > { %v1954_v12 = vadd.f32 %v3898_v10, %v3408_v11 }
 0x7bc   : > { %v1948_v13 = vpop.f32.mrf.mxu0 }
 0x7bd   : > { %v1949_v15 = vadd.f32 %v3408_v11, %v1948_v13  ;;  %3906 = vmatprep.subr.mxu1 %v1954_v12 }
 0x7be   : > { %3907 = vmatpush3.msra.mxu1 %v1954_v12 }
 0x7bf   : > { %3908 = vmatprep.subr.mxu1 %v1949_v15 }
 0x7c0   : > { %3909 = vmatpush3.msra.mxu1 %v1949_v15 }
 0x7c1   : > { %3913 = vmatprep.subr.mxu1 %v3418_v16 }
 0x7ca   : > { %v3938_v48 = vpop.f32.mrf.mxu0 }
 0x7cb   : > { %v2326_v50 = vadd.f32 %v3938_v48, %v3430_v49  ;;  %v4117_v48 = vld [vmem:[%s4537_s23] sm:$0xff] }
 0x7cc   : > { %v2320_v51 = vpop.f32.mrf.mxu0 }
 0x7cd   : > { %v2321_v52 = vadd.f32 %v3430_v49, %v2320_v51 }
 0x870   : > { %v3905_v56 = vpop.f32.mrf.mxu1 }
 0x871   : > { %v2045_v57 = vmul.f32 0.25, %v3905_v56 }
 0x872   : > { %v2035_v58 = vpop.f32.mrf.mxu1 }
 0x873   : > { %v2044_v59 = vmul.f32 0.25, %v2035_v58  ;;  %v2047_v60 = vadd.f32 %v2045_v57, %v4616_v46 }
 0x875   : > { %v2051_v61 = vsel %vm849_vm1, %v2047_v60, -inf  ;;  %v2046_v62 = vadd.f32 %v2044_v59, %v4614_v43  ;;  %v3442_v59 = vld [vmem:[%s5184_s3 + $0x7] ss:$0 sm:$0xff] }
 0x876   : > { %2052 = vmax.xlane.f32.xlu1 %v2051_v61 }
 0x877   : > { %v2048_v63 = vsel %vm849_vm1, %v2046_v62, -inf }
 0x878   : > { %2049 = vmax.xlane.f32.xlu0 %v2048_v63 }
 0x8ff   : > { %v2053_v0 = vpop.xlane.xlu1 %2052 }
 0x900   : > { %v2055_v1 = vsub.f32 %v2047_v60, %v2053_v0  ;;  %v3448_v0 = vld [vmem:[%s5183_s2 + $0x2d8] sm:$0xff] }
 0x901   : > { %v2050_v2 = vpop.xlane.xlu0 %2049  ;;  %3966 = vmatprep.subr.mxu0 %v3448_v0 }
 0x902   : > { %v2058_v3 = vmul.f32 1.442695, %v2055_v1  ;;  %v2054_v4 = vsub.f32 %v2046_v62, %v2050_v2  ;;  %v3447_v1 = vld [vmem:[%s5183_s2 + $0x2d0] sm:$0xff]  ;;  %3967 = vmatpush3.msra.mxu0 %v3448_v0  ;;  %v3446_v2 = vld [vmem:[%s5183_s2 + $0x2c8] sm:$0xff]  ;;  %v2860_v0 = vld [vmem:[%s5189_s8 + $0x58] sm:$0xff] }
 0x903   : > { %3968 = vmatprep.subr.mxu0 %v3447_v1 }
 0x904   : > { %4084 = vpow2.f32 %v2058_v3  ;;  %v2056_v5 = vmul.f32 1.442695, %v2054_v4  ;;  %3969 = vmatpush3.msra.mxu0 %v3447_v1  ;;  %v3445_v3 = vld [vmem:[%s5183_s2 + $0x2c0] sm:$0xff]  ;;  %v2859_v1 = vld [vmem:[%s5189_s8 + $0x50] sm:$0xff] }
 0x905   : > { %3970 = vmatprep.subr.mxu0 %v3446_v2 }
 0x906   : > { %4086 = vpow2.f32 %v2056_v5  ;;  %3971 = vmatpush3.msra.mxu0 %v3446_v2  ;;  %v2858_v2 = vld [vmem:[%s5189_s8 + $0x48] sm:$0xff] }
 0x907   : > { %3972 = vmatprep.subr.mxu0 %v3445_v3 }
 0x908   : > { %3973 = vmatpush3.msra.mxu0 %v3445_v3  ;;  %v2857_v3 = vld [vmem:[%s5189_s8 + $0x40] sm:$0xff] }
 0x909   : > { %3975 = vmatmul.mubr.msk.f32.vlgmr.msra.gmra.mxu0 %vm583_vm0, %v4557_v17  ;;  %2899 = vmatprep.subr.mxu0 %v2864_v32  ;;  %v2980_v32 = vld [vmem:[%s5191_s10] sm:$0xff] }
 0x90a   : > { %2900 = vmatpush1.msra.mxu0 %v2863_v33  ;;  %v2867_v33 = vlaneseq }
 0x90b   : > { %2901 = vmatprep.subr.mxu0 %v2862_v39 }
 0x90c   : > { %2902 = vmatpush1.msra.mxu0 %v2861_v40  ;;  %v2868_v39 = vshrl.u32 %v2867_v33, 7 }
 0x90d   : > { %2903 = vmatprep.subr.mxu0 %v2860_v0  ;;  %v2865_v0 = vld [vmem:[%s5190_s9] sm:$0x3] }
 0x90e   : > { %2904 = vmatpush1.msra.mxu0 %v2859_v1  ;;  %v2869_v40 = vsub.s32 0, %v2868_v39  ;;  %v2873_v1 = vsub.s32 1, %v2868_v39  ;;  %v3473_v39 = vld [vmem:[#allocation9] ss:$0 sm:$0xff] }
 0x90f   : > { %2905 = vmatprep.subr.mxu0 %v2858_v2 }
 0x910   : > { %2906 = vmatpush1.msra.mxu0 %v2857_v3  ;;  %v2870_v2 = vrot.slane %v2865_v0, %v2869_v40  ;;  %v2874_v3 = vrot.slane %v2865_v0, %v2873_v1  ;;  %v3474_v0 = vld [vmem:[#allocation10] ss:$0 sm:$0xff] }
 0x911   : > { %v4085_v6 = vpop.eup %4084 }
 0x912   : > { %v2063_v7 = vsel %vm849_vm1, %v4085_v6, 0.0 }
 0x913   : > { %v4087_v8 = vpop.eup %4086  ;;  %2064 = vadd.xlane.f32.xlu1 %v2063_v7 }
 0x914   : > { %v2060_v9 = vsel %vm849_vm1, %v4087_v8, 0.0 }
 0x915   : > { %2061 = vadd.xlane.f32.xlu0 %v2060_v9 }
 0x99c   : > { %v2065_v18 = vpop.xlane.xlu1 %2064 }
 0x99d   : > { %4088 = vrcp.f32 %v2065_v18 }
 0x99e   : > { %v2062_v19 = vpop.xlane.xlu0 %2061 }
 0x99f   : > { %4090 = vrcp.f32 %v2062_v19 }
 0x9aa   : > { %v4089_v20 = vpop.eup %4088 }
 0x9ab   : > { %v2069_v23 = vmul.f32 %v4089_v20, %v4085_v6 }
 0x9ac   : > { %v4091_v21 = vpop.eup %4090 }
 0x9ad   : > { %v2068_v22 = vmul.f32 %v4091_v21, %v4087_v8 }
 0x9af   : > { %3910 = vmatprep.mubr.msk.f32.mxu1 %vm849_vm1, %v2068_v22  ;;  %v3454_v22 = vld [vmem:[%s5184_s3 + $0xb] ss:$0 sm:$0xff] }
 0x9b0   : > { %3911 = vmatmul.mubr.msk.f32.vlgmr.msra.gmra.mxu1 %vm849_vm1, %v2069_v23 }
 0x9b1   : > { %3914 = vmatpush3.msra.mxu1 %v3418_v16 }
 0x9b2   : > { %3915 = vmatprep.subr.mxu1 %v3417_v24 }
 0x9b3   : > { %3916 = vmatpush3.msra.mxu1 %v3417_v24 }
 0x9b4   : > { %3939 = vmatprep.subr.mxu1 %v3440_v25 }
 0xa70   : > { %v3912_v36 = vpop.f32.mrf.mxu1 }
 0xa72   : > { %v2142_v37 = vpop.f32.mrf.mxu1 }
 0xa73   : > { %3917 = vmatprep.mubr.msk.f32.mxu1 %vm849_vm1, %v2142_v37 }
 0xa74   : > { %3918 = vmatmul.mubr.msk.f32.vlgmr.msra.gmra.mxu1 %vm849_vm1, %v3912_v36 }
 0xa75   : > { %3940 = vmatpush3.msra.mxu1 %v3440_v25  ;;  %3955 = vmatprep.mubr.msk.f32.mxu1 %vm583_vm0, %v4546_v14  ;;  %v3434_v14 = vld [vmem:[%s5183_s2 + $0x1c8] sm:$0xff] }
 0xa76   : > { %3941 = vmatprep.subr.mxu1 %v3439_v38 }
 0xa77   : > { %3942 = vmatpush3.msra.mxu1 %v3439_v38 }
 0xa78   : > { %3943 = vmatprep.subr.mxu1 %v3438_v41 }
 0xa79   : > { %3944 = vmatpush3.msra.mxu1 %v3438_v41 }
 0xa7a   : > { %3945 = vmatprep.subr.mxu1 %v3437_v42 }
 0xa7b   : > { %3946 = vmatpush3.msra.mxu1 %v3437_v42 }
 0xa7c   : > { %3947 = vmatprep.subr.mxu1 %v3436_v44 }
 0xa7d   : > { %3948 = vmatpush3.msra.mxu1 %v3436_v44  ;;  %v3467_v44 = vld [vmem:[#allocation2] ss:$0 sm:$0xff] }
 0xa7e   : > { %3949 = vmatprep.subr.mxu1 %v3435_v45 }
 0xa7f   : > { %3950 = vmatpush3.msra.mxu1 %v3435_v45  ;;  %v4116_v45 = vld [vmem:[%s4537_s23 + $0x8] sm:$0xff] }
 0xa80   : > { %3951 = vmatprep.subr.mxu1 %v3434_v14 }
 0xa81   : > { %3952 = vmatpush3.msra.mxu1 %v3434_v14 }
 0xa82   : > { %3953 = vmatprep.subr.mxu1 %v3433_v47 }
 0xa83   : > { %3954 = vmatpush3.msra.mxu1 %v3433_v47 }
 0xa84   : > { %3956 = vmatmul.mubr.msk.f32.vlgmr.msra.gmra.mxu1 %vm583_vm0, %v4557_v17 }
 0xa85   : > { %3981 = vmatprep.mubr.msk.f32.mxu1 %vm849_vm1, %v2321_v52 }
 0xb34   : > { %v3919_v54 = vpop.f32.mrf.mxu1 }
 0xb35   : > { %v4936_v56 = vadd.f32 %v3919_v54, %v1678_v53 }
 0xb36   : > { %v2226_v57 = vpop.f32.mrf.mxu1 }
 0xb37   : > { %v4938_v58 = vadd.f32 %v2226_v57, %v1673_v55 }
 0xb44   : > { %v3957_v60 = vpop.f32.mrf.mxu1 }
 0xb45   : > { %v2418_v61 = vadd.f32 %v3957_v60, %v3442_v59 }
 0xb46   : > { %v2412_v62 = vpop.f32.mrf.mxu1 }
 0xb47   : > { %v2413_v63 = vadd.f32 %v3442_v59, %v2412_v62  ;;  %3977 = vmatprep.subr.msk.mxu1 %vm849_vm1, %v2418_v61 }
 0xb48   : > { %3978 = vmatpush3.xpose.msk.msra.mxu1 %vm849_vm1, %v2418_v61 }
 0xb49   : > { %3979 = vmatprep.subr.msk.mxu1 %vm849_vm1, %v2413_v63 }
 0xb4c   : > { %3980 = vmatpush3.xpose.msk.msra.mxu1 %vm849_vm1, %v2413_v63 }
 0xb4f   : > { %3982 = vmatmul.mubr.msk.f32.vlgmr.msra.gmra.mxu1 %vm849_vm1, %v2326_v50 }
 0xc0f   : > { %v3983_v4 = vpop.f32.mrf.mxu1 }
 0xc10   : > { %v2601_v5 = vmul.f32 0.25, %v3983_v4  ;;  %v2856_v4 = vld [vmem:[%s5189_s8 + $0x38] sm:$0xff] }
 0xc11   : > { %v2591_v6 = vpop.f32.mrf.mxu1  ;;  %2907 = vmatprep.subr.mxu0 %v2856_v4 }
 0xc12   : > { %v2600_v7 = vmul.f32 0.25, %v2591_v6  ;;  %v2603_v8 = vadd.f32 %v2601_v5, %v4616_v46  ;;  %v2855_v5 = vld [vmem:[%s5189_s8 + $0x30] sm:$0xff]  ;;  %v2854_v6 = vld [vmem:[%s5189_s8 + $0x28] sm:$0xff] }
 0xc13   : > { %2908 = vmatpush1.msra.mxu0 %v2855_v5 }
 0xc14   : > { %v2607_v9 = vsel %vm849_vm1, %v2603_v8, -inf  ;;  %v2602_v10 = vadd.f32 %v2600_v7, %v4614_v43  ;;  %v3976_v43 = vpop.f32.mrf.mxu0  ;;  %2909 = vmatprep.subr.mxu0 %v2854_v6  ;;  %v2853_v7 = vld [vmem:[%s5189_s8 + $0x20] sm:$0xff] }
 0xc15   : > { %2608 = vmax.xlane.f32.xlu1 %v2607_v9  ;;  %v2510_v23 = vadd.f32 %v3976_v43, %v3454_v22  ;;  %v2851_v9 = vld [vmem:[%s5189_s8 + $0x10] sm:$0xff]  ;;  %2910 = vmatpush1.msra.mxu0 %v2853_v7 }
 0xc16   : > { %v2604_v11 = vsel %vm849_vm1, %v2602_v10, -inf  ;;  %v2504_v24 = vpop.f32.mrf.mxu0 }
 0xc17   : > { %2605 = vmax.xlane.f32.xlu0 %v2604_v11  ;;  %v2505_v25 = vadd.f32 %v3454_v22, %v2504_v24  ;;  %3984 = vmatprep.subr.mxu1 %v2510_v23  ;;  %v4304_v11 = vmov 0.0  }
 0xc18   : > { %3985 = vmatpush3.msra.mxu1 %v2510_v23  ;;  %2947 = vmatprep.mubr.f32.mxu0 %v4304_v11 }
 0xc19   : > { %3986 = vmatprep.subr.mxu1 %v2505_v25 }
 0xc1a   : > { %3987 = vmatpush3.msra.mxu1 %v2505_v25 }
 0xc1b   : > { %3991 = vmatprep.subr.mxu1 %v3464_v26 }
 0xc9e   : > { %v2609_v12 = vpop.xlane.xlu1 %2608 }
 0xc9f   : > { %v2611_v13 = vsub.f32 %v2603_v8, %v2609_v12  ;;  %v2852_v8 = vld [vmem:[%s5189_s8 + $0x18] sm:$0xff]  ;;  %v2849_v12 = vld [vmem:[%s5189_s8] sm:$0xff] }
 0xca0   : > { %v2606_v15 = vpop.xlane.xlu0 %2605  ;;  %2911 = vmatprep.subr.mxu0 %v2852_v8 }
 0xca1   : > { %v2614_v16 = vmul.f32 1.442695, %v2611_v13  ;;  %v2610_v18 = vsub.f32 %v2602_v10, %v2606_v15  ;;  %v2850_v10 = vld [vmem:[%s5189_s8 + $0x8] sm:$0xff]  ;;  %2912 = vmatpush1.msra.mxu0 %v2851_v9  ;;  %v3011_v13 = vld [vmem:[%s5191_s10 + $0xf8] sm:$0xff] }
 0xca2   : > { %2913 = vmatprep.subr.mxu0 %v2850_v10  ;;  %v2995_v15 = vld [vmem:[%s5191_s10 + $0x78] sm:$0xff] }
 0xca3   : > { %4092 = vpow2.f32 %v2614_v16  ;;  %v2612_v17 = vmul.f32 1.442695, %v2610_v18  ;;  %2914 = vmatpush1.msra.mxu0 %v2849_v12  ;;  %v3010_v16 = vld [vmem:[%s5191_s10 + $0xf0] sm:$0xff] }
 0xca4   : > { %v2994_v18 = vld [vmem:[%s5191_s10 + $0x70] sm:$0xff] }
 0xca5   : > { %4094 = vpow2.f32 %v2612_v17  ;;  %v3009_v17 = vld [vmem:[%s5191_s10 + $0xe8] sm:$0xff] }
 0xcb0   : > { %v4093_v19 = vpop.eup %4092 }
 0xcb1   : > { %v2619_v20 = vsel %vm849_vm1, %v4093_v19, 0.0 }
 0xcb2   : > { %v4095_v46 = vpop.eup %4094  ;;  %2620 = vadd.xlane.f32.xlu1 %v2619_v20 }
 0xcb3   : > { %v2616_v21 = vsel %vm849_vm1, %v4095_v46, 0.0 }
 0xcb4   : > { %2617 = vadd.xlane.f32.xlu0 %v2616_v21 }
 0xd3b   : > { %v2621_v27 = vpop.xlane.xlu1 %2620 }
 0xd3c   : > { %4096 = vrcp.f32 %v2621_v27 }
 0xd3d   : > { %v2618_v28 = vpop.xlane.xlu0 %2617 }
 0xd3e   : > { %4098 = vrcp.f32 %v2618_v28  ;;  %v3468_v28 = vld [vmem:[#allocation4] ss:$0 sm:$0xff] }
 0xd49   : > { %v4097_v29 = vpop.eup %4096 }
 0xd4a   : > { %v2625_v34 = vmul.f32 %v4097_v29, %v4093_v19  ;;  %v2993_v19 = vld [vmem:[%s5191_s10 + $0x68] sm:$0xff] }
 0xd4b   : > { %v4099_v30 = vpop.eup %4098 }
 0xd4c   : > { %v2624_v31 = vmul.f32 %v4099_v30, %v4095_v46  ;;  %v3469_v30 = vld [vmem:[#allocation6] ss:$0 sm:$0xff] }
 0xd4e   : > { %3988 = vmatprep.mubr.msk.f32.mxu1 %vm849_vm1, %v2624_v31 }
 0xd4f   : > { %3989 = vmatmul.mubr.msk.f32.vlgmr.msra.gmra.mxu1 %vm849_vm1, %v2625_v34 }
 0xd50   : > { %3992 = vmatpush3.msra.mxu1 %v3464_v26 }
 0xd51   : > { %3993 = vmatprep.subr.mxu1 %v3463_v35 }
 0xd52   : > { %3994 = vmatpush3.msra.mxu1 %v3463_v35 }
 0xd53   : > { %3648 = vmatprep.subr.mxu1 %v3011_v13 }
 0xe0f   : > { %v3990_v36 = vpop.f32.mrf.mxu1 }
 0xe11   : > { %v2698_v37 = vpop.f32.mrf.mxu1 }
 0xe12   : > { %3995 = vmatprep.mubr.msk.f32.mxu1 %vm849_vm1, %v2698_v37  ;;  %v2992_v37 = vld [vmem:[%s5191_s10 + $0x60] sm:$0xff] }
 0xe13   : > { %3996 = vmatmul.mubr.msk.f32.vlgmr.msra.gmra.mxu1 %vm849_vm1, %v3990_v36  ;;  %v3008_v36 = vld [vmem:[%s5191_s10 + $0xe0] sm:$0xff] }
 0xe14   : > { %3649 = vmatpush3.msra.mxu1 %v2995_v15 }
 0xe15   : > { %3650 = vmatprep.subr.mxu1 %v3010_v16 }
 0xe16   : > { %3651 = vmatpush3.msra.mxu1 %v2994_v18 }
 0xe17   : > { %3652 = vmatprep.subr.mxu1 %v3009_v17 }
 0xe18   : > { %3653 = vmatpush3.msra.mxu1 %v2993_v19 }
 0xe19   : > { %3654 = vmatprep.subr.mxu1 %v3008_v36 }
 0xe1a   : > { %3655 = vmatpush3.msra.mxu1 %v2992_v37 }
 0xed3   : > { %v3997_v38 = vpop.f32.mrf.mxu1 }
 0xed4   : > { %v2792_v41 = vadd.f32 %v3997_v38, %v4936_v56  ;;  %v3007_v38 = vld [vmem:[%s5191_s10 + $0xd8] sm:$0xff] }
 0xed5   : > { %v2782_v42 = vpop.f32.mrf.mxu1  ;;  %3656 = vmatprep.subr.mxu1 %v3007_v38 }
 0xed6   : > { %v2794_v14 = vadd.f32 %v4116_v45, %v2792_v41  ;;  %v2791_v47 = vadd.f32 %v2782_v42, %v4938_v58  ;;  %v2991_v41 = vld [vmem:[%s5191_s10 + $0x58] sm:$0xff]  ;;  %v3006_v42 = vld [vmem:[%s5191_s10 + $0xd0] sm:$0xff]  ;;  %v3005_v45 = vld [vmem:[%s5191_s10 + $0xc8] sm:$0xff] }
 0xed7   : > { %3657 = vmatpush3.msra.mxu1 %v2991_v41  ;;  %v3472_v41 = vld [vmem:[#allocation7] ss:$0 sm:$0xff] }
 0xed8   : > { %v2793_v49 = vadd.f32 %v4117_v48, %v2791_v47  ;;  %v2803_v50 = vadd.f32 %v3467_v44, %v2794_v14  ;;  %3658 = vmatprep.subr.mxu1 %v3006_v42  ;;  %v2989_v14 = vld [vmem:[%s5191_s10 + $0x48] sm:$0xff]  ;;  %v3004_v47 = vld [vmem:[%s5191_s10 + $0xc0] sm:$0xff] }
 0xed9   : > { %v2988_v48 = vld [vmem:[%s5191_s10 + $0x40] sm:$0xff] }
 0xeda   : > { %v2809_v51 = vsel %vm583_vm0, %v2803_v50, 0.0  ;;  %v2802_v52 = vadd.f32 %v3467_v44, %v2793_v49  ;;  %v2990_v44 = vld [vmem:[%s5191_s10 + $0x50] sm:$0xff]  ;;  %v3003_v49 = vld [vmem:[%s5191_s10 + $0xb8] sm:$0xff] }
 0xedb   : > { %2810 = vadd.xlane.f32.xlu1 %v2809_v51  ;;  %3659 = vmatpush3.msra.mxu1 %v2990_v44  ;;  %v3002_v51 = vld [vmem:[%s5191_s10 + $0xb0] sm:$0xff] }
 0xedc   : > { %v2806_v53 = vsel %vm583_vm0, %v2802_v52, 0.0  ;;  %3660 = vmatprep.subr.mxu1 %v3005_v45 }
 0xedd   : > { %2807 = vadd.xlane.f32.xlu0 %v2806_v53  ;;  %3661 = vmatpush3.msra.mxu1 %v2989_v14  ;;  %v3001_v53 = vld [vmem:[%s5191_s10 + $0xa8] sm:$0xff] }
 0xede   : > { %3662 = vmatprep.subr.mxu1 %v3004_v47 }
 0xedf   : > { %3663 = vmatpush3.msra.mxu1 %v2988_v48 }
 0xee0   : > { %3664 = vmatprep.subr.mxu1 %v3003_v49 }
 0xf64   : > { %v2811_v54 = vpop.xlane.xlu1 %2810 }
 0xf65   : > { %v2814_v55 = vmul.f32 0.015625, %v2811_v54  ;;  %v2985_v54 = vld [vmem:[%s5191_s10 + $0x28] sm:$0xff] }
 0xf66   : > { %v2808_v57 = vpop.xlane.xlu0 %2807 }
 0xf67   : > { %v4999_v56 = vsub.f32 %v2803_v50, %v2814_v55  ;;  %v2813_v59 = vmul.f32 0.015625, %v2808_v57  ;;  %v2987_v50 = vld [vmem:[%s5191_s10 + $0x38] sm:$0xff]  ;;  %v3000_v55 = vld [vmem:[%s5191_s10 + $0xa0] sm:$0xff] }
 0xf68   : > { %3665 = vmatpush3.msra.mxu1 %v2987_v50  ;;  %v2984_v57 = vld [vmem:[%s5191_s10 + $0x20] sm:$0xff] }
 0xf69   : > { %v5001_v60 = vsub.f32 %v2802_v52, %v2813_v59  ;;  %v2818_v58 = vmul.f32 %v4999_v56, %v4999_v56  ;;  %3666 = vmatprep.subr.mxu1 %v3002_v51  ;;  %v2986_v52 = vld [vmem:[%s5191_s10 + $0x30] sm:$0xff]  ;;  %v2983_v59 = vld [vmem:[%s5191_s10 + $0x18] sm:$0xff] }
 0xf6a   : > { %3667 = vmatpush3.msra.mxu1 %v2986_v52 }
 0xf6b   : > { %v2822_v61 = vsel %vm583_vm0, %v2818_v58, 0.0  ;;  %v2817_v62 = vmul.f32 %v5001_v60, %v5001_v60  ;;  %3668 = vmatprep.subr.mxu1 %v3001_v53  ;;  %v2982_v58 = vld [vmem:[%s5191_s10 + $0x10] sm:$0xff] }
 0xf6c   : > { %2823 = vadd.xlane.f32.xlu1 %v2822_v61  ;;  %3669 = vmatpush3.msra.mxu1 %v2985_v54  ;;  %v2997_v61 = vld [vmem:[%s5191_s10 + $0x88] sm:$0xff] }
 0xf6d   : > { %v2819_v63 = vsel %vm583_vm0, %v2817_v62, 0.0  ;;  %3670 = vmatprep.subr.mxu1 %v3000_v55  ;;  %v2981_v62 = vld [vmem:[%s5191_s10 + $0x8] sm:$0xff] }
 0xf6e   : > { %2820 = vadd.xlane.f32.xlu0 %v2819_v63  ;;  %3671 = vmatpush3.msra.mxu1 %v2984_v57  ;;  %v2996_v63 = vld [vmem:[%s5191_s10 + $0x80] sm:$0xff] }
 0xff5   : > { %v2824_v20 = vpop.xlane.xlu1 %2823 }
 0xff6   : > { %v2826_v46 = vmul.f32 0.015625, %v2824_v20 }
 0xff7   : > { %v2821_v21 = vpop.xlane.xlu0 %2820 }
 0xff8   : > { %v2828_v43 = vadd.f32 1e-05, %v2826_v46  ;;  %v2825_v22 = vmul.f32 0.015625, %v2821_v21 }
 0xffa   : > { %4100 = vrsqrt.f32 %v2828_v43  ;;  %v2827_v23 = vadd.f32 1e-05, %v2825_v22 }
 0xffc   : > { %4102 = vrsqrt.f32 %v2827_v23 }
0x1007   : > { %v4101_v24 = vpop.eup %4100 }
0x1008   : > { %v2832_v27 = vmul.f32 %v4101_v24, %v4999_v56  ;;  %v2999_v56 = vld [vmem:[%s5191_s10 + $0x98] sm:$0xff] }
0x1009   : > { %v4103_v25 = vpop.eup %4102  ;;  %3672 = vmatprep.subr.mxu1 %v2999_v56 }
0x100a   : > { %v2831_v26 = vmul.f32 %v4103_v25, %v5001_v60  ;;  %v2840_v34 = vmul.f32 %v3468_v28, %v2832_v27  ;;  %3673 = vmatpush3.msra.mxu1 %v2983_v59  ;;  %v2998_v60 = vld [vmem:[%s5191_s10 + $0x90] sm:$0xff] }
0x100b   : > { %3674 = vmatprep.subr.mxu1 %v2998_v60 }
0x100c   : > { %v2839_v29 = vmul.f32 %v3468_v28, %v2831_v26  ;;  %v5081_v35 = vadd.f32 %v3469_v30, %v2840_v34  ;;  %3675 = vmatpush3.msra.mxu1 %v2982_v58 }
0x100d   : > { %3676 = vmatprep.subr.mxu1 %v2997_v61 }
0x100e   : > { %v5077_v31 = vadd.f32 %v3469_v30, %v2839_v29  ;;  %3677 = vmatpush3.msra.mxu1 %v2981_v62 }
0x100f   : > { %3678 = vmatprep.subr.mxu1 %v2996_v63 }
0x1010   : > { %3470 = vmatmul.mubr.msk.f32.vlgmr.msra.gmra.mxu0 %vm583_vm0, %v5077_v31  ;;  %3679 = vmatpush3.msra.mxu1 %v2980_v32 }
0x1011   : > { %2953 = vmatprep.mubr.f32.mxu0 %v4304_v11 }
0x1014   : > { %3471 = vmatmul.mubr.msk.f32.gmra.mxu0 %vm583_vm0, %v5081_v35 }
0x10d0   : > { %v2949_v4 = vpop.f32.mrf.mxu0 }
0x10d1   : > { %v2950_v5 = vadd.f32 %v2949_v4, %v2870_v2 }
0x10d2   : > { %v2951_v6 = vpop.f32.mrf.mxu0 }
0x10d3   : > { %v2964_v7 = vmul.f32 0.70710677, %v2950_v5  ;;  %v2952_v8 = vadd.f32 %v2951_v6, %v2874_v3  ;;  %v2960_v43 = vmul.f32 0.5, %v2950_v5 }
0x10d4   : > { %v2955_v9 = vpop.f32.mrf.mxu0 }
0x10d5   : > { %4104 = verf.f32 %v2964_v7  ;;  %v2965_v10 = vmul.f32 0.70710677, %v2952_v8  ;;  %v2956_v11 = vadd.f32 %v2955_v9, %v2870_v2  ;;  %v2961_v20 = vmul.f32 0.5, %v2952_v8 }
0x10d6   : > { %v2957_v12 = vpop.f32.mrf.mxu0 }
0x10d7   : > { %4106 = verf.f32 %v2965_v10  ;;  %v2966_v13 = vmul.f32 0.70710677, %v2956_v11  ;;  %v2958_v15 = vadd.f32 %v2957_v12, %v2874_v3  ;;  %v2962_v28 = vmul.f32 0.5, %v2956_v11 }
0x10d9   : > { %4108 = verf.f32 %v2966_v13  ;;  %v2967_v16 = vmul.f32 0.70710677, %v2958_v15  ;;  %v2963_v26 = vmul.f32 0.5, %v2958_v15 }
0x10db   : > { %4110 = verf.f32 %v2967_v16 }
0x10e2   : > { %v4105_v18 = vpop.eup %4104 }
0x10e3   : > { %v2972_v19 = vadd.f32 1.0, %v4105_v18 }
0x10e4   : > { %v4107_v17 = vpop.eup %4106 }
0x10e5   : > { %v2973_v46 = vadd.f32 1.0, %v4107_v17  ;;  %v2976_v24 = vmul.f32 %v2972_v19, %v2960_v43 }
0x10e6   : > { %v4109_v21 = vpop.eup %4108 }
0x10e7   : > { %v2977_v22 = vmul.f32 %v2973_v46, %v2961_v20  ;;  %v2974_v25 = vadd.f32 1.0, %v4109_v21 }
0x10e8   : > { %v4111_v23 = vpop.eup %4110 }
0x10e9   : > { %3076 = vmatprep.mubr.f32.mxu1 %v2977_v22  ;;  %v2975_v27 = vadd.f32 1.0, %v4111_v23  ;;  %v2978_v30 = vmul.f32 %v2974_v25, %v2962_v28 }
0x10ea   : > { %3077 = vmatmul.mubr.f32.vlgmr.msra.gmra.mxu1 %v2976_v24 }
0x10eb   : > { %v2979_v29 = vmul.f32 %v2975_v27, %v2963_v26 }
0x10ed   : > { %3081 = vmatprep.mubr.f32.mxu1 %v2979_v29 }
0x10ee   : > { %3082 = vmatmul.mubr.f32.gmra.mxu1 %v2978_v30 }
0x11aa   : > { %v3680_v34 = vpop.f32.mrf.mxu1 }
0x11ac   : > { %v3681_v36 = vpop.f32.mrf.mxu1 }
0x11ad   : > { %v3682_v37 = vadd.f32 %v3681_v36, %v3680_v34 }
0x11ae   : > { %v3683_v38 = vpop.f32.mrf.mxu1 }
0x11af   : > { %v3087_v42 = vadd.f32 %v3682_v37, %v5077_v31 }
0x11b0   : > { %v3684_v44 = vpop.f32.mrf.mxu1 }
0x11b1   : > { %v3685_v45 = vadd.f32 %v3684_v44, %v3683_v38  ;;  %v3096_v14 = vadd.f32 %v3472_v41, %v3087_v42 }
0x11b3   : > { %v3088_v47 = vadd.f32 %v3685_v45, %v5081_v35  ;;  %v3100_v48 = vsel %vm583_vm0, %v3096_v14, 0.0 }
0x11b4   : > { %3101 = vadd.xlane.f32.xlu0 %v3100_v48 }
0x11b5   : > { %v3097_v49 = vadd.f32 %v3472_v41, %v3088_v47 }
0x11b7   : > { %v3103_v50 = vsel %vm583_vm0, %v3097_v49, 0.0 }
0x11b8   : > { %3104 = vadd.xlane.f32.xlu1 %v3103_v50 }
0x123d   : > { %v3102_v51 = vpop.xlane.xlu0 %3101 }
0x123e   : > { %v3106_v52 = vmul.f32 0.015625, %v3102_v51 }
0x1240   : > { %v3108_v53 = vsub.f32 %v3096_v14, %v3106_v52 }
0x1241   : > { %v3105_v54 = vpop.xlane.xlu1 %3104 }
0x1242   : > { %v3107_v55 = vmul.f32 0.015625, %v3105_v54  ;;  %v3110_v57 = vmul.f32 %v3108_v53, %v3108_v53 }
0x1244   : > { %v3109_v56 = vsub.f32 %v3097_v49, %v3107_v55  ;;  %v3112_v31 = vsel %vm583_vm0, %v3110_v57, 0.0 }
0x1245   : > { %3113 = vadd.xlane.f32.xlu0 %v3112_v31 }
0x1246   : > { %v3111_v59 = vmul.f32 %v3109_v56, %v3109_v56 }
0x1248   : > { %v3115_v35 = vsel %vm583_vm0, %v3111_v59, 0.0 }
0x1249   : > { %3116 = vadd.xlane.f32.xlu1 %v3115_v35 }
0x12ce   : > { %v3114_v60 = vpop.xlane.xlu0 %3113 }
0x12cf   : > { %v3118_v58 = vmul.f32 0.015625, %v3114_v60 }
0x12d1   : > { %v3120_v61 = vadd.f32 1e-05, %v3118_v58 }
0x12d2   : > { %v3117_v62 = vpop.xlane.xlu1 %3116 }
0x12d3   : > { %4112 = vrsqrt.f32 %v3120_v61  ;;  %v3119_v63 = vmul.f32 0.015625, %v3117_v62 }
0x12d5   : > { %v3121_v32 = vadd.f32 1e-05, %v3119_v63 }
0x12d7   : > { %4114 = vrsqrt.f32 %v3121_v32 }
0x12e0   : > { %v4113_v33 = vpop.eup %4112 }
0x12e1   : > { %v3124_v40 = vmul.f32 %v4113_v33, %v3108_v53 }
0x12e3   : > { %v3132_v1 = vmul.f32 %v3473_v39, %v3124_v40 }
0x12e4   : > { %v4115_v2 = vpop.eup %4114 }
0x12e5   : > { %v3140_v3 = vadd.f32 %v3474_v0, %v3132_v1  ;;  %v3125_v4 = vmul.f32 %v4115_v2, %v3109_v56 }
0x12e7   : > { %3142 = vst.msk [vmem:[%s563_s15] sm:$0xff] %vm583_vm0, %v3140_v3  ;;  %v3133_v5 = vmul.f32 %v3473_v39, %v3125_v4 }
0x12e9   : > { %v3141_v6 = vadd.f32 %v3474_v0, %v3133_v5 }
0x12eb   : > { %3143 = vst.msk [vmem:[%s563_s15 + $0x8] sm:$0xff] %vm583_vm0, %v3141_v6 }
0x12ec PF: > { %s28_s29 = sadd.s32 1, %s4296_s29  }
0x12ed   : > { %p25_p13 = scmp.ge.s32.totalorder %s28_s29, 4  }
0x12ef   :  { %27 = sbr.rel (!%p25_p13) target bundleno = 4 (0x4), region = 159 }
0x12f4   :  { %3165 = vsyncpa [#allocation3], 1 }
0x12f5   :  { %3167 = vsyncpa [#allocation3 + $0x1], 1 }
0x12f6   :  { %3168 = vsyncpa [#allocation5], 1 }
0x12f7   :  { %3169 = vsyncpa [#allocation8], 1 }
0x12f8   :  { %3170 = vsyncpa [#allocation11], 1 }

// kernel: vtn_forward.17
= control target key start
LH: loop header
LB: loop body
LE: loop exit
PB: predicated region body
PF: predicated region fallthrough
CT: control target
= control target key end

     0   :  { %vm33_vm0 = vcmask 523264   ;;  %s637_s0 = inlined_call_operand.vmem [shape: f32[32,64], index: 0, kind: input, shape index: {}]   ;;  %s638_s1 = inlined_call_operand.vmem [shape: f32[1,64], index: 1, kind: input, shape index: {}]   ;;  %s639_s2 = inlined_call_operand.vmem [shape: f32[1,64], index: 2, kind: input, shape index: {}]   ;;  %s640_s3 = inlined_call_operand.vmem [shape: f32[64,64], index: 3, kind: input, shape index: {}]   ;;  %s641_s4 = inlined_call_operand.vmem [shape: f32[1,64], index: 4, kind: input, shape index: {}]   ;;  %s642_s5 = inlined_call_operand.vmem [shape: f32[64,16], index: 5, kind: input, shape index: {}]   ;;  %s643_s6 = inlined_call_operand.vmem [shape: f32[1,16], index: 6, kind: input, shape index: {}]   ;;  %s644_s7 = inlined_call_operand.hbm [shape: f32[32,16], index: 7, kind: output, shape index: {}]  }
   0x1   :  { %v27_v0 = vld [vmem:[%s637_s0] sm:$0xff]  ;;  %v29_v1 = vld [vmem:[%s637_s0 + $0x10] sm:$0xff]  ;;  %v28_v2 = vld [vmem:[%s637_s0 + $0x8] sm:$0xff] }
   0x2   :  { %v34_v3 = vsel %vm33_vm0, %v27_v0, 0.0  ;;  %v40_v4 = vsel %vm33_vm0, %v29_v1, 0.0  ;;  %v30_v5 = vld [vmem:[%s637_s0 + $0x18] sm:$0xff] }
   0x3   :  { %12 = vsyncpa [#allocation3], 0  ;;  %35 = vadd.xlane.f32.xlu0 %v34_v3  ;;  %41 = vadd.xlane.f32.xlu1 %v40_v4  ;;  %v37_v6 = vsel %vm33_vm0, %v28_v2, 0.0  ;;  %v43_v7 = vsel %vm33_vm0, %v30_v5, 0.0  ;;  %v114_v28 = vld [vmem:[%s640_s3 + $0x38] sm:$0xff]  ;;  %v113_v29 = vld [vmem:[%s640_s3 + $0x30] sm:$0xff] }
   0x4   :  { %408 = vmatprep.subr.mxu0 %v114_v28  ;;  %v112_v30 = vld [vmem:[%s640_s3 + $0x28] sm:$0xff]  ;;  %v111_v31 = vld [vmem:[%s640_s3 + $0x20] sm:$0xff]  ;;  %v110_v32 = vld [vmem:[%s640_s3 + $0x18] sm:$0xff]  ;;  %vm351_vm1 = vcmask 130048   ;;  %s493_s19 = smov [#allocation2]  }
   0x5   :  { %409 = vmatpush3.msra.mxu0 %v114_v28  ;;  %v109_v33 = vld [vmem:[%s640_s3 + $0x10] sm:$0xff]  ;;  %v108_v34 = vld [vmem:[%s640_s3 + $0x8] sm:$0xff]  ;;  %v107_v35 = vld [vmem:[%s640_s3] sm:$0xff]  ;;  %s361_s20 = sshll.u32 %s493_s19, 4  ;;  %s362_s20 = int_to_ptr.vmem [resolvable:$true] %s361_s20 }
   0x6   :  { %410 = vmatprep.subr.mxu0 %v113_v29  ;;  %v372_v49 = vld [vmem:[%s638_s1] ss:$0 sm:$0xff]  ;;  %v245_v3 = vld [vmem:[%s642_s5 + $0x30] sm:$0xff]  ;;  %v244_v4 = vld [vmem:[%s642_s5 + $0x28] sm:$0xff]  ;;  %s471_s21 = scalar_lea.vmem %s362_s20, 512  ;;  %p476_p1 = scmp.lt.s32.totalorder %s362_s20, %s362_s20 }
   0x7   :  { %38 = vadd.xlane.f32.xlu0 %v37_v6  ;;  %44 = vadd.xlane.f32.xlu1 %v43_v7  ;;  %v373_v51 = vld [vmem:[%s639_s2] ss:$0 sm:$0xff]  ;;  %v242_v6 = vld [vmem:[%s642_s5 + $0x18] sm:$0xff]  ;;  %v241_v7 = vld [vmem:[%s642_s5 + $0x10] sm:$0xff]  ;;  %p472_p0 = scmp.ne.s32.totalorder %s362_s20, %s471_s21  ;;  %p477_p2 = scmp.lt.s32.totalorder %s471_s21, %s471_s21 }
   0x8   :  { %411 = vmatpush3.msra.mxu0 %v113_v29 }
   0x9   :  { %412 = vmatprep.subr.mxu0 %v112_v30  ;;  %p478_p3 = por %p477_p2, %p476_p1 }
   0xa   :  { %413 = vmatpush3.msra.mxu0 %v112_v30 }
   0xb   :  { %414 = vmatprep.subr.mxu0 %v111_v31  ;;  %p479_p4 = pnand %p478_p3, %p472_p0 }
   0xc   :  { %415 = vmatpush3.msra.mxu0 %v111_v31 }
   0xd   :  { %416 = vmatprep.subr.mxu0 %v110_v32 }
   0xe   :  { %417 = vmatpush3.msra.mxu0 %v110_v32 }
   0xf   :  { %418 = vmatprep.subr.mxu0 %v109_v33 }
  0x10   :  { %419 = vmatpush3.msra.mxu0 %v109_v33 }
  0x11   :  { %420 = vmatprep.subr.mxu0 %v108_v34 }
  0x12   :  { %421 = vmatpush3.msra.mxu0 %v108_v34 }
  0x13   :  { %422 = vmatprep.subr.mxu0 %v107_v35 }
  0x14   :  { %423 = vmatpush3.msra.mxu0 %v107_v35 }
  0x8c   :  { %v36_v8 = vpop.xlane.xlu0 %35  ;;  %v42_v9 = vpop.xlane.xlu1 %41 }
  0x8d   :  { %v47_v10 = vmul.f32 0.015625, %v36_v8  ;;  %v49_v11 = vmul.f32 0.015625, %v42_v9  ;;  %v240_v8 = vld [vmem:[%s642_s5 + $0x8] sm:$0xff]  ;;  %v239_v9 = vld [vmem:[%s642_s5] sm:$0xff] }
  0x8f   :  { %v51_v12 = vsub.f32 %v27_v0, %v47_v10  ;;  %v552_v13 = vsub.f32 %v29_v1, %v49_v11  ;;  %v374_v10 = vld [vmem:[%s641_s4] ss:$0 sm:$0xff] }
  0x90   :  { %v39_v14 = vpop.xlane.xlu0 %38  ;;  %v45_v15 = vpop.xlane.xlu1 %44 }
  0x91   :  { %v48_v16 = vmul.f32 0.015625, %v39_v14  ;;  %v50_v17 = vmul.f32 0.015625, %v45_v15  ;;  %v55_v18 = vmul.f32 %v51_v12, %v51_v12  ;;  %v57_v19 = vmul.f32 %v552_v13, %v552_v13 }
  0x93   :  { %v52_v20 = vsub.f32 %v28_v2, %v48_v16  ;;  %v556_v21 = vsub.f32 %v30_v5, %v50_v17  ;;  %v59_v22 = vsel %vm33_vm0, %v55_v18, 0.0  ;;  %v65_v23 = vsel %vm33_vm0, %v57_v19, 0.0  ;;  %v246_v2 = vld [vmem:[%s642_s5 + $0x38] sm:$0xff]  ;;  %v243_v5 = vld [vmem:[%s642_s5 + $0x20] sm:$0xff] }
  0x94   :  { %60 = vadd.xlane.f32.xlu0 %v59_v22  ;;  %430 = vmatprep.subr.mxu1 %v246_v2 }
  0x95   :  { %v56_v24 = vmul.f32 %v52_v20, %v52_v20  ;;  %v58_v25 = vmul.f32 %v556_v21, %v556_v21  ;;  %431 = vmatpush3.msra.mxu1 %v246_v2 }
  0x96   :  { %432 = vmatprep.subr.mxu1 %v245_v3 }
  0x97   :  { %v62_v26 = vsel %vm33_vm0, %v56_v24, 0.0  ;;  %v68_v27 = vsel %vm33_vm0, %v58_v25, 0.0  ;;  %433 = vmatpush3.msra.mxu1 %v245_v3 }
  0x98   :  { %66 = vadd.xlane.f32.xlu0 %v65_v23  ;;  %63 = vadd.xlane.f32.xlu1 %v62_v26 }
  0x99   :  { %434 = vmatprep.subr.mxu1 %v244_v4 }
  0x9a   :  { %435 = vmatpush3.msra.mxu1 %v244_v4 }
  0x9b   :  { %436 = vmatprep.subr.mxu1 %v243_v5 }
  0x9c   :  { %69 = vadd.xlane.f32.xlu1 %v68_v27  ;;  %437 = vmatpush3.msra.mxu1 %v243_v5 }
  0x9d   :  { %438 = vmatprep.subr.mxu1 %v242_v6 }
  0x9e   :  { %439 = vmatpush3.msra.mxu1 %v242_v6 }
  0x9f   :  { %440 = vmatprep.subr.mxu1 %v241_v7 }
  0xa0   :  { %441 = vmatpush3.msra.mxu1 %v241_v7 }
  0xa1   :  { %442 = vmatprep.subr.mxu1 %v240_v8 }
  0xa2   :  { %443 = vmatpush3.msra.mxu1 %v240_v8 }
  0xa3   :  { %444 = vmatprep.subr.mxu1 %v239_v9 }
  0xa4   :  { %445 = vmatpush3.msra.mxu1 %v239_v9 }
 0x11d   :  { %v61_v36 = vpop.xlane.xlu0 %60 }
 0x11e   :  { %v71_v37 = vmul.f32 0.015625, %v61_v36 }
 0x120   :  { %v75_v38 = vadd.f32 1e-05, %v71_v37 }
 0x121   :  { %v64_v39 = vpop.xlane.xlu1 %63  ;;  %v67_v40 = vpop.xlane.xlu0 %66 }
 0x122   :  { %455 = vrsqrt.f32 %v75_v38  ;;  %v72_v41 = vmul.f32 0.015625, %v64_v39  ;;  %v73_v42 = vmul.f32 0.015625, %v67_v40  ;;  %v379_v39 = vld [vmem:[%s643_s6] ss:$0 sm:$0xff] }
 0x124   :  { %v76_v43 = vadd.f32 1e-05, %v72_v41  ;;  %v77_v44 = vadd.f32 1e-05, %v73_v42 }
 0x125   :  { %v70_v45 = vpop.xlane.xlu1 %69 }
 0x126   :  { %457 = vrsqrt.f32 %v76_v43  ;;  %v74_v46 = vmul.f32 0.015625, %v70_v45 }
 0x127   :  { %459 = vrsqrt.f32 %v77_v44 }
 0x128   :  { %v78_v47 = vadd.f32 1e-05, %v74_v46 }
 0x12a   :  { %461 = vrsqrt.f32 %v78_v47 }
 0x12f   :  { %v456_v48 = vpop.eup %455 }
 0x130   :  { %v83_v50 = vmul.f32 %v456_v48, %v51_v12 }
 0x132   :  { %v93_v52 = vmul.f32 %v372_v49, %v83_v50 }
 0x133   :  { %v458_v53 = vpop.eup %457 }
 0x134   :  { %v460_v54 = vpop.eup %459  ;;  %v103_v55 = vadd.f32 %v373_v51, %v93_v52  ;;  %v84_v56 = vmul.f32 %v458_v53, %v52_v20 }
 0x135   :  { %v85_v57 = vmul.f32 %v460_v54, %v552_v13 }
 0x136   :  { %424 = vmatprep.mubr.msk.f32.mxu0 %vm33_vm0, %v103_v55  ;;  %v94_v58 = vmul.f32 %v372_v49, %v84_v56 }
 0x137   :  { %v462_v59 = vpop.eup %461  ;;  %v95_v60 = vmul.f32 %v372_v49, %v85_v57 }
 0x138   :  { %v104_v61 = vadd.f32 %v373_v51, %v94_v58  ;;  %v86_v62 = vmul.f32 %v462_v59, %v556_v21 }
 0x139   :  { %v105_v63 = vadd.f32 %v373_v51, %v95_v60 }
 0x13a   :  { %425 = vmatmul.mubr.msk.f32.vlgmr.msra.gmra.mxu0 %vm33_vm0, %v104_v61  ;;  %v96_v0 = vmul.f32 %v372_v49, %v86_v62 }
 0x13b   :  { %427 = vmatprep.mubr.msk.f32.mxu0 %vm33_vm0, %v105_v63 }
 0x13c   :  { %v106_v1 = vadd.f32 %v373_v51, %v96_v0 }
 0x13e   :  { %428 = vmatmul.mubr.msk.f32.gmra.mxu0 %vm33_vm0, %v106_v1 }
 0x1fa   :  { %v426_v11 = vpop.f32.mrf.mxu0 }
 0x1fb   :  { %v206_v12 = vadd.f32 %v426_v11, %v374_v10 }
 0x1fc   :  { %v200_v13 = vpop.f32.mrf.mxu0 }
 0x1fd   :  { %v224_v14 = vmul.f32 0.70710677, %v206_v12  ;;  %v201_v15 = vadd.f32 %v374_v10, %v200_v13  ;;  %v220_v29 = vmul.f32 0.5, %v206_v12 }
 0x1fe   :  { %v429_v16 = vpop.f32.mrf.mxu0 }
 0x1ff   :  { %463 = verf.f32 %v224_v14  ;;  %v223_v17 = vmul.f32 0.70710677, %v201_v15  ;;  %v216_v18 = vadd.f32 %v429_v16, %v374_v10  ;;  %v219_v26 = vmul.f32 0.5, %v201_v15 }
 0x200   :  { %v210_v19 = vpop.f32.mrf.mxu0 }
 0x201   :  { %465 = verf.f32 %v223_v17  ;;  %v226_v20 = vmul.f32 0.70710677, %v216_v18  ;;  %v211_v21 = vadd.f32 %v374_v10, %v210_v19  ;;  %v222_v36 = vmul.f32 0.5, %v216_v18 }
 0x203   :  { %467 = verf.f32 %v226_v20  ;;  %v225_v22 = vmul.f32 0.70710677, %v211_v21  ;;  %v221_v34 = vmul.f32 0.5, %v211_v21 }
 0x205   :  { %469 = verf.f32 %v225_v22 }
 0x20c   :  { %v464_v23 = vpop.eup %463 }
 0x20d   :  { %v232_v25 = vadd.f32 1.0, %v464_v23 }
 0x20e   :  { %v466_v24 = vpop.eup %465 }
 0x20f   :  { %v231_v27 = vadd.f32 1.0, %v466_v24  ;;  %v236_v32 = vmul.f32 %v232_v25, %v220_v29 }
 0x210   :  { %v468_v28 = vpop.eup %467 }
 0x211   :  { %v235_v30 = vmul.f32 %v231_v27, %v219_v26  ;;  %v234_v33 = vadd.f32 1.0, %v468_v28 }
 0x212   :  { %v470_v31 = vpop.eup %469 }
 0x213   :  { %v233_v35 = vadd.f32 1.0, %v470_v31  ;;  %446 = vmatprep.mubr.msk.f32.mxu1 %vm33_vm0, %v235_v30  ;;  %v238_v38 = vmul.f32 %v234_v33, %v222_v36 }
 0x214   :  { %447 = vmatmul.mubr.msk.f32.vlgmr.msra.gmra.mxu1 %vm33_vm0, %v236_v32 }
 0x215   :  { %v237_v37 = vmul.f32 %v233_v35, %v221_v34 }
 0x217   :  { %449 = vmatprep.mubr.msk.f32.mxu1 %vm33_vm0, %v237_v37 }
 0x218   :  { %450 = vmatmul.mubr.msk.f32.gmra.mxu1 %vm33_vm0, %v238_v38 }
 0x2d4   :  { %v448_v40 = vpop.f32.mrf.mxu1 }
 0x2d5   :  { %v338_v41 = vadd.f32 %v448_v40, %v379_v39 }
 0x2d6   :  { %v332_v42 = vpop.f32.mrf.mxu1 }
 0x2d7   :  { %353 = vst.msk [vmem:[#allocation2 + $0x8] sm:$0xff] %vm351_vm1, %v338_v41  ;;  %v333_v43 = vadd.f32 %v379_v39, %v332_v42 }
 0x2d8   :  { %v451_v44 = vpop.f32.mrf.mxu1 }
 0x2d9   :  { %352 = vst.msk [vmem:[#allocation2] sm:$0xff] %vm351_vm1, %v333_v43  ;;  %v348_v45 = vadd.f32 %v451_v44, %v379_v39 }
 0x2da   :  { %v342_v46 = vpop.f32.mrf.mxu1 }
 0x2db   :  { %355 = vst.msk [vmem:[#allocation2 + $0x18] sm:$0xff] %vm351_vm1, %v348_v45  ;;  %v343_v47 = vadd.f32 %v379_v39, %v342_v46 }
 0x2dd   :  { %354 = vst.msk [vmem:[#allocation2 + $0x10] sm:$0xff] %vm351_vm1, %v343_v47 }
 0x2de   :  { %482 = shalt.err (!%p479_p4)
}
 0x2df   :  { %s494_s6 = smov 128   ;;  %s495_s22 = smov 8  }
 0x2e0   :  { %367 = dma.vmem_to_hbm [thread:$0]  %s362_s20, 512, %s644_s7, [#allocation3], %s494_s6, %s494_s6, %s495_s22  }
 0x2e1   :  { %491 = dma.done.wait [#allocation3], 512  }
 0x2e2   :  { %492 = vsyncadd [#allocation3], 4294966784 }
 0x2e3   :  { %371 = vsyncpa [#allocation3], 1 }

</bundles_post_ra>
